<compile_context>
chip_gen: v7x
topology: tpu7x:2x2x1
jax: 0.10.0
libtpu: 0.0.40
codegen_flags: <defaults>
</compile_context>

<pallas_src>
import functools
import math

import jax
import jax.numpy as jnp
from jax.experimental import pallas as pl
from jax.experimental.pallas import tpu as pltpu


# ----------------------------------------------------------------------------
# In-kernel math helpers (operate on loaded jnp values, f32 epilogues)
# ----------------------------------------------------------------------------

def _layernorm(x, g, b, eps=1e-5):
    mu = jnp.mean(x, axis=-1, keepdims=True)
    xc = x - mu
    var = jnp.mean(xc * xc, axis=-1, keepdims=True)
    return xc * jax.lax.rsqrt(var + eps) * g + b


def _mha(q, k, v, wo, nhead):
    """Multi-head attention for ONE batch element + output projection (no bias).

    q: (Lq, d) f32, k/v: (Lk, d) f32, wo: (d, d) bf16.  Returns (Lq, d) f32.
    Heads are dh-wide column slices; W_O is applied per head and accumulated, which
    recombines the heads without any concatenate / transpose.
    """
    lq, d = q.shape
    dh = d // nhead
    scale = 1.0 / math.sqrt(dh)
    out = jnp.zeros((lq, d), jnp.float32)
    for h in range(nhead):                                 # unrolled, tiny matmuls
        sl = slice(h * dh, (h + 1) * dh)
        qh, kh, vh = q[:, sl], k[:, sl], v[:, sl]
        s = jax.lax.dot_general(qh, kh, (((1,), (1,)), ((), ())),
                                preferred_element_type=jnp.float32) * scale
        m = jnp.max(s, axis=-1, keepdims=True)
        p = jnp.exp(s - m)
        denom = jnp.sum(p, axis=-1, keepdims=True)
        oh = jnp.dot(p, vh, preferred_element_type=jnp.float32)
        oh = oh * pl.reciprocal(denom, approx=True)        # EUP; row-scale after PV
        out = out + jnp.dot(oh.astype(wo.dtype), wo[sl, :],
                            preferred_element_type=jnp.float32)
    return out


def _ffn(x, w1, b1, w2, b2):
    """relu(x @ w1 + b1) @ w2 + b2; bf16 MXU operands, f32 accumulation, hidden stays in VMEM."""
    h = jnp.dot(x.astype(w1.dtype), w1, preferred_element_type=jnp.float32) + b1
    h = jnp.maximum(h, 0.0)
    return jnp.dot(h.astype(w2.dtype), w2, preferred_element_type=jnp.float32) + b2


# ----------------------------------------------------------------------------
# Fused encoder / decoder kernels (grid = layers; activations resident in VMEM)
# ----------------------------------------------------------------------------

def _encoder_kernel(src_ref, in_w_ref, in_b_ref,
                    qkv_w_ref, qkv_b_ref, wo_ref, bo_ref, n1g_ref, n1b_ref,
                    ffw1_ref, ffb1_ref, ffw2_ref, ffb2_ref, n2g_ref, n2b_ref,
                    fng_ref, fnb_ref,
                    mem_ref, *, nhead):
    layer = pl.program_id(0)

    @pl.when(layer == 0)
    def _():
        # input_linear with K=1 == pure VPU broadcast multiply-add (no degenerate matmul).
        mem_ref[...] = src_ref[...] * in_w_ref[...] + in_b_ref[...]

    qkv_w, qkv_b = qkv_w_ref[0], qkv_b_ref[0]
    wo, bo = wo_ref[0], bo_ref[0]
    n1g, n1b = n1g_ref[0], n1b_ref[0]
    ffw1, ffb1 = ffw1_ref[0], ffb1_ref[0]
    ffw2, ffb2 = ffw2_ref[0], ffb2_ref[0]
    n2g, n2b = n2g_ref[0], n2b_ref[0]

    d = mem_ref.shape[-1]
    for n in range(mem_ref.shape[0]):                      # unrolled over batch
        x = mem_ref[n]                                     # (S, d) f32, VMEM-resident
        qkv = jnp.dot(x.astype(qkv_w.dtype), qkv_w,
                      preferred_element_type=jnp.float32) + qkv_b
        sa = _mha(qkv[:, :d], qkv[:, d:2 * d], qkv[:, 2 * d:], wo, nhead) + bo
        x = _layernorm(x + sa, n1g, n1b)                   # post-norm, residual fused
        x = _layernorm(x + _ffn(x, ffw1, ffb1, ffw2, ffb2), n2g, n2b)
        mem_ref[n] = x

    @pl.when(layer == pl.num_programs(0) - 1)
    def _():
        # final encoder LayerNorm folded into the last grid step
        mem_ref[...] = _layernorm(mem_ref[...], fng_ref[...], fnb_ref[...])


def _decoder_kernel(tgt_ref, in_w_ref, in_b_ref, mem_ref,
                    sqkv_w_ref, sqkv_b_ref, swo_ref, sbo_ref, n1g_ref, n1b_ref,
                    cq_w_ref, cq_b_ref, ckv_w_ref, ckv_b_ref, cwo_ref, cbo_ref,
                    n2g_ref, n2b_ref,
                    ffw1_ref, ffb1_ref, ffw2_ref, ffb2_ref, n3g_ref, n3b_ref,
                    fng_ref, fnb_ref, out_w_ref, out_b_ref,
                    y_ref, state_ref, *, nhead):
    layer = pl.program_id(0)

    @pl.when(layer == 0)
    def _():
        state_ref[...] = tgt_ref[...] * in_w_ref[...] + in_b_ref[...]

    sqkv_w, sqkv_b = sqkv_w_ref[0], sqkv_b_ref[0]
    swo, sbo = swo_ref[0], sbo_ref[0]
    n1g, n1b = n1g_ref[0], n1b_ref[0]
    cq_w, cq_b = cq_w_ref[0], cq_b_ref[0]
    ckv_w, ckv_b = ckv_w_ref[0], ckv_b_ref[0]
    cwo, cbo = cwo_ref[0], cbo_ref[0]
    n2g, n2b = n2g_ref[0], n2b_ref[0]
    ffw1, ffb1 = ffw1_ref[0], ffb1_ref[0]
    ffw2, ffb2 = ffw2_ref[0], ffb2_ref[0]
    n3g, n3b = n3g_ref[0], n3b_ref[0]

    d = state_ref.shape[-1]
    for n in range(state_ref.shape[0]):                    # unrolled over batch
        x = state_ref[n]                                   # (T, d) f32 VMEM scratch
        mem_n = mem_ref[n]                                 # (S, d) encoder memory
        # self-attention (no tgt causal mask -- matches the original module's forward)
        qkv = jnp.dot(x.astype(sqkv_w.dtype), sqkv_w,
                      preferred_element_type=jnp.float32) + sqkv_b
        sa = _mha(qkv[:, :d], qkv[:, d:2 * d], qkv[:, 2 * d:], swo, nhead) + sbo
        x = _layernorm(x + sa, n1g, n1b)
        # cross-attention on encoder memory (fused K|V projection)
        q = jnp.dot(x.astype(cq_w.dtype), cq_w,
                    preferred_element_type=jnp.float32) + cq_b
        kv = jnp.dot(mem_n.astype(ckv_w.dtype), ckv_w,
                     preferred_element_type=jnp.float32) + ckv_b
        ca = _mha(q, kv[:, :d], kv[:, d:], cwo, nhead) + cbo
        x = _layernorm(x + ca, n2g, n2b)
        # feed-forward
        x = _layernorm(x + _ffn(x, ffw1, ffb1, ffw2, ffb2), n3g, n3b)
        state_ref[n] = x

    @pl.when(layer == pl.num_programs(0) - 1)
    def _():
        # final decoder LayerNorm + output_linear folded into the last grid step.
        out_w = out_w_ref[...]                             # (1, d) row vector
        out_b = out_b_ref[...]                             # (1, 1)
        for n in range(state_ref.shape[0]):
            xf = _layernorm(state_ref[n], fng_ref[...], fnb_ref[...])
            # d -> 1 projection as a lane reduction (no degenerate N=1 matmul)
            y_ref[n] = jnp.sum(xf * out_w, axis=-1, keepdims=True) + out_b


# ----------------------------------------------------------------------------
# pallas_call wrappers
# ----------------------------------------------------------------------------

_COMPILER_PARAMS = pltpu.CompilerParams(
    dimension_semantics=("arbitrary",),            # layer axis is sequential
    vmem_limit_bytes=32 * 1024 * 1024,
)


def _const_spec(a):
    zeros = (0,) * a.ndim
    return pl.BlockSpec(a.shape, lambda l: zeros)


def _layer_spec(a):
    zeros = (0,) * (a.ndim - 1)
    return pl.BlockSpec((1,) + a.shape[1:], lambda l: (l,) + zeros)


def _encoder_forward(src3, gp, enc, nhead):
    nb, s, _ = src3.shape
    d = gp["in_w"].shape[1]
    nlayers = enc["qkv_w"].shape[0]
    order = ("qkv_w", "qkv_b", "wo", "bo", "n1g", "n1b",
             "ffw1", "ffb1", "ffw2", "ffb2", "n2g", "n2b")
    args = [src3, gp["in_w"], gp["in_b"]] + [enc[k] for k in order] + \
           [gp["enc_ng"], gp["enc_nb"]]
    in_specs = ([_const_spec(src3), _const_spec(gp["in_w"]), _const_spec(gp["in_b"])]
                + [_layer_spec(enc[k]) for k in order]
                + [_const_spec(gp["enc_ng"]), _const_spec(gp["enc_nb"])])
    return pl.pallas_call(
        functools.partial(_encoder_kernel, nhead=nhead),
        grid=(nlayers,),
        in_specs=in_specs,
        out_specs=pl.BlockSpec((nb, s, d), lambda l: (0, 0, 0)),
        out_shape=jax.ShapeDtypeStruct((nb, s, d), jnp.float32),
        compiler_params=_COMPILER_PARAMS,
    )(*args)


def _decoder_forward(tgt3, mem, gp, dec, nhead):
    nb, t, _ = tgt3.shape
    d = gp["in_w"].shape[1]
    nlayers = dec["sqkv_w"].shape[0]
    order = ("sqkv_w", "sqkv_b", "swo", "sbo", "n1g", "n1b",
             "cq_w", "cq_b", "ckv_w", "ckv_b", "cwo", "cbo", "n2g", "n2b",
             "ffw1", "ffb1", "ffw2", "ffb2", "n3g", "n3b")
    args = [tgt3, gp["in_w"], gp["in_b"], mem] + [dec[k] for k in order] + \
           [gp["dec_ng"], gp["dec_nb"], gp["out_w"], gp["out_b"]]
    in_specs = ([_const_spec(tgt3), _const_spec(gp["in_w"]), _const_spec(gp["in_b"]),
                 _const_spec(mem)]
                + [_layer_spec(dec[k]) for k in order]
                + [_const_spec(gp["dec_ng"]), _const_spec(gp["dec_nb"]),
                   _const_spec(gp["out_w"]), _const_spec(gp["out_b"])])
    return pl.pallas_call(
        functools.partial(_decoder_kernel, nhead=nhead),
        grid=(nlayers,),
        in_specs=in_specs,
        out_specs=pl.BlockSpec((nb, t, 1), lambda l: (0, 0, 0)),
        out_shape=jax.ShapeDtypeStruct((nb, t, 1), jnp.float32),
        scratch_shapes=[pltpu.VMEM((nb, t, d), jnp.float32)],   # resident decoder state
        compiler_params=_COMPILER_PARAMS,
    )(*args)


def stock_price_transformer(src, tgt, params, nhead):
    """src: (S, N, 1), tgt: (T, N, 1) sequence-first (PyTorch layout) -> (T, N, 1)."""
    glob, enc, dec = pack_params(params)
    src3 = jnp.transpose(src, (1, 0, 2))    # (N, S, 1) batch-major for the kernels
    tgt3 = jnp.transpose(tgt, (1, 0, 2))    # (N, T, 1)
    mem = _encoder_forward(src3, glob, enc, nhead)          # (N, S, d)
    y = _decoder_forward(tgt3, mem, glob, dec, nhead)       # (N, T, 1)
    return jnp.transpose(y, (1, 0, 2))


# ----------------------------------------------------------------------------
# Deterministic parameter init (weights stored as (fan_in, fan_out) so x @ W)
# ----------------------------------------------------------------------------

def _dense(key, fan_in, fan_out, scale=0.05):
    kw, kb = jax.random.split(key)
    w = jax.random.normal(kw, (fan_in, fan_out), jnp.float32) * scale
    b = jax.random.normal(kb, (fan_out,), jnp.float32) * scale
    return w, b


def _attn_params(key, d):
    ks = jax.random.split(key, 4)
    wq, bq = _dense(ks[0], d, d)
    wk, bk = _dense(ks[1], d, d)
    wv, bv = _dense(ks[2], d, d)
    wo, bo = _dense(ks[3], d, d)
    return dict(wq=wq, bq=bq, wk=wk, bk=bk, wv=wv, bv=bv, wo=wo, bo=bo)


def _enc_layer_params(key, d, dff):
    ks = jax.random.split(key, 3)
    w1, b1 = _dense(ks[1], d, dff)
    w2, b2 = _dense(ks[2], dff, d)
    return dict(self_attn=_attn_params(ks[0], d),
                norm1_g=jnp.ones((d,), jnp.float32), norm1_b=jnp.zeros((d,), jnp.float32),
                norm2_g=jnp.ones((d,), jnp.float32), norm2_b=jnp.zeros((d,), jnp.float32),
                ff_w1=w1, ff_b1=b1, ff_w2=w2, ff_b2=b2)


def _dec_layer_params(key, d, dff):
    ks = jax.random.split(key, 4)
    w1, b1 = _dense(ks[2], d, dff)
    w2, b2 = _dense(ks[3], dff, d)
    return dict(self_attn=_attn_params(ks[0], d),
                cross_attn=_attn_params(ks[1], d),
                norm1_g=jnp.ones((d,), jnp.float32), norm1_b=jnp.zeros((d,), jnp.float32),
                norm2_g=jnp.ones((d,), jnp.float32), norm2_b=jnp.zeros((d,), jnp.float32),
                norm3_g=jnp.ones((d,), jnp.float32), norm3_b=jnp.zeros((d,), jnp.float32),
                ff_w1=w1, ff_b1=b1, ff_w2=w2, ff_b2=b2)


def init_params(key, d_model=64, num_enc=2, num_dec=6, dff=2048):
    keys = jax.random.split(key, 2 + num_enc + num_dec)
    in_w, in_b = _dense(keys[0], 1, d_model)
    out_w, out_b = _dense(keys[1], d_model, 1)
    enc_layers = [_enc_layer_params(keys[2 + i], d_model, dff) for i in range(num_enc)]
    dec_layers = [_dec_layer_params(keys[2 + num_enc + i], d_model, dff) for i in range(num_dec)]
    return dict(input_w=in_w, input_b=in_b,
                output_w=out_w, output_b=out_b,
                enc_layers=enc_layers, dec_layers=dec_layers,
                enc_norm_g=jnp.ones((d_model,), jnp.float32),
                enc_norm_b=jnp.zeros((d_model,), jnp.float32),
                dec_norm_g=jnp.ones((d_model,), jnp.float32),
                dec_norm_b=jnp.zeros((d_model,), jnp.float32))


# ----------------------------------------------------------------------------
# Packing: fuse QKV / KV weights, stack per-layer weights, bf16 MXU operands
# ----------------------------------------------------------------------------

def pack_params(params):
    d = params["input_w"].shape[1]
    bf16 = jnp.bfloat16

    def qkv_fused(p):
        w = jnp.concatenate([p["wq"], p["wk"], p["wv"]], axis=1).astype(bf16)   # (d, 3d)
        b = jnp.concatenate([p["bq"], p["bk"], p["bv"]], axis=0).reshape(1, 3 * d)
        return w, b

    def enc_layer(lp):
        w, b = qkv_fused(lp["self_attn"])
        return dict(
            qkv_w=w, qkv_b=b,
            wo=lp["self_attn"]["wo"].astype(bf16),
            bo=lp["self_attn"]["bo"].reshape(1, d),
            n1g=lp["norm1_g"].reshape(1, d), n1b=lp["norm1_b"].reshape(1, d),
            ffw1=lp["ff_w1"].astype(bf16), ffb1=lp["ff_b1"].reshape(1, -1),
            ffw2=lp["ff_w2"].astype(bf16), ffb2=lp["ff_b2"].reshape(1, d),
            n2g=lp["norm2_g"].reshape(1, d), n2b=lp["norm2_b"].reshape(1, d))

    def dec_layer(lp):
        w, b = qkv_fused(lp["self_attn"])
        ca = lp["cross_attn"]
        return dict(
            sqkv_w=w, sqkv_b=b,
            swo=lp["self_attn"]["wo"].astype(bf16),
            sbo=lp["self_attn"]["bo"].reshape(1, d),
            n1g=lp["norm1_g"].reshape(1, d), n1b=lp["norm1_b"].reshape(1, d),
            cq_w=ca["wq"].astype(bf16), cq_b=ca["bq"].reshape(1, d),
            ckv_w=jnp.concatenate([ca["wk"], ca["wv"]], axis=1).astype(bf16),   # (d, 2d)
            ckv_b=jnp.concatenate([ca["bk"], ca["bv"]], axis=0).reshape(1, 2 * d),
            cwo=ca["wo"].astype(bf16), cbo=ca["bo"].reshape(1, d),
            n2g=lp["norm2_g"].reshape(1, d), n2b=lp["norm2_b"].reshape(1, d),
            ffw1=lp["ff_w1"].astype(bf16), ffb1=lp["ff_b1"].reshape(1, -1),
            ffw2=lp["ff_w2"].astype(bf16), ffb2=lp["ff_b2"].reshape(1, d),
            n3g=lp["norm3_g"].reshape(1, d), n3b=lp["norm3_b"].reshape(1, d))

    def stack(dicts):
        return {k: jnp.stack([x[k] for x in dicts], axis=0) for k in dicts[0]}

    glob = dict(
        in_w=params["input_w"],                           # (1, d)  f32 (VPU embed)
        in_b=params["input_b"].reshape(1, d),
        enc_ng=params["enc_norm_g"].reshape(1, d), enc_nb=params["enc_norm_b"].reshape(1, d),
        dec_ng=params["dec_norm_g"].reshape(1, d), dec_nb=params["dec_norm_b"].reshape(1, d),
        out_w=params["output_w"].reshape(1, d),           # (1, d)  row vector for lane reduce
        out_b=params["output_b"].reshape(1, 1))
    return (glob,
            stack([enc_layer(lp) for lp in params["enc_layers"]]),
            stack([dec_layer(lp) for lp in params["dec_layers"]]))


# ----------------------------------------------------------------------------
# Demo
# ----------------------------------------------------------------------------

if __name__ == "__main__":
    D_MODEL, NHEAD, NUM_LAYERS = 64, 4, 2          # StockPriceTransformer defaults
    NUM_DEC, DFF = 6, 2048                         # PyTorch nn.Transformer defaults
    S, T, NB = 10, 8, 2                            # small sequence / batch

    key = jax.random.PRNGKey(0)
    k_param, k_src, k_tgt = jax.random.split(key, 3)
    params = init_params(k_param, d_model=D_MODEL, num_enc=NUM_LAYERS,
                         num_dec=NUM_DEC, dff=DFF)

    src = jax.random.normal(k_src, (S, NB, 1), jnp.float32)
    tgt = jax.random.normal(k_tgt, (T, NB, 1), jnp.float32)

    fwd = jax.jit(functools.partial(stock_price_transformer, nhead=NHEAD))
    out = jax.block_until_ready(fwd(src, tgt, params))

    assert out.shape == (T, NB, 1), out.shape
    assert jnp.all(jnp.isfinite(out))
    print("KERNEL_OK")
</pallas_src>

<mosaic_0001>
module attributes {stable_mosaic.version = 11 : i64} {
  func.func @_encoder_kernel(%arg0: i32, %arg1: memref<2x10x1xf32, #tpu.memory_space<vmem>>, %arg2: memref<1x64xf32, #tpu.memory_space<vmem>>, %arg3: memref<1x64xf32, #tpu.memory_space<vmem>>, %arg4: memref<1x64x192xbf16, #tpu.memory_space<vmem>>, %arg5: memref<1x1x192xf32, #tpu.memory_space<vmem>>, %arg6: memref<1x64x64xbf16, #tpu.memory_space<vmem>>, %arg7: memref<1x1x64xf32, #tpu.memory_space<vmem>>, %arg8: memref<1x1x64xf32, #tpu.memory_space<vmem>>, %arg9: memref<1x1x64xf32, #tpu.memory_space<vmem>>, %arg10: memref<1x64x2048xbf16, #tpu.memory_space<vmem>>, %arg11: memref<1x1x2048xf32, #tpu.memory_space<vmem>>, %arg12: memref<1x2048x64xbf16, #tpu.memory_space<vmem>>, %arg13: memref<1x1x64xf32, #tpu.memory_space<vmem>>, %arg14: memref<1x1x64xf32, #tpu.memory_space<vmem>>, %arg15: memref<1x1x64xf32, #tpu.memory_space<vmem>>, %arg16: memref<1x64xf32, #tpu.memory_space<vmem>>, %arg17: memref<1x64xf32, #tpu.memory_space<vmem>>, %arg18: memref<2x10x64xf32, #tpu.memory_space<vmem>>) attributes {dimension_semantics = [#tpu.dimension_semantics<arbitrary>], iteration_bounds = array<i64: 2>, scalar_prefetch = 0 : i64, scratch_operands = 0 : i64, tpu.core_type = #tpu.core_type<tc>, window_params = [{pipeline_mode = #tpu.pipeline_mode<synchronous>, transform_indices = @transform_0, window_bounds = array<i64: 2, 10, 1>}, {pipeline_mode = #tpu.pipeline_mode<synchronous>, transform_indices = @transform_1, window_bounds = array<i64: 1, 64>}, {pipeline_mode = #tpu.pipeline_mode<synchronous>, transform_indices = @transform_2, window_bounds = array<i64: 1, 64>}, {transform_indices = @transform_3, window_bounds = array<i64: 1, 64, 192>}, {transform_indices = @transform_4, window_bounds = array<i64: 1, 1, 192>}, {transform_indices = @transform_5, window_bounds = array<i64: 1, 64, 64>}, {transform_indices = @transform_6, window_bounds = array<i64: 1, 1, 64>}, {transform_indices = @transform_7, window_bounds = array<i64: 1, 1, 64>}, {transform_indices = @transform_8, window_bounds = array<i64: 1, 1, 64>}, {transform_indices = @transform_9, window_bounds = array<i64: 1, 64, 2048>}, {transform_indices = @transform_10, window_bounds = array<i64: 1, 1, 2048>}, {transform_indices = @transform_11, window_bounds = array<i64: 1, 2048, 64>}, {transform_indices = @transform_12, window_bounds = array<i64: 1, 1, 64>}, {transform_indices = @transform_13, window_bounds = array<i64: 1, 1, 64>}, {transform_indices = @transform_14, window_bounds = array<i64: 1, 1, 64>}, {pipeline_mode = #tpu.pipeline_mode<synchronous>, transform_indices = @transform_15, window_bounds = array<i64: 1, 64>}, {pipeline_mode = #tpu.pipeline_mode<synchronous>, transform_indices = @transform_16, window_bounds = array<i64: 1, 64>}, {pipeline_mode = #tpu.pipeline_mode<synchronous>, transform_indices = @transform_17, window_bounds = array<i64: 2, 10, 64>}]} {
    %c0_i32 = arith.constant 0 : i32
    %0 = arith.cmpi eq, %arg0, %c0_i32 : i32
    %1 = arith.extui %0 : i1 to i32
    %c0_i32_0 = arith.constant 0 : i32
    %2 = arith.cmpi ne, %1, %c0_i32_0 : i32
    scf.if %2 {
      %c0_125 = arith.constant 0 : index
      %c0_126 = arith.constant 0 : index
      %c0_127 = arith.constant 0 : index
      %332 = vector.load %arg1[%c0_125, %c0_126, %c0_127] : memref<2x10x1xf32, #tpu.memory_space<vmem>>, vector<2x10x1xf32>
      %c0_128 = arith.constant 0 : index
      %c0_129 = arith.constant 0 : index
      %333 = vector.load %arg2[%c0_128, %c0_129] : memref<1x64xf32, #tpu.memory_space<vmem>>, vector<1x64xf32>
      %334 = vector.shape_cast %333 : vector<1x64xf32> to vector<1x1x64xf32>
      %335 = vector.broadcast %332 : vector<2x10x1xf32> to vector<2x10x64xf32>
      %336 = vector.broadcast %334 : vector<1x1x64xf32> to vector<2x10x64xf32>
      %337 = arith.mulf %335, %336 : vector<2x10x64xf32>
      %c0_130 = arith.constant 0 : index
      %c0_131 = arith.constant 0 : index
      %338 = vector.load %arg3[%c0_130, %c0_131] : memref<1x64xf32, #tpu.memory_space<vmem>>, vector<1x64xf32>
      %339 = vector.shape_cast %338 : vector<1x64xf32> to vector<1x1x64xf32>
      %340 = vector.broadcast %339 : vector<1x1x64xf32> to vector<2x10x64xf32>
      %341 = arith.addf %337, %340 : vector<2x10x64xf32>
      %c0_132 = arith.constant 0 : index
      %c0_133 = arith.constant 0 : index
      %c0_134 = arith.constant 0 : index
      %342 = vector.load %arg18[%c0_132, %c0_133, %c0_134] : memref<2x10x64xf32, #tpu.memory_space<vmem>>, vector<2x10x64xf32>
      tpu.vector_store %arg18[%c0_132, %c0_133, %c0_134], %341 {strides = array<i32>} : memref<2x10x64xf32, #tpu.memory_space<vmem>>, vector<2x10x64xf32>,
    } else {
    }
    %c0 = arith.constant 0 : index
    %c0_1 = arith.constant 0 : index
    %c0_2 = arith.constant 0 : index
    %3 = vector.load %arg4[%c0, %c0_1, %c0_2] : memref<1x64x192xbf16, #tpu.memory_space<vmem>>, vector<1x64x192xbf16>
    %4 = vector.shape_cast %3 : vector<1x64x192xbf16> to vector<64x192xbf16>
    %c0_3 = arith.constant 0 : index
    %c0_4 = arith.constant 0 : index
    %c0_5 = arith.constant 0 : index
    %5 = vector.load %arg5[%c0_3, %c0_4, %c0_5] : memref<1x1x192xf32, #tpu.memory_space<vmem>>, vector<1x1x192xf32>
    %6 = vector.shape_cast %5 : vector<1x1x192xf32> to vector<1x192xf32>
    %c0_6 = arith.constant 0 : index
    %c0_7 = arith.constant 0 : index
    %c0_8 = arith.constant 0 : index
    %7 = vector.load %arg6[%c0_6, %c0_7, %c0_8] : memref<1x64x64xbf16, #tpu.memory_space<vmem>>, vector<1x64x64xbf16>
    %8 = vector.shape_cast %7 : vector<1x64x64xbf16> to vector<64x64xbf16>
    %c0_9 = arith.constant 0 : index
    %c0_10 = arith.constant 0 : index
    %c0_11 = arith.constant 0 : index
    %9 = vector.load %arg7[%c0_9, %c0_10, %c0_11] : memref<1x1x64xf32, #tpu.memory_space<vmem>>, vector<1x1x64xf32>
    %10 = vector.shape_cast %9 : vector<1x1x64xf32> to vector<1x64xf32>
    %c0_12 = arith.constant 0 : index
    %c0_13 = arith.constant 0 : index
    %c0_14 = arith.constant 0 : index
    %11 = vector.load %arg8[%c0_12, %c0_13, %c0_14] : memref<1x1x64xf32, #tpu.memory_space<vmem>>, vector<1x1x64xf32>
    %12 = vector.shape_cast %11 : vector<1x1x64xf32> to vector<1x64xf32>
    %c0_15 = arith.constant 0 : index
    %c0_16 = arith.constant 0 : index
    %c0_17 = arith.constant 0 : index
    %13 = vector.load %arg9[%c0_15, %c0_16, %c0_17] : memref<1x1x64xf32, #tpu.memory_space<vmem>>, vector<1x1x64xf32>
    %14 = vector.shape_cast %13 : vector<1x1x64xf32> to vector<1x64xf32>
    %c0_18 = arith.constant 0 : index
    %c0_19 = arith.constant 0 : index
    %c0_20 = arith.constant 0 : index
    %15 = vector.load %arg10[%c0_18, %c0_19, %c0_20] : memref<1x64x2048xbf16, #tpu.memory_space<vmem>>, vector<1x64x2048xbf16>
    %16 = vector.shape_cast %15 : vector<1x64x2048xbf16> to vector<64x2048xbf16>
    %c0_21 = arith.constant 0 : index
    %c0_22 = arith.constant 0 : index
    %c0_23 = arith.constant 0 : index
    %17 = vector.load %arg11[%c0_21, %c0_22, %c0_23] : memref<1x1x2048xf32, #tpu.memory_space<vmem>>, vector<1x1x2048xf32>
    %18 = vector.shape_cast %17 : vector<1x1x2048xf32> to vector<1x2048xf32>
    %c0_24 = arith.constant 0 : index
    %c0_25 = arith.constant 0 : index
    %c0_26 = arith.constant 0 : index
    %19 = vector.load %arg12[%c0_24, %c0_25, %c0_26] : memref<1x2048x64xbf16, #tpu.memory_space<vmem>>, vector<1x2048x64xbf16>
    %20 = vector.shape_cast %19 : vector<1x2048x64xbf16> to vector<2048x64xbf16>
    %c0_27 = arith.constant 0 : index
    %c0_28 = arith.constant 0 : index
    %c0_29 = arith.constant 0 : index
    %21 = vector.load %arg13[%c0_27, %c0_28, %c0_29] : memref<1x1x64xf32, #tpu.memory_space<vmem>>, vector<1x1x64xf32>
    %22 = vector.shape_cast %21 : vector<1x1x64xf32> to vector<1x64xf32>
    %c0_30 = arith.constant 0 : index
    %c0_31 = arith.constant 0 : index
    %c0_32 = arith.constant 0 : index
    %23 = vector.load %arg14[%c0_30, %c0_31, %c0_32] : memref<1x1x64xf32, #tpu.memory_space<vmem>>, vector<1x1x64xf32>
    %24 = vector.shape_cast %23 : vector<1x1x64xf32> to vector<1x64xf32>
    %c0_33 = arith.constant 0 : index
    %c0_34 = arith.constant 0 : index
    %c0_35 = arith.constant 0 : index
    %25 = vector.load %arg15[%c0_33, %c0_34, %c0_35] : memref<1x1x64xf32, #tpu.memory_space<vmem>>, vector<1x1x64xf32>
    %26 = vector.shape_cast %25 : vector<1x1x64xf32> to vector<1x64xf32>
    %c0_36 = arith.constant 0 : index
    %c0_37 = arith.constant 0 : index
    %c0_38 = arith.constant 0 : index
    %27 = vector.load %arg18[%c0_36, %c0_37, %c0_38] : memref<2x10x64xf32, #tpu.memory_space<vmem>>, vector<1x10x64xf32>
    %28 = vector.shape_cast %27 : vector<1x10x64xf32> to vector<10x64xf32>
    %29 = arith.truncf %28 : vector<10x64xf32> to vector<10x64xbf16>
    %cst = arith.constant dense<0.000000e+00> : vector<10x192xf32>
    %30 = tpu.matmul %29, %4, %cst {dimension_numbers = #tpu.dot_dimension_numbers<[1], [0], [0], [1], [0, 0, 1, 1], [], []>} : vector<10x64xbf16>, vector<64x192xbf16>, vector<10x192xf32> -> vector<10x192xf32>
    %31 = vector.broadcast %6 : vector<1x192xf32> to vector<10x192xf32>
    %32 = arith.addf %30, %31 : vector<10x192xf32>
    %33 = vector.extract_strided_slice %32 {offsets = [0, 0], sizes = [10, 64], strides = [1, 1]} : vector<10x192xf32> to vector<10x64xf32>
    %34 = vector.extract_strided_slice %32 {offsets = [0, 64], sizes = [10, 64], strides = [1, 1]} : vector<10x192xf32> to vector<10x64xf32>
    %35 = vector.extract_strided_slice %32 {offsets = [0, 128], sizes = [10, 64], strides = [1, 1]} : vector<10x192xf32> to vector<10x64xf32>
    %cst_39 = arith.constant 0.000000e+00 : f32
    %36 = vector.broadcast %cst_39 : f32 to vector<10x64xf32>
    %37 = vector.extract_strided_slice %33 {offsets = [0, 0], sizes = [10, 16], strides = [1, 1]} : vector<10x64xf32> to vector<10x16xf32>
    %38 = vector.extract_strided_slice %34 {offsets = [0, 0], sizes = [10, 16], strides = [1, 1]} : vector<10x64xf32> to vector<10x16xf32>
    %39 = vector.extract_strided_slice %35 {offsets = [0, 0], sizes = [10, 16], strides = [1, 1]} : vector<10x64xf32> to vector<10x16xf32>
    %cst_40 = arith.constant dense<0.000000e+00> : vector<10x10xf32>
    %40 = tpu.matmul %37, %38, %cst_40 {dimension_numbers = #tpu.dot_dimension_numbers<[1], [1], [0], [0], [0, 0, 1, 0], [], []>} : vector<10x16xf32>, vector<10x16xf32>, vector<10x10xf32> -> vector<10x10xf32>
    %cst_41 = arith.constant 2.500000e-01 : f32
    %41 = vector.broadcast %cst_41 : f32 to vector<10x10xf32>
    %42 = arith.mulf %40, %41 : vector<10x10xf32>
    %cst_42 = arith.constant dense<0xFF800000> : vector<10xf32>
    %43 = vector.multi_reduction <maximumf>, %42, %cst_42 [1] : vector<10x10xf32> to vector<10xf32>
    %44 = vector.shape_cast %43 : vector<10xf32> to vector<10x1xf32>
    %45 = vector.broadcast %44 : vector<10x1xf32> to vector<10x10xf32>
    %46 = arith.subf %42, %45 : vector<10x10xf32>
    %47 = math.exp %46 : vector<10x10xf32>
    %cst_43 = arith.constant dense<0.000000e+00> : vector<10xf32>
    %48 = vector.multi_reduction <add>, %47, %cst_43 [1] : vector<10x10xf32> to vector<10xf32>
    %49 = vector.shape_cast %48 : vector<10xf32> to vector<10x1xf32>
    %cst_44 = arith.constant dense<0.000000e+00> : vector<10x16xf32>
    %50 = tpu.matmul %47, %39, %cst_44 {dimension_numbers = #tpu.dot_dimension_numbers<[1], [0], [0], [1], [0, 0, 1, 1], [], []>} : vector<10x10xf32>, vector<10x16xf32>, vector<10x16xf32> -> vector<10x16xf32>
    %51 = tpu.reciprocal %49 {approx = true} : vector<10x1xf32> -> vector<10x1xf32>
    %52 = vector.broadcast %51 : vector<10x1xf32> to vector<10x16xf32>
    %53 = arith.mulf %50, %52 : vector<10x16xf32>
    %54 = arith.truncf %53 : vector<10x16xf32> to vector<10x16xbf16>
    %55 = vector.extract_strided_slice %8 {offsets = [0, 0], sizes = [16, 64], strides = [1, 1]} : vector<64x64xbf16> to vector<16x64xbf16>
    %cst_45 = arith.constant dense<0.000000e+00> : vector<10x64xf32>
    %56 = tpu.matmul %54, %55, %cst_45 {dimension_numbers = #tpu.dot_dimension_numbers<[1], [0], [0], [1], [0, 0, 1, 1], [], []>} : vector<10x16xbf16>, vector<16x64xbf16>, vector<10x64xf32> -> vector<10x64xf32>
    %57 = arith.addf %36, %56 : vector<10x64xf32>
    %58 = vector.extract_strided_slice %33 {offsets = [0, 16], sizes = [10, 16], strides = [1, 1]} : vector<10x64xf32> to vector<10x16xf32>
    %59 = vector.extract_strided_slice %34 {offsets = [0, 16], sizes = [10, 16], strides = [1, 1]} : vector<10x64xf32> to vector<10x16xf32>
    %60 = vector.extract_strided_slice %35 {offsets = [0, 16], sizes = [10, 16], strides = [1, 1]} : vector<10x64xf32> to vector<10x16xf32>
    %cst_46 = arith.constant dense<0.000000e+00> : vector<10x10xf32>
    %61 = tpu.matmul %58, %59, %cst_46 {dimension_numbers = #tpu.dot_dimension_numbers<[1], [1], [0], [0], [0, 0, 1, 0], [], []>} : vector<10x16xf32>, vector<10x16xf32>, vector<10x10xf32> -> vector<10x10xf32>
    %cst_47 = arith.constant 2.500000e-01 : f32
    %62 = vector.broadcast %cst_47 : f32 to vector<10x10xf32>
    %63 = arith.mulf %61, %62 : vector<10x10xf32>
    %cst_48 = arith.constant dense<0xFF800000> : vector<10xf32>
    %64 = vector.multi_reduction <maximumf>, %63, %cst_48 [1] : vector<10x10xf32> to vector<10xf32>
    %65 = vector.shape_cast %64 : vector<10xf32> to vector<10x1xf32>
    %66 = vector.broadcast %65 : vector<10x1xf32> to vector<10x10xf32>
    %67 = arith.subf %63, %66 : vector<10x10xf32>
    %68 = math.exp %67 : vector<10x10xf32>
    %cst_49 = arith.constant dense<0.000000e+00> : vector<10xf32>
    %69 = vector.multi_reduction <add>, %68, %cst_49 [1] : vector<10x10xf32> to vector<10xf32>
    %70 = vector.shape_cast %69 : vector<10xf32> to vector<10x1xf32>
    %cst_50 = arith.constant dense<0.000000e+00> : vector<10x16xf32>
    %71 = tpu.matmul %68, %60, %cst_50 {dimension_numbers = #tpu.dot_dimension_numbers<[1], [0], [0], [1], [0, 0, 1, 1], [], []>} : vector<10x10xf32>, vector<10x16xf32>, vector<10x16xf32> -> vector<10x16xf32>
    %72 = tpu.reciprocal %70 {approx = true} : vector<10x1xf32> -> vector<10x1xf32>
    %73 = vector.broadcast %72 : vector<10x1xf32> to vector<10x16xf32>
    %74 = arith.mulf %71, %73 : vector<10x16xf32>
    %75 = arith.truncf %74 : vector<10x16xf32> to vector<10x16xbf16>
    %76 = vector.extract_strided_slice %8 {offsets = [16, 0], sizes = [16, 64], strides = [1, 1]} : vector<64x64xbf16> to vector<16x64xbf16>
    %cst_51 = arith.constant dense<0.000000e+00> : vector<10x64xf32>
    %77 = tpu.matmul %75, %76, %cst_51 {dimension_numbers = #tpu.dot_dimension_numbers<[1], [0], [0], [1], [0, 0, 1, 1], [], []>} : vector<10x16xbf16>, vector<16x64xbf16>, vector<10x64xf32> -> vector<10x64xf32>
    %78 = arith.addf %57, %77 : vector<10x64xf32>
    %79 = vector.extract_strided_slice %33 {offsets = [0, 32], sizes = [10, 16], strides = [1, 1]} : vector<10x64xf32> to vector<10x16xf32>
    %80 = vector.extract_strided_slice %34 {offsets = [0, 32], sizes = [10, 16], strides = [1, 1]} : vector<10x64xf32> to vector<10x16xf32>
    %81 = vector.extract_strided_slice %35 {offsets = [0, 32], sizes = [10, 16], strides = [1, 1]} : vector<10x64xf32> to vector<10x16xf32>
    %cst_52 = arith.constant dense<0.000000e+00> : vector<10x10xf32>
    %82 = tpu.matmul %79, %80, %cst_52 {dimension_numbers = #tpu.dot_dimension_numbers<[1], [1], [0], [0], [0, 0, 1, 0], [], []>} : vector<10x16xf32>, vector<10x16xf32>, vector<10x10xf32> -> vector<10x10xf32>
    %cst_53 = arith.constant 2.500000e-01 : f32
    %83 = vector.broadcast %cst_53 : f32 to vector<10x10xf32>
    %84 = arith.mulf %82, %83 : vector<10x10xf32>
    %cst_54 = arith.constant dense<0xFF800000> : vector<10xf32>
    %85 = vector.multi_reduction <maximumf>, %84, %cst_54 [1] : vector<10x10xf32> to vector<10xf32>
    %86 = vector.shape_cast %85 : vector<10xf32> to vector<10x1xf32>
    %87 = vector.broadcast %86 : vector<10x1xf32> to vector<10x10xf32>
    %88 = arith.subf %84, %87 : vector<10x10xf32>
    %89 = math.exp %88 : vector<10x10xf32>
    %cst_55 = arith.constant dense<0.000000e+00> : vector<10xf32>
    %90 = vector.multi_reduction <add>, %89, %cst_55 [1] : vector<10x10xf32> to vector<10xf32>
    %91 = vector.shape_cast %90 : vector<10xf32> to vector<10x1xf32>
    %cst_56 = arith.constant dense<0.000000e+00> : vector<10x16xf32>
    %92 = tpu.matmul %89, %81, %cst_56 {dimension_numbers = #tpu.dot_dimension_numbers<[1], [0], [0], [1], [0, 0, 1, 1], [], []>} : vector<10x10xf32>, vector<10x16xf32>, vector<10x16xf32> -> vector<10x16xf32>
    %93 = tpu.reciprocal %91 {approx = true} : vector<10x1xf32> -> vector<10x1xf32>
    %94 = vector.broadcast %93 : vector<10x1xf32> to vector<10x16xf32>
    %95 = arith.mulf %92, %94 : vector<10x16xf32>
    %96 = arith.truncf %95 : vector<10x16xf32> to vector<10x16xbf16>
    %97 = vector.extract_strided_slice %8 {offsets = [32, 0], sizes = [16, 64], strides = [1, 1]} : vector<64x64xbf16> to vector<16x64xbf16>
    %cst_57 = arith.constant dense<0.000000e+00> : vector<10x64xf32>
    %98 = tpu.matmul %96, %97, %cst_57 {dimension_numbers = #tpu.dot_dimension_numbers<[1], [0], [0], [1], [0, 0, 1, 1], [], []>} : vector<10x16xbf16>, vector<16x64xbf16>, vector<10x64xf32> -> vector<10x64xf32>
    %99 = arith.addf %78, %98 : vector<10x64xf32>
    %100 = vector.extract_strided_slice %33 {offsets = [0, 48], sizes = [10, 16], strides = [1, 1]} : vector<10x64xf32> to vector<10x16xf32>
    %101 = vector.extract_strided_slice %34 {offsets = [0, 48], sizes = [10, 16], strides = [1, 1]} : vector<10x64xf32> to vector<10x16xf32>
    %102 = vector.extract_strided_slice %35 {offsets = [0, 48], sizes = [10, 16], strides = [1, 1]} : vector<10x64xf32> to vector<10x16xf32>
    %cst_58 = arith.constant dense<0.000000e+00> : vector<10x10xf32>
    %103 = tpu.matmul %100, %101, %cst_58 {dimension_numbers = #tpu.dot_dimension_numbers<[1], [1], [0], [0], [0, 0, 1, 0], [], []>} : vector<10x16xf32>, vector<10x16xf32>, vector<10x10xf32> -> vector<10x10xf32>
    %cst_59 = arith.constant 2.500000e-01 : f32
    %104 = vector.broadcast %cst_59 : f32 to vector<10x10xf32>
    %105 = arith.mulf %103, %104 : vector<10x10xf32>
    %cst_60 = arith.constant dense<0xFF800000> : vector<10xf32>
    %106 = vector.multi_reduction <maximumf>, %105, %cst_60 [1] : vector<10x10xf32> to vector<10xf32>
    %107 = vector.shape_cast %106 : vector<10xf32> to vector<10x1xf32>
    %108 = vector.broadcast %107 : vector<10x1xf32> to vector<10x10xf32>
    %109 = arith.subf %105, %108 : vector<10x10xf32>
    %110 = math.exp %109 : vector<10x10xf32>
    %cst_61 = arith.constant dense<0.000000e+00> : vector<10xf32>
    %111 = vector.multi_reduction <add>, %110, %cst_61 [1] : vector<10x10xf32> to vector<10xf32>
    %112 = vector.shape_cast %111 : vector<10xf32> to vector<10x1xf32>
    %cst_62 = arith.constant dense<0.000000e+00> : vector<10x16xf32>
    %113 = tpu.matmul %110, %102, %cst_62 {dimension_numbers = #tpu.dot_dimension_numbers<[1], [0], [0], [1], [0, 0, 1, 1], [], []>} : vector<10x10xf32>, vector<10x16xf32>, vector<10x16xf32> -> vector<10x16xf32>
    %114 = tpu.reciprocal %112 {approx = true} : vector<10x1xf32> -> vector<10x1xf32>
    %115 = vector.broadcast %114 : vector<10x1xf32> to vector<10x16xf32>
    %116 = arith.mulf %113, %115 : vector<10x16xf32>
    %117 = arith.truncf %116 : vector<10x16xf32> to vector<10x16xbf16>
    %118 = vector.extract_strided_slice %8 {offsets = [48, 0], sizes = [16, 64], strides = [1, 1]} : vector<64x64xbf16> to vector<16x64xbf16>
    %cst_63 = arith.constant dense<0.000000e+00> : vector<10x64xf32>
    %119 = tpu.matmul %117, %118, %cst_63 {dimension_numbers = #tpu.dot_dimension_numbers<[1], [0], [0], [1], [0, 0, 1, 1], [], []>} : vector<10x16xbf16>, vector<16x64xbf16>, vector<10x64xf32> -> vector<10x64xf32>
    %120 = arith.addf %99, %119 : vector<10x64xf32>
    %121 = vector.broadcast %10 : vector<1x64xf32> to vector<10x64xf32>
    %122 = arith.addf %120, %121 : vector<10x64xf32>
    %123 = arith.addf %28, %122 : vector<10x64xf32>
    %cst_64 = arith.constant dense<0.000000e+00> : vector<10xf32>
    %124 = vector.multi_reduction <add>, %123, %cst_64 [1] : vector<10x64xf32> to vector<10xf32>
    %125 = vector.shape_cast %124 : vector<10xf32> to vector<10x1xf32>
    %cst_65 = arith.constant 6.400000e+01 : f32
    %126 = vector.broadcast %cst_65 : f32 to vector<10x1xf32>
    %127 = arith.divf %125, %126 : vector<10x1xf32>
    %128 = vector.broadcast %127 : vector<10x1xf32> to vector<10x64xf32>
    %129 = arith.subf %123, %128 : vector<10x64xf32>
    %130 = arith.mulf %129, %129 : vector<10x64xf32>
    %cst_66 = arith.constant dense<0.000000e+00> : vector<10xf32>
    %131 = vector.multi_reduction <add>, %130, %cst_66 [1] : vector<10x64xf32> to vector<10xf32>
    %132 = vector.shape_cast %131 : vector<10xf32> to vector<10x1xf32>
    %cst_67 = arith.constant 6.400000e+01 : f32
    %133 = vector.broadcast %cst_67 : f32 to vector<10x1xf32>
    %134 = arith.divf %132, %133 : vector<10x1xf32>
    %cst_68 = arith.constant 9.99999974E-6 : f32
    %135 = vector.broadcast %cst_68 : f32 to vector<10x1xf32>
    %136 = arith.addf %134, %135 : vector<10x1xf32>
    %137 = math.rsqrt %136 : vector<10x1xf32>
    %138 = vector.broadcast %137 : vector<10x1xf32> to vector<10x64xf32>
    %139 = arith.mulf %129, %138 : vector<10x64xf32>
    %140 = vector.broadcast %12 : vector<1x64xf32> to vector<10x64xf32>
    %141 = arith.mulf %139, %140 : vector<10x64xf32>
    %142 = vector.broadcast %14 : vector<1x64xf32> to vector<10x64xf32>
    %143 = arith.addf %141, %142 : vector<10x64xf32>
    %144 = arith.truncf %143 : vector<10x64xf32> to vector<10x64xbf16>
    %cst_69 = arith.constant dense<0.000000e+00> : vector<10x2048xf32>
    %145 = tpu.matmul %144, %16, %cst_69 {dimension_numbers = #tpu.dot_dimension_numbers<[1], [0], [0], [1], [0, 0, 1, 1], [], []>} : vector<10x64xbf16>, vector<64x2048xbf16>, vector<10x2048xf32> -> vector<10x2048xf32>
    %146 = vector.broadcast %18 : vector<1x2048xf32> to vector<10x2048xf32>
    %147 = arith.addf %145, %146 : vector<10x2048xf32>
    %cst_70 = arith.constant 0.000000e+00 : f32
    %148 = vector.broadcast %cst_70 : f32 to vector<10x2048xf32>
    %149 = arith.maximumf %147, %148 : vector<10x2048xf32>
    %150 = arith.truncf %149 : vector<10x2048xf32> to vector<10x2048xbf16>
    %cst_71 = arith.constant dense<0.000000e+00> : vector<10x64xf32>
    %151 = tpu.matmul %150, %20, %cst_71 {dimension_numbers = #tpu.dot_dimension_numbers<[1], [0], [0], [1], [0, 0, 1, 1], [], []>} : vector<10x2048xbf16>, vector<2048x64xbf16>, vector<10x64xf32> -> vector<10x64xf32>
    %152 = vector.broadcast %22 : vector<1x64xf32> to vector<10x64xf32>
    %153 = arith.addf %151, %152 : vector<10x64xf32>
    %154 = arith.addf %143, %153 : vector<10x64xf32>
    %cst_72 = arith.constant dense<0.000000e+00> : vector<10xf32>
    %155 = vector.multi_reduction <add>, %154, %cst_72 [1] : vector<10x64xf32> to vector<10xf32>
    %156 = vector.shape_cast %155 : vector<10xf32> to vector<10x1xf32>
    %cst_73 = arith.constant 6.400000e+01 : f32
    %157 = vector.broadcast %cst_73 : f32 to vector<10x1xf32>
    %158 = arith.divf %156, %157 : vector<10x1xf32>
    %159 = vector.broadcast %158 : vector<10x1xf32> to vector<10x64xf32>
    %160 = arith.subf %154, %159 : vector<10x64xf32>
    %161 = arith.mulf %160, %160 : vector<10x64xf32>
    %cst_74 = arith.constant dense<0.000000e+00> : vector<10xf32>
    %162 = vector.multi_reduction <add>, %161, %cst_74 [1] : vector<10x64xf32> to vector<10xf32>
    %163 = vector.shape_cast %162 : vector<10xf32> to vector<10x1xf32>
    %cst_75 = arith.constant 6.400000e+01 : f32
    %164 = vector.broadcast %cst_75 : f32 to vector<10x1xf32>
    %165 = arith.divf %163, %164 : vector<10x1xf32>
    %cst_76 = arith.constant 9.99999974E-6 : f32
    %166 = vector.broadcast %cst_76 : f32 to vector<10x1xf32>
    %167 = arith.addf %165, %166 : vector<10x1xf32>
    %168 = math.rsqrt %167 : vector<10x1xf32>
    %169 = vector.broadcast %168 : vector<10x1xf32> to vector<10x64xf32>
    %170 = arith.mulf %160, %169 : vector<10x64xf32>
    %171 = vector.broadcast %24 : vector<1x64xf32> to vector<10x64xf32>
    %172 = arith.mulf %170, %171 : vector<10x64xf32>
    %173 = vector.broadcast %26 : vector<1x64xf32> to vector<10x64xf32>
    %174 = arith.addf %172, %173 : vector<10x64xf32>
    %c0_77 = arith.constant 0 : index
    %c0_78 = arith.constant 0 : index
    %c0_79 = arith.constant 0 : index
    %175 = vector.load %arg18[%c0_77, %c0_78, %c0_79] : memref<2x10x64xf32, #tpu.memory_space<vmem>>, vector<1x10x64xf32>
    %176 = vector.shape_cast %175 : vector<1x10x64xf32> to vector<10x64xf32>
    %177 = vector.shape_cast %174 : vector<10x64xf32> to vector<1x10x64xf32>
    tpu.vector_store %arg18[%c0_77, %c0_78, %c0_79], %177 {strides = array<i32>} : memref<2x10x64xf32, #tpu.memory_space<vmem>>, vector<1x10x64xf32>,
    %c1 = arith.constant 1 : index
    %c0_80 = arith.constant 0 : index
    %c0_81 = arith.constant 0 : index
    %178 = vector.load %arg18[%c1, %c0_80, %c0_81] : memref<2x10x64xf32, #tpu.memory_space<vmem>>, vector<1x10x64xf32>
    %179 = vector.shape_cast %178 : vector<1x10x64xf32> to vector<10x64xf32>
    %180 = arith.truncf %179 : vector<10x64xf32> to vector<10x64xbf16>
    %cst_82 = arith.constant dense<0.000000e+00> : vector<10x192xf32>
    %181 = tpu.matmul %180, %4, %cst_82 {dimension_numbers = #tpu.dot_dimension_numbers<[1], [0], [0], [1], [0, 0, 1, 1], [], []>} : vector<10x64xbf16>, vector<64x192xbf16>, vector<10x192xf32> -> vector<10x192xf32>
    %182 = vector.broadcast %6 : vector<1x192xf32> to vector<10x192xf32>
    %183 = arith.addf %181, %182 : vector<10x192xf32>
    %184 = vector.extract_strided_slice %183 {offsets = [0, 0], sizes = [10, 64], strides = [1, 1]} : vector<10x192xf32> to vector<10x64xf32>
    %185 = vector.extract_strided_slice %183 {offsets = [0, 64], sizes = [10, 64], strides = [1, 1]} : vector<10x192xf32> to vector<10x64xf32>
    %186 = vector.extract_strided_slice %183 {offsets = [0, 128], sizes = [10, 64], strides = [1, 1]} : vector<10x192xf32> to vector<10x64xf32>
    %cst_83 = arith.constant 0.000000e+00 : f32
    %187 = vector.broadcast %cst_83 : f32 to vector<10x64xf32>
    %188 = vector.extract_strided_slice %184 {offsets = [0, 0], sizes = [10, 16], strides = [1, 1]} : vector<10x64xf32> to vector<10x16xf32>
    %189 = vector.extract_strided_slice %185 {offsets = [0, 0], sizes = [10, 16], strides = [1, 1]} : vector<10x64xf32> to vector<10x16xf32>
    %190 = vector.extract_strided_slice %186 {offsets = [0, 0], sizes = [10, 16], strides = [1, 1]} : vector<10x64xf32> to vector<10x16xf32>
    %cst_84 = arith.constant dense<0.000000e+00> : vector<10x10xf32>
    %191 = tpu.matmul %188, %189, %cst_84 {dimension_numbers = #tpu.dot_dimension_numbers<[1], [1], [0], [0], [0, 0, 1, 0], [], []>} : vector<10x16xf32>, vector<10x16xf32>, vector<10x10xf32> -> vector<10x10xf32>
    %cst_85 = arith.constant 2.500000e-01 : f32
    %192 = vector.broadcast %cst_85 : f32 to vector<10x10xf32>
    %193 = arith.mulf %191, %192 : vector<10x10xf32>
    %cst_86 = arith.constant dense<0xFF800000> : vector<10xf32>
    %194 = vector.multi_reduction <maximumf>, %193, %cst_86 [1] : vector<10x10xf32> to vector<10xf32>
    %195 = vector.shape_cast %194 : vector<10xf32> to vector<10x1xf32>
    %196 = vector.broadcast %195 : vector<10x1xf32> to vector<10x10xf32>
    %197 = arith.subf %193, %196 : vector<10x10xf32>
    %198 = math.exp %197 : vector<10x10xf32>
    %cst_87 = arith.constant dense<0.000000e+00> : vector<10xf32>
    %199 = vector.multi_reduction <add>, %198, %cst_87 [1] : vector<10x10xf32> to vector<10xf32>
    %200 = vector.shape_cast %199 : vector<10xf32> to vector<10x1xf32>
    %cst_88 = arith.constant dense<0.000000e+00> : vector<10x16xf32>
    %201 = tpu.matmul %198, %190, %cst_88 {dimension_numbers = #tpu.dot_dimension_numbers<[1], [0], [0], [1], [0, 0, 1, 1], [], []>} : vector<10x10xf32>, vector<10x16xf32>, vector<10x16xf32> -> vector<10x16xf32>
    %202 = tpu.reciprocal %200 {approx = true} : vector<10x1xf32> -> vector<10x1xf32>
    %203 = vector.broadcast %202 : vector<10x1xf32> to vector<10x16xf32>
    %204 = arith.mulf %201, %203 : vector<10x16xf32>
    %205 = arith.truncf %204 : vector<10x16xf32> to vector<10x16xbf16>
    %206 = vector.extract_strided_slice %8 {offsets = [0, 0], sizes = [16, 64], strides = [1, 1]} : vector<64x64xbf16> to vector<16x64xbf16>
    %cst_89 = arith.constant dense<0.000000e+00> : vector<10x64xf32>
    %207 = tpu.matmul %205, %206, %cst_89 {dimension_numbers = #tpu.dot_dimension_numbers<[1], [0], [0], [1], [0, 0, 1, 1], [], []>} : vector<10x16xbf16>, vector<16x64xbf16>, vector<10x64xf32> -> vector<10x64xf32>
    %208 = arith.addf %187, %207 : vector<10x64xf32>
    %209 = vector.extract_strided_slice %184 {offsets = [0, 16], sizes = [10, 16], strides = [1, 1]} : vector<10x64xf32> to vector<10x16xf32>
    %210 = vector.extract_strided_slice %185 {offsets = [0, 16], sizes = [10, 16], strides = [1, 1]} : vector<10x64xf32> to vector<10x16xf32>
    %211 = vector.extract_strided_slice %186 {offsets = [0, 16], sizes = [10, 16], strides = [1, 1]} : vector<10x64xf32> to vector<10x16xf32>
    %cst_90 = arith.constant dense<0.000000e+00> : vector<10x10xf32>
    %212 = tpu.matmul %209, %210, %cst_90 {dimension_numbers = #tpu.dot_dimension_numbers<[1], [1], [0], [0], [0, 0, 1, 0], [], []>} : vector<10x16xf32>, vector<10x16xf32>, vector<10x10xf32> -> vector<10x10xf32>
    %cst_91 = arith.constant 2.500000e-01 : f32
    %213 = vector.broadcast %cst_91 : f32 to vector<10x10xf32>
    %214 = arith.mulf %212, %213 : vector<10x10xf32>
    %cst_92 = arith.constant dense<0xFF800000> : vector<10xf32>
    %215 = vector.multi_reduction <maximumf>, %214, %cst_92 [1] : vector<10x10xf32> to vector<10xf32>
    %216 = vector.shape_cast %215 : vector<10xf32> to vector<10x1xf32>
    %217 = vector.broadcast %216 : vector<10x1xf32> to vector<10x10xf32>
    %218 = arith.subf %214, %217 : vector<10x10xf32>
    %219 = math.exp %218 : vector<10x10xf32>
    %cst_93 = arith.constant dense<0.000000e+00> : vector<10xf32>
    %220 = vector.multi_reduction <add>, %219, %cst_93 [1] : vector<10x10xf32> to vector<10xf32>
    %221 = vector.shape_cast %220 : vector<10xf32> to vector<10x1xf32>
    %cst_94 = arith.constant dense<0.000000e+00> : vector<10x16xf32>
    %222 = tpu.matmul %219, %211, %cst_94 {dimension_numbers = #tpu.dot_dimension_numbers<[1], [0], [0], [1], [0, 0, 1, 1], [], []>} : vector<10x10xf32>, vector<10x16xf32>, vector<10x16xf32> -> vector<10x16xf32>
    %223 = tpu.reciprocal %221 {approx = true} : vector<10x1xf32> -> vector<10x1xf32>
    %224 = vector.broadcast %223 : vector<10x1xf32> to vector<10x16xf32>
    %225 = arith.mulf %222, %224 : vector<10x16xf32>
    %226 = arith.truncf %225 : vector<10x16xf32> to vector<10x16xbf16>
    %227 = vector.extract_strided_slice %8 {offsets = [16, 0], sizes = [16, 64], strides = [1, 1]} : vector<64x64xbf16> to vector<16x64xbf16>
    %cst_95 = arith.constant dense<0.000000e+00> : vector<10x64xf32>
    %228 = tpu.matmul %226, %227, %cst_95 {dimension_numbers = #tpu.dot_dimension_numbers<[1], [0], [0], [1], [0, 0, 1, 1], [], []>} : vector<10x16xbf16>, vector<16x64xbf16>, vector<10x64xf32> -> vector<10x64xf32>
    %229 = arith.addf %208, %228 : vector<10x64xf32>
    %230 = vector.extract_strided_slice %184 {offsets = [0, 32], sizes = [10, 16], strides = [1, 1]} : vector<10x64xf32> to vector<10x16xf32>
    %231 = vector.extract_strided_slice %185 {offsets = [0, 32], sizes = [10, 16], strides = [1, 1]} : vector<10x64xf32> to vector<10x16xf32>
    %232 = vector.extract_strided_slice %186 {offsets = [0, 32], sizes = [10, 16], strides = [1, 1]} : vector<10x64xf32> to vector<10x16xf32>
    %cst_96 = arith.constant dense<0.000000e+00> : vector<10x10xf32>
    %233 = tpu.matmul %230, %231, %cst_96 {dimension_numbers = #tpu.dot_dimension_numbers<[1], [1], [0], [0], [0, 0, 1, 0], [], []>} : vector<10x16xf32>, vector<10x16xf32>, vector<10x10xf32> -> vector<10x10xf32>
    %cst_97 = arith.constant 2.500000e-01 : f32
    %234 = vector.broadcast %cst_97 : f32 to vector<10x10xf32>
    %235 = arith.mulf %233, %234 : vector<10x10xf32>
    %cst_98 = arith.constant dense<0xFF800000> : vector<10xf32>
    %236 = vector.multi_reduction <maximumf>, %235, %cst_98 [1] : vector<10x10xf32> to vector<10xf32>
    %237 = vector.shape_cast %236 : vector<10xf32> to vector<10x1xf32>
    %238 = vector.broadcast %237 : vector<10x1xf32> to vector<10x10xf32>
    %239 = arith.subf %235, %238 : vector<10x10xf32>
    %240 = math.exp %239 : vector<10x10xf32>
    %cst_99 = arith.constant dense<0.000000e+00> : vector<10xf32>
    %241 = vector.multi_reduction <add>, %240, %cst_99 [1] : vector<10x10xf32> to vector<10xf32>
    %242 = vector.shape_cast %241 : vector<10xf32> to vector<10x1xf32>
    %cst_100 = arith.constant dense<0.000000e+00> : vector<10x16xf32>
    %243 = tpu.matmul %240, %232, %cst_100 {dimension_numbers = #tpu.dot_dimension_numbers<[1], [0], [0], [1], [0, 0, 1, 1], [], []>} : vector<10x10xf32>, vector<10x16xf32>, vector<10x16xf32> -> vector<10x16xf32>
    %244 = tpu.reciprocal %242 {approx = true} : vector<10x1xf32> -> vector<10x1xf32>
    %245 = vector.broadcast %244 : vector<10x1xf32> to vector<10x16xf32>
    %246 = arith.mulf %243, %245 : vector<10x16xf32>
    %247 = arith.truncf %246 : vector<10x16xf32> to vector<10x16xbf16>
    %248 = vector.extract_strided_slice %8 {offsets = [32, 0], sizes = [16, 64], strides = [1, 1]} : vector<64x64xbf16> to vector<16x64xbf16>
    %cst_101 = arith.constant dense<0.000000e+00> : vector<10x64xf32>
    %249 = tpu.matmul %247, %248, %cst_101 {dimension_numbers = #tpu.dot_dimension_numbers<[1], [0], [0], [1], [0, 0, 1, 1], [], []>} : vector<10x16xbf16>, vector<16x64xbf16>, vector<10x64xf32> -> vector<10x64xf32>
    %250 = arith.addf %229, %249 : vector<10x64xf32>
    %251 = vector.extract_strided_slice %184 {offsets = [0, 48], sizes = [10, 16], strides = [1, 1]} : vector<10x64xf32> to vector<10x16xf32>
    %252 = vector.extract_strided_slice %185 {offsets = [0, 48], sizes = [10, 16], strides = [1, 1]} : vector<10x64xf32> to vector<10x16xf32>
    %253 = vector.extract_strided_slice %186 {offsets = [0, 48], sizes = [10, 16], strides = [1, 1]} : vector<10x64xf32> to vector<10x16xf32>
    %cst_102 = arith.constant dense<0.000000e+00> : vector<10x10xf32>
    %254 = tpu.matmul %251, %252, %cst_102 {dimension_numbers = #tpu.dot_dimension_numbers<[1], [1], [0], [0], [0, 0, 1, 0], [], []>} : vector<10x16xf32>, vector<10x16xf32>, vector<10x10xf32> -> vector<10x10xf32>
    %cst_103 = arith.constant 2.500000e-01 : f32
    %255 = vector.broadcast %cst_103 : f32 to vector<10x10xf32>
    %256 = arith.mulf %254, %255 : vector<10x10xf32>
    %cst_104 = arith.constant dense<0xFF800000> : vector<10xf32>
    %257 = vector.multi_reduction <maximumf>, %256, %cst_104 [1] : vector<10x10xf32> to vector<10xf32>
    %258 = vector.shape_cast %257 : vector<10xf32> to vector<10x1xf32>
    %259 = vector.broadcast %258 : vector<10x1xf32> to vector<10x10xf32>
    %260 = arith.subf %256, %259 : vector<10x10xf32>
    %261 = math.exp %260 : vector<10x10xf32>
    %cst_105 = arith.constant dense<0.000000e+00> : vector<10xf32>
    %262 = vector.multi_reduction <add>, %261, %cst_105 [1] : vector<10x10xf32> to vector<10xf32>
    %263 = vector.shape_cast %262 : vector<10xf32> to vector<10x1xf32>
    %cst_106 = arith.constant dense<0.000000e+00> : vector<10x16xf32>
    %264 = tpu.matmul %261, %253, %cst_106 {dimension_numbers = #tpu.dot_dimension_numbers<[1], [0], [0], [1], [0, 0, 1, 1], [], []>} : vector<10x10xf32>, vector<10x16xf32>, vector<10x16xf32> -> vector<10x16xf32>
    %265 = tpu.reciprocal %263 {approx = true} : vector<10x1xf32> -> vector<10x1xf32>
    %266 = vector.broadcast %265 : vector<10x1xf32> to vector<10x16xf32>
    %267 = arith.mulf %264, %266 : vector<10x16xf32>
    %268 = arith.truncf %267 : vector<10x16xf32> to vector<10x16xbf16>
    %269 = vector.extract_strided_slice %8 {offsets = [48, 0], sizes = [16, 64], strides = [1, 1]} : vector<64x64xbf16> to vector<16x64xbf16>
    %cst_107 = arith.constant dense<0.000000e+00> : vector<10x64xf32>
    %270 = tpu.matmul %268, %269, %cst_107 {dimension_numbers = #tpu.dot_dimension_numbers<[1], [0], [0], [1], [0, 0, 1, 1], [], []>} : vector<10x16xbf16>, vector<16x64xbf16>, vector<10x64xf32> -> vector<10x64xf32>
    %271 = arith.addf %250, %270 : vector<10x64xf32>
    %272 = vector.broadcast %10 : vector<1x64xf32> to vector<10x64xf32>
    %273 = arith.addf %271, %272 : vector<10x64xf32>
    %274 = arith.addf %179, %273 : vector<10x64xf32>
    %cst_108 = arith.constant dense<0.000000e+00> : vector<10xf32>
    %275 = vector.multi_reduction <add>, %274, %cst_108 [1] : vector<10x64xf32> to vector<10xf32>
    %276 = vector.shape_cast %275 : vector<10xf32> to vector<10x1xf32>
    %cst_109 = arith.constant 6.400000e+01 : f32
    %277 = vector.broadcast %cst_109 : f32 to vector<10x1xf32>
    %278 = arith.divf %276, %277 : vector<10x1xf32>
    %279 = vector.broadcast %278 : vector<10x1xf32> to vector<10x64xf32>
    %280 = arith.subf %274, %279 : vector<10x64xf32>
    %281 = arith.mulf %280, %280 : vector<10x64xf32>
    %cst_110 = arith.constant dense<0.000000e+00> : vector<10xf32>
    %282 = vector.multi_reduction <add>, %281, %cst_110 [1] : vector<10x64xf32> to vector<10xf32>
    %283 = vector.shape_cast %282 : vector<10xf32> to vector<10x1xf32>
    %cst_111 = arith.constant 6.400000e+01 : f32
    %284 = vector.broadcast %cst_111 : f32 to vector<10x1xf32>
    %285 = arith.divf %283, %284 : vector<10x1xf32>
    %cst_112 = arith.constant 9.99999974E-6 : f32
    %286 = vector.broadcast %cst_112 : f32 to vector<10x1xf32>
    %287 = arith.addf %285, %286 : vector<10x1xf32>
    %288 = math.rsqrt %287 : vector<10x1xf32>
    %289 = vector.broadcast %288 : vector<10x1xf32> to vector<10x64xf32>
    %290 = arith.mulf %280, %289 : vector<10x64xf32>
    %291 = vector.broadcast %12 : vector<1x64xf32> to vector<10x64xf32>
    %292 = arith.mulf %290, %291 : vector<10x64xf32>
    %293 = vector.broadcast %14 : vector<1x64xf32> to vector<10x64xf32>
    %294 = arith.addf %292, %293 : vector<10x64xf32>
    %295 = arith.truncf %294 : vector<10x64xf32> to vector<10x64xbf16>
    %cst_113 = arith.constant dense<0.000000e+00> : vector<10x2048xf32>
    %296 = tpu.matmul %295, %16, %cst_113 {dimension_numbers = #tpu.dot_dimension_numbers<[1], [0], [0], [1], [0, 0, 1, 1], [], []>} : vector<10x64xbf16>, vector<64x2048xbf16>, vector<10x2048xf32> -> vector<10x2048xf32>
    %297 = vector.broadcast %18 : vector<1x2048xf32> to vector<10x2048xf32>
    %298 = arith.addf %296, %297 : vector<10x2048xf32>
    %cst_114 = arith.constant 0.000000e+00 : f32
    %299 = vector.broadcast %cst_114 : f32 to vector<10x2048xf32>
    %300 = arith.maximumf %298, %299 : vector<10x2048xf32>
    %301 = arith.truncf %300 : vector<10x2048xf32> to vector<10x2048xbf16>
    %cst_115 = arith.constant dense<0.000000e+00> : vector<10x64xf32>
    %302 = tpu.matmul %301, %20, %cst_115 {dimension_numbers = #tpu.dot_dimension_numbers<[1], [0], [0], [1], [0, 0, 1, 1], [], []>} : vector<10x2048xbf16>, vector<2048x64xbf16>, vector<10x64xf32> -> vector<10x64xf32>
    %303 = vector.broadcast %22 : vector<1x64xf32> to vector<10x64xf32>
    %304 = arith.addf %302, %303 : vector<10x64xf32>
    %305 = arith.addf %294, %304 : vector<10x64xf32>
    %cst_116 = arith.constant dense<0.000000e+00> : vector<10xf32>
    %306 = vector.multi_reduction <add>, %305, %cst_116 [1] : vector<10x64xf32> to vector<10xf32>
    %307 = vector.shape_cast %306 : vector<10xf32> to vector<10x1xf32>
    %cst_117 = arith.constant 6.400000e+01 : f32
    %308 = vector.broadcast %cst_117 : f32 to vector<10x1xf32>
    %309 = arith.divf %307, %308 : vector<10x1xf32>
    %310 = vector.broadcast %309 : vector<10x1xf32> to vector<10x64xf32>
    %311 = arith.subf %305, %310 : vector<10x64xf32>
    %312 = arith.mulf %311, %311 : vector<10x64xf32>
    %cst_118 = arith.constant dense<0.000000e+00> : vector<10xf32>
    %313 = vector.multi_reduction <add>, %312, %cst_118 [1] : vector<10x64xf32> to vector<10xf32>
    %314 = vector.shape_cast %313 : vector<10xf32> to vector<10x1xf32>
    %cst_119 = arith.constant 6.400000e+01 : f32
    %315 = vector.broadcast %cst_119 : f32 to vector<10x1xf32>
    %316 = arith.divf %314, %315 : vector<10x1xf32>
    %cst_120 = arith.constant 9.99999974E-6 : f32
    %317 = vector.broadcast %cst_120 : f32 to vector<10x1xf32>
    %318 = arith.addf %316, %317 : vector<10x1xf32>
    %319 = math.rsqrt %318 : vector<10x1xf32>
    %320 = vector.broadcast %319 : vector<10x1xf32> to vector<10x64xf32>
    %321 = arith.mulf %311, %320 : vector<10x64xf32>
    %322 = vector.broadcast %24 : vector<1x64xf32> to vector<10x64xf32>
    %323 = arith.mulf %321, %322 : vector<10x64xf32>
    %324 = vector.broadcast %26 : vector<1x64xf32> to vector<10x64xf32>
    %325 = arith.addf %323, %324 : vector<10x64xf32>
    %c1_121 = arith.constant 1 : index
    %c0_122 = arith.constant 0 : index
    %c0_123 = arith.constant 0 : index
    %326 = vector.load %arg18[%c1_121, %c0_122, %c0_123] : memref<2x10x64xf32, #tpu.memory_space<vmem>>, vector<1x10x64xf32>
    %327 = vector.shape_cast %326 : vector<1x10x64xf32> to vector<10x64xf32>
    %328 = vector.shape_cast %325 : vector<10x64xf32> to vector<1x10x64xf32>
    tpu.vector_store %arg18[%c1_121, %c0_122, %c0_123], %328 {strides = array<i32>} : memref<2x10x64xf32, #tpu.memory_space<vmem>>, vector<1x10x64xf32>,
    %c1_i32 = arith.constant 1 : i32
    %329 = arith.cmpi eq, %arg0, %c1_i32 : i32
    %330 = arith.extui %329 : i1 to i32
    %c0_i32_124 = arith.constant 0 : i32
    %331 = arith.cmpi ne, %330, %c0_i32_124 : i32
    scf.if %331 {
      %c0_125 = arith.constant 0 : index
      %c0_126 = arith.constant 0 : index
      %c0_127 = arith.constant 0 : index
      %332 = vector.load %arg18[%c0_125, %c0_126, %c0_127] : memref<2x10x64xf32, #tpu.memory_space<vmem>>, vector<2x10x64xf32>
      %c0_128 = arith.constant 0 : index
      %c0_129 = arith.constant 0 : index
      %333 = vector.load %arg16[%c0_128, %c0_129] : memref<1x64xf32, #tpu.memory_space<vmem>>, vector<1x64xf32>
      %c0_130 = arith.constant 0 : index
      %c0_131 = arith.constant 0 : index
      %334 = vector.load %arg17[%c0_130, %c0_131] : memref<1x64xf32, #tpu.memory_space<vmem>>, vector<1x64xf32>
      %cst_132 = arith.constant dense<0.000000e+00> : vector<2x10xf32>
      %335 = vector.multi_reduction <add>, %332, %cst_132 [2] : vector<2x10x64xf32> to vector<2x10xf32>
      %336 = vector.shape_cast %335 : vector<2x10xf32> to vector<2x10x1xf32>
      %cst_133 = arith.constant 6.400000e+01 : f32
      %337 = vector.broadcast %cst_133 : f32 to vector<2x10x1xf32>
      %338 = arith.divf %336, %337 : vector<2x10x1xf32>
      %339 = vector.broadcast %338 : vector<2x10x1xf32> to vector<2x10x64xf32>
      %340 = arith.subf %332, %339 : vector<2x10x64xf32>
      %341 = arith.mulf %340, %340 : vector<2x10x64xf32>
      %cst_134 = arith.constant dense<0.000000e+00> : vector<2x10xf32>
      %342 = vector.multi_reduction <add>, %341, %cst_134 [2] : vector<2x10x64xf32> to vector<2x10xf32>
      %343 = vector.shape_cast %342 : vector<2x10xf32> to vector<2x10x1xf32>
      %cst_135 = arith.constant 6.400000e+01 : f32
      %344 = vector.broadcast %cst_135 : f32 to vector<2x10x1xf32>
      %345 = arith.divf %343, %344 : vector<2x10x1xf32>
      %cst_136 = arith.constant 9.99999974E-6 : f32
      %346 = vector.broadcast %cst_136 : f32 to vector<2x10x1xf32>
      %347 = arith.addf %345, %346 : vector<2x10x1xf32>
      %348 = math.rsqrt %347 : vector<2x10x1xf32>
      %349 = vector.broadcast %348 : vector<2x10x1xf32> to vector<2x10x64xf32>
      %350 = arith.mulf %340, %349 : vector<2x10x64xf32>
      %351 = vector.shape_cast %333 : vector<1x64xf32> to vector<1x1x64xf32>
      %352 = vector.broadcast %351 : vector<1x1x64xf32> to vector<2x10x64xf32>
      %353 = arith.mulf %350, %352 : vector<2x10x64xf32>
      %354 = vector.shape_cast %334 : vector<1x64xf32> to vector<1x1x64xf32>
      %355 = vector.broadcast %354 : vector<1x1x64xf32> to vector<2x10x64xf32>
      %356 = arith.addf %353, %355 : vector<2x10x64xf32>
      %c0_137 = arith.constant 0 : index
      %c0_138 = arith.constant 0 : index
      %c0_139 = arith.constant 0 : index
      %357 = vector.load %arg18[%c0_137, %c0_138, %c0_139] : memref<2x10x64xf32, #tpu.memory_space<vmem>>, vector<2x10x64xf32>
      tpu.vector_store %arg18[%c0_137, %c0_138, %c0_139], %356 {strides = array<i32>} : memref<2x10x64xf32, #tpu.memory_space<vmem>>, vector<2x10x64xf32>,
    } else {
    }
    return
  }
  func.func @transform_0(%arg0: i32) -> (i32, i32, i32) {
    %c0_i32 = arith.constant 0 : i32
    %c0_i32_0 = arith.constant 0 : i32
    %c0_i32_1 = arith.constant 0 : i32
    %c0_i32_2 = arith.constant 0 : i32
    return %c0_i32, %c0_i32_0, %c0_i32_1 : i32, i32, i32
  }
  func.func @transform_1(%arg0: i32) -> (i32, i32) {
    %c0_i32 = arith.constant 0 : i32
    %c0_i32_0 = arith.constant 0 : i32
    %c0_i32_1 = arith.constant 0 : i32
    return %c0_i32, %c0_i32_0 : i32, i32
  }
  func.func @transform_2(%arg0: i32) -> (i32, i32) {
    %c0_i32 = arith.constant 0 : i32
    %c0_i32_0 = arith.constant 0 : i32
    %c0_i32_1 = arith.constant 0 : i32
    return %c0_i32, %c0_i32_0 : i32, i32
  }
  func.func @transform_3(%arg0: i32) -> (i32, i32, i32) {
    %c0_i32 = arith.constant 0 : i32
    %c0_i32_0 = arith.constant 0 : i32
    %c0_i32_1 = arith.constant 0 : i32
    return %arg0, %c0_i32, %c0_i32_0 : i32, i32, i32
  }
  func.func @transform_4(%arg0: i32) -> (i32, i32, i32) {
    %c0_i32 = arith.constant 0 : i32
    %c0_i32_0 = arith.constant 0 : i32
    %c0_i32_1 = arith.constant 0 : i32
    return %arg0, %c0_i32, %c0_i32_0 : i32, i32, i32
  }
  func.func @transform_5(%arg0: i32) -> (i32, i32, i32) {
    %c0_i32 = arith.constant 0 : i32
    %c0_i32_0 = arith.constant 0 : i32
    %c0_i32_1 = arith.constant 0 : i32
    return %arg0, %c0_i32, %c0_i32_0 : i32, i32, i32
  }
  func.func @transform_6(%arg0: i32) -> (i32, i32, i32) {
    %c0_i32 = arith.constant 0 : i32
    %c0_i32_0 = arith.constant 0 : i32
    %c0_i32_1 = arith.constant 0 : i32
    return %arg0, %c0_i32, %c0_i32_0 : i32, i32, i32
  }
  func.func @transform_7(%arg0: i32) -> (i32, i32, i32) {
    %c0_i32 = arith.constant 0 : i32
    %c0_i32_0 = arith.constant 0 : i32
    %c0_i32_1 = arith.constant 0 : i32
    return %arg0, %c0_i32, %c0_i32_0 : i32, i32, i32
  }
  func.func @transform_8(%arg0: i32) -> (i32, i32, i32) {
    %c0_i32 = arith.constant 0 : i32
    %c0_i32_0 = arith.constant 0 : i32
    %c0_i32_1 = arith.constant 0 : i32
    return %arg0, %c0_i32, %c0_i32_0 : i32, i32, i32
  }
  func.func @transform_9(%arg0: i32) -> (i32, i32, i32) {
    %c0_i32 = arith.constant 0 : i32
    %c0_i32_0 = arith.constant 0 : i32
    %c0_i32_1 = arith.constant 0 : i32
    return %arg0, %c0_i32, %c0_i32_0 : i32, i32, i32
  }
  func.func @transform_10(%arg0: i32) -> (i32, i32, i32) {
    %c0_i32 = arith.constant 0 : i32
    %c0_i32_0 = arith.constant 0 : i32
    %c0_i32_1 = arith.constant 0 : i32
    return %arg0, %c0_i32, %c0_i32_0 : i32, i32, i32
  }
  func.func @transform_11(%arg0: i32) -> (i32, i32, i32) {
    %c0_i32 = arith.constant 0 : i32
    %c0_i32_0 = arith.constant 0 : i32
    %c0_i32_1 = arith.constant 0 : i32
    return %arg0, %c0_i32, %c0_i32_0 : i32, i32, i32
  }
  func.func @transform_12(%arg0: i32) -> (i32, i32, i32) {
    %c0_i32 = arith.constant 0 : i32
    %c0_i32_0 = arith.constant 0 : i32
    %c0_i32_1 = arith.constant 0 : i32
    return %arg0, %c0_i32, %c0_i32_0 : i32, i32, i32
  }
  func.func @transform_13(%arg0: i32) -> (i32, i32, i32) {
    %c0_i32 = arith.constant 0 : i32
    %c0_i32_0 = arith.constant 0 : i32
    %c0_i32_1 = arith.constant 0 : i32
    return %arg0, %c0_i32, %c0_i32_0 : i32, i32, i32
  }
  func.func @transform_14(%arg0: i32) -> (i32, i32, i32) {
    %c0_i32 = arith.constant 0 : i32
    %c0_i32_0 = arith.constant 0 : i32
    %c0_i32_1 = arith.constant 0 : i32
    return %arg0, %c0_i32, %c0_i32_0 : i32, i32, i32
  }
  func.func @transform_15(%arg0: i32) -> (i32, i32) {
    %c0_i32 = arith.constant 0 : i32
    %c0_i32_0 = arith.constant 0 : i32
    %c0_i32_1 = arith.constant 0 : i32
    return %c0_i32, %c0_i32_0 : i32, i32
  }
  func.func @transform_16(%arg0: i32) -> (i32, i32) {
    %c0_i32 = arith.constant 0 : i32
    %c0_i32_0 = arith.constant 0 : i32
    %c0_i32_1 = arith.constant 0 : i32
    return %c0_i32, %c0_i32_0 : i32, i32
  }
  func.func @transform_17(%arg0: i32) -> (i32, i32, i32) {
    %c0_i32 = arith.constant 0 : i32
    %c0_i32_0 = arith.constant 0 : i32
    %c0_i32_1 = arith.constant 0 : i32
    %c0_i32_2 = arith.constant 0 : i32
    return %c0_i32, %c0_i32_0, %c0_i32_1 : i32, i32, i32
  }
}

module attributes {stable_mosaic.version = 11 : i64} {
  func.func @_decoder_kernel(%arg0: i32, %arg1: memref<2x8x1xf32, #tpu.memory_space<vmem>>, %arg2: memref<1x64xf32, #tpu.memory_space<vmem>>, %arg3: memref<1x64xf32, #tpu.memory_space<vmem>>, %arg4: memref<2x10x64xf32, #tpu.memory_space<vmem>>, %arg5: memref<1x64x192xbf16, #tpu.memory_space<vmem>>, %arg6: memref<1x1x192xf32, #tpu.memory_space<vmem>>, %arg7: memref<1x64x64xbf16, #tpu.memory_space<vmem>>, %arg8: memref<1x1x64xf32, #tpu.memory_space<vmem>>, %arg9: memref<1x1x64xf32, #tpu.memory_space<vmem>>, %arg10: memref<1x1x64xf32, #tpu.memory_space<vmem>>, %arg11: memref<1x64x64xbf16, #tpu.memory_space<vmem>>, %arg12: memref<1x1x64xf32, #tpu.memory_space<vmem>>, %arg13: memref<1x64x128xbf16, #tpu.memory_space<vmem>>, %arg14: memref<1x1x128xf32, #tpu.memory_space<vmem>>, %arg15: memref<1x64x64xbf16, #tpu.memory_space<vmem>>, %arg16: memref<1x1x64xf32, #tpu.memory_space<vmem>>, %arg17: memref<1x1x64xf32, #tpu.memory_space<vmem>>, %arg18: memref<1x1x64xf32, #tpu.memory_space<vmem>>, %arg19: memref<1x64x2048xbf16, #tpu.memory_space<vmem>>, %arg20: memref<1x1x2048xf32, #tpu.memory_space<vmem>>, %arg21: memref<1x2048x64xbf16, #tpu.memory_space<vmem>>, %arg22: memref<1x1x64xf32, #tpu.memory_space<vmem>>, %arg23: memref<1x1x64xf32, #tpu.memory_space<vmem>>, %arg24: memref<1x1x64xf32, #tpu.memory_space<vmem>>, %arg25: memref<1x64xf32, #tpu.memory_space<vmem>>, %arg26: memref<1x64xf32, #tpu.memory_space<vmem>>, %arg27: memref<1x64xf32, #tpu.memory_space<vmem>>, %arg28: memref<1x1xf32, #tpu.memory_space<vmem>>, %arg29: memref<2x8x1xf32, #tpu.memory_space<vmem>>, %arg30: memref<2x8x64xf32, #tpu.memory_space<vmem>>) attributes {dimension_semantics = [#tpu.dimension_semantics<arbitrary>], iteration_bounds = array<i64: 6>, scalar_prefetch = 0 : i64, scratch_operands = 1 : i64, tpu.core_type = #tpu.core_type<tc>, window_params = [{pipeline_mode = #tpu.pipeline_mode<synchronous>, transform_indices = @transform_0, window_bounds = array<i64: 2, 8, 1>}, {pipeline_mode = #tpu.pipeline_mode<synchronous>, transform_indices = @transform_1, window_bounds = array<i64: 1, 64>}, {pipeline_mode = #tpu.pipeline_mode<synchronous>, transform_indices = @transform_2, window_bounds = array<i64: 1, 64>}, {pipeline_mode = #tpu.pipeline_mode<synchronous>, transform_indices = @transform_3, window_bounds = array<i64: 2, 10, 64>}, {transform_indices = @transform_4, window_bounds = array<i64: 1, 64, 192>}, {transform_indices = @transform_5, window_bounds = array<i64: 1, 1, 192>}, {transform_indices = @transform_6, window_bounds = array<i64: 1, 64, 64>}, {transform_indices = @transform_7, window_bounds = array<i64: 1, 1, 64>}, {transform_indices = @transform_8, window_bounds = array<i64: 1, 1, 64>}, {transform_indices = @transform_9, window_bounds = array<i64: 1, 1, 64>}, {transform_indices = @transform_10, window_bounds = array<i64: 1, 64, 64>}, {transform_indices = @transform_11, window_bounds = array<i64: 1, 1, 64>}, {transform_indices = @transform_12, window_bounds = array<i64: 1, 64, 128>}, {transform_indices = @transform_13, window_bounds = array<i64: 1, 1, 128>}, {transform_indices = @transform_14, window_bounds = array<i64: 1, 64, 64>}, {transform_indices = @transform_15, window_bounds = array<i64: 1, 1, 64>}, {transform_indices = @transform_16, window_bounds = array<i64: 1, 1, 64>}, {transform_indices = @transform_17, window_bounds = array<i64: 1, 1, 64>}, {transform_indices = @transform_18, window_bounds = array<i64: 1, 64, 2048>}, {transform_indices = @transform_19, window_bounds = array<i64: 1, 1, 2048>}, {transform_indices = @transform_20, window_bounds = array<i64: 1, 2048, 64>}, {transform_indices = @transform_21, window_bounds = array<i64: 1, 1, 64>}, {transform_indices = @transform_22, window_bounds = array<i64: 1, 1, 64>}, {transform_indices = @transform_23, window_bounds = array<i64: 1, 1, 64>}, {pipeline_mode = #tpu.pipeline_mode<synchronous>, transform_indices = @transform_24, window_bounds = array<i64: 1, 64>}, {pipeline_mode = #tpu.pipeline_mode<synchronous>, transform_indices = @transform_25, window_bounds = array<i64: 1, 64>}, {pipeline_mode = #tpu.pipeline_mode<synchronous>, transform_indices = @transform_26, window_bounds = array<i64: 1, 64>}, {pipeline_mode = #tpu.pipeline_mode<synchronous>, transform_indices = @transform_27, window_bounds = array<i64: 1, 1>}, {pipeline_mode = #tpu.pipeline_mode<synchronous>, transform_indices = @transform_28, window_bounds = array<i64: 2, 8, 1>}]} {
    %c0_i32 = arith.constant 0 : i32
    %0 = arith.cmpi eq, %arg0, %c0_i32 : i32
    %1 = arith.extui %0 : i1 to i32
    %c0_i32_0 = arith.constant 0 : i32
    %2 = arith.cmpi ne, %1, %c0_i32_0 : i32
    scf.if %2 {
      %c0_219 = arith.constant 0 : index
      %c0_220 = arith.constant 0 : index
      %c0_221 = arith.constant 0 : index
      %588 = vector.load %arg1[%c0_219, %c0_220, %c0_221] : memref<2x8x1xf32, #tpu.memory_space<vmem>>, vector<2x8x1xf32>
      %c0_222 = arith.constant 0 : index
      %c0_223 = arith.constant 0 : index
      %589 = vector.load %arg2[%c0_222, %c0_223] : memref<1x64xf32, #tpu.memory_space<vmem>>, vector<1x64xf32>
      %590 = vector.shape_cast %589 : vector<1x64xf32> to vector<1x1x64xf32>
      %591 = vector.broadcast %588 : vector<2x8x1xf32> to vector<2x8x64xf32>
      %592 = vector.broadcast %590 : vector<1x1x64xf32> to vector<2x8x64xf32>
      %593 = arith.mulf %591, %592 : vector<2x8x64xf32>
      %c0_224 = arith.constant 0 : index
      %c0_225 = arith.constant 0 : index
      %594 = vector.load %arg3[%c0_224, %c0_225] : memref<1x64xf32, #tpu.memory_space<vmem>>, vector<1x64xf32>
      %595 = vector.shape_cast %594 : vector<1x64xf32> to vector<1x1x64xf32>
      %596 = vector.broadcast %595 : vector<1x1x64xf32> to vector<2x8x64xf32>
      %597 = arith.addf %593, %596 : vector<2x8x64xf32>
      %c0_226 = arith.constant 0 : index
      %c0_227 = arith.constant 0 : index
      %c0_228 = arith.constant 0 : index
      %598 = vector.load %arg30[%c0_226, %c0_227, %c0_228] : memref<2x8x64xf32, #tpu.memory_space<vmem>>, vector<2x8x64xf32>
      tpu.vector_store %arg30[%c0_226, %c0_227, %c0_228], %597 {strides = array<i32>} : memref<2x8x64xf32, #tpu.memory_space<vmem>>, vector<2x8x64xf32>,
    } else {
    }
    %c0 = arith.constant 0 : index
    %c0_1 = arith.constant 0 : index
    %c0_2 = arith.constant 0 : index
    %3 = vector.load %arg5[%c0, %c0_1, %c0_2] : memref<1x64x192xbf16, #tpu.memory_space<vmem>>, vector<1x64x192xbf16>
    %4 = vector.shape_cast %3 : vector<1x64x192xbf16> to vector<64x192xbf16>
    %c0_3 = arith.constant 0 : index
    %c0_4 = arith.constant 0 : index
    %c0_5 = arith.constant 0 : index
    %5 = vector.load %arg6[%c0_3, %c0_4, %c0_5] : memref<1x1x192xf32, #tpu.memory_space<vmem>>, vector<1x1x192xf32>
    %6 = vector.shape_cast %5 : vector<1x1x192xf32> to vector<1x192xf32>
    %c0_6 = arith.constant 0 : index
    %c0_7 = arith.constant 0 : index
    %c0_8 = arith.constant 0 : index
    %7 = vector.load %arg7[%c0_6, %c0_7, %c0_8] : memref<1x64x64xbf16, #tpu.memory_space<vmem>>, vector<1x64x64xbf16>
    %8 = vector.shape_cast %7 : vector<1x64x64xbf16> to vector<64x64xbf16>
    %c0_9 = arith.constant 0 : index
    %c0_10 = arith.constant 0 : index
    %c0_11 = arith.constant 0 : index
    %9 = vector.load %arg8[%c0_9, %c0_10, %c0_11] : memref<1x1x64xf32, #tpu.memory_space<vmem>>, vector<1x1x64xf32>
    %10 = vector.shape_cast %9 : vector<1x1x64xf32> to vector<1x64xf32>
    %c0_12 = arith.constant 0 : index
    %c0_13 = arith.constant 0 : index
    %c0_14 = arith.constant 0 : index
    %11 = vector.load %arg9[%c0_12, %c0_13, %c0_14] : memref<1x1x64xf32, #tpu.memory_space<vmem>>, vector<1x1x64xf32>
    %12 = vector.shape_cast %11 : vector<1x1x64xf32> to vector<1x64xf32>
    %c0_15 = arith.constant 0 : index
    %c0_16 = arith.constant 0 : index
    %c0_17 = arith.constant 0 : index
    %13 = vector.load %arg10[%c0_15, %c0_16, %c0_17] : memref<1x1x64xf32, #tpu.memory_space<vmem>>, vector<1x1x64xf32>
    %14 = vector.shape_cast %13 : vector<1x1x64xf32> to vector<1x64xf32>
    %c0_18 = arith.constant 0 : index
    %c0_19 = arith.constant 0 : index
    %c0_20 = arith.constant 0 : index
    %15 = vector.load %arg11[%c0_18, %c0_19, %c0_20] : memref<1x64x64xbf16, #tpu.memory_space<vmem>>, vector<1x64x64xbf16>
    %16 = vector.shape_cast %15 : vector<1x64x64xbf16> to vector<64x64xbf16>
    %c0_21 = arith.constant 0 : index
    %c0_22 = arith.constant 0 : index
    %c0_23 = arith.constant 0 : index
    %17 = vector.load %arg12[%c0_21, %c0_22, %c0_23] : memref<1x1x64xf32, #tpu.memory_space<vmem>>, vector<1x1x64xf32>
    %18 = vector.shape_cast %17 : vector<1x1x64xf32> to vector<1x64xf32>
    %c0_24 = arith.constant 0 : index
    %c0_25 = arith.constant 0 : index
    %c0_26 = arith.constant 0 : index
    %19 = vector.load %arg13[%c0_24, %c0_25, %c0_26] : memref<1x64x128xbf16, #tpu.memory_space<vmem>>, vector<1x64x128xbf16>
    %20 = vector.shape_cast %19 : vector<1x64x128xbf16> to vector<64x128xbf16>
    %c0_27 = arith.constant 0 : index
    %c0_28 = arith.constant 0 : index
    %c0_29 = arith.constant 0 : index
    %21 = vector.load %arg14[%c0_27, %c0_28, %c0_29] : memref<1x1x128xf32, #tpu.memory_space<vmem>>, vector<1x1x128xf32>
    %22 = vector.shape_cast %21 : vector<1x1x128xf32> to vector<1x128xf32>
    %c0_30 = arith.constant 0 : index
    %c0_31 = arith.constant 0 : index
    %c0_32 = arith.constant 0 : index
    %23 = vector.load %arg15[%c0_30, %c0_31, %c0_32] : memref<1x64x64xbf16, #tpu.memory_space<vmem>>, vector<1x64x64xbf16>
    %24 = vector.shape_cast %23 : vector<1x64x64xbf16> to vector<64x64xbf16>
    %c0_33 = arith.constant 0 : index
    %c0_34 = arith.constant 0 : index
    %c0_35 = arith.constant 0 : index
    %25 = vector.load %arg16[%c0_33, %c0_34, %c0_35] : memref<1x1x64xf32, #tpu.memory_space<vmem>>, vector<1x1x64xf32>
    %26 = vector.shape_cast %25 : vector<1x1x64xf32> to vector<1x64xf32>
    %c0_36 = arith.constant 0 : index
    %c0_37 = arith.constant 0 : index
    %c0_38 = arith.constant 0 : index
    %27 = vector.load %arg17[%c0_36, %c0_37, %c0_38] : memref<1x1x64xf32, #tpu.memory_space<vmem>>, vector<1x1x64xf32>
    %28 = vector.shape_cast %27 : vector<1x1x64xf32> to vector<1x64xf32>
    %c0_39 = arith.constant 0 : index
    %c0_40 = arith.constant 0 : index
    %c0_41 = arith.constant 0 : index
    %29 = vector.load %arg18[%c0_39, %c0_40, %c0_41] : memref<1x1x64xf32, #tpu.memory_space<vmem>>, vector<1x1x64xf32>
    %30 = vector.shape_cast %29 : vector<1x1x64xf32> to vector<1x64xf32>
    %c0_42 = arith.constant 0 : index
    %c0_43 = arith.constant 0 : index
    %c0_44 = arith.constant 0 : index
    %31 = vector.load %arg19[%c0_42, %c0_43, %c0_44] : memref<1x64x2048xbf16, #tpu.memory_space<vmem>>, vector<1x64x2048xbf16>
    %32 = vector.shape_cast %31 : vector<1x64x2048xbf16> to vector<64x2048xbf16>
    %c0_45 = arith.constant 0 : index
    %c0_46 = arith.constant 0 : index
    %c0_47 = arith.constant 0 : index
    %33 = vector.load %arg20[%c0_45, %c0_46, %c0_47] : memref<1x1x2048xf32, #tpu.memory_space<vmem>>, vector<1x1x2048xf32>
    %34 = vector.shape_cast %33 : vector<1x1x2048xf32> to vector<1x2048xf32>
    %c0_48 = arith.constant 0 : index
    %c0_49 = arith.constant 0 : index
    %c0_50 = arith.constant 0 : index
    %35 = vector.load %arg21[%c0_48, %c0_49, %c0_50] : memref<1x2048x64xbf16, #tpu.memory_space<vmem>>, vector<1x2048x64xbf16>
    %36 = vector.shape_cast %35 : vector<1x2048x64xbf16> to vector<2048x64xbf16>
    %c0_51 = arith.constant 0 : index
    %c0_52 = arith.constant 0 : index
    %c0_53 = arith.constant 0 : index
    %37 = vector.load %arg22[%c0_51, %c0_52, %c0_53] : memref<1x1x64xf32, #tpu.memory_space<vmem>>, vector<1x1x64xf32>
    %38 = vector.shape_cast %37 : vector<1x1x64xf32> to vector<1x64xf32>
    %c0_54 = arith.constant 0 : index
    %c0_55 = arith.constant 0 : index
    %c0_56 = arith.constant 0 : index
    %39 = vector.load %arg23[%c0_54, %c0_55, %c0_56] : memref<1x1x64xf32, #tpu.memory_space<vmem>>, vector<1x1x64xf32>
    %40 = vector.shape_cast %39 : vector<1x1x64xf32> to vector<1x64xf32>
    %c0_57 = arith.constant 0 : index
    %c0_58 = arith.constant 0 : index
    %c0_59 = arith.constant 0 : index
    %41 = vector.load %arg24[%c0_57, %c0_58, %c0_59] : memref<1x1x64xf32, #tpu.memory_space<vmem>>, vector<1x1x64xf32>
    %42 = vector.shape_cast %41 : vector<1x1x64xf32> to vector<1x64xf32>
    %c0_60 = arith.constant 0 : index
    %c0_61 = arith.constant 0 : index
    %c0_62 = arith.constant 0 : index
    %43 = vector.load %arg30[%c0_60, %c0_61, %c0_62] : memref<2x8x64xf32, #tpu.memory_space<vmem>>, vector<1x8x64xf32>
    %44 = vector.shape_cast %43 : vector<1x8x64xf32> to vector<8x64xf32>
    %c0_63 = arith.constant 0 : index
    %c0_64 = arith.constant 0 : index
    %c0_65 = arith.constant 0 : index
    %45 = vector.load %arg4[%c0_63, %c0_64, %c0_65] : memref<2x10x64xf32, #tpu.memory_space<vmem>>, vector<1x10x64xf32>
    %46 = vector.shape_cast %45 : vector<1x10x64xf32> to vector<10x64xf32>
    %47 = arith.truncf %44 : vector<8x64xf32> to vector<8x64xbf16>
    %cst = arith.constant dense<0.000000e+00> : vector<8x192xf32>
    %48 = tpu.matmul %47, %4, %cst {dimension_numbers = #tpu.dot_dimension_numbers<[1], [0], [0], [1], [0, 0, 1, 1], [], []>} : vector<8x64xbf16>, vector<64x192xbf16>, vector<8x192xf32> -> vector<8x192xf32>
    %49 = vector.broadcast %6 : vector<1x192xf32> to vector<8x192xf32>
    %50 = arith.addf %48, %49 : vector<8x192xf32>
    %51 = vector.extract_strided_slice %50 {offsets = [0, 0], sizes = [8, 64], strides = [1, 1]} : vector<8x192xf32> to vector<8x64xf32>
    %52 = vector.extract_strided_slice %50 {offsets = [0, 64], sizes = [8, 64], strides = [1, 1]} : vector<8x192xf32> to vector<8x64xf32>
    %53 = vector.extract_strided_slice %50 {offsets = [0, 128], sizes = [8, 64], strides = [1, 1]} : vector<8x192xf32> to vector<8x64xf32>
    %cst_66 = arith.constant 0.000000e+00 : f32
    %54 = vector.broadcast %cst_66 : f32 to vector<8x64xf32>
    %55 = vector.extract_strided_slice %51 {offsets = [0, 0], sizes = [8, 16], strides = [1, 1]} : vector<8x64xf32> to vector<8x16xf32>
    %56 = vector.extract_strided_slice %52 {offsets = [0, 0], sizes = [8, 16], strides = [1, 1]} : vector<8x64xf32> to vector<8x16xf32>
    %57 = vector.extract_strided_slice %53 {offsets = [0, 0], sizes = [8, 16], strides = [1, 1]} : vector<8x64xf32> to vector<8x16xf32>
    %cst_67 = arith.constant dense<0.000000e+00> : vector<8x8xf32>
    %58 = tpu.matmul %55, %56, %cst_67 {dimension_numbers = #tpu.dot_dimension_numbers<[1], [1], [0], [0], [0, 0, 1, 0], [], []>} : vector<8x16xf32>, vector<8x16xf32>, vector<8x8xf32> -> vector<8x8xf32>
    %cst_68 = arith.constant 2.500000e-01 : f32
    %59 = vector.broadcast %cst_68 : f32 to vector<8x8xf32>
    %60 = arith.mulf %58, %59 : vector<8x8xf32>
    %cst_69 = arith.constant dense<0xFF800000> : vector<8xf32>
    %61 = vector.multi_reduction <maximumf>, %60, %cst_69 [1] : vector<8x8xf32> to vector<8xf32>
    %62 = vector.shape_cast %61 : vector<8xf32> to vector<8x1xf32>
    %63 = vector.broadcast %62 : vector<8x1xf32> to vector<8x8xf32>
    %64 = arith.subf %60, %63 : vector<8x8xf32>
    %65 = math.exp %64 : vector<8x8xf32>
    %cst_70 = arith.constant dense<0.000000e+00> : vector<8xf32>
    %66 = vector.multi_reduction <add>, %65, %cst_70 [1] : vector<8x8xf32> to vector<8xf32>
    %67 = vector.shape_cast %66 : vector<8xf32> to vector<8x1xf32>
    %cst_71 = arith.constant dense<0.000000e+00> : vector<8x16xf32>
    %68 = tpu.matmul %65, %57, %cst_71 {dimension_numbers = #tpu.dot_dimension_numbers<[1], [0], [0], [1], [0, 0, 1, 1], [], []>} : vector<8x8xf32>, vector<8x16xf32>, vector<8x16xf32> -> vector<8x16xf32>
    %69 = tpu.reciprocal %67 {approx = true} : vector<8x1xf32> -> vector<8x1xf32>
    %70 = vector.broadcast %69 : vector<8x1xf32> to vector<8x16xf32>
    %71 = arith.mulf %68, %70 : vector<8x16xf32>
    %72 = arith.truncf %71 : vector<8x16xf32> to vector<8x16xbf16>
    %73 = vector.extract_strided_slice %8 {offsets = [0, 0], sizes = [16, 64], strides = [1, 1]} : vector<64x64xbf16> to vector<16x64xbf16>
    %cst_72 = arith.constant dense<0.000000e+00> : vector<8x64xf32>
    %74 = tpu.matmul %72, %73, %cst_72 {dimension_numbers = #tpu.dot_dimension_numbers<[1], [0], [0], [1], [0, 0, 1, 1], [], []>} : vector<8x16xbf16>, vector<16x64xbf16>, vector<8x64xf32> -> vector<8x64xf32>
    %75 = arith.addf %54, %74 : vector<8x64xf32>
    %76 = vector.extract_strided_slice %51 {offsets = [0, 16], sizes = [8, 16], strides = [1, 1]} : vector<8x64xf32> to vector<8x16xf32>
    %77 = vector.extract_strided_slice %52 {offsets = [0, 16], sizes = [8, 16], strides = [1, 1]} : vector<8x64xf32> to vector<8x16xf32>
    %78 = vector.extract_strided_slice %53 {offsets = [0, 16], sizes = [8, 16], strides = [1, 1]} : vector<8x64xf32> to vector<8x16xf32>
    %cst_73 = arith.constant dense<0.000000e+00> : vector<8x8xf32>
    %79 = tpu.matmul %76, %77, %cst_73 {dimension_numbers = #tpu.dot_dimension_numbers<[1], [1], [0], [0], [0, 0, 1, 0], [], []>} : vector<8x16xf32>, vector<8x16xf32>, vector<8x8xf32> -> vector<8x8xf32>
    %cst_74 = arith.constant 2.500000e-01 : f32
    %80 = vector.broadcast %cst_74 : f32 to vector<8x8xf32>
    %81 = arith.mulf %79, %80 : vector<8x8xf32>
    %cst_75 = arith.constant dense<0xFF800000> : vector<8xf32>
    %82 = vector.multi_reduction <maximumf>, %81, %cst_75 [1] : vector<8x8xf32> to vector<8xf32>
    %83 = vector.shape_cast %82 : vector<8xf32> to vector<8x1xf32>
    %84 = vector.broadcast %83 : vector<8x1xf32> to vector<8x8xf32>
    %85 = arith.subf %81, %84 : vector<8x8xf32>
    %86 = math.exp %85 : vector<8x8xf32>
    %cst_76 = arith.constant dense<0.000000e+00> : vector<8xf32>
    %87 = vector.multi_reduction <add>, %86, %cst_76 [1] : vector<8x8xf32> to vector<8xf32>
    %88 = vector.shape_cast %87 : vector<8xf32> to vector<8x1xf32>
    %cst_77 = arith.constant dense<0.000000e+00> : vector<8x16xf32>
    %89 = tpu.matmul %86, %78, %cst_77 {dimension_numbers = #tpu.dot_dimension_numbers<[1], [0], [0], [1], [0, 0, 1, 1], [], []>} : vector<8x8xf32>, vector<8x16xf32>, vector<8x16xf32> -> vector<8x16xf32>
    %90 = tpu.reciprocal %88 {approx = true} : vector<8x1xf32> -> vector<8x1xf32>
    %91 = vector.broadcast %90 : vector<8x1xf32> to vector<8x16xf32>
    %92 = arith.mulf %89, %91 : vector<8x16xf32>
    %93 = arith.truncf %92 : vector<8x16xf32> to vector<8x16xbf16>
    %94 = vector.extract_strided_slice %8 {offsets = [16, 0], sizes = [16, 64], strides = [1, 1]} : vector<64x64xbf16> to vector<16x64xbf16>
    %cst_78 = arith.constant dense<0.000000e+00> : vector<8x64xf32>
    %95 = tpu.matmul %93, %94, %cst_78 {dimension_numbers = #tpu.dot_dimension_numbers<[1], [0], [0], [1], [0, 0, 1, 1], [], []>} : vector<8x16xbf16>, vector<16x64xbf16>, vector<8x64xf32> -> vector<8x64xf32>
    %96 = arith.addf %75, %95 : vector<8x64xf32>
    %97 = vector.extract_strided_slice %51 {offsets = [0, 32], sizes = [8, 16], strides = [1, 1]} : vector<8x64xf32> to vector<8x16xf32>
    %98 = vector.extract_strided_slice %52 {offsets = [0, 32], sizes = [8, 16], strides = [1, 1]} : vector<8x64xf32> to vector<8x16xf32>
    %99 = vector.extract_strided_slice %53 {offsets = [0, 32], sizes = [8, 16], strides = [1, 1]} : vector<8x64xf32> to vector<8x16xf32>
    %cst_79 = arith.constant dense<0.000000e+00> : vector<8x8xf32>
    %100 = tpu.matmul %97, %98, %cst_79 {dimension_numbers = #tpu.dot_dimension_numbers<[1], [1], [0], [0], [0, 0, 1, 0], [], []>} : vector<8x16xf32>, vector<8x16xf32>, vector<8x8xf32> -> vector<8x8xf32>
    %cst_80 = arith.constant 2.500000e-01 : f32
    %101 = vector.broadcast %cst_80 : f32 to vector<8x8xf32>
    %102 = arith.mulf %100, %101 : vector<8x8xf32>
    %cst_81 = arith.constant dense<0xFF800000> : vector<8xf32>
    %103 = vector.multi_reduction <maximumf>, %102, %cst_81 [1] : vector<8x8xf32> to vector<8xf32>
    %104 = vector.shape_cast %103 : vector<8xf32> to vector<8x1xf32>
    %105 = vector.broadcast %104 : vector<8x1xf32> to vector<8x8xf32>
    %106 = arith.subf %102, %105 : vector<8x8xf32>
    %107 = math.exp %106 : vector<8x8xf32>
    %cst_82 = arith.constant dense<0.000000e+00> : vector<8xf32>
    %108 = vector.multi_reduction <add>, %107, %cst_82 [1] : vector<8x8xf32> to vector<8xf32>
    %109 = vector.shape_cast %108 : vector<8xf32> to vector<8x1xf32>
    %cst_83 = arith.constant dense<0.000000e+00> : vector<8x16xf32>
    %110 = tpu.matmul %107, %99, %cst_83 {dimension_numbers = #tpu.dot_dimension_numbers<[1], [0], [0], [1], [0, 0, 1, 1], [], []>} : vector<8x8xf32>, vector<8x16xf32>, vector<8x16xf32> -> vector<8x16xf32>
    %111 = tpu.reciprocal %109 {approx = true} : vector<8x1xf32> -> vector<8x1xf32>
    %112 = vector.broadcast %111 : vector<8x1xf32> to vector<8x16xf32>
    %113 = arith.mulf %110, %112 : vector<8x16xf32>
    %114 = arith.truncf %113 : vector<8x16xf32> to vector<8x16xbf16>
    %115 = vector.extract_strided_slice %8 {offsets = [32, 0], sizes = [16, 64], strides = [1, 1]} : vector<64x64xbf16> to vector<16x64xbf16>
    %cst_84 = arith.constant dense<0.000000e+00> : vector<8x64xf32>
    %116 = tpu.matmul %114, %115, %cst_84 {dimension_numbers = #tpu.dot_dimension_numbers<[1], [0], [0], [1], [0, 0, 1, 1], [], []>} : vector<8x16xbf16>, vector<16x64xbf16>, vector<8x64xf32> -> vector<8x64xf32>
    %117 = arith.addf %96, %116 : vector<8x64xf32>
    %118 = vector.extract_strided_slice %51 {offsets = [0, 48], sizes = [8, 16], strides = [1, 1]} : vector<8x64xf32> to vector<8x16xf32>
    %119 = vector.extract_strided_slice %52 {offsets = [0, 48], sizes = [8, 16], strides = [1, 1]} : vector<8x64xf32> to vector<8x16xf32>
    %120 = vector.extract_strided_slice %53 {offsets = [0, 48], sizes = [8, 16], strides = [1, 1]} : vector<8x64xf32> to vector<8x16xf32>
    %cst_85 = arith.constant dense<0.000000e+00> : vector<8x8xf32>
    %121 = tpu.matmul %118, %119, %cst_85 {dimension_numbers = #tpu.dot_dimension_numbers<[1], [1], [0], [0], [0, 0, 1, 0], [], []>} : vector<8x16xf32>, vector<8x16xf32>, vector<8x8xf32> -> vector<8x8xf32>
    %cst_86 = arith.constant 2.500000e-01 : f32
    %122 = vector.broadcast %cst_86 : f32 to vector<8x8xf32>
    %123 = arith.mulf %121, %122 : vector<8x8xf32>
    %cst_87 = arith.constant dense<0xFF800000> : vector<8xf32>
    %124 = vector.multi_reduction <maximumf>, %123, %cst_87 [1] : vector<8x8xf32> to vector<8xf32>
    %125 = vector.shape_cast %124 : vector<8xf32> to vector<8x1xf32>
    %126 = vector.broadcast %125 : vector<8x1xf32> to vector<8x8xf32>
    %127 = arith.subf %123, %126 : vector<8x8xf32>
    %128 = math.exp %127 : vector<8x8xf32>
    %cst_88 = arith.constant dense<0.000000e+00> : vector<8xf32>
    %129 = vector.multi_reduction <add>, %128, %cst_88 [1] : vector<8x8xf32> to vector<8xf32>
    %130 = vector.shape_cast %129 : vector<8xf32> to vector<8x1xf32>
    %cst_89 = arith.constant dense<0.000000e+00> : vector<8x16xf32>
    %131 = tpu.matmul %128, %120, %cst_89 {dimension_numbers = #tpu.dot_dimension_numbers<[1], [0], [0], [1], [0, 0, 1, 1], [], []>} : vector<8x8xf32>, vector<8x16xf32>, vector<8x16xf32> -> vector<8x16xf32>
    %132 = tpu.reciprocal %130 {approx = true} : vector<8x1xf32> -> vector<8x1xf32>
    %133 = vector.broadcast %132 : vector<8x1xf32> to vector<8x16xf32>
    %134 = arith.mulf %131, %133 : vector<8x16xf32>
    %135 = arith.truncf %134 : vector<8x16xf32> to vector<8x16xbf16>
    %136 = vector.extract_strided_slice %8 {offsets = [48, 0], sizes = [16, 64], strides = [1, 1]} : vector<64x64xbf16> to vector<16x64xbf16>
    %cst_90 = arith.constant dense<0.000000e+00> : vector<8x64xf32>
    %137 = tpu.matmul %135, %136, %cst_90 {dimension_numbers = #tpu.dot_dimension_numbers<[1], [0], [0], [1], [0, 0, 1, 1], [], []>} : vector<8x16xbf16>, vector<16x64xbf16>, vector<8x64xf32> -> vector<8x64xf32>
    %138 = arith.addf %117, %137 : vector<8x64xf32>
    %139 = vector.broadcast %10 : vector<1x64xf32> to vector<8x64xf32>
    %140 = arith.addf %138, %139 : vector<8x64xf32>
    %141 = arith.addf %44, %140 : vector<8x64xf32>
    %cst_91 = arith.constant dense<0.000000e+00> : vector<8xf32>
    %142 = vector.multi_reduction <add>, %141, %cst_91 [1] : vector<8x64xf32> to vector<8xf32>
    %143 = vector.shape_cast %142 : vector<8xf32> to vector<8x1xf32>
    %cst_92 = arith.constant 6.400000e+01 : f32
    %144 = vector.broadcast %cst_92 : f32 to vector<8x1xf32>
    %145 = arith.divf %143, %144 : vector<8x1xf32>
    %146 = vector.broadcast %145 : vector<8x1xf32> to vector<8x64xf32>
    %147 = arith.subf %141, %146 : vector<8x64xf32>
    %148 = arith.mulf %147, %147 : vector<8x64xf32>
    %cst_93 = arith.constant dense<0.000000e+00> : vector<8xf32>
    %149 = vector.multi_reduction <add>, %148, %cst_93 [1] : vector<8x64xf32> to vector<8xf32>
    %150 = vector.shape_cast %149 : vector<8xf32> to vector<8x1xf32>
    %cst_94 = arith.constant 6.400000e+01 : f32
    %151 = vector.broadcast %cst_94 : f32 to vector<8x1xf32>
    %152 = arith.divf %150, %151 : vector<8x1xf32>
    %cst_95 = arith.constant 9.99999974E-6 : f32
    %153 = vector.broadcast %cst_95 : f32 to vector<8x1xf32>
    %154 = arith.addf %152, %153 : vector<8x1xf32>
    %155 = math.rsqrt %154 : vector<8x1xf32>
    %156 = vector.broadcast %155 : vector<8x1xf32> to vector<8x64xf32>
    %157 = arith.mulf %147, %156 : vector<8x64xf32>
    %158 = vector.broadcast %12 : vector<1x64xf32> to vector<8x64xf32>
    %159 = arith.mulf %157, %158 : vector<8x64xf32>
    %160 = vector.broadcast %14 : vector<1x64xf32> to vector<8x64xf32>
    %161 = arith.addf %159, %160 : vector<8x64xf32>
    %162 = arith.truncf %161 : vector<8x64xf32> to vector<8x64xbf16>
    %cst_96 = arith.constant dense<0.000000e+00> : vector<8x64xf32>
    %163 = tpu.matmul %162, %16, %cst_96 {dimension_numbers = #tpu.dot_dimension_numbers<[1], [0], [0], [1], [0, 0, 1, 1], [], []>} : vector<8x64xbf16>, vector<64x64xbf16>, vector<8x64xf32> -> vector<8x64xf32>
    %164 = vector.broadcast %18 : vector<1x64xf32> to vector<8x64xf32>
    %165 = arith.addf %163, %164 : vector<8x64xf32>
    %166 = arith.truncf %46 : vector<10x64xf32> to vector<10x64xbf16>
    %cst_97 = arith.constant dense<0.000000e+00> : vector<10x128xf32>
    %167 = tpu.matmul %166, %20, %cst_97 {dimension_numbers = #tpu.dot_dimension_numbers<[1], [0], [0], [1], [0, 0, 1, 1], [], []>} : vector<10x64xbf16>, vector<64x128xbf16>, vector<10x128xf32> -> vector<10x128xf32>
    %168 = vector.broadcast %22 : vector<1x128xf32> to vector<10x128xf32>
    %169 = arith.addf %167, %168 : vector<10x128xf32>
    %170 = vector.extract_strided_slice %169 {offsets = [0, 0], sizes = [10, 64], strides = [1, 1]} : vector<10x128xf32> to vector<10x64xf32>
    %171 = vector.extract_strided_slice %169 {offsets = [0, 64], sizes = [10, 64], strides = [1, 1]} : vector<10x128xf32> to vector<10x64xf32>
    %cst_98 = arith.constant 0.000000e+00 : f32
    %172 = vector.broadcast %cst_98 : f32 to vector<8x64xf32>
    %173 = vector.extract_strided_slice %165 {offsets = [0, 0], sizes = [8, 16], strides = [1, 1]} : vector<8x64xf32> to vector<8x16xf32>
    %174 = vector.extract_strided_slice %170 {offsets = [0, 0], sizes = [10, 16], strides = [1, 1]} : vector<10x64xf32> to vector<10x16xf32>
    %175 = vector.extract_strided_slice %171 {offsets = [0, 0], sizes = [10, 16], strides = [1, 1]} : vector<10x64xf32> to vector<10x16xf32>
    %cst_99 = arith.constant dense<0.000000e+00> : vector<8x10xf32>
    %176 = tpu.matmul %173, %174, %cst_99 {dimension_numbers = #tpu.dot_dimension_numbers<[1], [1], [0], [0], [0, 0, 1, 0], [], []>} : vector<8x16xf32>, vector<10x16xf32>, vector<8x10xf32> -> vector<8x10xf32>
    %cst_100 = arith.constant 2.500000e-01 : f32
    %177 = vector.broadcast %cst_100 : f32 to vector<8x10xf32>
    %178 = arith.mulf %176, %177 : vector<8x10xf32>
    %cst_101 = arith.constant dense<0xFF800000> : vector<8xf32>
    %179 = vector.multi_reduction <maximumf>, %178, %cst_101 [1] : vector<8x10xf32> to vector<8xf32>
    %180 = vector.shape_cast %179 : vector<8xf32> to vector<8x1xf32>
    %181 = vector.broadcast %180 : vector<8x1xf32> to vector<8x10xf32>
    %182 = arith.subf %178, %181 : vector<8x10xf32>
    %183 = math.exp %182 : vector<8x10xf32>
    %cst_102 = arith.constant dense<0.000000e+00> : vector<8xf32>
    %184 = vector.multi_reduction <add>, %183, %cst_102 [1] : vector<8x10xf32> to vector<8xf32>
    %185 = vector.shape_cast %184 : vector<8xf32> to vector<8x1xf32>
    %cst_103 = arith.constant dense<0.000000e+00> : vector<8x16xf32>
    %186 = tpu.matmul %183, %175, %cst_103 {dimension_numbers = #tpu.dot_dimension_numbers<[1], [0], [0], [1], [0, 0, 1, 1], [], []>} : vector<8x10xf32>, vector<10x16xf32>, vector<8x16xf32> -> vector<8x16xf32>
    %187 = tpu.reciprocal %185 {approx = true} : vector<8x1xf32> -> vector<8x1xf32>
    %188 = vector.broadcast %187 : vector<8x1xf32> to vector<8x16xf32>
    %189 = arith.mulf %186, %188 : vector<8x16xf32>
    %190 = arith.truncf %189 : vector<8x16xf32> to vector<8x16xbf16>
    %191 = vector.extract_strided_slice %24 {offsets = [0, 0], sizes = [16, 64], strides = [1, 1]} : vector<64x64xbf16> to vector<16x64xbf16>
    %cst_104 = arith.constant dense<0.000000e+00> : vector<8x64xf32>
    %192 = tpu.matmul %190, %191, %cst_104 {dimension_numbers = #tpu.dot_dimension_numbers<[1], [0], [0], [1], [0, 0, 1, 1], [], []>} : vector<8x16xbf16>, vector<16x64xbf16>, vector<8x64xf32> -> vector<8x64xf32>
    %193 = arith.addf %172, %192 : vector<8x64xf32>
    %194 = vector.extract_strided_slice %165 {offsets = [0, 16], sizes = [8, 16], strides = [1, 1]} : vector<8x64xf32> to vector<8x16xf32>
    %195 = vector.extract_strided_slice %170 {offsets = [0, 16], sizes = [10, 16], strides = [1, 1]} : vector<10x64xf32> to vector<10x16xf32>
    %196 = vector.extract_strided_slice %171 {offsets = [0, 16], sizes = [10, 16], strides = [1, 1]} : vector<10x64xf32> to vector<10x16xf32>
    %cst_105 = arith.constant dense<0.000000e+00> : vector<8x10xf32>
    %197 = tpu.matmul %194, %195, %cst_105 {dimension_numbers = #tpu.dot_dimension_numbers<[1], [1], [0], [0], [0, 0, 1, 0], [], []>} : vector<8x16xf32>, vector<10x16xf32>, vector<8x10xf32> -> vector<8x10xf32>
    %cst_106 = arith.constant 2.500000e-01 : f32
    %198 = vector.broadcast %cst_106 : f32 to vector<8x10xf32>
    %199 = arith.mulf %197, %198 : vector<8x10xf32>
    %cst_107 = arith.constant dense<0xFF800000> : vector<8xf32>
    %200 = vector.multi_reduction <maximumf>, %199, %cst_107 [1] : vector<8x10xf32> to vector<8xf32>
    %201 = vector.shape_cast %200 : vector<8xf32> to vector<8x1xf32>
    %202 = vector.broadcast %201 : vector<8x1xf32> to vector<8x10xf32>
    %203 = arith.subf %199, %202 : vector<8x10xf32>
    %204 = math.exp %203 : vector<8x10xf32>
    %cst_108 = arith.constant dense<0.000000e+00> : vector<8xf32>
    %205 = vector.multi_reduction <add>, %204, %cst_108 [1] : vector<8x10xf32> to vector<8xf32>
    %206 = vector.shape_cast %205 : vector<8xf32> to vector<8x1xf32>
    %cst_109 = arith.constant dense<0.000000e+00> : vector<8x16xf32>
    %207 = tpu.matmul %204, %196, %cst_109 {dimension_numbers = #tpu.dot_dimension_numbers<[1], [0], [0], [1], [0, 0, 1, 1], [], []>} : vector<8x10xf32>, vector<10x16xf32>, vector<8x16xf32> -> vector<8x16xf32>
    %208 = tpu.reciprocal %206 {approx = true} : vector<8x1xf32> -> vector<8x1xf32>
    %209 = vector.broadcast %208 : vector<8x1xf32> to vector<8x16xf32>
    %210 = arith.mulf %207, %209 : vector<8x16xf32>
    %211 = arith.truncf %210 : vector<8x16xf32> to vector<8x16xbf16>
    %212 = vector.extract_strided_slice %24 {offsets = [16, 0], sizes = [16, 64], strides = [1, 1]} : vector<64x64xbf16> to vector<16x64xbf16>
    %cst_110 = arith.constant dense<0.000000e+00> : vector<8x64xf32>
    %213 = tpu.matmul %211, %212, %cst_110 {dimension_numbers = #tpu.dot_dimension_numbers<[1], [0], [0], [1], [0, 0, 1, 1], [], []>} : vector<8x16xbf16>, vector<16x64xbf16>, vector<8x64xf32> -> vector<8x64xf32>
    %214 = arith.addf %193, %213 : vector<8x64xf32>
    %215 = vector.extract_strided_slice %165 {offsets = [0, 32], sizes = [8, 16], strides = [1, 1]} : vector<8x64xf32> to vector<8x16xf32>
    %216 = vector.extract_strided_slice %170 {offsets = [0, 32], sizes = [10, 16], strides = [1, 1]} : vector<10x64xf32> to vector<10x16xf32>
    %217 = vector.extract_strided_slice %171 {offsets = [0, 32], sizes = [10, 16], strides = [1, 1]} : vector<10x64xf32> to vector<10x16xf32>
    %cst_111 = arith.constant dense<0.000000e+00> : vector<8x10xf32>
    %218 = tpu.matmul %215, %216, %cst_111 {dimension_numbers = #tpu.dot_dimension_numbers<[1], [1], [0], [0], [0, 0, 1, 0], [], []>} : vector<8x16xf32>, vector<10x16xf32>, vector<8x10xf32> -> vector<8x10xf32>
    %cst_112 = arith.constant 2.500000e-01 : f32
    %219 = vector.broadcast %cst_112 : f32 to vector<8x10xf32>
    %220 = arith.mulf %218, %219 : vector<8x10xf32>
    %cst_113 = arith.constant dense<0xFF800000> : vector<8xf32>
    %221 = vector.multi_reduction <maximumf>, %220, %cst_113 [1] : vector<8x10xf32> to vector<8xf32>
    %222 = vector.shape_cast %221 : vector<8xf32> to vector<8x1xf32>
    %223 = vector.broadcast %222 : vector<8x1xf32> to vector<8x10xf32>
    %224 = arith.subf %220, %223 : vector<8x10xf32>
    %225 = math.exp %224 : vector<8x10xf32>
    %cst_114 = arith.constant dense<0.000000e+00> : vector<8xf32>
    %226 = vector.multi_reduction <add>, %225, %cst_114 [1] : vector<8x10xf32> to vector<8xf32>
    %227 = vector.shape_cast %226 : vector<8xf32> to vector<8x1xf32>
    %cst_115 = arith.constant dense<0.000000e+00> : vector<8x16xf32>
    %228 = tpu.matmul %225, %217, %cst_115 {dimension_numbers = #tpu.dot_dimension_numbers<[1], [0], [0], [1], [0, 0, 1, 1], [], []>} : vector<8x10xf32>, vector<10x16xf32>, vector<8x16xf32> -> vector<8x16xf32>
    %229 = tpu.reciprocal %227 {approx = true} : vector<8x1xf32> -> vector<8x1xf32>
    %230 = vector.broadcast %229 : vector<8x1xf32> to vector<8x16xf32>
    %231 = arith.mulf %228, %230 : vector<8x16xf32>
    %232 = arith.truncf %231 : vector<8x16xf32> to vector<8x16xbf16>
    %233 = vector.extract_strided_slice %24 {offsets = [32, 0], sizes = [16, 64], strides = [1, 1]} : vector<64x64xbf16> to vector<16x64xbf16>
    %cst_116 = arith.constant dense<0.000000e+00> : vector<8x64xf32>
    %234 = tpu.matmul %232, %233, %cst_116 {dimension_numbers = #tpu.dot_dimension_numbers<[1], [0], [0], [1], [0, 0, 1, 1], [], []>} : vector<8x16xbf16>, vector<16x64xbf16>, vector<8x64xf32> -> vector<8x64xf32>
    %235 = arith.addf %214, %234 : vector<8x64xf32>
    %236 = vector.extract_strided_slice %165 {offsets = [0, 48], sizes = [8, 16], strides = [1, 1]} : vector<8x64xf32> to vector<8x16xf32>
    %237 = vector.extract_strided_slice %170 {offsets = [0, 48], sizes = [10, 16], strides = [1, 1]} : vector<10x64xf32> to vector<10x16xf32>
    %238 = vector.extract_strided_slice %171 {offsets = [0, 48], sizes = [10, 16], strides = [1, 1]} : vector<10x64xf32> to vector<10x16xf32>
    %cst_117 = arith.constant dense<0.000000e+00> : vector<8x10xf32>
    %239 = tpu.matmul %236, %237, %cst_117 {dimension_numbers = #tpu.dot_dimension_numbers<[1], [1], [0], [0], [0, 0, 1, 0], [], []>} : vector<8x16xf32>, vector<10x16xf32>, vector<8x10xf32> -> vector<8x10xf32>
    %cst_118 = arith.constant 2.500000e-01 : f32
    %240 = vector.broadcast %cst_118 : f32 to vector<8x10xf32>
    %241 = arith.mulf %239, %240 : vector<8x10xf32>
    %cst_119 = arith.constant dense<0xFF800000> : vector<8xf32>
    %242 = vector.multi_reduction <maximumf>, %241, %cst_119 [1] : vector<8x10xf32> to vector<8xf32>
    %243 = vector.shape_cast %242 : vector<8xf32> to vector<8x1xf32>
    %244 = vector.broadcast %243 : vector<8x1xf32> to vector<8x10xf32>
    %245 = arith.subf %241, %244 : vector<8x10xf32>
    %246 = math.exp %245 : vector<8x10xf32>
    %cst_120 = arith.constant dense<0.000000e+00> : vector<8xf32>
    %247 = vector.multi_reduction <add>, %246, %cst_120 [1] : vector<8x10xf32> to vector<8xf32>
    %248 = vector.shape_cast %247 : vector<8xf32> to vector<8x1xf32>
    %cst_121 = arith.constant dense<0.000000e+00> : vector<8x16xf32>
    %249 = tpu.matmul %246, %238, %cst_121 {dimension_numbers = #tpu.dot_dimension_numbers<[1], [0], [0], [1], [0, 0, 1, 1], [], []>} : vector<8x10xf32>, vector<10x16xf32>, vector<8x16xf32> -> vector<8x16xf32>
    %250 = tpu.reciprocal %248 {approx = true} : vector<8x1xf32> -> vector<8x1xf32>
    %251 = vector.broadcast %250 : vector<8x1xf32> to vector<8x16xf32>
    %252 = arith.mulf %249, %251 : vector<8x16xf32>
    %253 = arith.truncf %252 : vector<8x16xf32> to vector<8x16xbf16>
    %254 = vector.extract_strided_slice %24 {offsets = [48, 0], sizes = [16, 64], strides = [1, 1]} : vector<64x64xbf16> to vector<16x64xbf16>
    %cst_122 = arith.constant dense<0.000000e+00> : vector<8x64xf32>
    %255 = tpu.matmul %253, %254, %cst_122 {dimension_numbers = #tpu.dot_dimension_numbers<[1], [0], [0], [1], [0, 0, 1, 1], [], []>} : vector<8x16xbf16>, vector<16x64xbf16>, vector<8x64xf32> -> vector<8x64xf32>
    %256 = arith.addf %235, %255 : vector<8x64xf32>
    %257 = vector.broadcast %26 : vector<1x64xf32> to vector<8x64xf32>
    %258 = arith.addf %256, %257 : vector<8x64xf32>
    %259 = arith.addf %161, %258 : vector<8x64xf32>
    %cst_123 = arith.constant dense<0.000000e+00> : vector<8xf32>
    %260 = vector.multi_reduction <add>, %259, %cst_123 [1] : vector<8x64xf32> to vector<8xf32>
    %261 = vector.shape_cast %260 : vector<8xf32> to vector<8x1xf32>
    %cst_124 = arith.constant 6.400000e+01 : f32
    %262 = vector.broadcast %cst_124 : f32 to vector<8x1xf32>
    %263 = arith.divf %261, %262 : vector<8x1xf32>
    %264 = vector.broadcast %263 : vector<8x1xf32> to vector<8x64xf32>
    %265 = arith.subf %259, %264 : vector<8x64xf32>
    %266 = arith.mulf %265, %265 : vector<8x64xf32>
    %cst_125 = arith.constant dense<0.000000e+00> : vector<8xf32>
    %267 = vector.multi_reduction <add>, %266, %cst_125 [1] : vector<8x64xf32> to vector<8xf32>
    %268 = vector.shape_cast %267 : vector<8xf32> to vector<8x1xf32>
    %cst_126 = arith.constant 6.400000e+01 : f32
    %269 = vector.broadcast %cst_126 : f32 to vector<8x1xf32>
    %270 = arith.divf %268, %269 : vector<8x1xf32>
    %cst_127 = arith.constant 9.99999974E-6 : f32
    %271 = vector.broadcast %cst_127 : f32 to vector<8x1xf32>
    %272 = arith.addf %270, %271 : vector<8x1xf32>
    %273 = math.rsqrt %272 : vector<8x1xf32>
    %274 = vector.broadcast %273 : vector<8x1xf32> to vector<8x64xf32>
    %275 = arith.mulf %265, %274 : vector<8x64xf32>
    %276 = vector.broadcast %28 : vector<1x64xf32> to vector<8x64xf32>
    %277 = arith.mulf %275, %276 : vector<8x64xf32>
    %278 = vector.broadcast %30 : vector<1x64xf32> to vector<8x64xf32>
    %279 = arith.addf %277, %278 : vector<8x64xf32>
    %280 = arith.truncf %279 : vector<8x64xf32> to vector<8x64xbf16>
    %cst_128 = arith.constant dense<0.000000e+00> : vector<8x2048xf32>
    %281 = tpu.matmul %280, %32, %cst_128 {dimension_numbers = #tpu.dot_dimension_numbers<[1], [0], [0], [1], [0, 0, 1, 1], [], []>} : vector<8x64xbf16>, vector<64x2048xbf16>, vector<8x2048xf32> -> vector<8x2048xf32>
    %282 = vector.broadcast %34 : vector<1x2048xf32> to vector<8x2048xf32>
    %283 = arith.addf %281, %282 : vector<8x2048xf32>
    %cst_129 = arith.constant 0.000000e+00 : f32
    %284 = vector.broadcast %cst_129 : f32 to vector<8x2048xf32>
    %285 = arith.maximumf %283, %284 : vector<8x2048xf32>
    %286 = arith.truncf %285 : vector<8x2048xf32> to vector<8x2048xbf16>
    %cst_130 = arith.constant dense<0.000000e+00> : vector<8x64xf32>
    %287 = tpu.matmul %286, %36, %cst_130 {dimension_numbers = #tpu.dot_dimension_numbers<[1], [0], [0], [1], [0, 0, 1, 1], [], []>} : vector<8x2048xbf16>, vector<2048x64xbf16>, vector<8x64xf32> -> vector<8x64xf32>
    %288 = vector.broadcast %38 : vector<1x64xf32> to vector<8x64xf32>
    %289 = arith.addf %287, %288 : vector<8x64xf32>
    %290 = arith.addf %279, %289 : vector<8x64xf32>
    %cst_131 = arith.constant dense<0.000000e+00> : vector<8xf32>
    %291 = vector.multi_reduction <add>, %290, %cst_131 [1] : vector<8x64xf32> to vector<8xf32>
    %292 = vector.shape_cast %291 : vector<8xf32> to vector<8x1xf32>
    %cst_132 = arith.constant 6.400000e+01 : f32
    %293 = vector.broadcast %cst_132 : f32 to vector<8x1xf32>
    %294 = arith.divf %292, %293 : vector<8x1xf32>
    %295 = vector.broadcast %294 : vector<8x1xf32> to vector<8x64xf32>
    %296 = arith.subf %290, %295 : vector<8x64xf32>
    %297 = arith.mulf %296, %296 : vector<8x64xf32>
    %cst_133 = arith.constant dense<0.000000e+00> : vector<8xf32>
    %298 = vector.multi_reduction <add>, %297, %cst_133 [1] : vector<8x64xf32> to vector<8xf32>
    %299 = vector.shape_cast %298 : vector<8xf32> to vector<8x1xf32>
    %cst_134 = arith.constant 6.400000e+01 : f32
    %300 = vector.broadcast %cst_134 : f32 to vector<8x1xf32>
    %301 = arith.divf %299, %300 : vector<8x1xf32>
    %cst_135 = arith.constant 9.99999974E-6 : f32
    %302 = vector.broadcast %cst_135 : f32 to vector<8x1xf32>
    %303 = arith.addf %301, %302 : vector<8x1xf32>
    %304 = math.rsqrt %303 : vector<8x1xf32>
    %305 = vector.broadcast %304 : vector<8x1xf32> to vector<8x64xf32>
    %306 = arith.mulf %296, %305 : vector<8x64xf32>
    %307 = vector.broadcast %40 : vector<1x64xf32> to vector<8x64xf32>
    %308 = arith.mulf %306, %307 : vector<8x64xf32>
    %309 = vector.broadcast %42 : vector<1x64xf32> to vector<8x64xf32>
    %310 = arith.addf %308, %309 : vector<8x64xf32>
    %c0_136 = arith.constant 0 : index
    %c0_137 = arith.constant 0 : index
    %c0_138 = arith.constant 0 : index
    %311 = vector.load %arg30[%c0_136, %c0_137, %c0_138] : memref<2x8x64xf32, #tpu.memory_space<vmem>>, vector<1x8x64xf32>
    %312 = vector.shape_cast %311 : vector<1x8x64xf32> to vector<8x64xf32>
    %313 = vector.shape_cast %310 : vector<8x64xf32> to vector<1x8x64xf32>
    tpu.vector_store %arg30[%c0_136, %c0_137, %c0_138], %313 {strides = array<i32>} : memref<2x8x64xf32, #tpu.memory_space<vmem>>, vector<1x8x64xf32>,
    %c1 = arith.constant 1 : index
    %c0_139 = arith.constant 0 : index
    %c0_140 = arith.constant 0 : index
    %314 = vector.load %arg30[%c1, %c0_139, %c0_140] : memref<2x8x64xf32, #tpu.memory_space<vmem>>, vector<1x8x64xf32>
    %315 = vector.shape_cast %314 : vector<1x8x64xf32> to vector<8x64xf32>
    %c1_141 = arith.constant 1 : index
    %c0_142 = arith.constant 0 : index
    %c0_143 = arith.constant 0 : index
    %316 = vector.load %arg4[%c1_141, %c0_142, %c0_143] : memref<2x10x64xf32, #tpu.memory_space<vmem>>, vector<1x10x64xf32>
    %317 = vector.shape_cast %316 : vector<1x10x64xf32> to vector<10x64xf32>
    %318 = arith.truncf %315 : vector<8x64xf32> to vector<8x64xbf16>
    %cst_144 = arith.constant dense<0.000000e+00> : vector<8x192xf32>
    %319 = tpu.matmul %318, %4, %cst_144 {dimension_numbers = #tpu.dot_dimension_numbers<[1], [0], [0], [1], [0, 0, 1, 1], [], []>} : vector<8x64xbf16>, vector<64x192xbf16>, vector<8x192xf32> -> vector<8x192xf32>
    %320 = vector.broadcast %6 : vector<1x192xf32> to vector<8x192xf32>
    %321 = arith.addf %319, %320 : vector<8x192xf32>
    %322 = vector.extract_strided_slice %321 {offsets = [0, 0], sizes = [8, 64], strides = [1, 1]} : vector<8x192xf32> to vector<8x64xf32>
    %323 = vector.extract_strided_slice %321 {offsets = [0, 64], sizes = [8, 64], strides = [1, 1]} : vector<8x192xf32> to vector<8x64xf32>
    %324 = vector.extract_strided_slice %321 {offsets = [0, 128], sizes = [8, 64], strides = [1, 1]} : vector<8x192xf32> to vector<8x64xf32>
    %cst_145 = arith.constant 0.000000e+00 : f32
    %325 = vector.broadcast %cst_145 : f32 to vector<8x64xf32>
    %326 = vector.extract_strided_slice %322 {offsets = [0, 0], sizes = [8, 16], strides = [1, 1]} : vector<8x64xf32> to vector<8x16xf32>
    %327 = vector.extract_strided_slice %323 {offsets = [0, 0], sizes = [8, 16], strides = [1, 1]} : vector<8x64xf32> to vector<8x16xf32>
    %328 = vector.extract_strided_slice %324 {offsets = [0, 0], sizes = [8, 16], strides = [1, 1]} : vector<8x64xf32> to vector<8x16xf32>
    %cst_146 = arith.constant dense<0.000000e+00> : vector<8x8xf32>
    %329 = tpu.matmul %326, %327, %cst_146 {dimension_numbers = #tpu.dot_dimension_numbers<[1], [1], [0], [0], [0, 0, 1, 0], [], []>} : vector<8x16xf32>, vector<8x16xf32>, vector<8x8xf32> -> vector<8x8xf32>
    %cst_147 = arith.constant 2.500000e-01 : f32
    %330 = vector.broadcast %cst_147 : f32 to vector<8x8xf32>
    %331 = arith.mulf %329, %330 : vector<8x8xf32>
    %cst_148 = arith.constant dense<0xFF800000> : vector<8xf32>
    %332 = vector.multi_reduction <maximumf>, %331, %cst_148 [1] : vector<8x8xf32> to vector<8xf32>
    %333 = vector.shape_cast %332 : vector<8xf32> to vector<8x1xf32>
    %334 = vector.broadcast %333 : vector<8x1xf32> to vector<8x8xf32>
    %335 = arith.subf %331, %334 : vector<8x8xf32>
    %336 = math.exp %335 : vector<8x8xf32>
    %cst_149 = arith.constant dense<0.000000e+00> : vector<8xf32>
    %337 = vector.multi_reduction <add>, %336, %cst_149 [1] : vector<8x8xf32> to vector<8xf32>
    %338 = vector.shape_cast %337 : vector<8xf32> to vector<8x1xf32>
    %cst_150 = arith.constant dense<0.000000e+00> : vector<8x16xf32>
    %339 = tpu.matmul %336, %328, %cst_150 {dimension_numbers = #tpu.dot_dimension_numbers<[1], [0], [0], [1], [0, 0, 1, 1], [], []>} : vector<8x8xf32>, vector<8x16xf32>, vector<8x16xf32> -> vector<8x16xf32>
    %340 = tpu.reciprocal %338 {approx = true} : vector<8x1xf32> -> vector<8x1xf32>
    %341 = vector.broadcast %340 : vector<8x1xf32> to vector<8x16xf32>
    %342 = arith.mulf %339, %341 : vector<8x16xf32>
    %343 = arith.truncf %342 : vector<8x16xf32> to vector<8x16xbf16>
    %344 = vector.extract_strided_slice %8 {offsets = [0, 0], sizes = [16, 64], strides = [1, 1]} : vector<64x64xbf16> to vector<16x64xbf16>
    %cst_151 = arith.constant dense<0.000000e+00> : vector<8x64xf32>
    %345 = tpu.matmul %343, %344, %cst_151 {dimension_numbers = #tpu.dot_dimension_numbers<[1], [0], [0], [1], [0, 0, 1, 1], [], []>} : vector<8x16xbf16>, vector<16x64xbf16>, vector<8x64xf32> -> vector<8x64xf32>
    %346 = arith.addf %325, %345 : vector<8x64xf32>
    %347 = vector.extract_strided_slice %322 {offsets = [0, 16], sizes = [8, 16], strides = [1, 1]} : vector<8x64xf32> to vector<8x16xf32>
    %348 = vector.extract_strided_slice %323 {offsets = [0, 16], sizes = [8, 16], strides = [1, 1]} : vector<8x64xf32> to vector<8x16xf32>
    %349 = vector.extract_strided_slice %324 {offsets = [0, 16], sizes = [8, 16], strides = [1, 1]} : vector<8x64xf32> to vector<8x16xf32>
    %cst_152 = arith.constant dense<0.000000e+00> : vector<8x8xf32>
    %350 = tpu.matmul %347, %348, %cst_152 {dimension_numbers = #tpu.dot_dimension_numbers<[1], [1], [0], [0], [0, 0, 1, 0], [], []>} : vector<8x16xf32>, vector<8x16xf32>, vector<8x8xf32> -> vector<8x8xf32>
    %cst_153 = arith.constant 2.500000e-01 : f32
    %351 = vector.broadcast %cst_153 : f32 to vector<8x8xf32>
    %352 = arith.mulf %350, %351 : vector<8x8xf32>
    %cst_154 = arith.constant dense<0xFF800000> : vector<8xf32>
    %353 = vector.multi_reduction <maximumf>, %352, %cst_154 [1] : vector<8x8xf32> to vector<8xf32>
    %354 = vector.shape_cast %353 : vector<8xf32> to vector<8x1xf32>
    %355 = vector.broadcast %354 : vector<8x1xf32> to vector<8x8xf32>
    %356 = arith.subf %352, %355 : vector<8x8xf32>
    %357 = math.exp %356 : vector<8x8xf32>
    %cst_155 = arith.constant dense<0.000000e+00> : vector<8xf32>
    %358 = vector.multi_reduction <add>, %357, %cst_155 [1] : vector<8x8xf32> to vector<8xf32>
    %359 = vector.shape_cast %358 : vector<8xf32> to vector<8x1xf32>
    %cst_156 = arith.constant dense<0.000000e+00> : vector<8x16xf32>
    %360 = tpu.matmul %357, %349, %cst_156 {dimension_numbers = #tpu.dot_dimension_numbers<[1], [0], [0], [1], [0, 0, 1, 1], [], []>} : vector<8x8xf32>, vector<8x16xf32>, vector<8x16xf32> -> vector<8x16xf32>
    %361 = tpu.reciprocal %359 {approx = true} : vector<8x1xf32> -> vector<8x1xf32>
    %362 = vector.broadcast %361 : vector<8x1xf32> to vector<8x16xf32>
    %363 = arith.mulf %360, %362 : vector<8x16xf32>
    %364 = arith.truncf %363 : vector<8x16xf32> to vector<8x16xbf16>
    %365 = vector.extract_strided_slice %8 {offsets = [16, 0], sizes = [16, 64], strides = [1, 1]} : vector<64x64xbf16> to vector<16x64xbf16>
    %cst_157 = arith.constant dense<0.000000e+00> : vector<8x64xf32>
    %366 = tpu.matmul %364, %365, %cst_157 {dimension_numbers = #tpu.dot_dimension_numbers<[1], [0], [0], [1], [0, 0, 1, 1], [], []>} : vector<8x16xbf16>, vector<16x64xbf16>, vector<8x64xf32> -> vector<8x64xf32>
    %367 = arith.addf %346, %366 : vector<8x64xf32>
    %368 = vector.extract_strided_slice %322 {offsets = [0, 32], sizes = [8, 16], strides = [1, 1]} : vector<8x64xf32> to vector<8x16xf32>
    %369 = vector.extract_strided_slice %323 {offsets = [0, 32], sizes = [8, 16], strides = [1, 1]} : vector<8x64xf32> to vector<8x16xf32>
    %370 = vector.extract_strided_slice %324 {offsets = [0, 32], sizes = [8, 16], strides = [1, 1]} : vector<8x64xf32> to vector<8x16xf32>
    %cst_158 = arith.constant dense<0.000000e+00> : vector<8x8xf32>
    %371 = tpu.matmul %368, %369, %cst_158 {dimension_numbers = #tpu.dot_dimension_numbers<[1], [1], [0], [0], [0, 0, 1, 0], [], []>} : vector<8x16xf32>, vector<8x16xf32>, vector<8x8xf32> -> vector<8x8xf32>
    %cst_159 = arith.constant 2.500000e-01 : f32
    %372 = vector.broadcast %cst_159 : f32 to vector<8x8xf32>
    %373 = arith.mulf %371, %372 : vector<8x8xf32>
    %cst_160 = arith.constant dense<0xFF800000> : vector<8xf32>
    %374 = vector.multi_reduction <maximumf>, %373, %cst_160 [1] : vector<8x8xf32> to vector<8xf32>
    %375 = vector.shape_cast %374 : vector<8xf32> to vector<8x1xf32>
    %376 = vector.broadcast %375 : vector<8x1xf32> to vector<8x8xf32>
    %377 = arith.subf %373, %376 : vector<8x8xf32>
    %378 = math.exp %377 : vector<8x8xf32>
    %cst_161 = arith.constant dense<0.000000e+00> : vector<8xf32>
    %379 = vector.multi_reduction <add>, %378, %cst_161 [1] : vector<8x8xf32> to vector<8xf32>
    %380 = vector.shape_cast %379 : vector<8xf32> to vector<8x1xf32>
    %cst_162 = arith.constant dense<0.000000e+00> : vector<8x16xf32>
    %381 = tpu.matmul %378, %370, %cst_162 {dimension_numbers = #tpu.dot_dimension_numbers<[1], [0], [0], [1], [0, 0, 1, 1], [], []>} : vector<8x8xf32>, vector<8x16xf32>, vector<8x16xf32> -> vector<8x16xf32>
    %382 = tpu.reciprocal %380 {approx = true} : vector<8x1xf32> -> vector<8x1xf32>
    %383 = vector.broadcast %382 : vector<8x1xf32> to vector<8x16xf32>
    %384 = arith.mulf %381, %383 : vector<8x16xf32>
    %385 = arith.truncf %384 : vector<8x16xf32> to vector<8x16xbf16>
    %386 = vector.extract_strided_slice %8 {offsets = [32, 0], sizes = [16, 64], strides = [1, 1]} : vector<64x64xbf16> to vector<16x64xbf16>
    %cst_163 = arith.constant dense<0.000000e+00> : vector<8x64xf32>
    %387 = tpu.matmul %385, %386, %cst_163 {dimension_numbers = #tpu.dot_dimension_numbers<[1], [0], [0], [1], [0, 0, 1, 1], [], []>} : vector<8x16xbf16>, vector<16x64xbf16>, vector<8x64xf32> -> vector<8x64xf32>
    %388 = arith.addf %367, %387 : vector<8x64xf32>
    %389 = vector.extract_strided_slice %322 {offsets = [0, 48], sizes = [8, 16], strides = [1, 1]} : vector<8x64xf32> to vector<8x16xf32>
    %390 = vector.extract_strided_slice %323 {offsets = [0, 48], sizes = [8, 16], strides = [1, 1]} : vector<8x64xf32> to vector<8x16xf32>
    %391 = vector.extract_strided_slice %324 {offsets = [0, 48], sizes = [8, 16], strides = [1, 1]} : vector<8x64xf32> to vector<8x16xf32>
    %cst_164 = arith.constant dense<0.000000e+00> : vector<8x8xf32>
    %392 = tpu.matmul %389, %390, %cst_164 {dimension_numbers = #tpu.dot_dimension_numbers<[1], [1], [0], [0], [0, 0, 1, 0], [], []>} : vector<8x16xf32>, vector<8x16xf32>, vector<8x8xf32> -> vector<8x8xf32>
    %cst_165 = arith.constant 2.500000e-01 : f32
    %393 = vector.broadcast %cst_165 : f32 to vector<8x8xf32>
    %394 = arith.mulf %392, %393 : vector<8x8xf32>
    %cst_166 = arith.constant dense<0xFF800000> : vector<8xf32>
    %395 = vector.multi_reduction <maximumf>, %394, %cst_166 [1] : vector<8x8xf32> to vector<8xf32>
    %396 = vector.shape_cast %395 : vector<8xf32> to vector<8x1xf32>
    %397 = vector.broadcast %396 : vector<8x1xf32> to vector<8x8xf32>
    %398 = arith.subf %394, %397 : vector<8x8xf32>
    %399 = math.exp %398 : vector<8x8xf32>
    %cst_167 = arith.constant dense<0.000000e+00> : vector<8xf32>
    %400 = vector.multi_reduction <add>, %399, %cst_167 [1] : vector<8x8xf32> to vector<8xf32>
    %401 = vector.shape_cast %400 : vector<8xf32> to vector<8x1xf32>
    %cst_168 = arith.constant dense<0.000000e+00> : vector<8x16xf32>
    %402 = tpu.matmul %399, %391, %cst_168 {dimension_numbers = #tpu.dot_dimension_numbers<[1], [0], [0], [1], [0, 0, 1, 1], [], []>} : vector<8x8xf32>, vector<8x16xf32>, vector<8x16xf32> -> vector<8x16xf32>
    %403 = tpu.reciprocal %401 {approx = true} : vector<8x1xf32> -> vector<8x1xf32>
    %404 = vector.broadcast %403 : vector<8x1xf32> to vector<8x16xf32>
    %405 = arith.mulf %402, %404 : vector<8x16xf32>
    %406 = arith.truncf %405 : vector<8x16xf32> to vector<8x16xbf16>
    %407 = vector.extract_strided_slice %8 {offsets = [48, 0], sizes = [16, 64], strides = [1, 1]} : vector<64x64xbf16> to vector<16x64xbf16>
    %cst_169 = arith.constant dense<0.000000e+00> : vector<8x64xf32>
    %408 = tpu.matmul %406, %407, %cst_169 {dimension_numbers = #tpu.dot_dimension_numbers<[1], [0], [0], [1], [0, 0, 1, 1], [], []>} : vector<8x16xbf16>, vector<16x64xbf16>, vector<8x64xf32> -> vector<8x64xf32>
    %409 = arith.addf %388, %408 : vector<8x64xf32>
    %410 = vector.broadcast %10 : vector<1x64xf32> to vector<8x64xf32>
    %411 = arith.addf %409, %410 : vector<8x64xf32>
    %412 = arith.addf %315, %411 : vector<8x64xf32>
    %cst_170 = arith.constant dense<0.000000e+00> : vector<8xf32>
    %413 = vector.multi_reduction <add>, %412, %cst_170 [1] : vector<8x64xf32> to vector<8xf32>
    %414 = vector.shape_cast %413 : vector<8xf32> to vector<8x1xf32>
    %cst_171 = arith.constant 6.400000e+01 : f32
    %415 = vector.broadcast %cst_171 : f32 to vector<8x1xf32>
    %416 = arith.divf %414, %415 : vector<8x1xf32>
    %417 = vector.broadcast %416 : vector<8x1xf32> to vector<8x64xf32>
    %418 = arith.subf %412, %417 : vector<8x64xf32>
    %419 = arith.mulf %418, %418 : vector<8x64xf32>
    %cst_172 = arith.constant dense<0.000000e+00> : vector<8xf32>
    %420 = vector.multi_reduction <add>, %419, %cst_172 [1] : vector<8x64xf32> to vector<8xf32>
    %421 = vector.shape_cast %420 : vector<8xf32> to vector<8x1xf32>
    %cst_173 = arith.constant 6.400000e+01 : f32
    %422 = vector.broadcast %cst_173 : f32 to vector<8x1xf32>
    %423 = arith.divf %421, %422 : vector<8x1xf32>
    %cst_174 = arith.constant 9.99999974E-6 : f32
    %424 = vector.broadcast %cst_174 : f32 to vector<8x1xf32>
    %425 = arith.addf %423, %424 : vector<8x1xf32>
    %426 = math.rsqrt %425 : vector<8x1xf32>
    %427 = vector.broadcast %426 : vector<8x1xf32> to vector<8x64xf32>
    %428 = arith.mulf %418, %427 : vector<8x64xf32>
    %429 = vector.broadcast %12 : vector<1x64xf32> to vector<8x64xf32>
    %430 = arith.mulf %428, %429 : vector<8x64xf32>
    %431 = vector.broadcast %14 : vector<1x64xf32> to vector<8x64xf32>
    %432 = arith.addf %430, %431 : vector<8x64xf32>
    %433 = arith.truncf %432 : vector<8x64xf32> to vector<8x64xbf16>
    %cst_175 = arith.constant dense<0.000000e+00> : vector<8x64xf32>
    %434 = tpu.matmul %433, %16, %cst_175 {dimension_numbers = #tpu.dot_dimension_numbers<[1], [0], [0], [1], [0, 0, 1, 1], [], []>} : vector<8x64xbf16>, vector<64x64xbf16>, vector<8x64xf32> -> vector<8x64xf32>
    %435 = vector.broadcast %18 : vector<1x64xf32> to vector<8x64xf32>
    %436 = arith.addf %434, %435 : vector<8x64xf32>
    %437 = arith.truncf %317 : vector<10x64xf32> to vector<10x64xbf16>
    %cst_176 = arith.constant dense<0.000000e+00> : vector<10x128xf32>
    %438 = tpu.matmul %437, %20, %cst_176 {dimension_numbers = #tpu.dot_dimension_numbers<[1], [0], [0], [1], [0, 0, 1, 1], [], []>} : vector<10x64xbf16>, vector<64x128xbf16>, vector<10x128xf32> -> vector<10x128xf32>
    %439 = vector.broadcast %22 : vector<1x128xf32> to vector<10x128xf32>
    %440 = arith.addf %438, %439 : vector<10x128xf32>
    %441 = vector.extract_strided_slice %440 {offsets = [0, 0], sizes = [10, 64], strides = [1, 1]} : vector<10x128xf32> to vector<10x64xf32>
    %442 = vector.extract_strided_slice %440 {offsets = [0, 64], sizes = [10, 64], strides = [1, 1]} : vector<10x128xf32> to vector<10x64xf32>
    %cst_177 = arith.constant 0.000000e+00 : f32
    %443 = vector.broadcast %cst_177 : f32 to vector<8x64xf32>
    %444 = vector.extract_strided_slice %436 {offsets = [0, 0], sizes = [8, 16], strides = [1, 1]} : vector<8x64xf32> to vector<8x16xf32>
    %445 = vector.extract_strided_slice %441 {offsets = [0, 0], sizes = [10, 16], strides = [1, 1]} : vector<10x64xf32> to vector<10x16xf32>
    %446 = vector.extract_strided_slice %442 {offsets = [0, 0], sizes = [10, 16], strides = [1, 1]} : vector<10x64xf32> to vector<10x16xf32>
    %cst_178 = arith.constant dense<0.000000e+00> : vector<8x10xf32>
    %447 = tpu.matmul %444, %445, %cst_178 {dimension_numbers = #tpu.dot_dimension_numbers<[1], [1], [0], [0], [0, 0, 1, 0], [], []>} : vector<8x16xf32>, vector<10x16xf32>, vector<8x10xf32> -> vector<8x10xf32>
    %cst_179 = arith.constant 2.500000e-01 : f32
    %448 = vector.broadcast %cst_179 : f32 to vector<8x10xf32>
    %449 = arith.mulf %447, %448 : vector<8x10xf32>
    %cst_180 = arith.constant dense<0xFF800000> : vector<8xf32>
    %450 = vector.multi_reduction <maximumf>, %449, %cst_180 [1] : vector<8x10xf32> to vector<8xf32>
    %451 = vector.shape_cast %450 : vector<8xf32> to vector<8x1xf32>
    %452 = vector.broadcast %451 : vector<8x1xf32> to vector<8x10xf32>
    %453 = arith.subf %449, %452 : vector<8x10xf32>
    %454 = math.exp %453 : vector<8x10xf32>
    %cst_181 = arith.constant dense<0.000000e+00> : vector<8xf32>
    %455 = vector.multi_reduction <add>, %454, %cst_181 [1] : vector<8x10xf32> to vector<8xf32>
    %456 = vector.shape_cast %455 : vector<8xf32> to vector<8x1xf32>
    %cst_182 = arith.constant dense<0.000000e+00> : vector<8x16xf32>
    %457 = tpu.matmul %454, %446, %cst_182 {dimension_numbers = #tpu.dot_dimension_numbers<[1], [0], [0], [1], [0, 0, 1, 1], [], []>} : vector<8x10xf32>, vector<10x16xf32>, vector<8x16xf32> -> vector<8x16xf32>
    %458 = tpu.reciprocal %456 {approx = true} : vector<8x1xf32> -> vector<8x1xf32>
    %459 = vector.broadcast %458 : vector<8x1xf32> to vector<8x16xf32>
    %460 = arith.mulf %457, %459 : vector<8x16xf32>
    %461 = arith.truncf %460 : vector<8x16xf32> to vector<8x16xbf16>
    %462 = vector.extract_strided_slice %24 {offsets = [0, 0], sizes = [16, 64], strides = [1, 1]} : vector<64x64xbf16> to vector<16x64xbf16>
    %cst_183 = arith.constant dense<0.000000e+00> : vector<8x64xf32>
    %463 = tpu.matmul %461, %462, %cst_183 {dimension_numbers = #tpu.dot_dimension_numbers<[1], [0], [0], [1], [0, 0, 1, 1], [], []>} : vector<8x16xbf16>, vector<16x64xbf16>, vector<8x64xf32> -> vector<8x64xf32>
    %464 = arith.addf %443, %463 : vector<8x64xf32>
    %465 = vector.extract_strided_slice %436 {offsets = [0, 16], sizes = [8, 16], strides = [1, 1]} : vector<8x64xf32> to vector<8x16xf32>
    %466 = vector.extract_strided_slice %441 {offsets = [0, 16], sizes = [10, 16], strides = [1, 1]} : vector<10x64xf32> to vector<10x16xf32>
    %467 = vector.extract_strided_slice %442 {offsets = [0, 16], sizes = [10, 16], strides = [1, 1]} : vector<10x64xf32> to vector<10x16xf32>
    %cst_184 = arith.constant dense<0.000000e+00> : vector<8x10xf32>
    %468 = tpu.matmul %465, %466, %cst_184 {dimension_numbers = #tpu.dot_dimension_numbers<[1], [1], [0], [0], [0, 0, 1, 0], [], []>} : vector<8x16xf32>, vector<10x16xf32>, vector<8x10xf32> -> vector<8x10xf32>
    %cst_185 = arith.constant 2.500000e-01 : f32
    %469 = vector.broadcast %cst_185 : f32 to vector<8x10xf32>
    %470 = arith.mulf %468, %469 : vector<8x10xf32>
    %cst_186 = arith.constant dense<0xFF800000> : vector<8xf32>
    %471 = vector.multi_reduction <maximumf>, %470, %cst_186 [1] : vector<8x10xf32> to vector<8xf32>
    %472 = vector.shape_cast %471 : vector<8xf32> to vector<8x1xf32>
    %473 = vector.broadcast %472 : vector<8x1xf32> to vector<8x10xf32>
    %474 = arith.subf %470, %473 : vector<8x10xf32>
    %475 = math.exp %474 : vector<8x10xf32>
    %cst_187 = arith.constant dense<0.000000e+00> : vector<8xf32>
    %476 = vector.multi_reduction <add>, %475, %cst_187 [1] : vector<8x10xf32> to vector<8xf32>
    %477 = vector.shape_cast %476 : vector<8xf32> to vector<8x1xf32>
    %cst_188 = arith.constant dense<0.000000e+00> : vector<8x16xf32>
    %478 = tpu.matmul %475, %467, %cst_188 {dimension_numbers = #tpu.dot_dimension_numbers<[1], [0], [0], [1], [0, 0, 1, 1], [], []>} : vector<8x10xf32>, vector<10x16xf32>, vector<8x16xf32> -> vector<8x16xf32>
    %479 = tpu.reciprocal %477 {approx = true} : vector<8x1xf32> -> vector<8x1xf32>
    %480 = vector.broadcast %479 : vector<8x1xf32> to vector<8x16xf32>
    %481 = arith.mulf %478, %480 : vector<8x16xf32>
    %482 = arith.truncf %481 : vector<8x16xf32> to vector<8x16xbf16>
    %483 = vector.extract_strided_slice %24 {offsets = [16, 0], sizes = [16, 64], strides = [1, 1]} : vector<64x64xbf16> to vector<16x64xbf16>
    %cst_189 = arith.constant dense<0.000000e+00> : vector<8x64xf32>
    %484 = tpu.matmul %482, %483, %cst_189 {dimension_numbers = #tpu.dot_dimension_numbers<[1], [0], [0], [1], [0, 0, 1, 1], [], []>} : vector<8x16xbf16>, vector<16x64xbf16>, vector<8x64xf32> -> vector<8x64xf32>
    %485 = arith.addf %464, %484 : vector<8x64xf32>
    %486 = vector.extract_strided_slice %436 {offsets = [0, 32], sizes = [8, 16], strides = [1, 1]} : vector<8x64xf32> to vector<8x16xf32>
    %487 = vector.extract_strided_slice %441 {offsets = [0, 32], sizes = [10, 16], strides = [1, 1]} : vector<10x64xf32> to vector<10x16xf32>
    %488 = vector.extract_strided_slice %442 {offsets = [0, 32], sizes = [10, 16], strides = [1, 1]} : vector<10x64xf32> to vector<10x16xf32>
    %cst_190 = arith.constant dense<0.000000e+00> : vector<8x10xf32>
    %489 = tpu.matmul %486, %487, %cst_190 {dimension_numbers = #tpu.dot_dimension_numbers<[1], [1], [0], [0], [0, 0, 1, 0], [], []>} : vector<8x16xf32>, vector<10x16xf32>, vector<8x10xf32> -> vector<8x10xf32>
    %cst_191 = arith.constant 2.500000e-01 : f32
    %490 = vector.broadcast %cst_191 : f32 to vector<8x10xf32>
    %491 = arith.mulf %489, %490 : vector<8x10xf32>
    %cst_192 = arith.constant dense<0xFF800000> : vector<8xf32>
    %492 = vector.multi_reduction <maximumf>, %491, %cst_192 [1] : vector<8x10xf32> to vector<8xf32>
    %493 = vector.shape_cast %492 : vector<8xf32> to vector<8x1xf32>
    %494 = vector.broadcast %493 : vector<8x1xf32> to vector<8x10xf32>
    %495 = arith.subf %491, %494 : vector<8x10xf32>
    %496 = math.exp %495 : vector<8x10xf32>
    %cst_193 = arith.constant dense<0.000000e+00> : vector<8xf32>
    %497 = vector.multi_reduction <add>, %496, %cst_193 [1] : vector<8x10xf32> to vector<8xf32>
    %498 = vector.shape_cast %497 : vector<8xf32> to vector<8x1xf32>
    %cst_194 = arith.constant dense<0.000000e+00> : vector<8x16xf32>
    %499 = tpu.matmul %496, %488, %cst_194 {dimension_numbers = #tpu.dot_dimension_numbers<[1], [0], [0], [1], [0, 0, 1, 1], [], []>} : vector<8x10xf32>, vector<10x16xf32>, vector<8x16xf32> -> vector<8x16xf32>
    %500 = tpu.reciprocal %498 {approx = true} : vector<8x1xf32> -> vector<8x1xf32>
    %501 = vector.broadcast %500 : vector<8x1xf32> to vector<8x16xf32>
    %502 = arith.mulf %499, %501 : vector<8x16xf32>
    %503 = arith.truncf %502 : vector<8x16xf32> to vector<8x16xbf16>
    %504 = vector.extract_strided_slice %24 {offsets = [32, 0], sizes = [16, 64], strides = [1, 1]} : vector<64x64xbf16> to vector<16x64xbf16>
    %cst_195 = arith.constant dense<0.000000e+00> : vector<8x64xf32>
    %505 = tpu.matmul %503, %504, %cst_195 {dimension_numbers = #tpu.dot_dimension_numbers<[1], [0], [0], [1], [0, 0, 1, 1], [], []>} : vector<8x16xbf16>, vector<16x64xbf16>, vector<8x64xf32> -> vector<8x64xf32>
    %506 = arith.addf %485, %505 : vector<8x64xf32>
    %507 = vector.extract_strided_slice %436 {offsets = [0, 48], sizes = [8, 16], strides = [1, 1]} : vector<8x64xf32> to vector<8x16xf32>
    %508 = vector.extract_strided_slice %441 {offsets = [0, 48], sizes = [10, 16], strides = [1, 1]} : vector<10x64xf32> to vector<10x16xf32>
    %509 = vector.extract_strided_slice %442 {offsets = [0, 48], sizes = [10, 16], strides = [1, 1]} : vector<10x64xf32> to vector<10x16xf32>
    %cst_196 = arith.constant dense<0.000000e+00> : vector<8x10xf32>
    %510 = tpu.matmul %507, %508, %cst_196 {dimension_numbers = #tpu.dot_dimension_numbers<[1], [1], [0], [0], [0, 0, 1, 0], [], []>} : vector<8x16xf32>, vector<10x16xf32>, vector<8x10xf32> -> vector<8x10xf32>
    %cst_197 = arith.constant 2.500000e-01 : f32
    %511 = vector.broadcast %cst_197 : f32 to vector<8x10xf32>
    %512 = arith.mulf %510, %511 : vector<8x10xf32>
    %cst_198 = arith.constant dense<0xFF800000> : vector<8xf32>
    %513 = vector.multi_reduction <maximumf>, %512, %cst_198 [1] : vector<8x10xf32> to vector<8xf32>
    %514 = vector.shape_cast %513 : vector<8xf32> to vector<8x1xf32>
    %515 = vector.broadcast %514 : vector<8x1xf32> to vector<8x10xf32>
    %516 = arith.subf %512, %515 : vector<8x10xf32>
    %517 = math.exp %516 : vector<8x10xf32>
    %cst_199 = arith.constant dense<0.000000e+00> : vector<8xf32>
    %518 = vector.multi_reduction <add>, %517, %cst_199 [1] : vector<8x10xf32> to vector<8xf32>
    %519 = vector.shape_cast %518 : vector<8xf32> to vector<8x1xf32>
    %cst_200 = arith.constant dense<0.000000e+00> : vector<8x16xf32>
    %520 = tpu.matmul %517, %509, %cst_200 {dimension_numbers = #tpu.dot_dimension_numbers<[1], [0], [0], [1], [0, 0, 1, 1], [], []>} : vector<8x10xf32>, vector<10x16xf32>, vector<8x16xf32> -> vector<8x16xf32>
    %521 = tpu.reciprocal %519 {approx = true} : vector<8x1xf32> -> vector<8x1xf32>
    %522 = vector.broadcast %521 : vector<8x1xf32> to vector<8x16xf32>
    %523 = arith.mulf %520, %522 : vector<8x16xf32>
    %524 = arith.truncf %523 : vector<8x16xf32> to vector<8x16xbf16>
    %525 = vector.extract_strided_slice %24 {offsets = [48, 0], sizes = [16, 64], strides = [1, 1]} : vector<64x64xbf16> to vector<16x64xbf16>
    %cst_201 = arith.constant dense<0.000000e+00> : vector<8x64xf32>
    %526 = tpu.matmul %524, %525, %cst_201 {dimension_numbers = #tpu.dot_dimension_numbers<[1], [0], [0], [1], [0, 0, 1, 1], [], []>} : vector<8x16xbf16>, vector<16x64xbf16>, vector<8x64xf32> -> vector<8x64xf32>
    %527 = arith.addf %506, %526 : vector<8x64xf32>
    %528 = vector.broadcast %26 : vector<1x64xf32> to vector<8x64xf32>
    %529 = arith.addf %527, %528 : vector<8x64xf32>
    %530 = arith.addf %432, %529 : vector<8x64xf32>
    %cst_202 = arith.constant dense<0.000000e+00> : vector<8xf32>
    %531 = vector.multi_reduction <add>, %530, %cst_202 [1] : vector<8x64xf32> to vector<8xf32>
    %532 = vector.shape_cast %531 : vector<8xf32> to vector<8x1xf32>
    %cst_203 = arith.constant 6.400000e+01 : f32
    %533 = vector.broadcast %cst_203 : f32 to vector<8x1xf32>
    %534 = arith.divf %532, %533 : vector<8x1xf32>
    %535 = vector.broadcast %534 : vector<8x1xf32> to vector<8x64xf32>
    %536 = arith.subf %530, %535 : vector<8x64xf32>
    %537 = arith.mulf %536, %536 : vector<8x64xf32>
    %cst_204 = arith.constant dense<0.000000e+00> : vector<8xf32>
    %538 = vector.multi_reduction <add>, %537, %cst_204 [1] : vector<8x64xf32> to vector<8xf32>
    %539 = vector.shape_cast %538 : vector<8xf32> to vector<8x1xf32>
    %cst_205 = arith.constant 6.400000e+01 : f32
    %540 = vector.broadcast %cst_205 : f32 to vector<8x1xf32>
    %541 = arith.divf %539, %540 : vector<8x1xf32>
    %cst_206 = arith.constant 9.99999974E-6 : f32
    %542 = vector.broadcast %cst_206 : f32 to vector<8x1xf32>
    %543 = arith.addf %541, %542 : vector<8x1xf32>
    %544 = math.rsqrt %543 : vector<8x1xf32>
    %545 = vector.broadcast %544 : vector<8x1xf32> to vector<8x64xf32>
    %546 = arith.mulf %536, %545 : vector<8x64xf32>
    %547 = vector.broadcast %28 : vector<1x64xf32> to vector<8x64xf32>
    %548 = arith.mulf %546, %547 : vector<8x64xf32>
    %549 = vector.broadcast %30 : vector<1x64xf32> to vector<8x64xf32>
    %550 = arith.addf %548, %549 : vector<8x64xf32>
    %551 = arith.truncf %550 : vector<8x64xf32> to vector<8x64xbf16>
    %cst_207 = arith.constant dense<0.000000e+00> : vector<8x2048xf32>
    %552 = tpu.matmul %551, %32, %cst_207 {dimension_numbers = #tpu.dot_dimension_numbers<[1], [0], [0], [1], [0, 0, 1, 1], [], []>} : vector<8x64xbf16>, vector<64x2048xbf16>, vector<8x2048xf32> -> vector<8x2048xf32>
    %553 = vector.broadcast %34 : vector<1x2048xf32> to vector<8x2048xf32>
    %554 = arith.addf %552, %553 : vector<8x2048xf32>
    %cst_208 = arith.constant 0.000000e+00 : f32
    %555 = vector.broadcast %cst_208 : f32 to vector<8x2048xf32>
    %556 = arith.maximumf %554, %555 : vector<8x2048xf32>
    %557 = arith.truncf %556 : vector<8x2048xf32> to vector<8x2048xbf16>
    %cst_209 = arith.constant dense<0.000000e+00> : vector<8x64xf32>
    %558 = tpu.matmul %557, %36, %cst_209 {dimension_numbers = #tpu.dot_dimension_numbers<[1], [0], [0], [1], [0, 0, 1, 1], [], []>} : vector<8x2048xbf16>, vector<2048x64xbf16>, vector<8x64xf32> -> vector<8x64xf32>
    %559 = vector.broadcast %38 : vector<1x64xf32> to vector<8x64xf32>
    %560 = arith.addf %558, %559 : vector<8x64xf32>
    %561 = arith.addf %550, %560 : vector<8x64xf32>
    %cst_210 = arith.constant dense<0.000000e+00> : vector<8xf32>
    %562 = vector.multi_reduction <add>, %561, %cst_210 [1] : vector<8x64xf32> to vector<8xf32>
    %563 = vector.shape_cast %562 : vector<8xf32> to vector<8x1xf32>
    %cst_211 = arith.constant 6.400000e+01 : f32
    %564 = vector.broadcast %cst_211 : f32 to vector<8x1xf32>
    %565 = arith.divf %563, %564 : vector<8x1xf32>
    %566 = vector.broadcast %565 : vector<8x1xf32> to vector<8x64xf32>
    %567 = arith.subf %561, %566 : vector<8x64xf32>
    %568 = arith.mulf %567, %567 : vector<8x64xf32>
    %cst_212 = arith.constant dense<0.000000e+00> : vector<8xf32>
    %569 = vector.multi_reduction <add>, %568, %cst_212 [1] : vector<8x64xf32> to vector<8xf32>
    %570 = vector.shape_cast %569 : vector<8xf32> to vector<8x1xf32>
    %cst_213 = arith.constant 6.400000e+01 : f32
    %571 = vector.broadcast %cst_213 : f32 to vector<8x1xf32>
    %572 = arith.divf %570, %571 : vector<8x1xf32>
    %cst_214 = arith.constant 9.99999974E-6 : f32
    %573 = vector.broadcast %cst_214 : f32 to vector<8x1xf32>
    %574 = arith.addf %572, %573 : vector<8x1xf32>
    %575 = math.rsqrt %574 : vector<8x1xf32>
    %576 = vector.broadcast %575 : vector<8x1xf32> to vector<8x64xf32>
    %577 = arith.mulf %567, %576 : vector<8x64xf32>
    %578 = vector.broadcast %40 : vector<1x64xf32> to vector<8x64xf32>
    %579 = arith.mulf %577, %578 : vector<8x64xf32>
    %580 = vector.broadcast %42 : vector<1x64xf32> to vector<8x64xf32>
    %581 = arith.addf %579, %580 : vector<8x64xf32>
    %c1_215 = arith.constant 1 : index
    %c0_216 = arith.constant 0 : index
    %c0_217 = arith.constant 0 : index
    %582 = vector.load %arg30[%c1_215, %c0_216, %c0_217] : memref<2x8x64xf32, #tpu.memory_space<vmem>>, vector<1x8x64xf32>
    %583 = vector.shape_cast %582 : vector<1x8x64xf32> to vector<8x64xf32>
    %584 = vector.shape_cast %581 : vector<8x64xf32> to vector<1x8x64xf32>
    tpu.vector_store %arg30[%c1_215, %c0_216, %c0_217], %584 {strides = array<i32>} : memref<2x8x64xf32, #tpu.memory_space<vmem>>, vector<1x8x64xf32>,
    %c5_i32 = arith.constant 5 : i32
    %585 = arith.cmpi eq, %arg0, %c5_i32 : i32
    %586 = arith.extui %585 : i1 to i32
    %c0_i32_218 = arith.constant 0 : i32
    %587 = arith.cmpi ne, %586, %c0_i32_218 : i32
    scf.if %587 {
      %c0_219 = arith.constant 0 : index
      %c0_220 = arith.constant 0 : index
      %588 = vector.load %arg27[%c0_219, %c0_220] : memref<1x64xf32, #tpu.memory_space<vmem>>, vector<1x64xf32>
      %c0_221 = arith.constant 0 : index
      %c0_222 = arith.constant 0 : index
      %589 = vector.load %arg28[%c0_221, %c0_222] : memref<1x1xf32, #tpu.memory_space<vmem>>, vector<1x1xf32>
      %c0_223 = arith.constant 0 : index
      %c0_224 = arith.constant 0 : index
      %c0_225 = arith.constant 0 : index
      %590 = vector.load %arg30[%c0_223, %c0_224, %c0_225] : memref<2x8x64xf32, #tpu.memory_space<vmem>>, vector<1x8x64xf32>
      %591 = vector.shape_cast %590 : vector<1x8x64xf32> to vector<8x64xf32>
      %c0_226 = arith.constant 0 : index
      %c0_227 = arith.constant 0 : index
      %592 = vector.load %arg25[%c0_226, %c0_227] : memref<1x64xf32, #tpu.memory_space<vmem>>, vector<1x64xf32>
      %c0_228 = arith.constant 0 : index
      %c0_229 = arith.constant 0 : index
      %593 = vector.load %arg26[%c0_228, %c0_229] : memref<1x64xf32, #tpu.memory_space<vmem>>, vector<1x64xf32>
      %cst_230 = arith.constant dense<0.000000e+00> : vector<8xf32>
      %594 = vector.multi_reduction <add>, %591, %cst_230 [1] : vector<8x64xf32> to vector<8xf32>
      %595 = vector.shape_cast %594 : vector<8xf32> to vector<8x1xf32>
      %cst_231 = arith.constant 6.400000e+01 : f32
      %596 = vector.broadcast %cst_231 : f32 to vector<8x1xf32>
      %597 = arith.divf %595, %596 : vector<8x1xf32>
      %598 = vector.broadcast %597 : vector<8x1xf32> to vector<8x64xf32>
      %599 = arith.subf %591, %598 : vector<8x64xf32>
      %600 = arith.mulf %599, %599 : vector<8x64xf32>
      %cst_232 = arith.constant dense<0.000000e+00> : vector<8xf32>
      %601 = vector.multi_reduction <add>, %600, %cst_232 [1] : vector<8x64xf32> to vector<8xf32>
      %602 = vector.shape_cast %601 : vector<8xf32> to vector<8x1xf32>
      %cst_233 = arith.constant 6.400000e+01 : f32
      %603 = vector.broadcast %cst_233 : f32 to vector<8x1xf32>
      %604 = arith.divf %602, %603 : vector<8x1xf32>
      %cst_234 = arith.constant 9.99999974E-6 : f32
      %605 = vector.broadcast %cst_234 : f32 to vector<8x1xf32>
      %606 = arith.addf %604, %605 : vector<8x1xf32>
      %607 = math.rsqrt %606 : vector<8x1xf32>
      %608 = vector.broadcast %607 : vector<8x1xf32> to vector<8x64xf32>
      %609 = arith.mulf %599, %608 : vector<8x64xf32>
      %610 = vector.broadcast %592 : vector<1x64xf32> to vector<8x64xf32>
      %611 = arith.mulf %609, %610 : vector<8x64xf32>
      %612 = vector.broadcast %593 : vector<1x64xf32> to vector<8x64xf32>
      %613 = arith.addf %611, %612 : vector<8x64xf32>
      %614 = vector.broadcast %588 : vector<1x64xf32> to vector<8x64xf32>
      %615 = arith.mulf %613, %614 : vector<8x64xf32>
      %cst_235 = arith.constant dense<0.000000e+00> : vector<8xf32>
      %616 = vector.multi_reduction <add>, %615, %cst_235 [1] : vector<8x64xf32> to vector<8xf32>
      %617 = vector.shape_cast %616 : vector<8xf32> to vector<8x1xf32>
      %618 = vector.broadcast %589 : vector<1x1xf32> to vector<8x1xf32>
      %619 = arith.addf %617, %618 : vector<8x1xf32>
      %c0_236 = arith.constant 0 : index
      %c0_237 = arith.constant 0 : index
      %c0_238 = arith.constant 0 : index
      %620 = vector.load %arg29[%c0_236, %c0_237, %c0_238] : memref<2x8x1xf32, #tpu.memory_space<vmem>>, vector<1x8x1xf32>
      %621 = vector.shape_cast %620 : vector<1x8x1xf32> to vector<8x1xf32>
      %622 = vector.shape_cast %619 : vector<8x1xf32> to vector<1x8x1xf32>
      tpu.vector_store %arg29[%c0_236, %c0_237, %c0_238], %622 {strides = array<i32>} : memref<2x8x1xf32, #tpu.memory_space<vmem>>, vector<1x8x1xf32>,
      %c1_239 = arith.constant 1 : index
      %c0_240 = arith.constant 0 : index
      %c0_241 = arith.constant 0 : index
      %623 = vector.load %arg30[%c1_239, %c0_240, %c0_241] : memref<2x8x64xf32, #tpu.memory_space<vmem>>, vector<1x8x64xf32>
      %624 = vector.shape_cast %623 : vector<1x8x64xf32> to vector<8x64xf32>
      %c0_242 = arith.constant 0 : index
      %c0_243 = arith.constant 0 : index
      %625 = vector.load %arg25[%c0_242, %c0_243] : memref<1x64xf32, #tpu.memory_space<vmem>>, vector<1x64xf32>
      %c0_244 = arith.constant 0 : index
      %c0_245 = arith.constant 0 : index
      %626 = vector.load %arg26[%c0_244, %c0_245] : memref<1x64xf32, #tpu.memory_space<vmem>>, vector<1x64xf32>
      %cst_246 = arith.constant dense<0.000000e+00> : vector<8xf32>
      %627 = vector.multi_reduction <add>, %624, %cst_246 [1] : vector<8x64xf32> to vector<8xf32>
      %628 = vector.shape_cast %627 : vector<8xf32> to vector<8x1xf32>
      %cst_247 = arith.constant 6.400000e+01 : f32
      %629 = vector.broadcast %cst_247 : f32 to vector<8x1xf32>
      %630 = arith.divf %628, %629 : vector<8x1xf32>
      %631 = vector.broadcast %630 : vector<8x1xf32> to vector<8x64xf32>
      %632 = arith.subf %624, %631 : vector<8x64xf32>
      %633 = arith.mulf %632, %632 : vector<8x64xf32>
      %cst_248 = arith.constant dense<0.000000e+00> : vector<8xf32>
      %634 = vector.multi_reduction <add>, %633, %cst_248 [1] : vector<8x64xf32> to vector<8xf32>
      %635 = vector.shape_cast %634 : vector<8xf32> to vector<8x1xf32>
      %cst_249 = arith.constant 6.400000e+01 : f32
      %636 = vector.broadcast %cst_249 : f32 to vector<8x1xf32>
      %637 = arith.divf %635, %636 : vector<8x1xf32>
      %cst_250 = arith.constant 9.99999974E-6 : f32
      %638 = vector.broadcast %cst_250 : f32 to vector<8x1xf32>
      %639 = arith.addf %637, %638 : vector<8x1xf32>
      %640 = math.rsqrt %639 : vector<8x1xf32>
      %641 = vector.broadcast %640 : vector<8x1xf32> to vector<8x64xf32>
      %642 = arith.mulf %632, %641 : vector<8x64xf32>
      %643 = vector.broadcast %625 : vector<1x64xf32> to vector<8x64xf32>
      %644 = arith.mulf %642, %643 : vector<8x64xf32>
      %645 = vector.broadcast %626 : vector<1x64xf32> to vector<8x64xf32>
      %646 = arith.addf %644, %645 : vector<8x64xf32>
      %647 = vector.broadcast %588 : vector<1x64xf32> to vector<8x64xf32>
      %648 = arith.mulf %646, %647 : vector<8x64xf32>
      %cst_251 = arith.constant dense<0.000000e+00> : vector<8xf32>
      %649 = vector.multi_reduction <add>, %648, %cst_251 [1] : vector<8x64xf32> to vector<8xf32>
      %650 = vector.shape_cast %649 : vector<8xf32> to vector<8x1xf32>
      %651 = vector.broadcast %589 : vector<1x1xf32> to vector<8x1xf32>
      %652 = arith.addf %650, %651 : vector<8x1xf32>
      %c1_252 = arith.constant 1 : index
      %c0_253 = arith.constant 0 : index
      %c0_254 = arith.constant 0 : index
      %653 = vector.load %arg29[%c1_252, %c0_253, %c0_254] : memref<2x8x1xf32, #tpu.memory_space<vmem>>, vector<1x8x1xf32>
      %654 = vector.shape_cast %653 : vector<1x8x1xf32> to vector<8x1xf32>
      %655 = vector.shape_cast %652 : vector<8x1xf32> to vector<1x8x1xf32>
      tpu.vector_store %arg29[%c1_252, %c0_253, %c0_254], %655 {strides = array<i32>} : memref<2x8x1xf32, #tpu.memory_space<vmem>>, vector<1x8x1xf32>,
    } else {
    }
    return
  }
  func.func @transform_0(%arg0: i32) -> (i32, i32, i32) {
    %c0_i32 = arith.constant 0 : i32
    %c0_i32_0 = arith.constant 0 : i32
    %c0_i32_1 = arith.constant 0 : i32
    %c0_i32_2 = arith.constant 0 : i32
    return %c0_i32, %c0_i32_0, %c0_i32_1 : i32, i32, i32
  }
  func.func @transform_1(%arg0: i32) -> (i32, i32) {
    %c0_i32 = arith.constant 0 : i32
    %c0_i32_0 = arith.constant 0 : i32
    %c0_i32_1 = arith.constant 0 : i32
    return %c0_i32, %c0_i32_0 : i32, i32
  }
  func.func @transform_2(%arg0: i32) -> (i32, i32) {
    %c0_i32 = arith.constant 0 : i32
    %c0_i32_0 = arith.constant 0 : i32
    %c0_i32_1 = arith.constant 0 : i32
    return %c0_i32, %c0_i32_0 : i32, i32
  }
  func.func @transform_3(%arg0: i32) -> (i32, i32, i32) {
    %c0_i32 = arith.constant 0 : i32
    %c0_i32_0 = arith.constant 0 : i32
    %c0_i32_1 = arith.constant 0 : i32
    %c0_i32_2 = arith.constant 0 : i32
    return %c0_i32, %c0_i32_0, %c0_i32_1 : i32, i32, i32
  }
  func.func @transform_4(%arg0: i32) -> (i32, i32, i32) {
    %c0_i32 = arith.constant 0 : i32
    %c0_i32_0 = arith.constant 0 : i32
    %c0_i32_1 = arith.constant 0 : i32
    return %arg0, %c0_i32, %c0_i32_0 : i32, i32, i32
  }
  func.func @transform_5(%arg0: i32) -> (i32, i32, i32) {
    %c0_i32 = arith.constant 0 : i32
    %c0_i32_0 = arith.constant 0 : i32
    %c0_i32_1 = arith.constant 0 : i32
    return %arg0, %c0_i32, %c0_i32_0 : i32, i32, i32
  }
  func.func @transform_6(%arg0: i32) -> (i32, i32, i32) {
    %c0_i32 = arith.constant 0 : i32
    %c0_i32_0 = arith.constant 0 : i32
    %c0_i32_1 = arith.constant 0 : i32
    return %arg0, %c0_i32, %c0_i32_0 : i32, i32, i32
  }
  func.func @transform_7(%arg0: i32) -> (i32, i32, i32) {
    %c0_i32 = arith.constant 0 : i32
    %c0_i32_0 = arith.constant 0 : i32
    %c0_i32_1 = arith.constant 0 : i32
    return %arg0, %c0_i32, %c0_i32_0 : i32, i32, i32
  }
  func.func @transform_8(%arg0: i32) -> (i32, i32, i32) {
    %c0_i32 = arith.constant 0 : i32
    %c0_i32_0 = arith.constant 0 : i32
    %c0_i32_1 = arith.constant 0 : i32
    return %arg0, %c0_i32, %c0_i32_0 : i32, i32, i32
  }
  func.func @transform_9(%arg0: i32) -> (i32, i32, i32) {
    %c0_i32 = arith.constant 0 : i32
    %c0_i32_0 = arith.constant 0 : i32
    %c0_i32_1 = arith.constant 0 : i32
    return %arg0, %c0_i32, %c0_i32_0 : i32, i32, i32
  }
  func.func @transform_10(%arg0: i32) -> (i32, i32, i32) {
    %c0_i32 = arith.constant 0 : i32
    %c0_i32_0 = arith.constant 0 : i32
    %c0_i32_1 = arith.constant 0 : i32
    return %arg0, %c0_i32, %c0_i32_0 : i32, i32, i32
  }
  func.func @transform_11(%arg0: i32) -> (i32, i32, i32) {
    %c0_i32 = arith.constant 0 : i32
    %c0_i32_0 = arith.constant 0 : i32
    %c0_i32_1 = arith.constant 0 : i32
    return %arg0, %c0_i32, %c0_i32_0 : i32, i32, i32
  }
  func.func @transform_12(%arg0: i32) -> (i32, i32, i32) {
    %c0_i32 = arith.constant 0 : i32
    %c0_i32_0 = arith.constant 0 : i32
    %c0_i32_1 = arith.constant 0 : i32
    return %arg0, %c0_i32, %c0_i32_0 : i32, i32, i32
  }
  func.func @transform_13(%arg0: i32) -> (i32, i32, i32) {
    %c0_i32 = arith.constant 0 : i32
    %c0_i32_0 = arith.constant 0 : i32
    %c0_i32_1 = arith.constant 0 : i32
    return %arg0, %c0_i32, %c0_i32_0 : i32, i32, i32
  }
  func.func @transform_14(%arg0: i32) -> (i32, i32, i32) {
    %c0_i32 = arith.constant 0 : i32
    %c0_i32_0 = arith.constant 0 : i32
    %c0_i32_1 = arith.constant 0 : i32
    return %arg0, %c0_i32, %c0_i32_0 : i32, i32, i32
  }
  func.func @transform_15(%arg0: i32) -> (i32, i32, i32) {
    %c0_i32 = arith.constant 0 : i32
    %c0_i32_0 = arith.constant 0 : i32
    %c0_i32_1 = arith.constant 0 : i32
    return %arg0, %c0_i32, %c0_i32_0 : i32, i32, i32
  }
  func.func @transform_16(%arg0: i32) -> (i32, i32, i32) {
    %c0_i32 = arith.constant 0 : i32
    %c0_i32_0 = arith.constant 0 : i32
    %c0_i32_1 = arith.constant 0 : i32
    return %arg0, %c0_i32, %c0_i32_0 : i32, i32, i32
  }
  func.func @transform_17(%arg0: i32) -> (i32, i32, i32) {
    %c0_i32 = arith.constant 0 : i32
    %c0_i32_0 = arith.constant 0 : i32
    %c0_i32_1 = arith.constant 0 : i32
    return %arg0, %c0_i32, %c0_i32_0 : i32, i32, i32
  }
  func.func @transform_18(%arg0: i32) -> (i32, i32, i32) {
    %c0_i32 = arith.constant 0 : i32
    %c0_i32_0 = arith.constant 0 : i32
    %c0_i32_1 = arith.constant 0 : i32
    return %arg0, %c0_i32, %c0_i32_0 : i32, i32, i32
  }
  func.func @transform_19(%arg0: i32) -> (i32, i32, i32) {
    %c0_i32 = arith.constant 0 : i32
    %c0_i32_0 = arith.constant 0 : i32
    %c0_i32_1 = arith.constant 0 : i32
    return %arg0, %c0_i32, %c0_i32_0 : i32, i32, i32
  }
  func.func @transform_20(%arg0: i32) -> (i32, i32, i32) {
    %c0_i32 = arith.constant 0 : i32
    %c0_i32_0 = arith.constant 0 : i32
    %c0_i32_1 = arith.constant 0 : i32
    return %arg0, %c0_i32, %c0_i32_0 : i32, i32, i32
  }
  func.func @transform_21(%arg0: i32) -> (i32, i32, i32) {
    %c0_i32 = arith.constant 0 : i32
    %c0_i32_0 = arith.constant 0 : i32
    %c0_i32_1 = arith.constant 0 : i32
    return %arg0, %c0_i32, %c0_i32_0 : i32, i32, i32
  }
  func.func @transform_22(%arg0: i32) -> (i32, i32, i32) {
    %c0_i32 = arith.constant 0 : i32
    %c0_i32_0 = arith.constant 0 : i32
    %c0_i32_1 = arith.constant 0 : i32
    return %arg0, %c0_i32, %c0_i32_0 : i32, i32, i32
  }
  func.func @transform_23(%arg0: i32) -> (i32, i32, i32) {
    %c0_i32 = arith.constant 0 : i32
    %c0_i32_0 = arith.constant 0 : i32
    %c0_i32_1 = arith.constant 0 : i32
    return %arg0, %c0_i32, %c0_i32_0 : i32, i32, i32
  }
  func.func @transform_24(%arg0: i32) -> (i32, i32) {
    %c0_i32 = arith.constant 0 : i32
    %c0_i32_0 = arith.constant 0 : i32
    %c0_i32_1 = arith.constant 0 : i32
    return %c0_i32, %c0_i32_0 : i32, i32
  }
  func.func @transform_25(%arg0: i32) -> (i32, i32) {
    %c0_i32 = arith.constant 0 : i32
    %c0_i32_0 = arith.constant 0 : i32
    %c0_i32_1 = arith.constant 0 : i32
    return %c0_i32, %c0_i32_0 : i32, i32
  }
  func.func @transform_26(%arg0: i32) -> (i32, i32) {
    %c0_i32 = arith.constant 0 : i32
    %c0_i32_0 = arith.constant 0 : i32
    %c0_i32_1 = arith.constant 0 : i32
    return %c0_i32, %c0_i32_0 : i32, i32
  }
  func.func @transform_27(%arg0: i32) -> (i32, i32) {
    %c0_i32 = arith.constant 0 : i32
    %c0_i32_0 = arith.constant 0 : i32
    %c0_i32_1 = arith.constant 0 : i32
    return %c0_i32, %c0_i32_0 : i32, i32
  }
  func.func @transform_28(%arg0: i32) -> (i32, i32, i32) {
    %c0_i32 = arith.constant 0 : i32
    %c0_i32_0 = arith.constant 0 : i32
    %c0_i32_1 = arith.constant 0 : i32
    %c0_i32_2 = arith.constant 0 : i32
    return %c0_i32, %c0_i32_0, %c0_i32_1 : i32, i32, i32
  }
}

</mosaic_0001>

<bundles_post_ra>
// kernel: stock_price_transformer.2
= control target key start
LH: loop header
LB: loop body
LE: loop exit
PB: predicated region body
PF: predicated region fallthrough
CT: control target
= control target key end

     0   :  { %s9671_s0 = inlined_call_operand.vmem [shape: f32[2,10,1], index: 0, kind: input, shape index: {}]   ;;  %s9672_s1 = inlined_call_operand.hbm [shape: f32[1,64], index: 1, kind: input, shape index: {}]   ;;  %s9673_s2 = inlined_call_operand.hbm [shape: f32[1,64], index: 2, kind: input, shape index: {}]   ;;  %s9674_s3 = inlined_call_operand.vmem [shape: bf16[2,64,192], index: 3, kind: input, shape index: {}]   ;;  %s9675_s4 = inlined_call_operand.vmem [shape: f32[2,1,192], index: 4, kind: input, shape index: {}]   ;;  %s9676_s5 = inlined_call_operand.vmem [shape: bf16[2,64,64], index: 5, kind: input, shape index: {}]   ;;  %s9677_s6 = inlined_call_operand.vmem [shape: f32[2,1,64], index: 6, kind: input, shape index: {}]   ;;  %s9678_s7 = inlined_call_operand.vmem [shape: f32[2,1,64], index: 7, kind: input, shape index: {}]   ;;  %s9679_s8 = inlined_call_operand.vmem [shape: f32[2,1,64], index: 8, kind: input, shape index: {}]   ;;  %s9680_s9 = inlined_call_operand.vmem [shape: bf16[2,64,2048], index: 9, kind: input, shape index: {}]   ;;  %s9681_s10 = inlined_call_operand.vmem [shape: f32[2,1,2048], index: 10, kind: input, shape index: {}]   ;;  %s9682_s11 = inlined_call_operand.vmem [shape: bf16[2,2048,64], index: 11, kind: input, shape index: {}]   ;;  %s9683_s12 = inlined_call_operand.vmem [shape: f32[2,1,64], index: 12, kind: input, shape index: {}]   ;;  %s9684_s13 = inlined_call_operand.vmem [shape: f32[2,1,64], index: 13, kind: input, shape index: {}]   ;;  %s9685_s14 = inlined_call_operand.vmem [shape: f32[2,1,64], index: 14, kind: input, shape index: {}]   ;;  %s9686_s15 = inlined_call_operand.hbm [shape: f32[1,64], index: 15, kind: input, shape index: {}]   ;;  %s9687_s16 = inlined_call_operand.hbm [shape: f32[1,64], index: 16, kind: input, shape index: {}]   ;;  %s9688_s17 = inlined_call_operand.vmem [shape: f32[2,10,64], index: 17, kind: output, shape index: {}]  }
   0x1   :  { %9773 = sst [smem:[#allocation66_spill]] %s9671_s0 }
   0x2   :  { %9774 = sst [smem:[#allocation67_spill]] %s9672_s1 }
   0x3   :  { %9775 = sst [smem:[#allocation68_spill]] %s9673_s2 }
   0x4   :  { %9776 = sst [smem:[#allocation69_spill]] %s9674_s3 }
   0x5   :  { %9777 = sst [smem:[#allocation70_spill]] %s9675_s4 }
   0x6   :  { %9778 = sst [smem:[#allocation71_spill]] %s9676_s5 }
   0x7   :  { %9779 = sst [smem:[#allocation72_spill]] %s9677_s6 }
   0x8   :  { %9780 = sst [smem:[#allocation73_spill]] %s9678_s7 }
   0x9   :  { %9781 = sst [smem:[#allocation74_spill]] %s9679_s8 }
   0xa   :  { %9782 = sst [smem:[#allocation75_spill]] %s9680_s9 }
   0xb   :  { %9783 = sst [smem:[#allocation76_spill]] %s9681_s10 }
   0xc   :  { %9784 = sst [smem:[#allocation77_spill]] %s9684_s13 }
   0xd   :  { %9785 = sst [smem:[#allocation78_spill]] %s9685_s14 }
   0xe   :  { %9786 = sst [smem:[#allocation79_spill]] %s9688_s17 }
   0xf   :  { %22 = vsyncpa [#allocation3], 0 }
  0x10   :  { %23 = vsyncpa [#allocation5], 0 }
  0x11   :  { %24 = vsyncpa [#allocation8], 0  ;;  %s8154_s24 = smov 0  }
  0x12 LB: > { %9787 = sst [smem:[#allocation12_spill]] %s8046_s24  ;;  %s8160_s25 = sadd.s32 4294967295, %s8046_s24   ;;  %s8046_s24 = sphi %s8154_s24, %s30_s24  }
  0x13   : > { %p6388_p0 = scmp.ge.s32.totalorder %s8046_s24, 1  ;;  %p473_p1 = scmp.lt.s32.totalorder %s8046_s24, 3 }
  0x14   : > { %p9692_p3 = scmp.eq.s32.totalorder %s8160_s25, 0  ;;  %s8048_s26 = smov [#allocation4]  }
  0x15   : > { %s500_s27 = sshll.u32 %s8048_s26, 4  ;;  %p8166_p4 = pnand %p6388_p0, %p473_p1  ;;  %s501_s27 = int_to_ptr.vmem [resolvable:$true] %s500_s27 }
  0x16   : > { %s8049_s29 = smov [#allocation2]   ;;  %s8050_s30 = smov [#allocation6]  }
  0x17   : > { %s9788_s28 = scalar_select %p8166_p4, 1, 0 }
  0x18   : > { %s489_s0 = sshll.u32 %s8049_s29, 4  ;;  %p7421_p5 = pneg %p8166_p4  ;;  %s8178_s0 = int_to_ptr.vmem [resolvable:$true] %s489_s0 }
  0x19   : > { %s511_s18 = sshll.u32 %s8050_s30, 4  ;;  %s8051_s1 = smov [#allocation7]   ;;  %s8180_s18 = int_to_ptr.vmem [resolvable:$true] %s511_s18 }
  0x1a   : > { %p8174_p6 = pnand %p9692_p3, %p7421_p5  ;;  %s522_s20 = sshll.u32 %s8051_s1, 4  ;;  %s8182_s20 = int_to_ptr.vmem [resolvable:$true] %s522_s20 }
  0x1b   : > { %s9790_s2 = sld [smem:[#allocation68_spill]] }
  0x1c   : > { %p8192_p8 = pneg %p8174_p6 }
  0x21   : > { %s7916_s23 = scalar_lea.hbm %s9790_s2, 16 }
  0x22   : > { %p7917_p7 = scmp.ne.s32.totalorder %s9790_s2, %s7916_s23  ;;  %p7923_p11 = scmp.lt.u32.totalorder %s7916_s23, %s9790_s2 }
  0x24   : > { %p7919_p9 = pnand %p8192_p8, %p7917_p7 }
  0x26   : > { %p7920_p10 = pneg %p7919_p9 }
  0x28   : > { %p7925_p12 = pnand %p7923_p11, %p7920_p10 }
  0x2a   : > { %7928 = shalt.err (!%p7925_p12)
}
  0x2b   : > { %s7929_s21 = scalar_lea.vmem %s501_s27, 16  ;;  %s7936_s22 = scalar_lea.vmem %s501_s27, 32 }
  0x2c   : > { %p7930_p13 = scmp.ne.s32.totalorder %s501_s27, %s7929_s21  ;;  %p7937_p5 = scmp.lt.s32.totalorder %s501_s27, %s501_s27 }
  0x2d   : > { %p7938_p2 = scmp.lt.s32.totalorder %s7936_s22, %s7929_s21 }
  0x2e   : > { %p7932_p0 = pnand %p7930_p13, %p8192_p8 }
  0x2f   : > { %p7939_p3 = por %p7938_p2, %p7937_p5 }
  0x30   : > { %p7933_p1 = pneg %p7932_p0 }
  0x32   : > { %p7940_p4 = pnand %p7939_p3, %p7933_p1 }
  0x34   : > { %7943 = shalt.err (!%p7940_p4)
}
  0x35   : > { %7427 = dma.hbm_to_vmem [thread:$0]  (!%p8174_p6), %s9790_s2, 16, %s501_s27, [#allocation5]  }
  0x36   : > { %s9792_s1 = sld [smem:[#allocation67_spill]] }
  0x3c   : > { %s7944_s17 = scalar_lea.hbm %s9792_s1, 16 }
  0x3d   : > { %p7945_p7 = scmp.ne.s32.totalorder %s9792_s1, %s7944_s17  ;;  %p7951_p3 = scmp.lt.u32.totalorder %s7944_s17, %s9792_s1 }
  0x3f   : > { %p7947_p9 = pnand %p7945_p7, %p8192_p8 }
  0x41   : > { %p7948_p2 = pneg %p7947_p9 }
  0x43   : > { %p7953_p4 = pnand %p7951_p3, %p7948_p2 }
  0x45   : > { %7956 = shalt.err (!%p7953_p4)
}
  0x46   : > { %s7957_s27 = scalar_lea.vmem %s8178_s0, 16  ;;  %s7964_s13 = scalar_lea.vmem %s8178_s0, 32 }
  0x47   : > { %p7958_p10 = scmp.ne.s32.totalorder %s8178_s0, %s7957_s27  ;;  %p7965_p13 = scmp.lt.s32.totalorder %s8178_s0, %s8178_s0 }
  0x48   : > { %p7966_p0 = scmp.lt.s32.totalorder %s7964_s13, %s7957_s27 }
  0x49   : > { %p7960_p11 = pnand %p7958_p10, %p8192_p8 }
  0x4a   : > { %p7967_p1 = por %p7966_p0, %p7965_p13 }
  0x4b   : > { %p7961_p12 = pneg %p7960_p11 }
  0x4d   : > { %p7968_p5 = pnand %p7967_p1, %p7961_p12 }
  0x4f   : > { %7971 = shalt.err (!%p7968_p5)
}
  0x50   : > { %7424 = dma.hbm_to_vmem [thread:$0]  (!%p8174_p6), %s9792_s1, 16, %s8178_s0, [#allocation3]  }
  0x51   : > { %s7972_s24 = scalar_lea.hbm %s9686_s15, 16 }
  0x52   : > { %p7973_p7 = scmp.ne.s32.totalorder %s9686_s15, %s7972_s24  ;;  %p7979_p3 = scmp.lt.u32.totalorder %s7972_s24, %s9686_s15 }
  0x54   : > { %p7975_p9 = pnand %p7973_p7, %p8192_p8 }
  0x56   : > { %p7976_p2 = pneg %p7975_p9 }
  0x58   : > { %p7981_p4 = pnand %p7979_p3, %p7976_p2 }
  0x5a   : > { %7984 = shalt.err (!%p7981_p4)
}
  0x5b   : > { %s7985_s0 = scalar_lea.vmem %s8180_s18, 16  ;;  %s7992_s13 = scalar_lea.vmem %s8180_s18, 32 }
  0x5c   : > { %p7986_p10 = scmp.ne.s32.totalorder %s8180_s18, %s7985_s0  ;;  %p7993_p13 = scmp.lt.s32.totalorder %s8180_s18, %s8180_s18 }
  0x5d   : > { %p7994_p0 = scmp.lt.s32.totalorder %s7992_s13, %s7985_s0 }
  0x5e   : > { %p7988_p11 = pnand %p7986_p10, %p8192_p8 }
  0x5f   : > { %p7995_p1 = por %p7994_p0, %p7993_p13 }
  0x60   : > { %p7989_p12 = pneg %p7988_p11 }
  0x62   : > { %p7996_p5 = pnand %p7995_p1, %p7989_p12 }
  0x64   : > { %7999 = shalt.err (!%p7996_p5)
}
  0x65   : > { %7430 = dma.hbm_to_vmem [thread:$0]  (!%p8174_p6), %s9686_s15, 16, %s8180_s18, [#allocation5]  }
  0x66   : > { %s8000_s24 = scalar_lea.hbm %s9687_s16, 16 }
  0x67   : > { %p8001_p7 = scmp.ne.s32.totalorder %s9687_s16, %s8000_s24  ;;  %p8007_p3 = scmp.lt.u32.totalorder %s8000_s24, %s9687_s16 }
  0x69   : > { %p8003_p9 = pnand %p8001_p7, %p8192_p8 }
  0x6b   : > { %p8004_p2 = pneg %p8003_p9 }
  0x6d   : > { %p8009_p4 = pnand %p8007_p3, %p8004_p2 }
  0x6f   : > { %8012 = shalt.err (!%p8009_p4)
}
  0x70   : > { %s8013_s18 = scalar_lea.vmem %s8182_s20, 16  ;;  %s8020_s0 = scalar_lea.vmem %s8182_s20, 32 }
  0x71   : > { %p8014_p10 = scmp.ne.s32.totalorder %s8182_s20, %s8013_s18  ;;  %p8021_p13 = scmp.lt.s32.totalorder %s8182_s20, %s8182_s20 }
  0x72   : > { %p8022_p0 = scmp.lt.s32.totalorder %s8020_s0, %s8013_s18 }
  0x73   : > { %p8016_p11 = pnand %p8014_p10, %p8192_p8 }
  0x74   : > { %p8023_p1 = por %p8022_p0, %p8021_p13 }
  0x75   : > { %p8017_p12 = pneg %p8016_p11 }
  0x77   : > { %p8024_p5 = pnand %p8023_p1, %p8017_p12 }
  0x79   : > { %8027 = shalt.err (!%p8024_p5)
}
  0x7a   : > { %7433 = dma.hbm_to_vmem [thread:$0]  (!%p8174_p6), %s9687_s16, 16, %s8182_s20, [#allocation8]  }
  0x7b   : > { %p9793_p7 = scmp.ne.s32.totalorder %s9788_s28, 0 }
  0x7d   : > { %617 = sbr.rel (%p9793_p7) target bundleno = 7521 (0x1d61), region = 88 }
  0x84   : > { %p9794_p8 = scmp.eq.s32.totalorder %s8160_s25, 0 }
  0x86   : > { %8033 = dma.done.wait (%p9794_p8), [#allocation3], 16   ;;  %p9795_p9 = pmov %p9794_p8 }
  0x87   : > { %p9796_p2 = pmov %p9794_p8 }
  0x88   : > { %8035 = vsyncadd (%p9795_p9), [#allocation3], 4294967280 }
  0x89   : > { %8037 = dma.done.wait (%p9796_p2), [#allocation5], 32   ;;  %p9797_p3 = pmov %p9796_p2 }
  0x8a   : > { %p9798_p4 = pmov %p9796_p2 }
  0x8b   : > { %8039 = vsyncadd (%p9797_p3), [#allocation5], 4294967264 }
  0x8c   : > { %8041 = dma.done.wait (%p9798_p4), [#allocation8], 16   ;;  %p9799_p6 = pmov %p9796_p2 }
  0x8d   : > { %p717_p10 = scmp.lt.s32.totalorder %s8160_s25, 1  ;;  %s9800_s3 = sld [smem:[#allocation69_spill]] }
  0x8e   : > { %8043 = vsyncadd (%p9799_p6), [#allocation8], 4294967280  ;;  %s9801_s4 = sld [smem:[#allocation70_spill]]  ;;  %s9802_s6 = sld [smem:[#allocation72_spill]] }
  0x8f   : > { %s8296_s28 = scalar_select %p717_p10, %s8160_s25, 1 }
  0x90   : > { %s9803_s5 = sld [smem:[#allocation71_spill]]  ;;  %s9804_s7 = sld [smem:[#allocation73_spill]] }
  0x91   : > { %s6713_s19 = sshll.u32 %s8296_s28, 6  ;;  %s6401_s20 = sshll.u32 %s8296_s28, 1 }
  0x92   : > { %s6714_s21 = sshll.u32 %s8296_s28, 5  ;;  %s9805_s8 = sld [smem:[#allocation74_spill]] }
  0x93   : > { %s8303_s26 = scalar_lea.vmem %s9800_s3, %s6713_s19  ;;  %s6715_s24 = sshll.u32 %s8296_s28, 9 }
  0x94   : > { %s8308_s23 = scalar_lea.vmem %s9801_s4, %s6401_s20  ;;  %s8315_s18 = scalar_lea.vmem %s9802_s6, %s8296_s28 }
  0x95   : > { %s9806_s9 = sld [smem:[#allocation75_spill]]  ;;  %s6406_s3 = sshll.u32 %s8296_s28, 4 }
  0x96   : > { %s8320_s14 = scalar_lea.vmem %s9803_s5, %s6714_s21  ;;  %s8326_s19 = scalar_lea.vmem %s9804_s7, %s8296_s28 }
  0x97   : > { %s9807_s10 = sld [smem:[#allocation76_spill]]  ;;  %s6716_s30 = sshll.u32 %s8296_s28, 10 }
  0x98   : > { %s8332_s20 = scalar_lea.vmem %s9805_s8, %s8296_s28  ;;  %s8350_s5 = scalar_lea.vmem %s9682_s11, %s6716_s30 }
  0x99   : > { %s8356_s6 = scalar_lea.vmem %s9683_s12, %s8296_s28  ;;  %s9808_s22 = sld [smem:[#allocation77_spill]] }
  0x9a   : > { %s9809_s0 = sld [smem:[#allocation78_spill]]  ;;  %p9810_p11 = scmp.ne.s32.totalorder %s8160_s25, 0 }
  0x9b   : > { %s8338_s27 = scalar_lea.vmem %s9806_s9, %s6715_s24  ;;  %s9811_s30 = sld [smem:[#allocation66_spill]] (!%p9810_p11)  ;;  %v8052_v2 = vmov (!%p9810_p11), 0   ;;  %v6410_v5 = vld [vmem:[#allocation2] ss:$0 sm:$0xff] (!%p9810_p11)  ;;  %v6411_v6 = vld [vmem:[#allocation4] ss:$0 sm:$0xff] (!%p9810_p11) }
  0x9c   : > { %767 = sbr.rel (%p9810_p11) target bundleno = 299 (0x12b), region = 108  ;;  %7467 = vset.pattern.permute.xlu1 (!%p9810_p11), %v8052_v2  ;;  %7466 = vset.pattern.permute.xlu0 (!%p9810_p11), %v8052_v2  ;;  %vm814_vm0 = vcmask (!%p9810_p11), 523264   ;;  %s9812_s24 = sld [smem:[#allocation79_spill]] (!%p9810_p11)  ;;  %vm816_vm1 = vcmask (!%p9810_p11), 517120  }
  0x9d   : > { %s8344_s13 = scalar_lea.vmem %s9807_s10, %s6406_s3 }
  0x9f   : > { %s759_s7 = scalar_lea.vmem %s9808_s22, %s8296_s28 }
  0xa0   : > { %s762_s3 = scalar_lea.vmem %s9809_s0, %s8296_s28 }
  0xa1   : > { %v770_v0 = vld [vmem:[%s9811_s30 + $0x10] sm:$0xff] (!%p9810_p11)  ;;  %v768_v1 = vld [vmem:[%s9811_s30] sm:$0xff] (!%p9810_p11)  ;;  %v771_v3 = vld [vmem:[%s9811_s30 + $0x18] sm:$0x3] (!%p9810_p11) }
  0xa2   : > { %785 = vperm.xlu1 (!%p9810_p11), %7467, %v770_v0   ;;  %775 = vperm.xlu0 (!%p9810_p11), %7466, %v768_v1   ;;  %v769_v4 = vld [vmem:[%s9811_s30 + $0x8] sm:$0x3] (!%p9810_p11) }
  0xa6   : > { %790 = vperm.xlu1 %7467, %v771_v3   ;;  %780 = vperm.xlu0 %7466, %v769_v4  }
 0x121   : > { %v786_v7 = vpop.permute.xlu1 %785  ;;  %v776_v8 = vpop.permute.xlu0 %775 }
 0x122   : > { %v801_v9 = vmul.f32 %v6410_v5, %v786_v7  ;;  %v799_v10 = vmul.f32 %v6410_v5, %v776_v8 }
 0x124   : > { %v812_v11 = vadd.f32 %v6411_v6, %v801_v9  ;;  %v810_v12 = vadd.f32 %v6411_v6, %v799_v10 }
 0x125   : > { %v791_v13 = vpop.permute.xlu1 %790  ;;  %v781_v14 = vpop.permute.xlu0 %780 }
 0x126   : > { %818 = vst.msk [vmem:[%s9812_s24 + $0x10] sm:$0xff] %vm814_vm0, %v812_v11  ;;  %815 = vst.msk [vmem:[%s9812_s24] sm:$0xff] %vm814_vm0, %v810_v12  ;;  %v802_v15 = vmul.f32 %v6410_v5, %v791_v13  ;;  %v800_v16 = vmul.f32 %v6410_v5, %v781_v14 }
 0x128   : > { %v813_v17 = vadd.f32 %v6411_v6, %v802_v15  ;;  %v811_v18 = vadd.f32 %v6411_v6, %v800_v16 }
 0x12a   : > { %819 = vst.msk [vmem:[%s9812_s24 + $0x18] sm:$0x3] %vm816_vm1, %v813_v17  ;;  %817 = vst.msk [vmem:[%s9812_s24 + $0x8] sm:$0x3] %vm816_vm1, %v811_v18 }
 0x12b PF: > { %v7538_v19 = vld [vmem:[%s8303_s26 + $0x4] ss:$8 sps:$4 sm:$0xff]   ;;  %v7540_v20 = vld [vmem:[%s8303_s26] ss:$8 sps:$4 sm:$0xff]   ;;  %v9700_v21 = vmov 0   ;;  %vm1219_vm2 = vcmask 523264   ;;  %v1169_v31 = vlaneseq }
 0x12c   : > { %1255 = vmatprep.mubr.bf16.mxu0 %v9700_v21  ;;  %1223 = vmatprep.subr.bf16.mxu0 %v7538_v19  ;;  %v7541_v22 = vld [vmem:[%s8303_s26 + $0x14] ss:$8 sps:$4 sm:$0xff]   ;;  %v7543_v23 = vld [vmem:[%s8303_s26 + $0x10] ss:$8 sps:$4 sm:$0xff]   ;;  %v7544_v24 = vld [vmem:[%s8303_s26 + $0x24] ss:$8 sps:$4 sm:$0xff]  }
 0x12d   : > { %1224 = vmatpush1.bf16.msra.mxu0 %v7540_v20  ;;  %v7546_v25 = vld [vmem:[%s8303_s26 + $0x20] ss:$8 sps:$4 sm:$0xff]   ;;  %v7547_v26 = vld [vmem:[%s8303_s26 + $0x34] ss:$8 sps:$4 sm:$0xff]   ;;  %v7549_v27 = vld [vmem:[%s8303_s26 + $0x30] ss:$8 sps:$4 sm:$0xff]  }
 0x12e   : > { %1225 = vmatprep.subr.bf16.mxu0 %v7541_v22  ;;  %s9813_s9 = sld [smem:[#allocation79_spill]]  ;;  %v8408_v32 = vshrl.u32 %v1169_v31, 7  ;;  %v828_v34 = vld [vmem:[%s8308_s23] sm:$0x3]  ;;  %vm1272_vm3 = vcmask 130048   ;;  %s8054_s23 = smov 64  }
 0x12f   : > { %vm1384_vm4 = vcmask 1041408   ;;  %vm8443_vm5 = vmpackc.low %vm1272_vm3, %vm1272_vm3  ;;  %vm8055_vm6 = vmmov 1   ;;  %vm1362_vm8 = vcmask 74752   ;;  %vm1358_vm9 = vcmask 80896   ;;  %s8056_s24 = smov 48   ;;  %s8057_s22 = smov 112  }
 0x130   : > { %v8411_v33 = vsub.s32 0, %v8408_v32  ;;  %v8415_v35 = vsub.s32 1, %v8408_v32  ;;  %vm8447_vm7 = vmpackc.low %vm1384_vm4, %vm8055_vm6  ;;  %s8058_s0 = smov 32   ;;  %s8060_s21 = smov 96   ;;  %vm8062_vm10 = vmmov 0   ;;  %vm2298_vm11 = vcmask 517120  }
 0x131   : > { %1226 = vmatpush1.bf16.msra.mxu0 %v7543_v23  ;;  %s8061_s4 = smov 80   ;;  %s8063_s17 = smov 16  }
 0x132   : > { %1227 = vmatprep.subr.bf16.mxu0 %v7544_v24  ;;  %v8418_v36 = vrot.slane %v828_v34, %v8411_v33  ;;  %v8421_v38 = vrot.slane %v828_v34, %v8415_v35  ;;  %p6708_p12 = scmp.ne.s32.totalorder %s8160_s25, 1 }
 0x134   : > { %v1165_v28 = vld [vmem:[%s9813_s9] sm:$0xff]  ;;  %v1166_v29 = vld [vmem:[%s9813_s9 + $0x8] sm:$0x3] }
 0x135   : > { %1228 = vmatpush1.bf16.msra.mxu0 %v7546_v25  ;;  %v1167_v30 = vpack.c.bf16 %v1166_v29, %v1165_v28 }
 0x136   : > { %1229 = vmatprep.subr.bf16.mxu0 %v7547_v26 }
 0x139   : > { %1230 = vmatpush1.bf16.msra.mxu0 %v7549_v27 }
 0x13c   : > { %6420 = vmatmul.mubr.msk.bf16.vlgmr.msra.gmra.mrb[0].mxu0 %vm1219_vm2, %v1167_v30 }
 0x20f   : > { %v1257_v37 = vpop.f32.mrb[0].mxu0 }
 0x210   : > { %v8424_v39 = vadd.f32 %v1257_v37, %v8418_v36  ;;  %v1259_v40 = vpop.f32.mrb[1].mxu0 }
 0x211   : > { %v1261_v41 = vpop.f32.mrb[2].mxu0  ;;  %v1260_v44 = vadd.f32 %v1259_v40, %v8421_v38 }
 0x212   : > { %v8427_v42 = vadd.f32 %v1261_v41, %v8418_v36  ;;  %v1263_v43 = vpop.f32.mrb[3].mxu0  ;;  %7153 = vmatprep.mubr.msk.f32.mxu1 %vm1272_vm3, %v8424_v39  ;;  %v7550_v41 = vld [vmem:[%s8320_s14 + $0x8] sm:$0xff]  }
 0x213   : > { %v1264_v45 = vadd.f32 %v1263_v43, %v8421_v38  ;;  %v9698_v43 = vmov 0.0  }
 0x214   : > { %v8435_v46 = vpack.i.bf16 %v8427_v42, %v8424_v39 }
 0x215   : > { %v7315_v47 = vpack.c.bf16 %v1264_v45, %v1260_v44  ;;  %v8437_v48 = vpack.i.bf16 %v1264_v45, %v1260_v44  ;;  %v7551_v44 = vld [vmem:[%s8320_s14] sm:$0xff]  }
 0x216   : > { %7469 = vrot.lane.b32.xlu0 %v8435_v46, %s8054_s23 }
 0x288   : > { %v7470_v49 = vpop.permute.xlu0 %7469 }
 0x289   : > { %v7472_v50 = vunpack.i.h.bf16 %v7470_v49  ;;  %v7471_v51 = vunpack.i.l.bf16 %v7470_v49 }
 0x28b   : > { %v7309_v53 = vpack.c.bf16 %v7472_v50, %v7471_v51 }
 0x28d   : > { %7311 = vmatprep.subr.msk.bf16.mxu1 %vm8443_vm5, %v7309_v53 }
 0x28e   : > { %7314 = vmatpush3.bf16.xpose.msk.msra.mxu1 %vm8443_vm5, %v7309_v53 }
 0x28f   : > { %7317 = vmatprep.subr.msk.bf16.mxu1 %vm8447_vm7, %v7315_v47 }
 0x295   : > { %7154 = vmatmul.mubr.msk.f32.vlgmr.msra.gmra.mrb[0].mxu1 %vm1272_vm3, %v8427_v42 }
 0x296   : > { %7320 = vmatpush3.bf16.msk.msra.mxu1 %vm8447_vm7, %v7315_v47 }
 0x368   : > { %v7155_v55 = vpop.f32.mrb[0].mxu1 }
 0x369   : > { %v1357_v56 = vmul.f32 0.25, %v7155_v55  ;;  %v1347_v57 = vpop.f32.mrb[1].mxu1 }
 0x36a   : > { %v1356_v58 = vmul.f32 0.25, %v1347_v57 }
 0x36b   : > { %v1363_v59 = vsel %vm1362_vm8, %v1357_v56, -inf }
 0x36c   : > { %1364 = vmax.xlane.f32.xlu1 %v1363_v59  ;;  %v1359_v60 = vsel %vm1358_vm9, %v1356_v58, -inf }
 0x36d   : > { %1360 = vmax.xlane.f32.xlu0 %v1359_v60 }
 0x37d   : > { %7474 = vrot.lane.b32.xlu1 %v8435_v46, %s8056_s24 }
 0x381   : > { %1468 = vrot.lane.b32.xlu1 %v8424_v39, %s8057_s22 }
 0x385   : > { %1470 = vrot.lane.b32.xlu1 %v8427_v42, %s8057_s22 }
 0x3f9   : > { %v1365_v61 = vpop.xlane.xlu1 %1364 }
 0x3fa   : > { %v1367_v62 = vsub.f32 %v1357_v56, %v1365_v61  ;;  %v1361_v63 = vpop.xlane.xlu0 %1360 }
 0x3fb   : > { %v1366_v0 = vsub.f32 %v1356_v58, %v1361_v63 }
 0x3fc   : > { %v1370_v1 = vmul.f32 1.442695, %v1367_v62 }
 0x3fd   : > { %v1368_v2 = vmul.f32 1.442695, %v1366_v0  ;;  %v7475_v3 = vpop.permute.xlu1 %7474 }
 0x3fe   : > { %v7477_v4 = vunpack.i.h.bf16 %v7475_v3  ;;  %v7476_v5 = vunpack.i.l.bf16 %v7475_v3 }
 0x3ff   : > { %7682 = vpow2.f32 %v1368_v2 }
 0x400   : > { %7684 = vpow2.f32 %v1370_v1  ;;  %v7321_v6 = vpack.c.bf16 %v7477_v4, %v7476_v5 }
 0x401   : > { %v1469_v9 = vpop.permute.xlu1 %1468 }
 0x402   : > { %7323 = vmatprep.subr.msk.bf16.mxu1 %vm8443_vm5, %v7321_v6 }
 0x405   : > { %v1471_v10 = vpop.permute.xlu1 %1470 }
 0x409   : > { %v7683_v7 = vpop.eup %7682 }
 0x40a   : > { %v7685_v8 = vpop.eup %7684  ;;  %7160 = vmatprep.mubr.msk.f32.mxu1 %vm1358_vm9, %v7683_v7  ;;  %v1372_v40 = vsel %vm1358_vm9, %v7683_v7, 0.0 }
 0x40b   : > { %7161 = vmatmul.mubr.msk.f32.vlgmr.msra.gmra.mrb[2].mxu1 %vm1358_vm9, %v7685_v8  ;;  %v1375_v45 = vsel %vm1362_vm8, %v7685_v8, 0.0 }
 0x40c   : > { %7326 = vmatpush3.bf16.xpose.msk.msra.mxu1 %vm8443_vm5, %v7321_v6  ;;  %7167 = vmatprep.mubr.msk.f32.mxu1 %vm1272_vm3, %v1469_v9 }
 0x40d   : > { %7177 = vmatprep.subr.bf16.mxu1 %v9698_v43 }
 0x413   : > { %7168 = vmatmul.mubr.msk.f32.vlgmr.msra.gmra.mrb[4].mxu1 %vm1272_vm3, %v1471_v10 }
 0x414   : > { %7178 = vmatpush3.bf16.msra.mxu1 %v7550_v41  ;;  %7179 = vmatprep.mubr.msk.bf16.mxu1 %vm8062_vm10, %v9698_v43 }
 0x4de   : > { %v8477_v11 = vpop.f32.mrb[2].mxu1 }
 0x4df   : > { %v8479_v12 = vpop.f32.mrb[3].mxu1 }
 0x4e6   : > { %v7169_v13 = vpop.f32.mrb[4].mxu1 }
 0x4e7   : > { %v1560_v14 = vmul.f32 0.25, %v7169_v13  ;;  %v1550_v15 = vpop.f32.mrb[5].mxu1 }
 0x4e8   : > { %v1559_v16 = vmul.f32 0.25, %v1550_v15 }
 0x4e9   : > { %v1564_v17 = vsel %vm1362_vm8, %v1560_v14, -inf }
 0x4ea   : > { %1565 = vmax.xlane.f32.xlu0 %v1564_v17  ;;  %v1561_v18 = vsel %vm1358_vm9, %v1559_v16, -inf }
 0x4eb   : > { %1562 = vmax.xlane.f32.xlu1 %v1561_v18 }
 0x500   : > { %7479 = vrot.lane.b32.xlu0 %v8437_v48, %s8057_s22 }
 0x577   : > { %v1566_v19 = vpop.xlane.xlu0 %1565 }
 0x578   : > { %v1568_v20 = vsub.f32 %v1560_v14, %v1566_v19  ;;  %v1563_v22 = vpop.xlane.xlu1 %1562 }
 0x579   : > { %v1567_v23 = vsub.f32 %v1559_v16, %v1563_v22 }
 0x57a   : > { %v1571_v24 = vmul.f32 1.442695, %v1568_v20 }
 0x57b   : > { %v1569_v25 = vmul.f32 1.442695, %v1567_v23  ;;  %v7480_v26 = vpop.permute.xlu0 %7479 }
 0x57c   : > { %7686 = vpow2.f32 %v1571_v24  ;;  %v7482_v27 = vunpack.i.h.bf16 %v7480_v26  ;;  %v7481_v28 = vunpack.i.l.bf16 %v7480_v26 }
 0x57d   : > { %7688 = vpow2.f32 %v1569_v25 }
 0x57e   : > { %v7327_v29 = vpack.c.bf16 %v7482_v27, %v7481_v28 }
 0x580   : > { %7329 = vmatprep.subr.msk.bf16.mxu0 %vm8447_vm7, %v7327_v29 }
 0x581   : > { %7332 = vmatpush3.bf16.msk.msra.mxu0 %vm8447_vm7, %v7327_v29 }
 0x582   : > { %7183 = vmatprep.subr.bf16.mxu0 %v9698_v43 }
 0x586   : > { %v7687_v30 = vpop.eup %7686 }
 0x587   : > { %v7689_v31 = vpop.eup %7688  ;;  %v1576_v34 = vsel %vm1362_vm8, %v7687_v30, 0.0 }
 0x588   : > { %1577 = vadd.xlane.f32.xlu1 %v1576_v34  ;;  %7174 = vmatprep.mubr.msk.f32.mxu0 %vm1358_vm9, %v7689_v31  ;;  %v1573_v37 = vsel %vm1358_vm9, %v7689_v31, 0.0 }
 0x589   : > { %7175 = vmatmul.mubr.msk.f32.vlgmr.msra.gmra.mrb[4].mxu0 %vm1358_vm9, %v7687_v30  ;;  %1574 = vadd.xlane.f32.xlu0 %v1573_v37 }
 0x58a   : > { %7184 = vmatpush3.bf16.msra.mxu0 %v7551_v44  ;;  %7185 = vmatprep.mubr.msk.bf16.mxu0 %vm8062_vm10, %v9698_v43 }
 0x58d   : > { %1373 = vadd.xlane.f32.xlu0 %v1372_v40 }
 0x599   : > { %7484 = vrot.lane.b32.xlu1 %v8435_v46, %s8058_s0 }
 0x59d   : > { %1773 = vrot.lane.b32.xlu1 %v8424_v39, %s8060_s21 }
 0x5a1   : > { %1775 = vrot.lane.b32.xlu1 %v8427_v42, %s8060_s21 }
 0x5a3   : > { %7489 = vrot.lane.b32.xlu0 %v8437_v48, %s8060_s21 }
 0x5c5   : > { %1376 = vadd.xlane.f32.xlu1 %v1375_v45 }
 0x5d6   : > { %2031 = vrot.lane.b32.xlu1 %v8427_v42, %s8061_s4 }
 0x615   : > { %v1578_v47 = vpop.xlane.xlu1 %1577 }
 0x616   : > { %v1575_v49 = vpop.xlane.xlu0 %1574  ;;  %7690 = vrcp.f32 %v1578_v47 }
 0x619   : > { %v7485_v50 = vpop.permute.xlu1 %7484 }
 0x61a   : > { %v7487_v51 = vunpack.i.h.bf16 %v7485_v50  ;;  %v7486_v53 = vunpack.i.l.bf16 %v7485_v50  ;;  %v1374_v55 = vpop.xlane.xlu0 %1373 }
 0x61b   : > { %7692 = vrcp.f32 %v1374_v55 }
 0x61c   : > { %v7333_v56 = vpack.c.bf16 %v7487_v51, %v7486_v53  ;;  %7694 = vrcp.f32 %v1575_v49  ;;  %v7552_v53 = vld [vmem:[%s8320_s14 + $0x10] sm:$0xff]  }
 0x61d   : > { %v1774_v60 = vpop.permute.xlu1 %1773 }
 0x61e   : > { %7335 = vmatprep.subr.msk.bf16.mxu1 %vm8443_vm5, %v7333_v56  ;;  %v7490_v57 = vpop.permute.xlu0 %7489 }
 0x61f   : > { %v7492_v58 = vunpack.i.h.bf16 %v7490_v57  ;;  %v7491_v42 = vunpack.i.l.bf16 %v7490_v57 }
 0x620   : > { %v7691_v63 = vpop.eup %7690 }
 0x621   : > { %v7339_v59 = vpack.c.bf16 %v7492_v58, %v7491_v42  ;;  %v1776_v61 = vpop.permute.xlu1 %1775 }
 0x623   : > { %7341 = vmatprep.subr.msk.bf16.mxu0 %vm8447_vm7, %v7339_v59 }
 0x625   : > { %v7693_v0 = vpop.eup %7692 }
 0x626   : > { %v7695_v1 = vpop.eup %7694  ;;  %v1465_v6 = vmul.f32 %v7693_v0, %v8479_v12 }
 0x652   : > { %v1377_v62 = vpop.xlane.xlu1 %1376 }
 0x653   : > { %7696 = vrcp.f32 %v1377_v62 }
 0x656   : > { %v2032_v51 = vpop.permute.xlu1 %2031 }
 0x65c   : > { %v7176_v2 = vpop.f32.mrb[4].mxu0 }
 0x65d   : > { %v7697_v3 = vpop.eup %7696  ;;  %v1671_v4 = vmul.f32 %v7691_v63, %v7176_v2  ;;  %v1659_v5 = vpop.f32.mrb[5].mxu0 }
 0x65e   : > { %v1466_v7 = vmul.f32 %v7697_v3, %v8477_v11  ;;  %v1670_v8 = vmul.f32 %v7695_v1, %v1659_v5 }
 0x660   : > { %v1672_v9 = vpack.c.bf16 %v1671_v4, %v1670_v8  ;;  %v1467_v10 = vpack.c.bf16 %v1466_v7, %v1465_v6 }
 0x662   : > { %7180 = vmatmul.mubr.msk.bf16.vlgmr.msra.gmra.mrb[8].mxu1 %vm1272_vm3, %v1672_v9  ;;  %7186 = vmatmul.mubr.msk.bf16.vlgmr.msra.gmra.mrb[8].mxu0 %vm1272_vm3, %v1467_v10 }
 0x663   : > { %7338 = vmatpush3.bf16.xpose.msk.msra.mxu1 %vm8443_vm5, %v7333_v56  ;;  %7344 = vmatpush3.bf16.msk.msra.mxu0 %vm8447_vm7, %v7339_v59 }
 0x664   : > { %7193 = vmatprep.mubr.msk.f32.mxu1 %vm1272_vm3, %v1774_v60  ;;  %7203 = vmatprep.subr.bf16.mxu1 %v9698_v43 }
 0x66a   : > { %7194 = vmatmul.mubr.msk.f32.vlgmr.msra.gmra.mrb[6].mxu1 %vm1272_vm3, %v1776_v61 }
 0x66b   : > { %7205 = vmatprep.mubr.msk.bf16.mxu1 %vm8062_vm10, %v9698_v43  ;;  %7204 = vmatpush3.bf16.msra.mxu1 %v7552_v53  ;;  %v7762_v53 = vld [vmem:[%s9813_s9] sm:$0xff] }
 0x735   : > { %v1716_v11 = vpop.f32.mrb[8].mxu1  ;;  %v1766_v12 = vpop.f32.mrb[8].mxu0 }
 0x736   : > { %v8530_v13 = vadd.f32 %v1766_v12, %v1716_v11  ;;  %v7181_v14 = vpop.f32.mrb[9].mxu1  ;;  %v7187_v15 = vpop.f32.mrb[9].mxu0 }
 0x737   : > { %v1719_v16 = vpop.f32.mrb[10].mxu1  ;;  %v1769_v17 = vpop.f32.mrb[10].mxu0 }
 0x738   : > { %v8532_v18 = vadd.f32 %v1769_v17, %v1719_v16  ;;  %v7182_v19 = vpop.f32.mrb[11].mxu1  ;;  %v7188_v20 = vpop.f32.mrb[11].mxu0 }
 0x73d   : > { %v7195_v22 = vpop.f32.mrb[6].mxu1 }
 0x73e   : > { %v1865_v23 = vmul.f32 0.25, %v7195_v22  ;;  %v1855_v24 = vpop.f32.mrb[7].mxu1 }
 0x73f   : > { %v1864_v25 = vmul.f32 0.25, %v1855_v24 }
 0x740   : > { %v1869_v26 = vsel %vm1362_vm8, %v1865_v23, -inf }
 0x741   : > { %1870 = vmax.xlane.f32.xlu0 %v1869_v26  ;;  %v1866_v27 = vsel %vm1358_vm9, %v1864_v25, -inf }
 0x745   : > { %1867 = vmax.xlane.f32.xlu0 %v1866_v27  ;;  %v7553_v27 = vld [vmem:[%s8320_s14 + $0x18] sm:$0xff]  }
 0x75b   : > { %7494 = vrot.lane.b32.xlu0 %v8435_v46, %s8063_s17 }
 0x75f   : > { %2029 = vrot.lane.b32.xlu0 %v8424_v39, %s8061_s4 }
 0x7ce   : > { %v1871_v28 = vpop.xlane.xlu0 %1870 }
 0x7cf   : > { %v1873_v29 = vsub.f32 %v1865_v23, %v1871_v28 }
 0x7d1   : > { %v1876_v30 = vmul.f32 1.442695, %v1873_v29 }
 0x7d2   : > { %v1868_v31 = vpop.xlane.xlu0 %1867 }
 0x7d3   : > { %7698 = vpow2.f32 %v1876_v30  ;;  %v1872_v34 = vsub.f32 %v1864_v25, %v1868_v31 }
 0x7d5   : > { %v1874_v37 = vmul.f32 1.442695, %v1872_v34 }
 0x7d6   : > { %v7495_v40 = vpop.permute.xlu0 %7494 }
 0x7d7   : > { %7700 = vpow2.f32 %v1874_v37  ;;  %v7497_v41 = vunpack.i.h.bf16 %v7495_v40  ;;  %v7496_v44 = vunpack.i.l.bf16 %v7495_v40 }
 0x7d9   : > { %v7345_v45 = vpack.c.bf16 %v7497_v41, %v7496_v44 }
 0x7da   : > { %v2030_v50 = vpop.permute.xlu0 %2029 }
 0x7db   : > { %7347 = vmatprep.subr.msk.bf16.mxu0 %vm8443_vm5, %v7345_v45 }
 0x7dd   : > { %v7699_v46 = vpop.eup %7698 }
 0x7de   : > { %v1881_v47 = vsel %vm1362_vm8, %v7699_v46, 0.0 }
 0x7df   : > { %1882 = vadd.xlane.f32.xlu1 %v1881_v47 }
 0x7e1   : > { %v7701_v39 = vpop.eup %7700 }
 0x7e2   : > { %7200 = vmatprep.mubr.msk.f32.mxu0 %vm1358_vm9, %v7701_v39  ;;  %v1878_v49 = vsel %vm1358_vm9, %v7701_v39, 0.0 }
 0x7e3   : > { %1879 = vadd.xlane.f32.xlu0 %v1878_v49  ;;  %7201 = vmatmul.mubr.msk.f32.vlgmr.msra.gmra.mrb[6].mxu0 %vm1358_vm9, %v7699_v46 }
 0x7e4   : > { %7350 = vmatpush3.bf16.xpose.msk.msra.mxu0 %vm8443_vm5, %v7345_v45  ;;  %7213 = vmatprep.mubr.msk.f32.mxu0 %vm1272_vm3, %v2030_v50 }
 0x7e5   : > { %7223 = vmatprep.subr.bf16.mxu0 %v9698_v43 }
 0x7eb   : > { %7214 = vmatmul.mubr.msk.f32.vlgmr.msra.gmra.mrb[12].mxu0 %vm1272_vm3, %v2032_v51 }
 0x7ec   : > { %7225 = vmatprep.mubr.msk.bf16.mxu0 %vm8062_vm10, %v9698_v43  ;;  %7224 = vmatpush3.bf16.msra.mxu0 %v7553_v27  ;;  %v881_v27 = vld [vmem:[%s8338_s27 + $0x148] sm:$0xff] }
 0x7ed   : > { %v893_v43 = vld [vmem:[%s8338_s27 + $0x1a8] sm:$0xff] }
 0x86c   : > { %v1883_v55 = vpop.xlane.xlu1 %1882 }
 0x86d   : > { %7702 = vrcp.f32 %v1883_v55 }
 0x870   : > { %v1880_v56 = vpop.xlane.xlu0 %1879 }
 0x871   : > { %7704 = vrcp.f32 %v1880_v56 }
 0x877   : > { %v7703_v57 = vpop.eup %7702 }
 0x87b   : > { %v7705_v42 = vpop.eup %7704 }
 0x8b6   : > { %v7202_v58 = vpop.f32.mrb[6].mxu0 }
 0x8b7   : > { %v1975_v59 = vmul.f32 %v7703_v57, %v7202_v58  ;;  %v1963_v60 = vpop.f32.mrb[7].mxu0  ;;  %v7763_v57 = vld [vmem:[%s9813_s9 + $0x8] sm:$0x3] }
 0x8b8   : > { %v1974_v61 = vmul.f32 %v7705_v42, %v1963_v60 }
 0x8ba   : > { %v1976_v62 = vpack.c.bf16 %v1975_v59, %v1974_v61 }
 0x8bc   : > { %7206 = vmatmul.mubr.msk.bf16.vlgmr.msra.gmra.mrb[12].mxu1 %vm1272_vm3, %v1976_v62 }
 0x8be   : > { %v7215_v63 = vpop.f32.mrb[12].mxu0 }
 0x8bf   : > { %v2121_v0 = vmul.f32 0.25, %v7215_v63  ;;  %v2111_v1 = vpop.f32.mrb[13].mxu0 }
 0x8c0   : > { %v2120_v2 = vmul.f32 0.25, %v2111_v1 }
 0x8c1   : > { %v2125_v3 = vsel %vm1362_vm8, %v2121_v0, -inf }
 0x8c2   : > { %2126 = vmax.xlane.f32.xlu0 %v2125_v3  ;;  %v2122_v4 = vsel %vm1358_vm9, %v2120_v2, -inf }
 0x8c6   : > { %2123 = vmax.xlane.f32.xlu0 %v2122_v4 }
 0x8dc   : > { %7499 = vrot.lane.b32.xlu0 %v8437_v48, %s8061_s4 }
 0x94f   : > { %v2127_v5 = vpop.xlane.xlu0 %2126 }
 0x950   : > { %v2129_v6 = vsub.f32 %v2121_v0, %v2127_v5  ;;  %v840_v5 = vld [vmem:[%s8338_s27] sm:$0xff] }
 0x952   : > { %v2132_v9 = vmul.f32 1.442695, %v2129_v6  ;;  %v848_v6 = vld [vmem:[%s8338_s27 + $0x40] sm:$0xff] }
 0x953   : > { %v2124_v7 = vpop.xlane.xlu0 %2123 }
 0x954   : > { %v2128_v8 = vsub.f32 %v2120_v2, %v2124_v7  ;;  %v841_v7 = vld [vmem:[%s8338_s27 + $0x8] sm:$0xff] }
 0x956   : > { %v2130_v10 = vmul.f32 1.442695, %v2128_v8  ;;  %v8595_v8 = vcombine.high %v840_v5, %v848_v6 }
 0x957   : > { %v7500_v11 = vpop.permute.xlu0 %7499 }
 0x958   : > { %7706 = vpow2.f32 %v2130_v10  ;;  %v7502_v12 = vunpack.i.h.bf16 %v7500_v11  ;;  %v7501_v14 = vunpack.i.l.bf16 %v7500_v11  ;;  %v8598_v10 = vcombine.low %v840_v5, %v848_v6  ;;  %v858_v6 = vld [vmem:[%s8338_s27 + $0x90] sm:$0xff] }
 0x959   : > { %7708 = vpow2.f32 %v2132_v9  ;;  %v849_v9 = vld [vmem:[%s8338_s27 + $0x48] sm:$0xff] }
 0x95a   : > { %v7351_v15 = vpack.c.bf16 %v7502_v12, %v7501_v14  ;;  %v8600_v11 = vcombine.low %v841_v7, %v849_v9  ;;  %v8602_v12 = vcombine.high %v841_v7, %v849_v9  ;;  %v856_v14 = vld [vmem:[%s8338_s27 + $0x80] sm:$0xff]  ;;  %v866_v7 = vld [vmem:[%s8338_s27 + $0xd0] sm:$0xff]  ;;  %v859_v9 = vld [vmem:[%s8338_s27 + $0x98] sm:$0xff] }
 0x95c   : > { %7353 = vmatprep.subr.msk.bf16.mxu1 %vm8447_vm7, %v7351_v15  ;;  %2788 = vmatprep.subr.bf16.mxu0 %v8602_v12 }
 0x95d   : > { %7356 = vmatpush3.bf16.msk.msra.mxu1 %vm8447_vm7, %v7351_v15  ;;  %v864_v15 = vld [vmem:[%s8338_s27 + $0xc0] sm:$0xff] }
 0x95e   : > { %2745 = vmatprep.subr.bf16.mxu1 %v8595_v8 }
 0x962   : > { %v7707_v48 = vpop.eup %7706 }
 0x963   : > { %v7709_v16 = vpop.eup %7708  ;;  %7220 = vmatprep.mubr.msk.f32.mxu1 %vm1358_vm9, %v7707_v48  ;;  %v2134_v17 = vsel %vm1358_vm9, %v7707_v48, 0.0  ;;  %v857_v48 = vld [vmem:[%s8338_s27 + $0x88] sm:$0xff] }
 0x964   : > { %2135 = vadd.xlane.f32.xlu1 %v2134_v17  ;;  %7221 = vmatmul.mubr.msk.f32.vlgmr.msra.gmra.mrb[16].mxu1 %vm1358_vm9, %v7709_v16  ;;  %v2137_v19 = vsel %vm1362_vm8, %v7709_v16, 0.0  ;;  %v8611_v16 = vcombine.high %v856_v14, %v864_v15  ;;  %v865_v17 = vld [vmem:[%s8338_s27 + $0xc8] sm:$0xff] }
 0x965   : > { %2777 = vmatprep.mubr.bf16.mxu1 %v9700_v21  ;;  %2746 = vmatpush1.bf16.msra.mxu1 %v8598_v10 }
 0x966   : > { %2747 = vmatprep.subr.bf16.mxu1 %v8611_v16 }
 0x968   : > { %2138 = vadd.xlane.f32.xlu1 %v2137_v19  ;;  %v8614_v19 = vcombine.low %v856_v14, %v864_v15  ;;  %v867_v14 = vld [vmem:[%s8338_s27 + $0xd8] sm:$0xff] }
 0x96a   : > { %2748 = vmatpush1.bf16.msra.mxu1 %v8614_v19 }
 0x98f   : > { %v2020_v20 = vpop.f32.mrb[12].mxu1 }
 0x990   : > { %v2027_v22 = vadd.f32 %v2020_v20, %v8530_v13  ;;  %v7207_v23 = vpop.f32.mrb[13].mxu1  ;;  %v6457_v13 = vld [vmem:[%s8315_s18] ss:$0 sm:$0xff]  ;;  %v8616_v20 = vcombine.low %v857_v48, %v865_v17 }
 0x991   : > { %v2023_v24 = vpop.f32.mrb[14].mxu1  ;;  %v872_v23 = vld [vmem:[%s8338_s27 + $0x100] sm:$0xff] }
 0x992   : > { %v2028_v25 = vadd.f32 %v2023_v24, %v8532_v18  ;;  %v7208_v26 = vpop.f32.mrb[15].mxu1  ;;  %v880_v24 = vld [vmem:[%s8338_s27 + $0x140] sm:$0xff] }
 0x993   : > { %v8627_v26 = vcombine.high %v872_v23, %v880_v24 }
 0x995   : > { %2749 = vmatprep.subr.bf16.mxu1 %v8627_v26 }
 0x9f1   : > { %v2136_v28 = vpop.xlane.xlu1 %2135 }
 0x9f5   : > { %v2139_v29 = vpop.xlane.xlu1 %2138 }
 0x9f6   : > { %7710 = vrcp.f32 %v2139_v29 }
 0x9f7   : > { %7712 = vrcp.f32 %v2136_v28  ;;  %v8630_v28 = vcombine.low %v872_v23, %v880_v24  ;;  %v8688_v23 = vcombine.high %v859_v9, %v867_v14  ;;  %v882_v24 = vld [vmem:[%s8338_s27 + $0x150] sm:$0xff] }
 0x9f9   : > { %2750 = vmatpush1.bf16.msra.mxu1 %v8630_v28 }
 0xa00   : > { %v7711_v30 = vpop.eup %7710 }
 0xa01   : > { %v7713_v34 = vpop.eup %7712 }
 0xa37   : > { %v7222_v31 = vpop.f32.mrb[16].mxu1 }
 0xa38   : > { %v2231_v37 = vmul.f32 %v7711_v30, %v7222_v31  ;;  %v2219_v40 = vpop.f32.mrb[17].mxu1  ;;  %v888_v31 = vld [vmem:[%s8338_s27 + $0x180] sm:$0xff] }
 0xa39   : > { %v2230_v41 = vmul.f32 %v7713_v34, %v2219_v40  ;;  %v896_v34 = vld [vmem:[%s8338_s27 + $0x1c0] sm:$0xff] }
 0xa3a   : > { %v8643_v40 = vcombine.high %v888_v31, %v896_v34 }
 0xa3b   : > { %v2232_v44 = vpack.c.bf16 %v2231_v37, %v2230_v41  ;;  %v889_v37 = vld [vmem:[%s8338_s27 + $0x188] sm:$0xff] }
 0xa3c   : > { %v897_v41 = vld [vmem:[%s8338_s27 + $0x1c8] sm:$0xff]  ;;  %2751 = vmatprep.subr.bf16.mxu1 %v8643_v40 }
 0xa3d   : > { %7226 = vmatmul.mubr.msk.bf16.vlgmr.msra.gmra.mrb[16].mxu0 %vm1272_vm3, %v2232_v44  ;;  %v8646_v44 = vcombine.low %v888_v31, %v896_v34  ;;  %v8700_v31 = vcombine.low %v858_v6, %v866_v7  ;;  %v8702_v34 = vcombine.low %v859_v9, %v867_v14 }
 0xa3e   : > { %2820 = vmatprep.mubr.bf16.mxu0 %v9700_v21  ;;  %2789 = vmatpush1.bf16.msra.mxu0 %v8600_v11 }
 0xa3f   : > { %2752 = vmatpush1.bf16.msra.mxu1 %v8646_v44 }
 0xb10   : > { %v2276_v18 = vpop.f32.mrb[16].mxu0 }
 0xb11   : > { %v2283_v45 = vadd.f32 %v2276_v18, %v2027_v22  ;;  %v7227_v46 = vpop.f32.mrb[17].mxu0  ;;  %v8618_v22 = vcombine.high %v857_v48, %v865_v17  ;;  %v8650_v18 = vcombine.high %v889_v37, %v897_v41  ;;  %v8686_v17 = vcombine.high %v858_v6, %v866_v7  ;;  %v861_v6 = vld [vmem:[%s8338_s27 + $0xa8] sm:$0xff] }
 0xb12   : > { %v2279_v47 = vpop.f32.mrb[18].mxu0  ;;  %v850_v46 = vld [vmem:[%s8338_s27 + $0x50] sm:$0xff]  ;;  %v869_v7 = vld [vmem:[%s8338_s27 + $0xe8] sm:$0xff] }
 0xb13   : > { %v2291_v39 = vadd.f32 %v6457_v13, %v2283_v45  ;;  %v2284_v49 = vadd.f32 %v2279_v47, %v2028_v25  ;;  %v7228_v50 = vpop.f32.mrb[19].mxu0  ;;  %2790 = vmatprep.subr.bf16.mxu0 %v8618_v22  ;;  %v873_v25 = vld [vmem:[%s8338_s27 + $0x108] sm:$0xff]  ;;  %v842_v45 = vld [vmem:[%s8338_s27 + $0x10] sm:$0xff]  ;;  %v843_v47 = vld [vmem:[%s8338_s27 + $0x18] sm:$0xff] }
 0xb14   : > { %2791 = vmatpush1.bf16.msra.mxu0 %v8616_v20  ;;  %v8632_v29 = vcombine.low %v873_v25, %v881_v27  ;;  %v8634_v30 = vcombine.high %v873_v25, %v881_v27  ;;  %v8662_v50 = vcombine.low %v842_v45, %v850_v46  ;;  %v875_v25 = vld [vmem:[%s8338_s27 + $0x118] sm:$0xff] }
 0xb15   : > { %v2292_v51 = vadd.f32 %v6457_v13, %v2284_v49  ;;  %v2293_v55 = vadd.f32 %v7762_v53, %v2291_v39  ;;  %v8648_v13 = vcombine.low %v889_v37, %v897_v41  ;;  %v8659_v39 = vcombine.high %v842_v45, %v850_v46  ;;  %v851_v49 = vld [vmem:[%s8338_s27 + $0x58] sm:$0xff]  ;;  %v890_v45 = vld [vmem:[%s8338_s27 + $0x190] sm:$0xff] }
 0xb16   : > { %2792 = vmatprep.subr.bf16.mxu0 %v8634_v30  ;;  %v8666_v53 = vcombine.high %v843_v47, %v851_v49  ;;  %v883_v27 = vld [vmem:[%s8338_s27 + $0x158] sm:$0xff]  ;;  %v898_v46 = vld [vmem:[%s8338_s27 + $0x1d0] sm:$0xff] }
 0xb17   : > { %v2295_v56 = vsel %vm1219_vm2, %v2293_v55, 0.0  ;;  %v2294_v58 = vadd.f32 %v7763_v57, %v2292_v51  ;;  %v8664_v51 = vcombine.low %v843_v47, %v851_v49  ;;  %2831 = vmatprep.subr.bf16.mxu1 %v8659_v39  ;;  %v8708_v41 = vcombine.high %v875_v25, %v883_v27  ;;  %v891_v47 = vld [vmem:[%s8338_s27 + $0x198] sm:$0xff] }
 0xb18   : > { %2296 = vadd.xlane.f32.xlu1 %v2295_v56  ;;  %2793 = vmatpush1.bf16.msra.mxu0 %v8632_v29  ;;  %v899_v49 = vld [vmem:[%s8338_s27 + $0x1d8] sm:$0xff] }
 0xb19   : > { %v2299_v42 = vsel %vm2298_vm11, %v2294_v58, 0.0  ;;  %2794 = vmatprep.subr.bf16.mxu0 %v8650_v18  ;;  %9819 = vst [vmem:[#allocation14_spill] sm:$0xff] %v8708_v41 }
 0xb1a   : > { %2300 = vadd.xlane.f32.xlu0 %v2299_v42 }
 0xb1c   : > { %2795 = vmatpush1.bf16.msra.mxu0 %v8648_v13 }
 0xb1d   : > { %2874 = vmatprep.subr.bf16.mxu0 %v8666_v53 }
 0xba5   : > { %v2297_v59 = vpop.xlane.xlu1 %2296 }
 0xba6   : > { %v2303_v60 = vmul.f32 0.015625, %v2297_v59 }
 0xba7   : > { %v2301_v61 = vpop.xlane.xlu0 %2300 }
 0xba8   : > { %v8582_v62 = vsub.f32 %v2293_v55, %v2303_v60  ;;  %v2304_v63 = vmul.f32 0.015625, %v2301_v61 }
 0xbaa   : > { %v8584_v0 = vsub.f32 %v2294_v58, %v2304_v63  ;;  %v2307_v1 = vmul.f32 %v8582_v62, %v8582_v62  ;;  %v6458_v63 = vld [vmem:[%s8326_s19] ss:$0 sm:$0xff] }
 0xbac   : > { %v2309_v2 = vsel %vm1219_vm2, %v2307_v1, 0.0  ;;  %v2308_v3 = vmul.f32 %v8584_v0, %v8584_v0 }
 0xbad   : > { %2310 = vadd.xlane.f32.xlu1 %v2309_v2 }
 0xbae   : > { %v2312_v4 = vsel %vm2298_vm11, %v2308_v3, 0.0 }
 0xbb1   : > { %2313 = vadd.xlane.f32.xlu1 %v2312_v4  ;;  %v6459_v4 = vld [vmem:[%s8332_s20] ss:$0 sm:$0xff] }
 0xc3a   : > { %v2311_v55 = vpop.xlane.xlu1 %2310 }
 0xc3b   : > { %v2315_v56 = vmul.f32 0.015625, %v2311_v55 }
 0xc3d   : > { %v2317_v57 = vadd.f32 1e-05, %v2315_v56  ;;  %v8720_v56 = vcombine.low %v875_v25, %v883_v27  ;;  %v876_v25 = vld [vmem:[%s8338_s27 + $0x120] sm:$0xff] }
 0xc3e   : > { %v2314_v58 = vpop.xlane.xlu1 %2313  ;;  %v884_v27 = vld [vmem:[%s8338_s27 + $0x160] sm:$0xff] }
 0xc3f   : > { %7714 = vrsqrt.f32 %v2317_v57  ;;  %v2316_v42 = vmul.f32 0.015625, %v2314_v58  ;;  %9821 = vst [vmem:[#allocation16_spill] sm:$0xff] %v8720_v56  ;;  %v8724_v57 = vcombine.high %v890_v45, %v898_v46  ;;  %v8726_v58 = vcombine.high %v891_v47, %v899_v49 }
 0xc41   : > { %v2318_v59 = vadd.f32 1e-05, %v2316_v42  ;;  %9822 = vst [vmem:[#allocation17_spill] sm:$0xff] %v8724_v57  ;;  %9823 = vst [vmem:[#allocation18_spill] sm:$0xff] %v8726_v58  ;;  %v844_v42 = vld [vmem:[%s8338_s27 + $0x20] sm:$0xff] }
 0xc43   : > { %7716 = vrsqrt.f32 %v2318_v59  ;;  %v852_v59 = vld [vmem:[%s8338_s27 + $0x60] sm:$0xff] }
 0xc44   : > { %v8750_v9 = vcombine.low %v844_v42, %v852_v59 }
 0xc46   : > { %9828 = vst [vmem:[#allocation23_spill] sm:$0xff] %v8750_v9 }
 0xc49   : > { %v7715_v60 = vpop.eup %7714 }
 0xc4a   : > { %v2321_v61 = vmul.f32 %v7715_v60, %v8582_v62  ;;  %v845_v60 = vld [vmem:[%s8338_s27 + $0x28] sm:$0xff] }
 0xc4c   : > { %v2329_v2 = vmul.f32 %v6458_v63, %v2321_v61  ;;  %v853_v61 = vld [vmem:[%s8338_s27 + $0x68] sm:$0xff] }
 0xc4d   : > { %v7717_v1 = vpop.eup %7716  ;;  %v8752_v14 = vcombine.low %v845_v60, %v853_v61 }
 0xc4e   : > { %v2322_v3 = vmul.f32 %v7717_v1, %v8584_v0  ;;  %v8678_v15 = vadd.f32 %v6459_v4, %v2329_v2  ;;  %v874_v0 = vld [vmem:[%s8338_s27 + $0x110] sm:$0xff]  ;;  %v8736_v1 = vcombine.low %v891_v47, %v899_v49  ;;  %v8740_v2 = vcombine.high %v844_v42, %v852_v59 }
 0xc4f   : > { %v8706_v37 = vcombine.high %v874_v0, %v882_v24  ;;  %v8718_v55 = vcombine.low %v874_v0, %v882_v24  ;;  %9829 = vst [vmem:[#allocation24_spill] sm:$0xff] %v8752_v14  ;;  %v8758_v24 = vcombine.high %v861_v6, %v869_v7  ;;  %v8772_v49 = vcombine.low %v861_v6, %v869_v7 }
 0xc50   : > { %v2330_v5 = vmul.f32 %v6458_v63, %v2322_v3  ;;  %v8734_v63 = vcombine.low %v890_v45, %v898_v46  ;;  %9825 = vst [vmem:[#allocation20_spill] sm:$0xff] %v8736_v1  ;;  %9826 = vst [vmem:[#allocation21_spill] sm:$0xff] %v8740_v2  ;;  %v8742_v3 = vcombine.high %v845_v60, %v853_v61  ;;  %v877_v45 = vld [vmem:[%s8338_s27 + $0x128] sm:$0xff]  ;;  %v892_v60 = vld [vmem:[%s8338_s27 + $0x1a0] sm:$0xff] }
 0xc51   : > { %9818 = vst [vmem:[#allocation13_spill] sm:$0xff] %v8706_v37  ;;  %9820 = vst [vmem:[#allocation15_spill] sm:$0xff] %v8718_v55  ;;  %v885_v46 = vld [vmem:[%s8338_s27 + $0x168] sm:$0xff]  ;;  %v8776_v42 = vcombine.high %v876_v25, %v884_v27  ;;  %v900_v61 = vld [vmem:[%s8338_s27 + $0x1e0] sm:$0xff] }
 0xc52   : > { %v8680_v48 = vadd.f32 %v6459_v4, %v2330_v5  ;;  %9824 = vst [vmem:[#allocation19_spill] sm:$0xff] %v8734_v63  ;;  %9827 = vst [vmem:[#allocation22_spill] sm:$0xff] %v8742_v3  ;;  %v860_v4 = vld [vmem:[%s8338_s27 + $0xa0] sm:$0xff]  ;;  %v8778_v59 = vcombine.high %v877_v45, %v885_v46  ;;  %v8790_v6 = vcombine.low %v877_v45, %v885_v46 }
 0xc53   : > { %v868_v5 = vld [vmem:[%s8338_s27 + $0xe0] sm:$0xff]  ;;  %9831 = vst [vmem:[#allocation26_spill] sm:$0xff] %v8758_v24  ;;  %9833 = vst [vmem:[#allocation28_spill] sm:$0xff] %v8772_v49  ;;  %v8794_v7 = vcombine.high %v892_v60, %v900_v61 }
 0xc54   : > { %v8684_v62 = vpack.c.bf16 %v8680_v48, %v8678_v15  ;;  %v8756_v0 = vcombine.high %v860_v4, %v868_v5  ;;  %v8770_v47 = vcombine.low %v860_v4, %v868_v5  ;;  %9834 = vst [vmem:[#allocation29_spill] sm:$0xff] %v8776_v42  ;;  %9835 = vst [vmem:[#allocation30_spill] sm:$0xff] %v8778_v59  ;;  %v9836_v4 = vmov 0  }
 0xc55   : > { %v8788_v5 = vcombine.low %v876_v25, %v884_v27  ;;  %9838 = vst [vmem:[#allocation32_spill] sm:$0xff] %v8790_v6  ;;  %9839 = vst [vmem:[#allocation33_spill] sm:$0xff] %v8794_v7  ;;  %v8804_v25 = vcombine.low %v892_v60, %v900_v61 }
 0xc56   : > { %6524 = vmatmul.mubr.msk.bf16.vlgmr.msra.gmra.mrb[20].mxu1 %vm1219_vm2, %v8684_v62  ;;  %6525 = vmatmul.mubr.msk.bf16.vlgmr.msra.gmra.mrb[20].mxu0 %vm1219_vm2, %v8684_v62  ;;  %9830 = vst [vmem:[#allocation25_spill] sm:$0xff] %v8756_v0  ;;  %9832 = vst [vmem:[#allocation27_spill] sm:$0xff] %v8770_v47 }
 0xc57   : > { %2832 = vmatpush1.bf16.msra.mxu1 %v8662_v50  ;;  %2875 = vmatpush1.bf16.msra.mxu0 %v8664_v51  ;;  %9837 = vst [vmem:[#allocation31_spill] sm:$0xff] %v8788_v5  ;;  %9841 = vst [vmem:[#allocation35_spill] sm:$0xff] %v8804_v25 }
 0xc58   : > { %2833 = vmatprep.subr.bf16.mxu1 %v8686_v17  ;;  %2876 = vmatprep.subr.bf16.mxu0 %v8688_v23 }
 0xc59   : > { %2863 = vmatprep.mubr.bf16.mxu1 %v9700_v21  ;;  %2906 = vmatprep.mubr.bf16.mxu0 %v9700_v21  ;;  %v901_v21 = vld [vmem:[%s8338_s27 + $0x1e8] sm:$0xff] }
 0xc5a   : > { %v8806_v27 = vcombine.low %v893_v43, %v901_v21 }
 0xc5b   : > { %2834 = vmatpush1.bf16.msra.mxu1 %v8700_v31  ;;  %2877 = vmatpush1.bf16.msra.mxu0 %v8702_v34 }
 0xc5c   : > { %2835 = vmatprep.subr.bf16.mxu1 %v8706_v37  ;;  %2878 = vmatprep.subr.bf16.mxu0 %v8708_v41  ;;  %9842 = vst [vmem:[#allocation36_spill] sm:$0xff] %v8806_v27  ;;  %v7588_v41 = vld [vmem:[%s8350_s5 + $0x100] sm:$0xff]   ;;  %v7591_v37 = vld [vmem:[%s8350_s5 + $0x1c8] sm:$0xff]  }
 0xc5f   : > { %2836 = vmatpush1.bf16.msra.mxu1 %v8718_v55  ;;  %2879 = vmatpush1.bf16.msra.mxu0 %v8720_v56 }
 0xc60   : > { %2837 = vmatprep.subr.bf16.mxu1 %v8724_v57  ;;  %2880 = vmatprep.subr.bf16.mxu0 %v8726_v58 }
 0xc63   : > { %2838 = vmatpush1.bf16.msra.mxu1 %v8734_v63  ;;  %2881 = vmatpush1.bf16.msra.mxu0 %v8736_v1 }
 0xc64   : > { %2917 = vmatprep.subr.bf16.mxu1 %v8740_v2  ;;  %2960 = vmatprep.subr.bf16.mxu0 %v8742_v3  ;;  %v903_v3 = vld [vmem:[%s8338_s27 + $0x1f8] sm:$0xff] }
 0xc66   : > { %6526 = vmatmul.mubr.msk.bf16.vlgmr.msra.gmra.mrb[24].mxu1 %vm1219_vm2, %v8684_v62  ;;  %6527 = vmatmul.mubr.msk.bf16.vlgmr.msra.gmra.mrb[24].mxu0 %vm1219_vm2, %v8684_v62 }
 0xc67   : > { %2918 = vmatpush1.bf16.msra.mxu1 %v8750_v9  ;;  %2961 = vmatpush1.bf16.msra.mxu0 %v8752_v14  ;;  %v847_v14 = vld [vmem:[%s8338_s27 + $0x38] sm:$0xff] }
 0xc68   : > { %2919 = vmatprep.subr.bf16.mxu1 %v8756_v0  ;;  %2962 = vmatprep.subr.bf16.mxu0 %v8758_v24  ;;  %v8796_v24 = vcombine.high %v893_v43, %v901_v21  ;;  %v846_v0 = vld [vmem:[%s8338_s27 + $0x30] sm:$0xff]  ;;  %v895_v9 = vld [vmem:[%s8338_s27 + $0x1b8] sm:$0xff] }
 0xc69   : > { %2949 = vmatprep.mubr.bf16.mxu1 %v9836_v4  ;;  %2992 = vmatprep.mubr.bf16.mxu0 %v9836_v4 }
 0xc6a   : > { %9840 = vst [vmem:[#allocation34_spill] sm:$0xff] %v8796_v24 }
 0xc6b   : > { %2920 = vmatpush1.bf16.msra.mxu1 %v8770_v47  ;;  %2963 = vmatpush1.bf16.msra.mxu0 %v8772_v49  ;;  %v854_v47 = vld [vmem:[%s8338_s27 + $0x70] sm:$0xff]  ;;  %v855_v49 = vld [vmem:[%s8338_s27 + $0x78] sm:$0xff] }
 0xc6c   : > { %2921 = vmatprep.subr.bf16.mxu1 %v8776_v42  ;;  %2964 = vmatprep.subr.bf16.mxu0 %v8778_v59  ;;  %v8810_v45 = vcombine.high %v846_v0, %v854_v47  ;;  %v8812_v46 = vcombine.high %v847_v14, %v855_v49  ;;  %v862_v59 = vld [vmem:[%s8338_s27 + $0xb0] sm:$0xff]  ;;  %v863_v42 = vld [vmem:[%s8338_s27 + $0xb8] sm:$0xff]  ;;  %v8820_v21 = vcombine.low %v846_v0, %v854_v47 }
 0xc6d   : > { %v8822_v43 = vcombine.low %v847_v14, %v855_v49 }
 0xc6e   : > { %9843 = vst [vmem:[#allocation37_spill] sm:$0xff] %v8810_v45  ;;  %9844 = vst [vmem:[#allocation38_spill] sm:$0xff] %v8812_v46 }
 0xc6f   : > { %2922 = vmatpush1.bf16.msra.mxu1 %v8788_v5  ;;  %2965 = vmatpush1.bf16.msra.mxu0 %v8790_v6  ;;  %v870_v5 = vld [vmem:[%s8338_s27 + $0xf0] sm:$0xff]  ;;  %v871_v6 = vld [vmem:[%s8338_s27 + $0xf8] sm:$0xff]  ;;  %9845 = vst [vmem:[#allocation39_spill] sm:$0xff] %v8820_v21  ;;  %9846 = vst [vmem:[#allocation40_spill] sm:$0xff] %v8822_v43 }
 0xc70   : > { %2923 = vmatprep.subr.bf16.mxu1 %v8794_v7  ;;  %2966 = vmatprep.subr.bf16.mxu0 %v8796_v24  ;;  %v8826_v60 = vcombine.high %v862_v59, %v870_v5  ;;  %v8828_v61 = vcombine.high %v863_v42, %v871_v6  ;;  %v878_v24 = vld [vmem:[%s8338_s27 + $0x130] sm:$0xff]  ;;  %v8840_v14 = vcombine.low %v862_v59, %v870_v5 }
 0xc71   : > { %v886_v7 = vld [vmem:[%s8338_s27 + $0x170] sm:$0xff]  ;;  %v8842_v0 = vcombine.low %v863_v42, %v871_v6  ;;  %v8866_v6 = vcombine.high %v895_v9, %v903_v3 }
 0xc72   : > { %9847 = vst [vmem:[#allocation41_spill] sm:$0xff] %v8826_v60  ;;  %9848 = vst [vmem:[#allocation42_spill] sm:$0xff] %v8828_v61  ;;  %v8846_v47 = vcombine.high %v878_v24, %v886_v7  ;;  %v8858_v42 = vcombine.low %v878_v24, %v886_v7  ;;  %v8872_v7 = vcombine.low %v895_v9, %v903_v3  ;;  %v7558_v3 = vld [vmem:[%s8350_s5 + $0x48] sm:$0xff]  }
 0xc73   : > { %2924 = vmatpush1.bf16.msra.mxu1 %v8804_v25  ;;  %2967 = vmatpush1.bf16.msra.mxu0 %v8806_v27  ;;  %v879_v25 = vld [vmem:[%s8338_s27 + $0x138] sm:$0xff]  ;;  %9849 = vst [vmem:[#allocation43_spill] sm:$0xff] %v8840_v14  ;;  %9850 = vst [vmem:[#allocation44_spill] sm:$0xff] %v8842_v0  ;;  %v7559_v9 = vld [vmem:[%s8350_s5 + $0xc8] sm:$0xff]  }
 0xc74   : > { %3003 = vmatprep.subr.bf16.mxu1 %v8810_v45  ;;  %3046 = vmatprep.subr.bf16.mxu0 %v8812_v46  ;;  %v887_v27 = vld [vmem:[%s8338_s27 + $0x178] sm:$0xff]  ;;  %9851 = vst [vmem:[#allocation45_spill] sm:$0xff] %v8846_v47  ;;  %v894_v46 = vld [vmem:[%s8338_s27 + $0x1b0] sm:$0xff]  ;;  %9853 = vst [vmem:[#allocation47_spill] sm:$0xff] %v8858_v42 }
 0xc75   : > { %v8848_v49 = vcombine.high %v879_v25, %v887_v27  ;;  %v902_v45 = vld [vmem:[%s8338_s27 + $0x1f0] sm:$0xff]  ;;  %v8860_v59 = vcombine.low %v879_v25, %v887_v27  ;;  %9856 = vst [vmem:[#allocation50_spill] sm:$0xff] %v8866_v6  ;;  %9858 = vst [vmem:[#allocation52_spill] sm:$0xff] %v8872_v7  ;;  %v7554_v25 = vld [vmem:[%s8350_s5 + $0x40] sm:$0xff]  }
 0xc76   : > { %6528 = vmatmul.mubr.msk.bf16.vlgmr.msra.gmra.mrb[28].mxu1 %vm1219_vm2, %v8684_v62  ;;  %6529 = vmatmul.mubr.msk.bf16.vlgmr.msra.gmra.mrb[28].mxu0 %vm1219_vm2, %v8684_v62  ;;  %v8864_v5 = vcombine.high %v894_v46, %v902_v45  ;;  %v8870_v24 = vcombine.low %v894_v46, %v902_v45  ;;  %v7555_v27 = vld [vmem:[%s8350_s5 + $0xc0] sm:$0xff]   ;;  %v7560_v45 = vld [vmem:[%s8350_s5 + $0x8] sm:$0xff]  }
 0xc77   : > { %3004 = vmatpush1.bf16.msra.mxu1 %v8820_v21  ;;  %3047 = vmatpush1.bf16.msra.mxu0 %v8822_v43  ;;  %9852 = vst [vmem:[#allocation46_spill] sm:$0xff] %v8848_v49  ;;  %9854 = vst [vmem:[#allocation48_spill] sm:$0xff] %v8860_v59  ;;  %v7561_v46 = vld [vmem:[%s8350_s5 + $0x88] sm:$0xff]  }
 0xc78   : > { %3005 = vmatprep.subr.bf16.mxu1 %v8826_v60  ;;  %3048 = vmatprep.subr.bf16.mxu0 %v8828_v61  ;;  %9855 = vst [vmem:[#allocation49_spill] sm:$0xff] %v8864_v5  ;;  %9857 = vst [vmem:[#allocation51_spill] sm:$0xff] %v8870_v24 }
 0xc79   : > { %3035 = vmatprep.mubr.bf16.mxu1 %v9836_v4  ;;  %3078 = vmatprep.mubr.bf16.mxu0 %v9836_v4 }
 0xc7b   : > { %3006 = vmatpush1.bf16.msra.mxu1 %v8840_v14  ;;  %3049 = vmatpush1.bf16.msra.mxu0 %v8842_v0 }
 0xc7c   : > { %3007 = vmatprep.subr.bf16.mxu1 %v8846_v47  ;;  %3050 = vmatprep.subr.bf16.mxu0 %v8848_v49 }
 0xc7f   : > { %3008 = vmatpush1.bf16.msra.mxu1 %v8858_v42  ;;  %3051 = vmatpush1.bf16.msra.mxu0 %v8860_v59  ;;  %v7556_v42 = vld [vmem:[%s8350_s5] sm:$0xff]  }
 0xc80   : > { %3009 = vmatprep.subr.bf16.mxu1 %v8864_v5  ;;  %3052 = vmatprep.subr.bf16.mxu0 %v8866_v6  ;;  %v7557_v59 = vld [vmem:[%s8350_s5 + $0x80] sm:$0xff]   ;;  %v7585_v6 = vld [vmem:[%s8350_s5 + $0xb8] sm:$0xff]  }
 0xc83   : > { %3010 = vmatpush1.bf16.msra.mxu1 %v8870_v24  ;;  %3053 = vmatpush1.bf16.msra.mxu0 %v8872_v7  ;;  %v7564_v7 = vld [vmem:[%s8350_s5 + $0x10] sm:$0xff]  }
 0xc84   : > { %6757 = vmatprep.subr.bf16.mxu1 %v7554_v25  ;;  %6779 = vmatprep.subr.bf16.mxu0 %v7555_v27  ;;  %v7562_v25 = vld [vmem:[%s8350_s5 + $0x50] sm:$0xff]  }
 0xc85   : > { %v7563_v27 = vld [vmem:[%s8350_s5 + $0xd0] sm:$0xff]  }
 0xc86   : > { %6530 = vmatmul.mubr.msk.bf16.vlgmr.msra.gmra.mrb[32].mxu1 %vm1219_vm2, %v8684_v62  ;;  %6531 = vmatmul.mubr.msk.bf16.vlgmr.msra.gmra.mrb[32].mxu0 %vm1219_vm2, %v8684_v62  ;;  %v7565_v24 = vld [vmem:[%s8350_s5 + $0x90] sm:$0xff]   ;;  %v7566_v62 = vld [vmem:[%s8350_s5 + $0x58] sm:$0xff]  }
 0xc87   : > { %6758 = vmatpush3.bf16.msra.mxu1 %v7556_v42  ;;  %6780 = vmatpush3.bf16.msra.mxu0 %v7557_v59  ;;  %v7567_v42 = vld [vmem:[%s8350_s5 + $0xd8] sm:$0xff]  }
 0xc88   : > { %6759 = vmatprep.subr.bf16.mxu1 %v7558_v3  ;;  %6781 = vmatprep.subr.bf16.mxu0 %v7559_v9  ;;  %v7568_v59 = vld [vmem:[%s8350_s5 + $0x18] sm:$0xff]   ;;  %v7570_v9 = vld [vmem:[%s8350_s5 + $0x60] sm:$0xff]  }
 0xc89   : > { %v7569_v3 = vld [vmem:[%s8350_s5 + $0x98] sm:$0xff]  }
 0xc8b   : > { %6760 = vmatpush3.bf16.msra.mxu1 %v7560_v45  ;;  %6782 = vmatpush3.bf16.msra.mxu0 %v7561_v46  ;;  %v7571_v45 = vld [vmem:[%s8350_s5 + $0xe0] sm:$0xff]  }
 0xc8c   : > { %6761 = vmatprep.subr.bf16.mxu1 %v7562_v25  ;;  %6783 = vmatprep.subr.bf16.mxu0 %v7563_v27  ;;  %v7572_v46 = vld [vmem:[%s8350_s5 + $0x20] sm:$0xff]   ;;  %v7576_v27 = vld [vmem:[%s8350_s5 + $0x28] sm:$0xff]  }
 0xc8d   : > { %v7573_v25 = vld [vmem:[%s8350_s5 + $0xa0] sm:$0xff]  }
 0xc8f   : > { %6762 = vmatpush3.bf16.msra.mxu1 %v7564_v7  ;;  %6784 = vmatpush3.bf16.msra.mxu0 %v7565_v24  ;;  %v7574_v7 = vld [vmem:[%s8350_s5 + $0x68] sm:$0xff]  }
 0xc90   : > { %6763 = vmatprep.subr.bf16.mxu1 %v7566_v62  ;;  %6785 = vmatprep.subr.bf16.mxu0 %v7567_v42  ;;  %v7575_v24 = vld [vmem:[%s8350_s5 + $0xe8] sm:$0xff]   ;;  %v7578_v42 = vld [vmem:[%s8350_s5 + $0x70] sm:$0xff]  }
 0xc91   : > { %v7577_v62 = vld [vmem:[%s8350_s5 + $0xa8] sm:$0xff]  }
 0xc93   : > { %6764 = vmatpush3.bf16.msra.mxu1 %v7568_v59  ;;  %6786 = vmatpush3.bf16.msra.mxu0 %v7569_v3  ;;  %v7579_v59 = vld [vmem:[%s8350_s5 + $0xf0] sm:$0xff]  }
 0xc94   : > { %6765 = vmatprep.subr.bf16.mxu1 %v7570_v9  ;;  %6787 = vmatprep.subr.bf16.mxu0 %v7571_v45  ;;  %v7580_v3 = vld [vmem:[%s8350_s5 + $0x30] sm:$0xff]   ;;  %v7582_v45 = vld [vmem:[%s8350_s5 + $0x78] sm:$0xff]  }
 0xc95   : > { %v7581_v9 = vld [vmem:[%s8350_s5 + $0xb0] sm:$0xff]  }
 0xc97   : > { %6766 = vmatpush3.bf16.msra.mxu1 %v7572_v46  ;;  %6788 = vmatpush3.bf16.msra.mxu0 %v7573_v25  ;;  %v7583_v46 = vld [vmem:[%s8350_s5 + $0xf8] sm:$0xff]  }
 0xc98   : > { %6767 = vmatprep.subr.bf16.mxu1 %v7574_v7  ;;  %6789 = vmatprep.subr.bf16.mxu0 %v7575_v24  ;;  %v7584_v25 = vld [vmem:[%s8350_s5 + $0x38] sm:$0xff]   ;;  %v7586_v7 = vld [vmem:[%s8350_s5 + $0x140] sm:$0xff]  }
 0xc99   : > { %v7587_v24 = vld [vmem:[%s8350_s5 + $0x1c0] sm:$0xff]  }
 0xc9b   : > { %6768 = vmatpush3.bf16.msra.mxu1 %v7576_v27  ;;  %6790 = vmatpush3.bf16.msra.mxu0 %v7577_v62  ;;  %v2368_v27 = vsub.s32 6, %v8408_v32  ;;  %v8918_v62 = vld [vmem:[%s8344_s13 + $0x8] sm:$0xff] }
 0xc9c   : > { %6769 = vmatprep.subr.bf16.mxu1 %v7578_v42  ;;  %6791 = vmatprep.subr.bf16.mxu0 %v7579_v59  ;;  %v9729_v59 = vsub.s32 2, %v8408_v32 }
 0xc9d   : > { %v8921_v42 = vrot.slane %v8918_v62, %v2368_v27 }
 0xc9f   : > { %6770 = vmatpush3.bf16.msra.mxu1 %v7580_v3  ;;  %6792 = vmatpush3.bf16.msra.mxu0 %v7581_v9  ;;  %9859 = vst [vmem:[#allocation53_spill] sm:$0xff] %v8921_v42  ;;  %v904_v3 = vld [vmem:[%s8344_s13] sm:$0xff]  ;;  %v9734_v9 = vsub.s32 3, %v8408_v32 }
 0xca0   : > { %6771 = vmatprep.subr.bf16.mxu1 %v7582_v45  ;;  %6793 = vmatprep.subr.bf16.mxu0 %v7583_v46  ;;  %v8927_v45 = vrot.slane %v904_v3, %v8411_v33  ;;  %v8934_v46 = vrot.slane %v904_v3, %v8415_v35 }
 0xca2   : > { %9860 = vst [vmem:[#allocation54_spill] sm:$0xff] %v8927_v45  ;;  %9862 = vst [vmem:[#allocation56_spill] sm:$0xff] %v8934_v46 }
 0xca3   : > { %6772 = vmatpush3.bf16.msra.mxu1 %v7584_v25  ;;  %6794 = vmatpush3.bf16.msra.mxu0 %v7585_v6  ;;  %v8931_v6 = vrot.slane %v904_v3, %v9729_v59  ;;  %v8938_v25 = vrot.slane %v904_v3, %v9734_v9 }
 0xca4   : > { %6801 = vmatprep.subr.bf16.mxu1 %v7586_v7  ;;  %6823 = vmatprep.subr.bf16.mxu0 %v7587_v24 }
 0xca5   : > { %9861 = vst [vmem:[#allocation55_spill] sm:$0xff] %v8931_v6 }
 0xd29   : > { %v2779_v7 = vpop.f32.mrb[20].mxu1  ;;  %v2822_v24 = vpop.f32.mrb[20].mxu0 }
 0xd2a   : > { %v2780_v5 = vadd.f32 %v2779_v7, %v8927_v45  ;;  %v2823_v49 = vadd.f32 %v2822_v24, %v8931_v6  ;;  %v2781_v47 = vpop.f32.mrb[21].mxu1  ;;  %v2824_v0 = vpop.f32.mrb[21].mxu0 }
 0xd2b   : > { %v2782_v14 = vadd.f32 %v2781_v47, %v8934_v46  ;;  %v2825_v59 = vadd.f32 %v2824_v0, %v8938_v25  ;;  %v2783_v61 = vpop.f32.mrb[22].mxu1  ;;  %v2826_v60 = vpop.f32.mrb[22].mxu0 }
 0xd2c   : > { %v2784_v43 = vadd.f32 %v2783_v61, %v8927_v45  ;;  %v2827_v21 = vadd.f32 %v2826_v60, %v8931_v6  ;;  %v2785_v9 = vpop.f32.mrb[23].mxu1  ;;  %v2828_v2 = vpop.f32.mrb[23].mxu0  ;;  %v3089_v1 = vmax.f32 %v2780_v5, 0.0  ;;  %v3091_v47 = vmax.f32 %v2823_v49, 0.0  ;;  %v7596_v5 = vld [vmem:[%s8350_s5 + $0x110] sm:$0xff]  }
 0xd2d   : > { %v2786_v7 = vadd.f32 %v2785_v9, %v8934_v46  ;;  %v2829_v24 = vadd.f32 %v2828_v2, %v8938_v25  ;;  %v3090_v58 = vmax.f32 %v2782_v14, 0.0  ;;  %v3092_v57 = vmax.f32 %v2825_v59, 0.0  ;;  %v7589_v9 = vld [vmem:[%s8350_s5 + $0x180] sm:$0xff]   ;;  %v7590_v46 = vld [vmem:[%s8350_s5 + $0x148] sm:$0xff]   ;;  %v7597_v59 = vld [vmem:[%s8350_s5 + $0x190] sm:$0xff]  }
 0xd2e   : > { %v3105_v63 = vmax.f32 %v2784_v43, 0.0  ;;  %v3107_v0 = vmax.f32 %v2827_v21, 0.0  ;;  %v9752_v2 = vsub.s32 4, %v8408_v32  ;;  %v9751_v21 = vsub.s32 5, %v8408_v32 }
 0xd2f   : > { %v3106_v56 = vmax.f32 %v2786_v7, 0.0  ;;  %v3108_v61 = vmax.f32 %v2829_v24, 0.0  ;;  %v9750_v43 = vsub.s32 7, %v8408_v32  ;;  %v7598_v7 = vld [vmem:[%s8350_s5 + $0x158] sm:$0xff]  }
 0xd30   : > { %v3121_v45 = vpack.c.bf16 %v3105_v63, %v3089_v1  ;;  %v3123_v60 = vpack.c.bf16 %v3107_v0, %v3091_v47  ;;  %v8961_v63 = vrot.slane %v904_v3, %v2368_v27  ;;  %v7595_v1 = vld [vmem:[%s8350_s5 + $0x1d0] sm:$0xff]   ;;  %v7599_v24 = vld [vmem:[%s8350_s5 + $0x1d8] sm:$0xff]  }
 0xd31   : > { %v3122_v6 = vpack.c.bf16 %v3106_v56, %v3090_v58  ;;  %v3124_v55 = vpack.c.bf16 %v3108_v61, %v3092_v57  ;;  %v7592_v56 = vld [vmem:[%s8350_s5 + $0x108] sm:$0xff]   ;;  %v8959_v58 = vrot.slane %v904_v3, %v9752_v2  ;;  %v8971_v14 = vrot.slane %v904_v3, %v9750_v43 }
 0xd32   : > { %v7593_v57 = vld [vmem:[%s8350_s5 + $0x188] sm:$0xff]   ;;  %9863 = vst [vmem:[#allocation57_spill] sm:$0xff] %v8961_v63 }
 0xd33   : > { %3943 = vmatprep.mubr.bf16.mxu1 %v3122_v6  ;;  %3984 = vmatprep.mubr.bf16.mxu0 %v3124_v55  ;;  %v7594_v55 = vld [vmem:[%s8350_s5 + $0x150] sm:$0xff]   ;;  %9865 = vst [vmem:[#allocation59_spill] sm:$0xff] %v8971_v14 }
 0xd34   : > { %3944 = vmatmul.mubr.bf16.vlgmr.msra.gmra.mrb[36].mxu1 %v3121_v45  ;;  %3985 = vmatmul.mubr.bf16.vlgmr.msra.gmra.mrb[36].mxu0 %v3123_v60 }
 0xd35   : > { %6802 = vmatpush3.bf16.msra.mxu1 %v7588_v41  ;;  %6824 = vmatpush3.bf16.msra.mxu0 %v7589_v9  ;;  %v8967_v41 = vrot.slane %v904_v3, %v9751_v21 }
 0xd36   : > { %6803 = vmatprep.subr.bf16.mxu1 %v7590_v46  ;;  %6825 = vmatprep.subr.bf16.mxu0 %v7591_v37 }
 0xd37   : > { %9864 = vst [vmem:[#allocation58_spill] sm:$0xff] %v8967_v41 }
 0xd39   : > { %v2865_v49 = vpop.f32.mrb[24].mxu1  ;;  %v2908_v37 = vpop.f32.mrb[24].mxu0  ;;  %6804 = vmatpush3.bf16.msra.mxu1 %v7592_v56  ;;  %6826 = vmatpush3.bf16.msra.mxu0 %v7593_v57 }
 0xd3a   : > { %v2866_v27 = vadd.f32 %v2865_v49, %v8959_v58  ;;  %v2909_v45 = vadd.f32 %v2908_v37, %v8961_v63  ;;  %v2867_v6 = vpop.f32.mrb[25].mxu1  ;;  %v2910_v46 = vpop.f32.mrb[25].mxu0  ;;  %6805 = vmatprep.subr.bf16.mxu1 %v7594_v55  ;;  %6827 = vmatprep.subr.bf16.mxu0 %v7595_v1  ;;  %v7600_v49 = vld [vmem:[%s8350_s5 + $0x118] sm:$0xff]  }
 0xd3b   : > { %v2868_v3 = vadd.f32 %v2867_v6, %v8967_v41  ;;  %v2911_v47 = vadd.f32 %v2910_v46, %v8971_v14  ;;  %v2869_v0 = vpop.f32.mrb[26].mxu1  ;;  %v2912_v61 = vpop.f32.mrb[26].mxu0  ;;  %v7601_v37 = vld [vmem:[%s8350_s5 + $0x198] sm:$0xff]  }
 0xd3c   : > { %v2870_v60 = vadd.f32 %v2869_v0, %v8959_v58  ;;  %v2913_v9 = vadd.f32 %v2912_v61, %v8961_v63  ;;  %v2871_v56 = vpop.f32.mrb[27].mxu1  ;;  %v2914_v57 = vpop.f32.mrb[27].mxu0  ;;  %v3093_v6 = vmax.f32 %v2866_v27, 0.0  ;;  %v3095_v46 = vmax.f32 %v2909_v45, 0.0  ;;  %v7602_v0 = vld [vmem:[%s8350_s5 + $0x160] sm:$0xff]  }
 0xd3d   : > { %v2872_v55 = vadd.f32 %v2871_v56, %v8967_v41  ;;  %v2915_v1 = vadd.f32 %v2914_v57, %v8971_v14  ;;  %6806 = vmatpush3.bf16.msra.mxu1 %v7596_v5  ;;  %6828 = vmatpush3.bf16.msra.mxu0 %v7597_v59  ;;  %v7603_v61 = vld [vmem:[%s8350_s5 + $0x1e0] sm:$0xff]   ;;  %v3094_v2 = vmax.f32 %v2868_v3, 0.0  ;;  %v3096_v56 = vmax.f32 %v2911_v47, 0.0  ;;  %v7606_v3 = vld [vmem:[%s8350_s5 + $0x168] sm:$0xff]  }
 0xd3e   : > { %v3109_v43 = vmax.f32 %v2870_v60, 0.0  ;;  %v3111_v21 = vmax.f32 %v2913_v9, 0.0  ;;  %6807 = vmatprep.subr.bf16.mxu1 %v7598_v7  ;;  %6829 = vmatprep.subr.bf16.mxu0 %v7599_v24  ;;  %v7604_v7 = vld [vmem:[%s8350_s5 + $0x120] sm:$0xff]   ;;  %v7607_v47 = vld [vmem:[%s8350_s5 + $0x1e8] sm:$0xff]   ;;  %v7610_v9 = vld [vmem:[%s8350_s5 + $0x170] sm:$0xff]  }
 0xd3f   : > { %v3110_v41 = vmax.f32 %v2872_v55, 0.0  ;;  %v3112_v57 = vmax.f32 %v2915_v1, 0.0  ;;  %v7605_v24 = vld [vmem:[%s8350_s5 + $0x1a0] sm:$0xff]   ;;  %v7611_v55 = vld [vmem:[%s8350_s5 + $0x1f0] sm:$0xff]   ;;  %v9012_v1 = vrot.slane %v8918_v62, %v8415_v35  ;;  %v7614_v35 = vld [vmem:[%s8350_s5 + $0x178] sm:$0xff]  }
 0xd40   : > { %v8989_v5 = vpack.c.bf16 %v3109_v43, %v3093_v6  ;;  %v8991_v59 = vpack.c.bf16 %v3111_v21, %v3095_v46  ;;  %v7608_v21 = vld [vmem:[%s8350_s5 + $0x128] sm:$0xff]   ;;  %v7612_v46 = vld [vmem:[%s8350_s5 + $0x130] sm:$0xff]  }
 0xd41   : > { %v3126_v27 = vpack.c.bf16 %v3110_v41, %v3094_v2  ;;  %v3128_v45 = vpack.c.bf16 %v3112_v57, %v3096_v56  ;;  %6808 = vmatpush3.bf16.msra.mxu1 %v7600_v49  ;;  %6830 = vmatpush3.bf16.msra.mxu0 %v7601_v37  ;;  %v7609_v43 = vld [vmem:[%s8350_s5 + $0x1a8] sm:$0xff]   ;;  %v9001_v2 = vrot.slane %v8918_v62, %v8411_v33  ;;  %v9866_v41 = vsub.s32 2, %v8408_v32 }
 0xd42   : > { %6809 = vmatprep.subr.bf16.mxu1 %v7602_v0  ;;  %6831 = vmatprep.subr.bf16.mxu0 %v7603_v61  ;;  %9868 = vst [vmem:[#allocation61_spill] sm:$0xff] %v9012_v1  ;;  %v9869_v49 = vsub.s32 3, %v8408_v32  ;;  %v7613_v0 = vld [vmem:[%s8350_s5 + $0x1b0] sm:$0xff]  }
 0xd43   : > { %4025 = vmatprep.mubr.bf16.mxu1 %v3126_v27  ;;  %4066 = vmatprep.mubr.bf16.mxu0 %v3128_v45  ;;  %v9006_v60 = vrot.slane %v8918_v62, %v9866_v41  ;;  %v7615_v45 = vld [vmem:[%s8350_s5 + $0x1f8] sm:$0xff]  }
 0xd44   : > { %v9017_v37 = vrot.slane %v8918_v62, %v9869_v49 }
 0xd45   : > { %6810 = vmatpush3.bf16.msra.mxu1 %v7604_v7  ;;  %6832 = vmatpush3.bf16.msra.mxu0 %v7605_v24  ;;  %9867 = vst [vmem:[#allocation60_spill] sm:$0xff] %v9006_v60 }
 0xd46   : > { %6811 = vmatprep.subr.bf16.mxu1 %v7606_v3  ;;  %6833 = vmatprep.subr.bf16.mxu0 %v7607_v47  ;;  %9870 = vst [vmem:[#allocation62_spill] sm:$0xff] %v9017_v37 }
 0xd49   : > { %v2951_v33 = vpop.f32.mrb[28].mxu1  ;;  %v2994_v6 = vpop.f32.mrb[28].mxu0  ;;  %6812 = vmatpush3.bf16.msra.mxu1 %v7608_v21  ;;  %6834 = vmatpush3.bf16.msra.mxu0 %v7609_v43 }
 0xd4a   : > { %v2952_v61 = vadd.f32 %v2951_v33, %v9001_v2  ;;  %v2995_v56 = vadd.f32 %v2994_v6, %v9006_v60  ;;  %v2953_v57 = vpop.f32.mrb[29].mxu1  ;;  %v2996_v27 = vpop.f32.mrb[29].mxu0  ;;  %6813 = vmatprep.subr.bf16.mxu1 %v7610_v9  ;;  %6835 = vmatprep.subr.bf16.mxu0 %v7611_v55  ;;  %v7616_v33 = vld [vmem:[%s8350_s5 + $0x138] sm:$0xff]  }
 0xd4b   : > { %v2954_v7 = vadd.f32 %v2953_v57, %v9012_v1  ;;  %v2997_v24 = vadd.f32 %v2996_v27, %v9017_v37  ;;  %v2955_v3 = vpop.f32.mrb[30].mxu1  ;;  %v2998_v47 = vpop.f32.mrb[30].mxu0  ;;  %v7617_v6 = vld [vmem:[%s8350_s5 + $0x1b8] sm:$0xff]  }
 0xd4c   : > { %v2956_v21 = vadd.f32 %v2955_v3, %v9001_v2  ;;  %v2999_v43 = vadd.f32 %v2998_v47, %v9006_v60  ;;  %v2957_v41 = vpop.f32.mrb[31].mxu1  ;;  %v3000_v49 = vpop.f32.mrb[31].mxu0  ;;  %v3097_v57 = vmax.f32 %v2952_v61, 0.0  ;;  %v3099_v27 = vmax.f32 %v2995_v56, 0.0  ;;  %v7618_v3 = vld [vmem:[%s8350_s5 + $0x240] sm:$0xff]  }
 0xd4d   : > { %v2958_v9 = vadd.f32 %v2957_v41, %v9012_v1  ;;  %v3001_v55 = vadd.f32 %v3000_v49, %v9017_v37  ;;  %6814 = vmatpush3.bf16.msra.mxu1 %v7612_v46  ;;  %6836 = vmatpush3.bf16.msra.mxu0 %v7613_v0  ;;  %v7619_v47 = vld [vmem:[%s8350_s5 + $0x2c0] sm:$0xff]   ;;  %v3098_v60 = vmax.f32 %v2954_v7, 0.0  ;;  %v3100_v41 = vmax.f32 %v2997_v24, 0.0  ;;  %v7623_v7 = vld [vmem:[%s8350_s5 + $0x2c8] sm:$0xff]   ;;  %v7626_v24 = vld [vmem:[%s8350_s5 + $0x250] sm:$0xff]  }
 0xd4e   : > { %v3113_v14 = vmax.f32 %v2956_v21, 0.0  ;;  %v3115_v63 = vmax.f32 %v2999_v43, 0.0  ;;  %6815 = vmatprep.subr.bf16.mxu1 %v7614_v35  ;;  %6837 = vmatprep.subr.bf16.mxu0 %v7615_v45  ;;  %v7620_v35 = vld [vmem:[%s8350_s5 + $0x200] sm:$0xff]   ;;  %v7622_v21 = vld [vmem:[%s8350_s5 + $0x248] sm:$0xff]   ;;  %v9875_v43 = vsub.s32 7, %v8408_v32 }
 0xd4f   : > { %v3114_v1 = vmax.f32 %v2958_v9, 0.0  ;;  %v3116_v49 = vmax.f32 %v3001_v55, 0.0  ;;  %v7621_v45 = vld [vmem:[%s8350_s5 + $0x280] sm:$0xff]   ;;  %v7627_v55 = vld [vmem:[%s8350_s5 + $0x2d0] sm:$0xff]  }
 0xd50   : > { %v9035_v46 = vpack.c.bf16 %v3113_v14, %v3097_v57  ;;  %v9037_v0 = vpack.c.bf16 %v3115_v63, %v3099_v27  ;;  %v7624_v63 = vld [vmem:[%s8350_s5 + $0x208] sm:$0xff]   ;;  %v9871_v14 = vsub.s32 4, %v8408_v32  ;;  %v9061_v9 = vrot.slane %v8918_v62, %v9875_v43  ;;  %v7628_v57 = vld [vmem:[%s8350_s5 + $0x210] sm:$0xff]  }
 0xd51   : > { %v3130_v61 = vpack.c.bf16 %v3114_v1, %v3098_v60  ;;  %v3132_v56 = vpack.c.bf16 %v3116_v49, %v3100_v41  ;;  %6816 = vmatpush3.bf16.msra.mxu1 %v7616_v33  ;;  %6838 = vmatpush3.bf16.msra.mxu0 %v7617_v6  ;;  %v7625_v1 = vld [vmem:[%s8350_s5 + $0x288] sm:$0xff]   ;;  %v7629_v49 = vld [vmem:[%s8350_s5 + $0x290] sm:$0xff]  }
 0xd52   : > { %6845 = vmatprep.subr.bf16.mxu1 %v7618_v3  ;;  %6867 = vmatprep.subr.bf16.mxu0 %v7619_v47  ;;  %v9049_v60 = vrot.slane %v8918_v62, %v9871_v14  ;;  %9876 = vst [vmem:[#allocation65_spill] sm:$0xff] %v9061_v9 }
 0xd54   : > { %4026 = vmatmul.mubr.bf16.vlgmr.msra.gmra.mrb[40].mxu1 %v8989_v5  ;;  %4067 = vmatmul.mubr.bf16.vlgmr.msra.gmra.mrb[40].mxu0 %v8991_v59  ;;  %9872 = vst [vmem:[#allocation63_spill] sm:$0xff] %v9049_v60  ;;  %v9873_v5 = vsub.s32 5, %v8408_v32  ;;  %v7630_v32 = vld [vmem:[%s8350_s5 + $0x258] sm:$0xff]  }
 0xd55   : > { %6846 = vmatpush3.bf16.msra.mxu1 %v7620_v35  ;;  %4107 = vmatprep.mubr.bf16.mxu1 %v3130_v61 }
 0xd56   : > { %6868 = vmatpush3.bf16.msra.mxu0 %v7621_v45  ;;  %4148 = vmatprep.mubr.bf16.mxu0 %v3132_v56  ;;  %v9056_v59 = vrot.slane %v8918_v62, %v9873_v5  ;;  %v7631_v45 = vld [vmem:[%s8350_s5 + $0x2d8] sm:$0xff]  }
 0xd57   : > { %6847 = vmatprep.subr.bf16.mxu1 %v7622_v21  ;;  %6869 = vmatprep.subr.bf16.mxu0 %v7623_v7  ;;  %v7632_v5 = vld [vmem:[%s8350_s5 + $0x218] sm:$0xff]  }
 0xd58   : > { %9874 = vst [vmem:[#allocation64_spill] sm:$0xff] %v9056_v59 }
 0xd59   : > { %v3037_v33 = vpop.f32.mrb[32].mxu1  ;;  %v3080_v6 = vpop.f32.mrb[32].mxu0  ;;  %6848 = vmatpush3.bf16.msra.mxu1 %v7624_v63 }
 0xd5a   : > { %v3038_v27 = vadd.f32 %v3037_v33, %v9049_v60  ;;  %v3081_v3 = vadd.f32 %v3080_v6, %v8921_v42  ;;  %6870 = vmatpush3.bf16.msra.mxu0 %v7625_v1  ;;  %v3039_v47 = vpop.f32.mrb[33].mxu1  ;;  %v3082_v41 = vpop.f32.mrb[33].mxu0  ;;  %6849 = vmatprep.subr.bf16.mxu1 %v7626_v24 }
 0xd5b   : > { %v3040_v62 = vadd.f32 %v3039_v47, %v9056_v59  ;;  %v3083_v61 = vadd.f32 %v3082_v41, %v9061_v9  ;;  %v3041_v56 = vpop.f32.mrb[34].mxu1  ;;  %v3084_v35 = vpop.f32.mrb[34].mxu0  ;;  %6871 = vmatprep.subr.bf16.mxu0 %v7627_v55  ;;  %v7633_v47 = vld [vmem:[%s8350_s5 + $0x298] sm:$0xff]   ;;  %v7634_v41 = vld [vmem:[%s8350_s5 + $0x260] sm:$0xff]  }
 0xd5c   : > { %v3042_v21 = vadd.f32 %v3041_v56, %v9049_v60  ;;  %v3085_v7 = vadd.f32 %v3084_v35, %v8921_v42  ;;  %v3043_v63 = vpop.f32.mrb[35].mxu1  ;;  %v3086_v14 = vpop.f32.mrb[35].mxu0  ;;  %v3101_v43 = vmax.f32 %v3038_v27, 0.0  ;;  %v3103_v33 = vmax.f32 %v3081_v3, 0.0 }
 0xd5d   : > { %v3044_v1 = vadd.f32 %v3043_v63, %v9056_v59  ;;  %v3087_v24 = vadd.f32 %v3086_v14, %v9061_v9  ;;  %6850 = vmatpush3.bf16.msra.mxu1 %v7628_v57  ;;  %v3102_v56 = vmax.f32 %v3040_v62, 0.0  ;;  %v3104_v35 = vmax.f32 %v3083_v61, 0.0  ;;  %v7635_v57 = vld [vmem:[%s8350_s5 + $0x2e0] sm:$0xff]   ;;  %v7638_v61 = vld [vmem:[%s8350_s5 + $0x268] sm:$0xff]  }
 0xd5e   : > { %v3117_v6 = vmax.f32 %v3042_v21, 0.0  ;;  %v3119_v55 = vmax.f32 %v3085_v7, 0.0  ;;  %6872 = vmatpush3.bf16.msra.mxu0 %v7629_v49  ;;  %6851 = vmatprep.subr.bf16.mxu1 %v7630_v32  ;;  %v7636_v32 = vld [vmem:[%s8350_s5 + $0x220] sm:$0xff]   ;;  %v7640_v21 = vld [vmem:[%s8350_s5 + $0x228] sm:$0xff]  }
 0xd5f   : > { %v3118_v63 = vmax.f32 %v3044_v1, 0.0  ;;  %v3120_v59 = vmax.f32 %v3087_v24, 0.0  ;;  %6873 = vmatprep.subr.bf16.mxu0 %v7631_v45  ;;  %v7637_v62 = vld [vmem:[%s8350_s5 + $0x2a0] sm:$0xff]   ;;  %v7639_v45 = vld [vmem:[%s8350_s5 + $0x2e8] sm:$0xff]   ;;  %v7643_v1 = vld [vmem:[%s8350_s5 + $0x2f0] sm:$0xff]  }
 0xd60   : > { %v9080_v14 = vpack.c.bf16 %v3117_v6, %v3101_v43  ;;  %v9082_v27 = vpack.c.bf16 %v3119_v55, %v3103_v33  ;;  %v7641_v7 = vld [vmem:[%s8350_s5 + $0x2a8] sm:$0xff]   ;;  %v7644_v24 = vld [vmem:[%s8350_s5 + $0x230] sm:$0xff]   ;;  %v7646_v43 = vld [vmem:[%s8350_s5 + $0x278] sm:$0xff]  }
 0xd61   : > { %v3134_v3 = vpack.c.bf16 %v3118_v63, %v3102_v56  ;;  %v3136_v49 = vpack.c.bf16 %v3120_v59, %v3104_v35  ;;  %6852 = vmatpush3.bf16.msra.mxu1 %v7632_v5  ;;  %v7642_v59 = vld [vmem:[%s8350_s5 + $0x270] sm:$0xff]   ;;  %v7647_v33 = vld [vmem:[%s8350_s5 + $0x2f8] sm:$0xff]   ;;  %v7652_v56 = vld [vmem:[%s8350_s5 + $0x300] sm:$0xff]  }
 0xd62   : > { %6874 = vmatpush3.bf16.msra.mxu0 %v7633_v47  ;;  %6853 = vmatprep.subr.bf16.mxu1 %v7634_v41  ;;  %v7645_v5 = vld [vmem:[%s8350_s5 + $0x2b0] sm:$0xff]   ;;  %v7648_v6 = vld [vmem:[%s8350_s5 + $0x238] sm:$0xff]   ;;  %v7650_v47 = vld [vmem:[%s8350_s5 + $0x340] sm:$0xff]  }
 0xd63   : > { %6875 = vmatprep.subr.bf16.mxu0 %v7635_v57  ;;  %v7649_v55 = vld [vmem:[%s8350_s5 + $0x2b8] sm:$0xff]   ;;  %v7651_v41 = vld [vmem:[%s8350_s5 + $0x3c0] sm:$0xff]   ;;  %v7654_v63 = vld [vmem:[%s8350_s5 + $0x348] sm:$0xff]  }
 0xd64   : > { %v7653_v35 = vld [vmem:[%s8350_s5 + $0x380] sm:$0xff]   ;;  %v7655_v57 = vld [vmem:[%s8350_s5 + $0x3c8] sm:$0xff]  }
 0xd65   : > { %6854 = vmatpush3.bf16.msra.mxu1 %v7636_v32  ;;  %v7656_v32 = vld [vmem:[%s8350_s5 + $0x308] sm:$0xff]  }
 0xd66   : > { %6876 = vmatpush3.bf16.msra.mxu0 %v7637_v62  ;;  %6855 = vmatprep.subr.bf16.mxu1 %v7638_v61  ;;  %v7657_v62 = vld [vmem:[%s8350_s5 + $0x388] sm:$0xff]   ;;  %v7658_v61 = vld [vmem:[%s8350_s5 + $0x350] sm:$0xff]  }
 0xd67   : > { %6877 = vmatprep.subr.bf16.mxu0 %v7639_v45  ;;  %v7659_v45 = vld [vmem:[%s8350_s5 + $0x3d0] sm:$0xff]  }
 0xd69   : > { %6856 = vmatpush3.bf16.msra.mxu1 %v7640_v21  ;;  %v7662_v21 = vld [vmem:[%s8350_s5 + $0x358] sm:$0xff]  }
 0xd6a   : > { %6878 = vmatpush3.bf16.msra.mxu0 %v7641_v7  ;;  %6857 = vmatprep.subr.bf16.mxu1 %v7642_v59  ;;  %v7665_v7 = vld [vmem:[%s8350_s5 + $0x398] sm:$0xff]   ;;  %v7666_v59 = vld [vmem:[%s8350_s5 + $0x360] sm:$0xff]  }
 0xd6b   : > { %6879 = vmatprep.subr.bf16.mxu0 %v7643_v1  ;;  %v7667_v1 = vld [vmem:[%s8350_s5 + $0x3e0] sm:$0xff]  }
 0xd6d   : > { %6858 = vmatpush3.bf16.msra.mxu1 %v7644_v24  ;;  %v7668_v24 = vld [vmem:[%s8350_s5 + $0x320] sm:$0xff]  }
 0xd6e   : > { %6880 = vmatpush3.bf16.msra.mxu0 %v7645_v5  ;;  %6859 = vmatprep.subr.bf16.mxu1 %v7646_v43  ;;  %v7669_v5 = vld [vmem:[%s8350_s5 + $0x3a0] sm:$0xff]   ;;  %v7670_v43 = vld [vmem:[%s8350_s5 + $0x368] sm:$0xff]  }
 0xd6f   : > { %6881 = vmatprep.subr.bf16.mxu0 %v7647_v33  ;;  %v7671_v33 = vld [vmem:[%s8350_s5 + $0x3e8] sm:$0xff]  }
 0xd71   : > { %6860 = vmatpush3.bf16.msra.mxu1 %v7648_v6  ;;  %v7672_v6 = vld [vmem:[%s8350_s5 + $0x328] sm:$0xff]  }
 0xd72   : > { %6882 = vmatpush3.bf16.msra.mxu0 %v7649_v55  ;;  %6889 = vmatprep.subr.bf16.mxu1 %v7650_v47  ;;  %v7673_v55 = vld [vmem:[%s8350_s5 + $0x3a8] sm:$0xff]   ;;  %v7674_v47 = vld [vmem:[%s8350_s5 + $0x370] sm:$0xff]  }
 0xd73   : > { %6911 = vmatprep.subr.bf16.mxu0 %v7651_v41  ;;  %v7675_v41 = vld [vmem:[%s8350_s5 + $0x3f0] sm:$0xff]  }
 0xd74   : > { %4108 = vmatmul.mubr.bf16.vlgmr.msra.gmra.mrb[44].mxu1 %v9035_v46  ;;  %v7660_v46 = vld [vmem:[%s8350_s5 + $0x310] sm:$0xff]  }
 0xd75   : > { %4149 = vmatmul.mubr.bf16.vlgmr.msra.gmra.mrb[44].mxu0 %v9037_v0  ;;  %6890 = vmatpush3.bf16.msra.mxu1 %v7652_v56  ;;  %v7661_v0 = vld [vmem:[%s8350_s5 + $0x390] sm:$0xff]  }
 0xd76   : > { %4189 = vmatprep.mubr.bf16.mxu1 %v3134_v3  ;;  %6912 = vmatpush3.bf16.msra.mxu0 %v7653_v35  ;;  %v7663_v3 = vld [vmem:[%s8350_s5 + $0x3d8] sm:$0xff]   ;;  %v7676_v56 = vld [vmem:[%s8350_s5 + $0x330] sm:$0xff]  }
 0xd77   : > { %4230 = vmatprep.mubr.bf16.mxu0 %v3136_v49  ;;  %6891 = vmatprep.subr.bf16.mxu1 %v7654_v63  ;;  %v7664_v49 = vld [vmem:[%s8350_s5 + $0x318] sm:$0xff]   ;;  %v7677_v35 = vld [vmem:[%s8350_s5 + $0x3b0] sm:$0xff]  }
 0xd78   : > { %6913 = vmatprep.subr.bf16.mxu0 %v7655_v57  ;;  %v7678_v63 = vld [vmem:[%s8350_s5 + $0x378] sm:$0xff]  }
 0xd79   : > { %6892 = vmatpush3.bf16.msra.mxu1 %v7656_v32  ;;  %v7679_v57 = vld [vmem:[%s8350_s5 + $0x3f8] sm:$0xff]  }
 0xd7a   : > { %6914 = vmatpush3.bf16.msra.mxu0 %v7657_v62  ;;  %6893 = vmatprep.subr.bf16.mxu1 %v7658_v61  ;;  %v7680_v32 = vld [vmem:[%s8350_s5 + $0x338] sm:$0xff]   ;;  %v7764_v61 = vld [vmem:[%s8303_s26 + $0x4] ss:$8 sps:$4 sm:$0xff]  }
 0xd7b   : > { %6915 = vmatprep.subr.bf16.mxu0 %v7659_v45  ;;  %v7681_v62 = vld [vmem:[%s8350_s5 + $0x3b8] sm:$0xff]   ;;  %v7765_v45 = vld [vmem:[%s8303_s26] ss:$8 sps:$4 sm:$0xff]  }
 0xd7d   : > { %6894 = vmatpush3.bf16.msra.mxu1 %v7660_v46  ;;  %v7766_v46 = vld [vmem:[%s8303_s26 + $0x14] ss:$8 sps:$4 sm:$0xff]  }
 0xd7e   : > { %6916 = vmatpush3.bf16.msra.mxu0 %v7661_v0  ;;  %6895 = vmatprep.subr.bf16.mxu1 %v7662_v21  ;;  %v7767_v0 = vld [vmem:[%s8303_s26 + $0x10] ss:$8 sps:$4 sm:$0xff]   ;;  %v7768_v21 = vld [vmem:[%s8303_s26 + $0x24] ss:$8 sps:$4 sm:$0xff]  }
 0xd7f   : > { %6917 = vmatprep.subr.bf16.mxu0 %v7663_v3  ;;  %v7769_v3 = vld [vmem:[%s8303_s26 + $0x20] ss:$8 sps:$4 sm:$0xff]  }
 0xd81   : > { %6896 = vmatpush3.bf16.msra.mxu1 %v7664_v49  ;;  %v7770_v49 = vld [vmem:[%s8303_s26 + $0x34] ss:$8 sps:$4 sm:$0xff]  }
 0xd82   : > { %6918 = vmatpush3.bf16.msra.mxu0 %v7665_v7  ;;  %6897 = vmatprep.subr.bf16.mxu1 %v7666_v59  ;;  %v7771_v59 = vld [vmem:[%s8303_s26 + $0x30] ss:$8 sps:$4 sm:$0xff]  }
 0xd83   : > { %6919 = vmatprep.subr.bf16.mxu0 %v7667_v1 }
 0xd85   : > { %6898 = vmatpush3.bf16.msra.mxu1 %v7668_v24 }
 0xd86   : > { %6920 = vmatpush3.bf16.msra.mxu0 %v7669_v5  ;;  %6899 = vmatprep.subr.bf16.mxu1 %v7670_v43  ;;  %v6532_v5 = vld [vmem:[%s8356_s6] ss:$0 sm:$0xff] }
 0xd87   : > { %6921 = vmatprep.subr.bf16.mxu0 %v7671_v33 }
 0xd89   : > { %6900 = vmatpush3.bf16.msra.mxu1 %v7672_v6 }
 0xd8a   : > { %6922 = vmatpush3.bf16.msra.mxu0 %v7673_v55  ;;  %6901 = vmatprep.subr.bf16.mxu1 %v7674_v47 }
 0xd8b   : > { %6923 = vmatprep.subr.bf16.mxu0 %v7675_v41 }
 0xd8d   : > { %6902 = vmatpush3.bf16.msra.mxu1 %v7676_v56 }
 0xd8e   : > { %6924 = vmatpush3.bf16.msra.mxu0 %v7677_v35  ;;  %6903 = vmatprep.subr.bf16.mxu1 %v7678_v63 }
 0xd8f   : > { %6925 = vmatprep.subr.bf16.mxu0 %v7679_v57 }
 0xd91   : > { %6904 = vmatpush3.bf16.msra.mxu1 %v7680_v32 }
 0xd92   : > { %6926 = vmatpush3.bf16.msra.mxu0 %v7681_v62  ;;  %4292 = vmatprep.subr.bf16.mxu1 %v7764_v61 }
 0xd94   : > { %4190 = vmatmul.mubr.bf16.vlgmr.msra.gmra.mrb[48].mxu1 %v9080_v14  ;;  %v9144_v14 = vld [vmem:[%s9813_s9 + $0x10] sm:$0xff] }
 0xd95   : > { %4231 = vmatmul.mubr.bf16.vlgmr.msra.gmra.mrb[48].mxu0 %v9082_v27  ;;  %4293 = vmatpush1.bf16.msra.mxu1 %v7765_v45  ;;  %v9149_v27 = vld [vmem:[%s9813_s9 + $0x18] sm:$0x3] }
 0xd96   : > { %4294 = vmatprep.subr.bf16.mxu1 %v7766_v46  ;;  %4324 = vmatprep.mubr.bf16.mxu1 %v9836_v4  ;;  %v4288_v7 = vpack.c.bf16 %v9149_v27, %v9144_v14 }
 0xd99   : > { %4295 = vmatpush1.bf16.msra.mxu1 %v7767_v0 }
 0xd9a   : > { %4296 = vmatprep.subr.bf16.mxu1 %v7768_v21 }
 0xd9d   : > { %4297 = vmatpush1.bf16.msra.mxu1 %v7769_v3 }
 0xd9e   : > { %4298 = vmatprep.subr.bf16.mxu1 %v7770_v49 }
 0xda1   : > { %4299 = vmatpush1.bf16.msra.mxu1 %v7771_v59 }
 0xda4   : > { %6665 = vmatmul.mubr.msk.bf16.vlgmr.msra.gmra.mrb[52].mxu1 %vm1219_vm2, %v4288_v7 }
 0xe07   : > { %v6773_v1 = vpop.f32.mrb[36].mxu1  ;;  %v6795_v24 = vpop.f32.mrb[36].mxu0 }
 0xe08   : > { %v6774_v43 = vpop.f32.mrb[37].mxu1  ;;  %v6796_v33 = vpop.f32.mrb[37].mxu0 }
 0xe09   : > { %v6775_v6 = vadd.f32 %v6774_v43, %v6773_v1  ;;  %v6797_v55 = vadd.f32 %v6796_v33, %v6795_v24  ;;  %v6776_v47 = vpop.f32.mrb[38].mxu1  ;;  %v6798_v41 = vpop.f32.mrb[38].mxu0 }
 0xe0a   : > { %v6777_v56 = vpop.f32.mrb[39].mxu1  ;;  %v6799_v35 = vpop.f32.mrb[39].mxu0 }
 0xe0b   : > { %v3946_v63 = vadd.f32 %v6775_v6, %v6532_v5  ;;  %v6778_v57 = vadd.f32 %v6777_v56, %v6776_v47  ;;  %v6800_v32 = vadd.f32 %v6799_v35, %v6798_v41 }
 0xe0d   : > { %v3987_v62 = vadd.f32 %v6797_v55, %v3946_v63  ;;  %v3949_v61 = vadd.f32 %v6778_v57, %v6532_v5 }
 0xe0f   : > { %v3990_v45 = vadd.f32 %v6800_v32, %v3949_v61 }
 0xe27   : > { %v6817_v46 = vpop.f32.mrb[40].mxu1  ;;  %v6839_v0 = vpop.f32.mrb[40].mxu0 }
 0xe28   : > { %v6818_v21 = vpop.f32.mrb[41].mxu1  ;;  %v6840_v3 = vpop.f32.mrb[41].mxu0 }
 0xe29   : > { %v6819_v49 = vadd.f32 %v6818_v21, %v6817_v46  ;;  %v6841_v7 = vadd.f32 %v6840_v3, %v6839_v0  ;;  %v6820_v59 = vpop.f32.mrb[42].mxu1  ;;  %v6842_v9 = vpop.f32.mrb[42].mxu0 }
 0xe2a   : > { %v6821_v1 = vpop.f32.mrb[43].mxu1  ;;  %v6843_v24 = vpop.f32.mrb[43].mxu0 }
 0xe2b   : > { %v4028_v43 = vadd.f32 %v6819_v49, %v3987_v62  ;;  %v6822_v33 = vadd.f32 %v6821_v1, %v6820_v59  ;;  %v6844_v42 = vadd.f32 %v6843_v24, %v6842_v9 }
 0xe2d   : > { %v4069_v60 = vadd.f32 %v6841_v7, %v4028_v43  ;;  %v4031_v6 = vadd.f32 %v6822_v33, %v3990_v45 }
 0xe2f   : > { %v4072_v47 = vadd.f32 %v6844_v42, %v4031_v6 }
 0xe47   : > { %v6861_v41 = vpop.f32.mrb[44].mxu1 }
 0xe48   : > { %v6883_v55 = vpop.f32.mrb[44].mxu0  ;;  %v6862_v5 = vpop.f32.mrb[45].mxu1 }
 0xe49   : > { %v6863_v56 = vadd.f32 %v6862_v5, %v6861_v41  ;;  %v6884_v35 = vpop.f32.mrb[45].mxu0  ;;  %v6864_v63 = vpop.f32.mrb[46].mxu1 }
 0xe4a   : > { %v6885_v57 = vadd.f32 %v6884_v35, %v6883_v55  ;;  %v6886_v32 = vpop.f32.mrb[46].mxu0  ;;  %v6865_v61 = vpop.f32.mrb[47].mxu1 }
 0xe4b   : > { %v4110_v46 = vadd.f32 %v6863_v56, %v4069_v60  ;;  %v6866_v0 = vadd.f32 %v6865_v61, %v6864_v63  ;;  %v6887_v21 = vpop.f32.mrb[47].mxu0 }
 0xe4c   : > { %v6888_v3 = vadd.f32 %v6887_v21, %v6886_v32 }
 0xe4d   : > { %v4151_v37 = vadd.f32 %v6885_v57, %v4110_v46  ;;  %v4113_v62 = vadd.f32 %v6866_v0, %v4072_v47 }
 0xe4f   : > { %v4154_v49 = vadd.f32 %v6888_v3, %v4113_v62 }
 0xe67   : > { %v6905_v9 = vpop.f32.mrb[48].mxu1 }
 0xe68   : > { %v6927_v7 = vpop.f32.mrb[48].mxu0  ;;  %v6906_v45 = vpop.f32.mrb[49].mxu1 }
 0xe69   : > { %v6907_v42 = vadd.f32 %v6906_v45, %v6905_v9  ;;  %v6928_v59 = vpop.f32.mrb[49].mxu0  ;;  %v6908_v1 = vpop.f32.mrb[50].mxu1 }
 0xe6a   : > { %v6929_v24 = vadd.f32 %v6928_v59, %v6927_v7  ;;  %v6930_v43 = vpop.f32.mrb[50].mxu0  ;;  %v6909_v33 = vpop.f32.mrb[51].mxu1 }
 0xe6b   : > { %v4192_v6 = vadd.f32 %v6907_v42, %v4151_v37  ;;  %v6910_v41 = vadd.f32 %v6909_v33, %v6908_v1  ;;  %v6931_v55 = vpop.f32.mrb[51].mxu0 }
 0xe6c   : > { %v6932_v5 = vadd.f32 %v6931_v55, %v6930_v43 }
 0xe6d   : > { %v9157_v60 = vadd.f32 %v6929_v24, %v4192_v6  ;;  %v4195_v56 = vadd.f32 %v6910_v41, %v4154_v49 }
 0xe6f   : > { %v9159_v35 = vadd.f32 %v6932_v5, %v4195_v56 }
 0xe77   : > { %v4326_v47 = vpop.f32.mrb[52].mxu1 }
 0xe78   : > { %v9162_v63 = vadd.f32 %v4326_v47, %v8418_v36  ;;  %v4328_v57 = vpop.f32.mrb[53].mxu1 }
 0xe79   : > { %v4330_v32 = vpop.f32.mrb[54].mxu1  ;;  %v4329_v37 = vadd.f32 %v4328_v57, %v8421_v38 }
 0xe7a   : > { %v9165_v61 = vadd.f32 %v4330_v32, %v8418_v36  ;;  %v4332_v46 = vpop.f32.mrb[55].mxu1  ;;  %7233 = vmatprep.mubr.msk.f32.mxu0 %vm1272_vm3, %v9162_v63 }
 0xe7b   : > { %v4333_v0 = vadd.f32 %v4332_v46, %v8421_v38 }
 0xe7c   : > { %v9173_v21 = vpack.i.bf16 %v9165_v61, %v9162_v63 }
 0xe7d   : > { %v7363_v3 = vpack.c.bf16 %v4333_v0, %v4329_v37  ;;  %v9175_v62 = vpack.i.bf16 %v4333_v0, %v4329_v37 }
 0xe7e   : > { %7504 = vrot.lane.b32.xlu1 %v9173_v21, %s8054_s23 }
 0xef0   : > { %v7505_v36 = vpop.permute.xlu1 %7504 }
 0xef1   : > { %v7507_v49 = vunpack.i.h.bf16 %v7505_v36  ;;  %v7506_v9 = vunpack.i.l.bf16 %v7505_v36 }
 0xef3   : > { %v7357_v7 = vpack.c.bf16 %v7507_v49, %v7506_v9  ;;  %v7772_v49 = vld [vmem:[%s8320_s14 + $0x8] sm:$0xff]  }
 0xef5   : > { %7359 = vmatprep.subr.msk.bf16.mxu0 %vm8443_vm5, %v7357_v7 }
 0xef6   : > { %7362 = vmatpush3.bf16.xpose.msk.msra.mxu0 %vm8443_vm5, %v7357_v7 }
 0xef7   : > { %7365 = vmatprep.subr.msk.bf16.mxu0 %vm8447_vm7, %v7363_v3 }
 0xefd   : > { %7234 = vmatmul.mubr.msk.f32.vlgmr.msra.gmra.mrb[14].mxu0 %vm1272_vm3, %v9165_v61 }
 0xefe   : > { %7368 = vmatpush3.bf16.msk.msra.mxu0 %vm8447_vm7, %v7363_v3  ;;  %v9877_v3 = vmov 0.0  }
 0xfd0   : > { %v7235_v38 = vpop.f32.mrb[14].mxu0 }
 0xfd1   : > { %v4425_v45 = vmul.f32 0.25, %v7235_v38  ;;  %v4415_v42 = vpop.f32.mrb[15].mxu0 }
 0xfd2   : > { %v4424_v59 = vmul.f32 0.25, %v4415_v42 }
 0xfd3   : > { %v4429_v1 = vsel %vm1362_vm8, %v4425_v45, -inf }
 0xfd4   : > { %4430 = vmax.xlane.f32.xlu0 %v4429_v1  ;;  %v4426_v24 = vsel %vm1358_vm9, %v4424_v59, -inf }
 0xfd5   : > { %4427 = vmax.xlane.f32.xlu1 %v4426_v24 }
 0xfea   : > { %7509 = vrot.lane.b32.xlu0 %v9173_v21, %s8056_s24 }
 0xfee   : > { %4533 = vrot.lane.b32.xlu0 %v9162_v63, %s8057_s22 }
 0xff2   : > { %4535 = vrot.lane.b32.xlu0 %v9165_v61, %s8057_s22 }
0x1061   : > { %v4431_v43 = vpop.xlane.xlu0 %4430 }
0x1062   : > { %v4433_v33 = vsub.f32 %v4425_v45, %v4431_v43  ;;  %v4428_v6 = vpop.xlane.xlu1 %4427 }
0x1063   : > { %v4432_v41 = vsub.f32 %v4424_v59, %v4428_v6 }
0x1064   : > { %v4436_v55 = vmul.f32 1.442695, %v4433_v33 }
0x1065   : > { %v4434_v5 = vmul.f32 1.442695, %v4432_v41  ;;  %v7510_v56 = vpop.permute.xlu0 %7509 }
0x1066   : > { %v7512_v47 = vunpack.i.h.bf16 %v7510_v56  ;;  %v7511_v57 = vunpack.i.l.bf16 %v7510_v56 }
0x1067   : > { %7718 = vpow2.f32 %v4434_v5 }
0x1068   : > { %7720 = vpow2.f32 %v4436_v55  ;;  %v7369_v32 = vpack.c.bf16 %v7512_v47, %v7511_v57 }
0x1069   : > { %v4534_v0 = vpop.permute.xlu0 %4533 }
0x106a   : > { %7371 = vmatprep.subr.msk.bf16.mxu0 %vm8443_vm5, %v7369_v32 }
0x106d   : > { %v4536_v36 = vpop.permute.xlu0 %4535 }
0x1071   : > { %v7719_v46 = vpop.eup %7718 }
0x1072   : > { %v7721_v37 = vpop.eup %7720  ;;  %7240 = vmatprep.mubr.msk.f32.mxu0 %vm1358_vm9, %v7719_v46 }
0x1073   : > { %7241 = vmatmul.mubr.msk.f32.vlgmr.msra.gmra.mrb[52].mxu0 %vm1358_vm9, %v7721_v37 }
0x1074   : > { %7374 = vmatpush3.bf16.xpose.msk.msra.mxu0 %vm8443_vm5, %v7369_v32  ;;  %7247 = vmatprep.mubr.msk.f32.mxu0 %vm1272_vm3, %v4534_v0 }
0x1075   : > { %7257 = vmatprep.subr.bf16.mxu0 %v9877_v3 }
0x107b   : > { %7248 = vmatmul.mubr.msk.f32.vlgmr.msra.gmra.mrb[54].mxu0 %vm1272_vm3, %v4536_v36 }
0x107c   : > { %7258 = vmatpush3.bf16.msra.mxu0 %v7772_v49  ;;  %7259 = vmatprep.mubr.msk.bf16.mxu0 %vm8062_vm10, %v9877_v3 }
0x1146   : > { %v9209_v9 = vpop.f32.mrb[52].mxu0 }
0x1147   : > { %v9211_v7 = vpop.f32.mrb[53].mxu0 }
0x114e   : > { %v7249_v38 = vpop.f32.mrb[54].mxu0 }
0x114f   : > { %v4625_v45 = vmul.f32 0.25, %v7249_v38  ;;  %v4615_v42 = vpop.f32.mrb[55].mxu0 }
0x1150   : > { %v4624_v59 = vmul.f32 0.25, %v4615_v42  ;;  %v4441_v42 = vsel %vm1362_vm8, %v7721_v37, 0.0 }
0x1151   : > { %v4629_v1 = vsel %vm1362_vm8, %v4625_v45, -inf }
0x1152   : > { %4630 = vmax.xlane.f32.xlu0 %v4629_v1  ;;  %v4626_v24 = vsel %vm1358_vm9, %v4624_v59, -inf }
0x1153   : > { %4627 = vmax.xlane.f32.xlu1 %v4626_v24 }
0x1164   : > { %7514 = vrot.lane.b32.xlu1 %v9175_v62, %s8057_s22 }
0x11df   : > { %v4631_v43 = vpop.xlane.xlu0 %4630 }
0x11e0   : > { %v4633_v33 = vsub.f32 %v4625_v45, %v4631_v43  ;;  %v4628_v6 = vpop.xlane.xlu1 %4627  ;;  %v7773_v45 = vld [vmem:[%s8320_s14] sm:$0xff]  }
0x11e1   : > { %v4632_v41 = vsub.f32 %v4624_v59, %v4628_v6  ;;  %v4438_v59 = vsel %vm1358_vm9, %v7719_v46, 0.0 }
0x11e2   : > { %v4636_v55 = vmul.f32 1.442695, %v4633_v33 }
0x11e3   : > { %v4634_v5 = vmul.f32 1.442695, %v4632_v41 }
0x11e4   : > { %7722 = vpow2.f32 %v4636_v55  ;;  %v7515_v56 = vpop.permute.xlu1 %7514 }
0x11e5   : > { %7724 = vpow2.f32 %v4634_v5  ;;  %v7517_v47 = vunpack.i.h.bf16 %v7515_v56  ;;  %v7516_v57 = vunpack.i.l.bf16 %v7515_v56 }
0x11e7   : > { %v7375_v32 = vpack.c.bf16 %v7517_v47, %v7516_v57 }
0x11e9   : > { %7377 = vmatprep.subr.msk.bf16.mxu1 %vm8447_vm7, %v7375_v32 }
0x11ea   : > { %7380 = vmatpush3.bf16.msk.msra.mxu1 %vm8447_vm7, %v7375_v32 }
0x11eb   : > { %7263 = vmatprep.subr.bf16.mxu1 %v9877_v3 }
0x11ee   : > { %v7723_v0 = vpop.eup %7722 }
0x11ef   : > { %v7725_v36 = vpop.eup %7724  ;;  %v4641_v49 = vsel %vm1362_vm8, %v7723_v0, 0.0 }
0x11f0   : > { %4642 = vadd.xlane.f32.xlu0 %v4641_v49  ;;  %7254 = vmatprep.mubr.msk.f32.mxu1 %vm1358_vm9, %v7725_v36  ;;  %v4638_v38 = vsel %vm1358_vm9, %v7725_v36, 0.0 }
0x11f1   : > { %4639 = vadd.xlane.f32.xlu1 %v4638_v38  ;;  %7255 = vmatmul.mubr.msk.f32.vlgmr.msra.gmra.mrb[18].mxu1 %vm1358_vm9, %v7723_v0 }
0x11f2   : > { %7264 = vmatpush3.bf16.msra.mxu1 %v7773_v45  ;;  %7265 = vmatprep.mubr.msk.bf16.mxu1 %vm8062_vm10, %v9877_v3 }
0x1202   : > { %4826 = vrot.lane.b32.xlu1 %v9162_v63, %s8060_s21 }
0x1206   : > { %7519 = vrot.lane.b32.xlu0 %v9173_v21, %s8058_s0 }
0x120a   : > { %4828 = vrot.lane.b32.xlu0 %v9165_v61, %s8060_s21 }
0x1226   : > { %4442 = vadd.xlane.f32.xlu1 %v4441_v42 }
0x1229   : > { %4439 = vadd.xlane.f32.xlu0 %v4438_v59 }
0x1237   : > { %7529 = vrot.lane.b32.xlu1 %v9173_v21, %s8063_s17  ;;  %s9933_s17 = sld [smem:[#allocation79_spill]] (!%p6708_p12) }
0x123b   : > { %5078 = vrot.lane.b32.xlu1 %v9165_v61, %s8061_s4 }
0x127d   : > { %v4643_v1 = vpop.xlane.xlu0 %4642 }
0x127e   : > { %v4640_v41 = vpop.xlane.xlu1 %4639 }
0x1281   : > { %v7520_v24 = vpop.permute.xlu0 %7519 }
0x1282   : > { %v7522_v43 = vunpack.i.h.bf16 %v7520_v24  ;;  %v7521_v33 = vunpack.i.l.bf16 %v7520_v24  ;;  %v4827_v37 = vpop.permute.xlu1 %4826 }
0x1284   : > { %v7381_v6 = vpack.c.bf16 %v7522_v43, %v7521_v33 }
0x1285   : > { %v4829_v55 = vpop.permute.xlu0 %4828 }
0x1286   : > { %7383 = vmatprep.subr.msk.bf16.mxu0 %vm8443_vm5, %v7381_v6 }
0x12b3   : > { %v4443_v5 = vpop.xlane.xlu1 %4442 }
0x12b4   : > { %7726 = vrcp.f32 %v4443_v5 }
0x12b6   : > { %v4440_v46 = vpop.xlane.xlu0 %4439 }
0x12b7   : > { %7728 = vrcp.f32 %v4440_v46 }
0x12b8   : > { %7730 = vrcp.f32 %v4643_v1 }
0x12b9   : > { %7732 = vrcp.f32 %v4640_v41 }
0x12be   : > { %v7727_v21 = vpop.eup %7726 }
0x12bf   : > { %v4531_v61 = vmul.f32 %v7727_v21, %v9209_v9  ;;  %v7774_v9 = vld [vmem:[%s8320_s14 + $0x10] sm:$0xff]  }
0x12c1   : > { %v7729_v56 = vpop.eup %7728 }
0x12c2   : > { %v4530_v47 = vmul.f32 %v7729_v56, %v9211_v7  ;;  %v7731_v57 = vpop.eup %7730 }
0x12c3   : > { %v7733_v36 = vpop.eup %7732 }
0x12c4   : > { %v7256_v32 = vpop.f32.mrb[18].mxu1  ;;  %v4532_v0 = vpack.c.bf16 %v4531_v61, %v4530_v47 }
0x12c5   : > { %v4736_v49 = vmul.f32 %v7731_v57, %v7256_v32  ;;  %v4724_v38 = vpop.f32.mrb[19].mxu1 }
0x12c6   : > { %v4735_v45 = vmul.f32 %v7733_v36, %v4724_v38  ;;  %7266 = vmatmul.mubr.msk.bf16.vlgmr.msra.gmra.mrb[56].mxu1 %vm1272_vm3, %v4532_v0 }
0x12c8   : > { %v4737_v42 = vpack.c.bf16 %v4736_v49, %v4735_v45  ;;  %v7530_v49 = vpop.permute.xlu1 %7529 }
0x12ca   : > { %7260 = vmatmul.mubr.msk.bf16.vlgmr.msra.gmra.mrb[56].mxu0 %vm1272_vm3, %v4737_v42  ;;  %v7532_v42 = vunpack.i.h.bf16 %v7530_v49 }
0x12cb   : > { %7386 = vmatpush3.bf16.xpose.msk.msra.mxu0 %vm8443_vm5, %v7381_v6  ;;  %7273 = vmatprep.mubr.msk.f32.mxu0 %vm1272_vm3, %v4827_v37 }
0x12cc   : > { %7283 = vmatprep.subr.bf16.mxu0 %v9877_v3 }
0x12d2   : > { %7274 = vmatmul.mubr.msk.f32.vlgmr.msra.gmra.mrb[60].mxu0 %vm1272_vm3, %v4829_v55 }
0x12d3   : > { %7284 = vmatpush3.bf16.msra.mxu0 %v7774_v9  ;;  %7285 = vmatprep.mubr.msk.bf16.mxu0 %vm8062_vm10, %v9877_v3 }
0x1399   : > { %v4819_v7 = vpop.f32.mrb[56].mxu1 }
0x139a   : > { %v7267_v59 = vpop.f32.mrb[57].mxu1 }
0x139b   : > { %v4822_v1 = vpop.f32.mrb[58].mxu1 }
0x139c   : > { %v7268_v24 = vpop.f32.mrb[59].mxu1 }
0x139d   : > { %v4775_v43 = vpop.f32.mrb[56].mxu0 }
0x139e   : > { %v9255_v33 = vadd.f32 %v4819_v7, %v4775_v43  ;;  %v7261_v41 = vpop.f32.mrb[57].mxu0  ;;  %v7531_v7 = vunpack.i.l.bf16 %v7530_v49 }
0x139f   : > { %v4778_v6 = vpop.f32.mrb[58].mxu0 }
0x13a0   : > { %v9257_v5 = vadd.f32 %v4822_v1, %v4778_v6  ;;  %v7262_v37 = vpop.f32.mrb[59].mxu0  ;;  %v7393_v43 = vpack.c.bf16 %v7532_v42, %v7531_v7 }
0x13a5   : > { %v7275_v46 = vpop.f32.mrb[60].mxu0 }
0x13a6   : > { %v4918_v21 = vmul.f32 0.25, %v7275_v46  ;;  %v4908_v55 = vpop.f32.mrb[61].mxu0 }
0x13a7   : > { %v4917_v56 = vmul.f32 0.25, %v4908_v55  ;;  %v7775_v55 = vld [vmem:[%s8320_s14 + $0x18] sm:$0xff]  }
0x13a8   : > { %v4922_v61 = vsel %vm1362_vm8, %v4918_v21, -inf }
0x13a9   : > { %4923 = vmax.xlane.f32.xlu0 %v4922_v61  ;;  %v4919_v47 = vsel %vm1358_vm9, %v4917_v56, -inf }
0x13ad   : > { %4920 = vmax.xlane.f32.xlu0 %v4919_v47 }
0x13c3   : > { %7524 = vrot.lane.b32.xlu0 %v9175_v62, %s8060_s21 }
0x13c7   : > { %5076 = vrot.lane.b32.xlu0 %v9162_v63, %s8061_s4 }
0x1436   : > { %v4924_v57 = vpop.xlane.xlu0 %4923 }
0x1437   : > { %v4926_v32 = vsub.f32 %v4918_v21, %v4924_v57  ;;  %v5079_v21 = vpop.permute.xlu1 %5078 }
0x1439   : > { %v4929_v0 = vmul.f32 1.442695, %v4926_v32 }
0x143a   : > { %v4921_v36 = vpop.xlane.xlu0 %4920 }
0x143b   : > { %7734 = vpow2.f32 %v4929_v0  ;;  %v4925_v38 = vsub.f32 %v4917_v56, %v4921_v36 }
0x143d   : > { %v4927_v45 = vmul.f32 1.442695, %v4925_v38 }
0x143e   : > { %v7525_v9 = vpop.permute.xlu0 %7524 }
0x143f   : > { %7736 = vpow2.f32 %v4927_v45  ;;  %v7527_v59 = vunpack.i.h.bf16 %v7525_v9  ;;  %v7526_v1 = vunpack.i.l.bf16 %v7525_v9 }
0x1441   : > { %v7387_v24 = vpack.c.bf16 %v7527_v59, %v7526_v1 }
0x1442   : > { %v5077_v46 = vpop.permute.xlu0 %5076 }
0x1443   : > { %7389 = vmatprep.subr.msk.bf16.mxu1 %vm8447_vm7, %v7387_v24 }
0x1444   : > { %7392 = vmatpush3.bf16.msk.msra.mxu1 %vm8447_vm7, %v7387_v24 }
0x1445   : > { %v7735_v63 = vpop.eup %7734  ;;  %7395 = vmatprep.subr.msk.bf16.mxu1 %vm8443_vm5, %v7393_v43 }
0x1446   : > { %v4934_v41 = vsel %vm1362_vm8, %v7735_v63, 0.0 }
0x1447   : > { %4935 = vadd.xlane.f32.xlu1 %v4934_v41 }
0x1449   : > { %v7737_v6 = vpop.eup %7736 }
0x144a   : > { %7280 = vmatprep.mubr.msk.f32.mxu1 %vm1358_vm9, %v7737_v6  ;;  %v4931_v37 = vsel %vm1358_vm9, %v7737_v6, 0.0 }
0x144b   : > { %4932 = vadd.xlane.f32.xlu0 %v4931_v37  ;;  %7281 = vmatmul.mubr.msk.f32.vlgmr.msra.gmra.mrb[60].mxu1 %vm1358_vm9, %v7735_v63 }
0x144c   : > { %7293 = vmatprep.mubr.msk.f32.mxu1 %vm1272_vm3, %v5077_v46 }
0x144d   : > { %7398 = vmatpush3.bf16.xpose.msk.msra.mxu1 %vm8443_vm5, %v7393_v43 }
0x144e   : > { %7303 = vmatprep.subr.bf16.mxu1 %v9877_v3 }
0x1454   : > { %7294 = vmatmul.mubr.msk.f32.vlgmr.msra.gmra.mrb[62].mxu1 %vm1272_vm3, %v5079_v21 }
0x1455   : > { %7304 = vmatpush3.bf16.msra.mxu1 %v7775_v55  ;;  %7305 = vmatprep.mubr.msk.bf16.mxu1 %vm8062_vm10, %v9877_v3 }
0x1456   : > { %5407 = vmatprep.subr.bf16.mxu1 %v8602_v12 }
0x1458   : > { %7534 = vrot.lane.b32.xlu1 %v9175_v62, %s8061_s4 }
0x14d4   : > { %v4936_v56 = vpop.xlane.xlu1 %4935 }
0x14d5   : > { %7738 = vrcp.f32 %v4936_v56 }
0x14d8   : > { %v7535_v61 = vpop.permute.xlu1 %7534  ;;  %v4933_v32 = vpop.xlane.xlu0 %4932 }
0x14d9   : > { %v7537_v47 = vunpack.i.h.bf16 %v7535_v61  ;;  %v7536_v52 = vunpack.i.l.bf16 %v7535_v61  ;;  %7740 = vrcp.f32 %v4933_v32 }
0x14db   : > { %v7399_v57 = vpack.c.bf16 %v7537_v47, %v7536_v52 }
0x14dd   : > { %7401 = vmatprep.subr.msk.bf16.mxu0 %vm8447_vm7, %v7399_v57 }
0x14df   : > { %v7739_v0 = vpop.eup %7738 }
0x14e3   : > { %v7741_v49 = vpop.eup %7740 }
0x151e   : > { %v7282_v36 = vpop.f32.mrb[60].mxu1 }
0x151f   : > { %v5028_v3 = vmul.f32 %v7739_v0, %v7282_v36  ;;  %v5016_v38 = vpop.f32.mrb[61].mxu1  ;;  %v7776_v36 = vld [vmem:[%s8315_s18] ss:$0 sm:$0xff] }
0x1520   : > { %v5027_v12 = vmul.f32 %v7741_v49, %v5016_v38 }
0x1522   : > { %v5029_v45 = vpack.c.bf16 %v5028_v3, %v5027_v12 }
0x1524   : > { %7286 = vmatmul.mubr.msk.bf16.vlgmr.msra.gmra.mrb[64].mxu0 %vm1272_vm3, %v5029_v45 }
0x1525   : > { %7404 = vmatpush3.bf16.msk.msra.mxu0 %vm8447_vm7, %v7399_v57 }
0x1526   : > { %5364 = vmatprep.subr.bf16.mxu0 %v8595_v8 }
0x1527   : > { %v7295_v62 = vpop.f32.mrb[62].mxu1 }
0x1528   : > { %v5158_v42 = vpop.f32.mrb[63].mxu1  ;;  %v5168_v7 = vmul.f32 0.25, %v7295_v62 }
0x1529   : > { %v5167_v9 = vmul.f32 0.25, %v5158_v42 }
0x152a   : > { %v5172_v1 = vsel %vm1362_vm8, %v5168_v7, -inf }
0x152b   : > { %v5169_v59 = vsel %vm1358_vm9, %v5167_v9, -inf }
0x152c   : > { %5170 = vmax.xlane.f32.xlu0 %v5169_v59 }
0x1530   : > { %5173 = vmax.xlane.f32.xlu0 %v5172_v1 }
0x15b9   : > { %v5171_v24 = vpop.xlane.xlu0 %5170 }
0x15ba   : > { %v5175_v43 = vsub.f32 %v5167_v9, %v5171_v24  ;;  %v9334_v24 = vadd.f32 %v9159_v35, %v8680_v48 }
0x15bc   : > { %v5177_v63 = vmul.f32 1.442695, %v5175_v43  ;;  %v4244_v43 = vsel %vm2298_vm11, %v9334_v24, 0.0 }
0x15bd   : > { %v5174_v41 = vpop.xlane.xlu0 %5173 }
0x15be   : > { %7742 = vpow2.f32 %v5177_v63  ;;  %v5176_v6 = vsub.f32 %v5168_v7, %v5174_v41 }
0x15c0   : > { %v5179_v54 = vmul.f32 1.442695, %v5176_v6 }
0x15c2   : > { %7744 = vpow2.f32 %v5179_v54 }
0x15c8   : > { %v7743_v37 = vpop.eup %7742 }
0x15c9   : > { %7300 = vmatprep.mubr.msk.f32.mxu0 %vm1358_vm9, %v7743_v37  ;;  %v5181_v8 = vsel %vm1358_vm9, %v7743_v37, 0.0 }
0x15ca   : > { %5182 = vadd.xlane.f32.xlu0 %v5181_v8 }
0x15cc   : > { %v7745_v46 = vpop.eup %7744 }
0x15cd   : > { %7301 = vmatmul.mubr.msk.f32.vlgmr.msra.gmra.mrb[62].mxu0 %vm1358_vm9, %v7745_v46  ;;  %v5184_v21 = vsel %vm1362_vm8, %v7745_v46, 0.0 }
0x15ce   : > { %5185 = vadd.xlane.f32.xlu0 %v5184_v21  ;;  %5365 = vmatpush1.bf16.msra.mxu0 %v8598_v10  ;;  %v7777_v21 = vld [vmem:[%s8326_s19] ss:$0 sm:$0xff] }
0x15cf   : > { %5366 = vmatprep.subr.bf16.mxu0 %v8611_v16  ;;  %5396 = vmatprep.mubr.bf16.mxu0 %v9836_v4 }
0x15d2   : > { %5367 = vmatpush1.bf16.msra.mxu0 %v8614_v19 }
0x15d3   : > { %5368 = vmatprep.subr.bf16.mxu0 %v8627_v26 }
0x15d6   : > { %5369 = vmatpush1.bf16.msra.mxu0 %v8630_v28 }
0x15d7   : > { %5370 = vmatprep.subr.bf16.mxu0 %v8643_v40 }
0x15da   : > { %5371 = vmatpush1.bf16.msra.mxu0 %v8646_v44 }
0x15db   : > { %5450 = vmatprep.subr.bf16.mxu0 %v8659_v39 }
0x15f7   : > { %v5067_v55 = vpop.f32.mrb[64].mxu0 }
0x15f8   : > { %v5074_v56 = vadd.f32 %v5067_v55, %v9255_v33  ;;  %v7287_v10 = vpop.f32.mrb[65].mxu0 }
0x15f9   : > { %v5070_v61 = vpop.f32.mrb[66].mxu0 }
0x15fa   : > { %v5075_v16 = vadd.f32 %v5070_v61, %v9257_v5  ;;  %v7288_v47 = vpop.f32.mrb[67].mxu0 }
0x15fb   : > { %v9878_v47 = vld [vmem:[#allocation13_spill] sm:$0xff] }
0x1657   : > { %v5183_v52 = vpop.xlane.xlu0 %5182 }
0x165b   : > { %v5186_v19 = vpop.xlane.xlu0 %5185 }
0x165c   : > { %7746 = vrcp.f32 %v5186_v19  ;;  %v9880_v19 = vld [vmem:[#allocation15_spill] sm:$0xff] }
0x165d   : > { %7748 = vrcp.f32 %v5183_v52  ;;  %v9879_v52 = vld [vmem:[#allocation14_spill] sm:$0xff] }
0x1666   : > { %v7747_v26 = vpop.eup %7746 }
0x1667   : > { %v7749_v57 = vpop.eup %7748 }
0x16a0   : > { %v7302_v28 = vpop.f32.mrb[62].mxu0 }
0x16a1   : > { %v5278_v40 = vmul.f32 %v7747_v26, %v7302_v28  ;;  %v5266_v32 = vpop.f32.mrb[63].mxu0  ;;  %v9885_v26 = vld [vmem:[#allocation20_spill] sm:$0xff]  ;;  %v9886_v28 = vld [vmem:[#allocation21_spill] sm:$0xff] }
0x16a2   : > { %v5277_v44 = vmul.f32 %v7749_v57, %v5266_v32  ;;  %v9889_v57 = vld [vmem:[#allocation24_spill] sm:$0xff]  ;;  %v9891_v32 = vld [vmem:[#allocation26_spill] sm:$0xff] }
0x16a4   : > { %v5279_v39 = vpack.c.bf16 %v5278_v40, %v5277_v44  ;;  %v9890_v40 = vld [vmem:[#allocation25_spill] sm:$0xff]  ;;  %v9892_v44 = vld [vmem:[#allocation27_spill] sm:$0xff] }
0x16a6   : > { %7306 = vmatmul.mubr.msk.bf16.vlgmr.msra.gmra.mrb[64].mxu1 %vm1272_vm3, %v5279_v39  ;;  %v9893_v39 = vld [vmem:[#allocation28_spill] sm:$0xff] }
0x16a7   : > { %5408 = vmatpush1.bf16.msra.mxu1 %v8600_v11  ;;  %5439 = vmatprep.mubr.bf16.mxu1 %v9836_v4 }
0x16a8   : > { %5409 = vmatprep.subr.bf16.mxu1 %v8618_v22 }
0x16ab   : > { %5410 = vmatpush1.bf16.msra.mxu1 %v8616_v20 }
0x16ac   : > { %5411 = vmatprep.subr.bf16.mxu1 %v8634_v30 }
0x16af   : > { %5412 = vmatpush1.bf16.msra.mxu1 %v8632_v29 }
0x16b0   : > { %5413 = vmatprep.subr.bf16.mxu1 %v8650_v18 }
0x16b3   : > { %5414 = vmatpush1.bf16.msra.mxu1 %v8648_v13 }
0x16b4   : > { %5493 = vmatprep.subr.bf16.mxu1 %v8666_v53 }
0x1779   : > { %v5317_v33 = vpop.f32.mrb[64].mxu1 }
0x177a   : > { %v5324_v5 = vadd.f32 %v5317_v33, %v5074_v56  ;;  %v7307_v0 = vpop.f32.mrb[65].mxu1  ;;  %v7778_v56 = vld [vmem:[%s8332_s20] ss:$0 sm:$0xff]  ;;  %v9894_v33 = vld [vmem:[#allocation29_spill] sm:$0xff] }
0x177b   : > { %v5320_v11 = vpop.f32.mrb[66].mxu1  ;;  %v9896_v0 = vld [vmem:[#allocation31_spill] sm:$0xff] }
0x177c   : > { %v5326_v49 = vadd.f32 %v7776_v36, %v5324_v5  ;;  %v5325_v3 = vadd.f32 %v5320_v11, %v5075_v16  ;;  %v7308_v22 = vpop.f32.mrb[67].mxu1  ;;  %v9895_v5 = vld [vmem:[#allocation30_spill] sm:$0xff]  ;;  %v9897_v11 = vld [vmem:[#allocation32_spill] sm:$0xff] }
0x177d   : > { %v9901_v22 = vld [vmem:[#allocation36_spill] sm:$0xff] }
0x177e   : > { %v5327_v38 = vadd.f32 %v7776_v36, %v5325_v3  ;;  %v5328_v20 = vadd.f32 %v9144_v14, %v5326_v49  ;;  %v9898_v36 = vld [vmem:[#allocation33_spill] sm:$0xff]  ;;  %v9899_v49 = vld [vmem:[#allocation34_spill] sm:$0xff]  ;;  %v9900_v3 = vld [vmem:[#allocation35_spill] sm:$0xff] }
0x1780   : > { %v5330_v30 = vsel %vm1219_vm2, %v5328_v20, 0.0  ;;  %v5329_v29 = vadd.f32 %v9149_v27, %v5327_v38  ;;  %v9328_v27 = vadd.f32 %v9157_v60, %v8678_v15  ;;  %v9902_v38 = vld [vmem:[#allocation37_spill] sm:$0xff] }
0x1781   : > { %5331 = vadd.xlane.f32.xlu0 %v5330_v30  ;;  %v9904_v30 = vld [vmem:[#allocation39_spill] sm:$0xff] }
0x1782   : > { %v5333_v13 = vsel %vm2298_vm11, %v5329_v29, 0.0  ;;  %v4241_v1 = vsel %vm1219_vm2, %v9328_v27, 0.0 }
0x1785   : > { %5334 = vadd.xlane.f32.xlu0 %v5333_v13  ;;  %v9906_v13 = vld [vmem:[#allocation41_spill] sm:$0xff] }
0x180e   : > { %v5332_v18 = vpop.xlane.xlu0 %5331 }
0x180f   : > { %v5336_v53 = vmul.f32 0.015625, %v5332_v18  ;;  %v9907_v18 = vld [vmem:[#allocation42_spill] sm:$0xff] }
0x1811   : > { %v5338_v12 = vsub.f32 %v5328_v20, %v5336_v53  ;;  %v9903_v20 = vld [vmem:[#allocation38_spill] sm:$0xff]  ;;  %v9908_v53 = vld [vmem:[#allocation43_spill] sm:$0xff] }
0x1812   : > { %v5335_v45 = vpop.xlane.xlu0 %5334 }
0x1813   : > { %v5337_v62 = vmul.f32 0.015625, %v5335_v45  ;;  %v5340_v42 = vmul.f32 %v5338_v12, %v5338_v12  ;;  %v9910_v45 = vld [vmem:[#allocation45_spill] sm:$0xff] }
0x1815   : > { %v5339_v9 = vsub.f32 %v5329_v29, %v5337_v62  ;;  %v5342_v7 = vsel %vm1219_vm2, %v5340_v42, 0.0  ;;  %v9905_v29 = vld [vmem:[#allocation40_spill] sm:$0xff]  ;;  %v9911_v62 = vld [vmem:[#allocation46_spill] sm:$0xff]  ;;  %v9912_v42 = vld [vmem:[#allocation47_spill] sm:$0xff] }
0x1816   : > { %5343 = vadd.xlane.f32.xlu1 %v5342_v7  ;;  %v9914_v7 = vld [vmem:[#allocation49_spill] sm:$0xff] }
0x1817   : > { %v5341_v59 = vmul.f32 %v5339_v9, %v5339_v9 }
0x1819   : > { %v5345_v14 = vsel %vm2298_vm11, %v5341_v59, 0.0  ;;  %v9915_v59 = vld [vmem:[#allocation50_spill] sm:$0xff] }
0x181a   : > { %5346 = vadd.xlane.f32.xlu0 %v5345_v14  ;;  %v9917_v14 = vld [vmem:[#allocation52_spill] sm:$0xff] }
0x181e   : > { %4242 = vadd.xlane.f32.xlu0 %v4241_v1  ;;  %v7779_v1 = vld [vmem:[%s8350_s5 + $0x40] sm:$0xff]  }
0x1822   : > { %4245 = vadd.xlane.f32.xlu0 %v4244_v43  ;;  %v7780_v43 = vld [vmem:[%s8350_s5 + $0xc0] sm:$0xff]  }
0x18a3   : > { %v5344_v63 = vpop.xlane.xlu1 %5343 }
0x18a4   : > { %v5348_v41 = vmul.f32 0.015625, %v5344_v63  ;;  %v7781_v63 = vld [vmem:[%s8350_s5] sm:$0xff]  }
0x18a6   : > { %v5350_v6 = vadd.f32 1e-05, %v5348_v41  ;;  %v7782_v41 = vld [vmem:[%s8350_s5 + $0x80] sm:$0xff]  }
0x18a7   : > { %v5347_v15 = vpop.xlane.xlu0 %5346 }
0x18a8   : > { %7750 = vrsqrt.f32 %v5350_v6  ;;  %v5349_v60 = vmul.f32 0.015625, %v5347_v15  ;;  %v7783_v6 = vld [vmem:[%s8350_s5 + $0x48] sm:$0xff]  }
0x18a9   : > { %v7784_v15 = vld [vmem:[%s8350_s5 + $0xc8] sm:$0xff]  }
0x18aa   : > { %v5351_v54 = vadd.f32 1e-05, %v5349_v60  ;;  %v7785_v60 = vld [vmem:[%s8350_s5 + $0x8] sm:$0xff]  }
0x18ac   : > { %7752 = vrsqrt.f32 %v5351_v54  ;;  %v7786_v54 = vld [vmem:[%s8350_s5 + $0x88] sm:$0xff]  }
0x18b2   : > { %v7751_v37 = vpop.eup %7750 }
0x18b3   : > { %v5354_v8 = vmul.f32 %v7751_v37, %v5338_v12  ;;  %v9909_v12 = vld [vmem:[#allocation44_spill] sm:$0xff]  ;;  %v7787_v37 = vld [vmem:[%s8350_s5 + $0x50] sm:$0xff]  }
0x18b5   : > { %v5356_v48 = vmul.f32 %v7777_v21, %v5354_v8  ;;  %v7788_v8 = vld [vmem:[%s8350_s5 + $0xd0] sm:$0xff]  }
0x18b6   : > { %v7753_v46 = vpop.eup %7752 }
0x18b7   : > { %v5355_v35 = vmul.f32 %v7753_v46, %v5339_v9  ;;  %v9340_v10 = vadd.f32 %v7778_v56, %v5356_v48  ;;  %v9913_v9 = vld [vmem:[#allocation48_spill] sm:$0xff]  ;;  %v7789_v46 = vld [vmem:[%s8350_s5 + $0x10] sm:$0xff]   ;;  %v7791_v48 = vld [vmem:[%s8350_s5 + $0x58] sm:$0xff]  }
0x18b9   : > { %v5357_v55 = vmul.f32 %v7777_v21, %v5355_v35  ;;  %v7790_v21 = vld [vmem:[%s8350_s5 + $0x90] sm:$0xff]   ;;  %v7792_v35 = vld [vmem:[%s8350_s5 + $0xd8] sm:$0xff]  }
0x18bb   : > { %v9342_v61 = vadd.f32 %v7778_v56, %v5357_v55  ;;  %v7793_v55 = vld [vmem:[%s8350_s5 + $0x18] sm:$0xff]  }
0x18bc   : > { %v7794_v56 = vld [vmem:[%s8350_s5 + $0x98] sm:$0xff]  }
0x18bd   : > { %v9346_v16 = vpack.c.bf16 %v9342_v61, %v9340_v10 }
0x18bf   : > { %6698 = vmatmul.mubr.msk.bf16.vlgmr.msra.gmra.mrb[68].mxu0 %vm1219_vm2, %v9346_v16  ;;  %6699 = vmatmul.mubr.msk.bf16.vlgmr.msra.gmra.mrb[68].mxu1 %vm1219_vm2, %v9346_v16 }
0x18c0   : > { %5451 = vmatpush1.bf16.msra.mxu0 %v8662_v50  ;;  %5494 = vmatpush1.bf16.msra.mxu1 %v8664_v51  ;;  %v9881_v50 = vld [vmem:[#allocation16_spill] sm:$0xff]  ;;  %v9882_v51 = vld [vmem:[#allocation17_spill] sm:$0xff] }
0x18c1   : > { %5452 = vmatprep.subr.bf16.mxu0 %v8686_v17  ;;  %5495 = vmatprep.subr.bf16.mxu1 %v8688_v23  ;;  %v9883_v17 = vld [vmem:[#allocation18_spill] sm:$0xff]  ;;  %v9884_v23 = vld [vmem:[#allocation19_spill] sm:$0xff] }
0x18c2   : > { %5482 = vmatprep.mubr.bf16.mxu0 %v9836_v4  ;;  %5525 = vmatprep.mubr.bf16.mxu1 %v9836_v4 }
0x18c4   : > { %5453 = vmatpush1.bf16.msra.mxu0 %v8700_v31  ;;  %5496 = vmatpush1.bf16.msra.mxu1 %v8702_v34  ;;  %v9887_v31 = vld [vmem:[#allocation22_spill] sm:$0xff]  ;;  %v9888_v34 = vld [vmem:[#allocation23_spill] sm:$0xff] }
0x18c5   : > { %5454 = vmatprep.subr.bf16.mxu0 %v9878_v47  ;;  %5497 = vmatprep.subr.bf16.mxu1 %v9879_v52  ;;  %v7796_v47 = vld [vmem:[%s8350_s5 + $0xe0] sm:$0xff]  }
0x18c6   : > { %v7797_v52 = vld [vmem:[%s8350_s5 + $0x20] sm:$0xff]  }
0x18c8   : > { %5455 = vmatpush1.bf16.msra.mxu0 %v9880_v19  ;;  %5498 = vmatpush1.bf16.msra.mxu1 %v9881_v50  ;;  %v7798_v19 = vld [vmem:[%s8350_s5 + $0xa0] sm:$0xff]   ;;  %v7799_v50 = vld [vmem:[%s8350_s5 + $0x68] sm:$0xff]  }
0x18c9   : > { %5456 = vmatprep.subr.bf16.mxu0 %v9882_v51  ;;  %5499 = vmatprep.subr.bf16.mxu1 %v9883_v17  ;;  %v7800_v51 = vld [vmem:[%s8350_s5 + $0xe8] sm:$0xff]  }
0x18ca   : > { %v7801_v17 = vld [vmem:[%s8350_s5 + $0x28] sm:$0xff]  }
0x18cc   : > { %5457 = vmatpush1.bf16.msra.mxu0 %v9884_v23  ;;  %5500 = vmatpush1.bf16.msra.mxu1 %v9885_v26  ;;  %v7802_v23 = vld [vmem:[%s8350_s5 + $0xa8] sm:$0xff]   ;;  %v7803_v26 = vld [vmem:[%s8350_s5 + $0x70] sm:$0xff]  }
0x18cd   : > { %5536 = vmatprep.subr.bf16.mxu0 %v9886_v28  ;;  %5579 = vmatprep.subr.bf16.mxu1 %v9887_v31  ;;  %v7804_v28 = vld [vmem:[%s8350_s5 + $0xf0] sm:$0xff]  }
0x18ce   : > { %v7805_v31 = vld [vmem:[%s8350_s5 + $0x30] sm:$0xff]  }
0x18cf   : > { %6700 = vmatmul.mubr.msk.bf16.vlgmr.msra.gmra.mrb[72].mxu0 %vm1219_vm2, %v9346_v16  ;;  %6701 = vmatmul.mubr.msk.bf16.vlgmr.msra.gmra.mrb[72].mxu1 %vm1219_vm2, %v9346_v16 }
0x18d0   : > { %5537 = vmatpush1.bf16.msra.mxu0 %v9888_v34  ;;  %5580 = vmatpush1.bf16.msra.mxu1 %v9889_v57  ;;  %v7806_v34 = vld [vmem:[%s8350_s5 + $0xb0] sm:$0xff]   ;;  %v7807_v57 = vld [vmem:[%s8350_s5 + $0x78] sm:$0xff]  }
0x18d1   : > { %5538 = vmatprep.subr.bf16.mxu0 %v9890_v40  ;;  %5581 = vmatprep.subr.bf16.mxu1 %v9891_v32  ;;  %v7808_v40 = vld [vmem:[%s8350_s5 + $0xf8] sm:$0xff]  }
0x18d2   : > { %5568 = vmatprep.mubr.bf16.mxu0 %v9836_v4  ;;  %5611 = vmatprep.mubr.bf16.mxu1 %v9836_v4  ;;  %v7809_v32 = vld [vmem:[%s8350_s5 + $0x38] sm:$0xff]  }
0x18d4   : > { %5539 = vmatpush1.bf16.msra.mxu0 %v9892_v44  ;;  %5582 = vmatpush1.bf16.msra.mxu1 %v9893_v39  ;;  %v7810_v44 = vld [vmem:[%s8350_s5 + $0xb8] sm:$0xff]   ;;  %v7811_v39 = vld [vmem:[%s8350_s5 + $0x140] sm:$0xff]  }
0x18d5   : > { %5540 = vmatprep.subr.bf16.mxu0 %v9894_v33  ;;  %5583 = vmatprep.subr.bf16.mxu1 %v9895_v5  ;;  %v7812_v33 = vld [vmem:[%s8350_s5 + $0x1c0] sm:$0xff]  }
0x18d8   : > { %5541 = vmatpush1.bf16.msra.mxu0 %v9896_v0  ;;  %5584 = vmatpush1.bf16.msra.mxu1 %v9897_v11  ;;  %v9918_v11 = vld [vmem:[#allocation54_spill] sm:$0xff] }
0x18d9   : > { %5542 = vmatprep.subr.bf16.mxu0 %v9898_v36  ;;  %5585 = vmatprep.subr.bf16.mxu1 %v9899_v49  ;;  %v9919_v49 = vld [vmem:[#allocation55_spill] sm:$0xff] }
0x18dc   : > { %5543 = vmatpush1.bf16.msra.mxu0 %v9900_v3  ;;  %5586 = vmatpush1.bf16.msra.mxu1 %v9901_v22 }
0x18dd   : > { %5622 = vmatprep.subr.bf16.mxu0 %v9902_v38  ;;  %5665 = vmatprep.subr.bf16.mxu1 %v9903_v20  ;;  %v9920_v20 = vld [vmem:[#allocation56_spill] sm:$0xff] }
0x18df   : > { %6702 = vmatmul.mubr.msk.bf16.vlgmr.msra.gmra.mrb[76].mxu0 %vm1219_vm2, %v9346_v16  ;;  %6703 = vmatmul.mubr.msk.bf16.vlgmr.msra.gmra.mrb[76].mxu1 %vm1219_vm2, %v9346_v16 }
0x18e0   : > { %5623 = vmatpush1.bf16.msra.mxu0 %v9904_v30  ;;  %5666 = vmatpush1.bf16.msra.mxu1 %v9905_v29 }
0x18e1   : > { %5624 = vmatprep.subr.bf16.mxu0 %v9906_v13  ;;  %5667 = vmatprep.subr.bf16.mxu1 %v9907_v18 }
0x18e2   : > { %5654 = vmatprep.mubr.bf16.mxu0 %v9836_v4  ;;  %5697 = vmatprep.mubr.bf16.mxu1 %v9836_v4  ;;  %v9916_v4 = vld [vmem:[#allocation51_spill] sm:$0xff] }
0x18e4   : > { %5625 = vmatpush1.bf16.msra.mxu0 %v9908_v53  ;;  %5668 = vmatpush1.bf16.msra.mxu1 %v9909_v12 }
0x18e5   : > { %5626 = vmatprep.subr.bf16.mxu0 %v9910_v45  ;;  %5669 = vmatprep.subr.bf16.mxu1 %v9911_v62 }
0x18e8   : > { %5627 = vmatpush1.bf16.msra.mxu0 %v9912_v42  ;;  %5670 = vmatpush1.bf16.msra.mxu1 %v9913_v9 }
0x18e9   : > { %5628 = vmatprep.subr.bf16.mxu0 %v9914_v7  ;;  %5671 = vmatprep.subr.bf16.mxu1 %v9915_v59 }
0x18ec   : > { %5629 = vmatpush1.bf16.msra.mxu0 %v9916_v4  ;;  %5672 = vmatpush1.bf16.msra.mxu1 %v9917_v14 }
0x18ed   : > { %6973 = vmatprep.subr.bf16.mxu0 %v7779_v1  ;;  %6995 = vmatprep.subr.bf16.mxu1 %v7780_v43 }
0x18ef   : > { %6704 = vmatmul.mubr.msk.bf16.vlgmr.msra.gmra.mrb[80].mxu0 %vm1219_vm2, %v9346_v16  ;;  %6705 = vmatmul.mubr.msk.bf16.vlgmr.msra.gmra.mrb[80].mxu1 %vm1219_vm2, %v9346_v16  ;;  %v7795_v16 = vld [vmem:[%s8350_s5 + $0x60] sm:$0xff]  }
0x18f0   : > { %6974 = vmatpush3.bf16.msra.mxu0 %v7781_v63  ;;  %6996 = vmatpush3.bf16.msra.mxu1 %v7782_v41 }
0x18f1   : > { %6975 = vmatprep.subr.bf16.mxu0 %v7783_v6  ;;  %6997 = vmatprep.subr.bf16.mxu1 %v7784_v15 }
0x18f4   : > { %6976 = vmatpush3.bf16.msra.mxu0 %v7785_v60  ;;  %6998 = vmatpush3.bf16.msra.mxu1 %v7786_v54 }
0x18f5   : > { %6977 = vmatprep.subr.bf16.mxu0 %v7787_v37  ;;  %6999 = vmatprep.subr.bf16.mxu1 %v7788_v8  ;;  %v7814_v37 = vld [vmem:[%s8350_s5 + $0x180] sm:$0xff]   ;;  %v7815_v8 = vld [vmem:[%s8350_s5 + $0x148] sm:$0xff]  }
0x18f8   : > { %6978 = vmatpush3.bf16.msra.mxu0 %v7789_v46  ;;  %7000 = vmatpush3.bf16.msra.mxu1 %v7790_v21  ;;  %v7816_v46 = vld [vmem:[%s8350_s5 + $0x1c8] sm:$0xff]  }
0x18f9   : > { %6979 = vmatprep.subr.bf16.mxu0 %v7791_v48  ;;  %7001 = vmatprep.subr.bf16.mxu1 %v7792_v35  ;;  %v7817_v35 = vld [vmem:[%s8350_s5 + $0x108] sm:$0xff]  }
0x18fc   : > { %6980 = vmatpush3.bf16.msra.mxu0 %v7793_v55  ;;  %7002 = vmatpush3.bf16.msra.mxu1 %v7794_v56  ;;  %v7818_v55 = vld [vmem:[%s8350_s5 + $0x188] sm:$0xff]  }
0x18fd   : > { %6981 = vmatprep.subr.bf16.mxu0 %v7795_v16  ;;  %7003 = vmatprep.subr.bf16.mxu1 %v7796_v47  ;;  %v9921_v16 = vld [vmem:[#allocation57_spill] sm:$0xff] }
0x1900   : > { %6982 = vmatpush3.bf16.msra.mxu0 %v7797_v52  ;;  %7004 = vmatpush3.bf16.msra.mxu1 %v7798_v19 }
0x1901   : > { %6983 = vmatprep.subr.bf16.mxu0 %v7799_v50  ;;  %7005 = vmatprep.subr.bf16.mxu1 %v7800_v51  ;;  %v7819_v50 = vld [vmem:[%s8350_s5 + $0x150] sm:$0xff]  }
0x1902   : > { %v7820_v51 = vld [vmem:[%s8350_s5 + $0x1d0] sm:$0xff]  }
0x1904   : > { %6984 = vmatpush3.bf16.msra.mxu0 %v7801_v17  ;;  %7006 = vmatpush3.bf16.msra.mxu1 %v7802_v23  ;;  %v9922_v17 = vld [vmem:[#allocation58_spill] sm:$0xff] }
0x1905   : > { %6985 = vmatprep.subr.bf16.mxu0 %v7803_v26  ;;  %7007 = vmatprep.subr.bf16.mxu1 %v7804_v28  ;;  %v9923_v26 = vld [vmem:[#allocation59_spill] sm:$0xff] }
0x1908   : > { %6986 = vmatpush3.bf16.msra.mxu0 %v7805_v31  ;;  %7008 = vmatpush3.bf16.msra.mxu1 %v7806_v34 }
0x1909   : > { %6987 = vmatprep.subr.bf16.mxu0 %v7807_v57  ;;  %7009 = vmatprep.subr.bf16.mxu1 %v7808_v40 }
0x190c   : > { %6988 = vmatpush3.bf16.msra.mxu0 %v7809_v32  ;;  %7010 = vmatpush3.bf16.msra.mxu1 %v7810_v44 }
0x190d   : > { %7017 = vmatprep.subr.bf16.mxu0 %v7811_v39  ;;  %7039 = vmatprep.subr.bf16.mxu1 %v7812_v33 }
0x1992   : > { %v5398_v5 = vpop.f32.mrb[68].mxu0  ;;  %v5441_v0 = vpop.f32.mrb[68].mxu1 }
0x1993   : > { %v5399_v36 = vadd.f32 %v5398_v5, %v9918_v11  ;;  %v5442_v3 = vadd.f32 %v5441_v0, %v9919_v49  ;;  %v5400_v22 = vpop.f32.mrb[69].mxu0  ;;  %v5443_v38 = vpop.f32.mrb[69].mxu1  ;;  %v7821_v5 = vld [vmem:[%s8350_s5 + $0x110] sm:$0xff]  }
0x1994   : > { %v5401_v30 = vadd.f32 %v5400_v22, %v9920_v20  ;;  %v5444_v29 = vadd.f32 %v5443_v38, %v8938_v25  ;;  %v5402_v13 = vpop.f32.mrb[70].mxu0  ;;  %v5445_v18 = vpop.f32.mrb[70].mxu1  ;;  %v7822_v0 = vld [vmem:[%s8350_s5 + $0x190] sm:$0xff]   ;;  %v7824_v22 = vld [vmem:[%s8350_s5 + $0x1d8] sm:$0xff]  }
0x1995   : > { %v5403_v53 = vadd.f32 %v5402_v13, %v9918_v11  ;;  %v5446_v12 = vadd.f32 %v5445_v18, %v9919_v49  ;;  %v5404_v45 = vpop.f32.mrb[71].mxu0  ;;  %v5447_v62 = vpop.f32.mrb[71].mxu1  ;;  %v5708_v7 = vmax.f32 %v5399_v36, 0.0  ;;  %v5710_v59 = vmax.f32 %v5442_v3, 0.0 }
0x1996   : > { %v5405_v42 = vadd.f32 %v5404_v45, %v9920_v20  ;;  %v5448_v9 = vadd.f32 %v5447_v62, %v8938_v25  ;;  %v5709_v1 = vmax.f32 %v5401_v30, 0.0  ;;  %v5711_v43 = vmax.f32 %v5444_v29, 0.0  ;;  %v7813_v25 = vld [vmem:[%s8350_s5 + $0x100] sm:$0xff]   ;;  %v7825_v45 = vld [vmem:[%s8350_s5 + $0x118] sm:$0xff]  }
0x1997   : > { %v5724_v4 = vmax.f32 %v5403_v53, 0.0  ;;  %v5726_v14 = vmax.f32 %v5446_v12, 0.0  ;;  %v7826_v62 = vld [vmem:[%s8350_s5 + $0x198] sm:$0xff]  }
0x1998   : > { %v5725_v63 = vmax.f32 %v5405_v42, 0.0  ;;  %v5727_v41 = vmax.f32 %v5448_v9, 0.0  ;;  %v7827_v42 = vld [vmem:[%s8350_s5 + $0x160] sm:$0xff]  }
0x1999   : > { %v5740_v6 = vpack.c.bf16 %v5724_v4, %v5708_v7  ;;  %v5742_v15 = vpack.c.bf16 %v5726_v14, %v5710_v59  ;;  %v7828_v9 = vld [vmem:[%s8350_s5 + $0x1e0] sm:$0xff]   ;;  %v7831_v4 = vld [vmem:[%s8350_s5 + $0x168] sm:$0xff]  }
0x199a   : > { %v5741_v60 = vpack.c.bf16 %v5725_v63, %v5709_v1  ;;  %v5743_v54 = vpack.c.bf16 %v5727_v41, %v5711_v43  ;;  %v7829_v7 = vld [vmem:[%s8350_s5 + $0x120] sm:$0xff]   ;;  %v7832_v14 = vld [vmem:[%s8350_s5 + $0x1e8] sm:$0xff]  }
0x199b   : > { %v7830_v59 = vld [vmem:[%s8350_s5 + $0x1a0] sm:$0xff]   ;;  %v7833_v63 = vld [vmem:[%s8350_s5 + $0x128] sm:$0xff]  }
0x199c   : > { %5788 = vmatprep.mubr.bf16.mxu0 %v5741_v60  ;;  %5829 = vmatprep.mubr.bf16.mxu1 %v5743_v54  ;;  %v7834_v41 = vld [vmem:[%s8350_s5 + $0x1a8] sm:$0xff]  }
0x199d   : > { %5789 = vmatmul.mubr.bf16.vlgmr.msra.gmra.mrb[84].mxu0 %v5740_v6  ;;  %5830 = vmatmul.mubr.bf16.vlgmr.msra.gmra.mrb[84].mxu1 %v5742_v15  ;;  %v9924_v15 = vld [vmem:[#allocation60_spill] sm:$0xff] }
0x199e   : > { %7018 = vmatpush3.bf16.msra.mxu0 %v7813_v25  ;;  %7040 = vmatpush3.bf16.msra.mxu1 %v7814_v37  ;;  %v7835_v37 = vld [vmem:[%s8350_s5 + $0x170] sm:$0xff]  }
0x199f   : > { %7019 = vmatprep.subr.bf16.mxu0 %v7815_v8  ;;  %7041 = vmatprep.subr.bf16.mxu1 %v7816_v46  ;;  %v7836_v8 = vld [vmem:[%s8350_s5 + $0x1f0] sm:$0xff]   ;;  %v9925_v46 = vld [vmem:[#allocation61_spill] sm:$0xff] }
0x19a2   : > { %v5484_v21 = vpop.f32.mrb[72].mxu0  ;;  %v5527_v48 = vpop.f32.mrb[72].mxu1  ;;  %7020 = vmatpush3.bf16.msra.mxu0 %v7817_v35  ;;  %7042 = vmatpush3.bf16.msra.mxu1 %v7818_v55 }
0x19a3   : > { %v5485_v56 = vadd.f32 %v5484_v21, %v8959_v58  ;;  %v5528_v47 = vadd.f32 %v5527_v48, %v9921_v16  ;;  %v5486_v52 = vpop.f32.mrb[73].mxu0  ;;  %v5529_v19 = vpop.f32.mrb[73].mxu1  ;;  %7021 = vmatprep.subr.bf16.mxu0 %v7819_v50  ;;  %7043 = vmatprep.subr.bf16.mxu1 %v7820_v51  ;;  %v9926_v48 = vld [vmem:[#allocation62_spill] sm:$0xff] }
0x19a4   : > { %v5487_v23 = vadd.f32 %v5486_v52, %v9922_v17  ;;  %v5530_v28 = vadd.f32 %v5529_v19, %v9923_v26  ;;  %v5488_v31 = vpop.f32.mrb[74].mxu0  ;;  %v5531_v34 = vpop.f32.mrb[74].mxu1 }
0x19a5   : > { %v5489_v57 = vadd.f32 %v5488_v31, %v8959_v58  ;;  %v5532_v40 = vadd.f32 %v5531_v34, %v9921_v16  ;;  %v5490_v32 = vpop.f32.mrb[75].mxu0  ;;  %v5533_v44 = vpop.f32.mrb[75].mxu1  ;;  %v5712_v11 = vmax.f32 %v5485_v56, 0.0  ;;  %v5714_v36 = vmax.f32 %v5528_v47, 0.0  ;;  %v7823_v58 = vld [vmem:[%s8350_s5 + $0x158] sm:$0xff]  }
0x19a6   : > { %v5491_v39 = vadd.f32 %v5490_v32, %v9922_v17  ;;  %v5534_v33 = vadd.f32 %v5533_v44, %v9923_v26  ;;  %7022 = vmatpush3.bf16.msra.mxu0 %v7821_v5  ;;  %7044 = vmatpush3.bf16.msra.mxu1 %v7822_v0  ;;  %v5713_v38 = vmax.f32 %v5487_v23, 0.0  ;;  %v5715_v20 = vmax.f32 %v5530_v28, 0.0  ;;  %v7837_v17 = vld [vmem:[%s8350_s5 + $0x130] sm:$0xff]  }
0x19a7   : > { %v5728_v49 = vmax.f32 %v5489_v57, 0.0  ;;  %v5730_v3 = vmax.f32 %v5532_v40, 0.0  ;;  %7023 = vmatprep.subr.bf16.mxu0 %v7823_v58  ;;  %7045 = vmatprep.subr.bf16.mxu1 %v7824_v22  ;;  %v7838_v23 = vld [vmem:[%s8350_s5 + $0x1b0] sm:$0xff]   ;;  %v7840_v57 = vld [vmem:[%s8350_s5 + $0x1f8] sm:$0xff]   ;;  %v7844_v58 = vld [vmem:[%s8350_s5 + $0x2c0] sm:$0xff]  }
0x19a8   : > { %v5729_v30 = vmax.f32 %v5491_v39, 0.0  ;;  %v5731_v29 = vmax.f32 %v5534_v33, 0.0  ;;  %v7845_v22 = vld [vmem:[%s8350_s5 + $0x200] sm:$0xff]  }
0x19a9   : > { %v9478_v13 = vpack.c.bf16 %v5728_v49, %v5712_v11  ;;  %v9480_v18 = vpack.c.bf16 %v5730_v3, %v5714_v36  ;;  %v7841_v36 = vld [vmem:[%s8350_s5 + $0x138] sm:$0xff]   ;;  %v7843_v3 = vld [vmem:[%s8350_s5 + $0x240] sm:$0xff]  }
0x19aa   : > { %v5745_v53 = vpack.c.bf16 %v5729_v30, %v5713_v38  ;;  %v5747_v12 = vpack.c.bf16 %v5731_v29, %v5715_v20  ;;  %7024 = vmatpush3.bf16.msra.mxu0 %v7825_v45  ;;  %7046 = vmatpush3.bf16.msra.mxu1 %v7826_v62  ;;  %v7842_v49 = vld [vmem:[%s8350_s5 + $0x1b8] sm:$0xff]   ;;  %v7846_v38 = vld [vmem:[%s8350_s5 + $0x280] sm:$0xff]   ;;  %v7847_v20 = vld [vmem:[%s8350_s5 + $0x248] sm:$0xff]  }
0x19ab   : > { %7025 = vmatprep.subr.bf16.mxu0 %v7827_v42  ;;  %7047 = vmatprep.subr.bf16.mxu1 %v7828_v9  ;;  %v7848_v30 = vld [vmem:[%s8350_s5 + $0x2c8] sm:$0xff]  }
0x19ac   : > { %5870 = vmatprep.mubr.bf16.mxu0 %v5745_v53  ;;  %5911 = vmatprep.mubr.bf16.mxu1 %v5747_v12  ;;  %v7849_v12 = vld [vmem:[%s8350_s5 + $0x208] sm:$0xff]  }
0x19ad   : > { %v7850_v42 = vld [vmem:[%s8350_s5 + $0x288] sm:$0xff]  }
0x19ae   : > { %7026 = vmatpush3.bf16.msra.mxu0 %v7829_v7  ;;  %7048 = vmatpush3.bf16.msra.mxu1 %v7830_v59  ;;  %v7851_v59 = vld [vmem:[%s8350_s5 + $0x250] sm:$0xff]  }
0x19af   : > { %7027 = vmatprep.subr.bf16.mxu0 %v7831_v4  ;;  %7049 = vmatprep.subr.bf16.mxu1 %v7832_v14  ;;  %v9929_v4 = vld [vmem:[#allocation64_spill] sm:$0xff] }
0x19b2   : > { %v5570_v1 = vpop.f32.mrb[76].mxu0  ;;  %v5613_v43 = vpop.f32.mrb[76].mxu1  ;;  %7028 = vmatpush3.bf16.msra.mxu0 %v7833_v63  ;;  %7050 = vmatpush3.bf16.msra.mxu1 %v7834_v41 }
0x19b3   : > { %v5571_v6 = vadd.f32 %v5570_v1, %v9001_v2  ;;  %v5614_v60 = vadd.f32 %v5613_v43, %v9924_v15  ;;  %v5572_v54 = vpop.f32.mrb[77].mxu0  ;;  %v5615_v25 = vpop.f32.mrb[77].mxu1  ;;  %7029 = vmatprep.subr.bf16.mxu0 %v7835_v37  ;;  %7051 = vmatprep.subr.bf16.mxu1 %v7836_v8  ;;  %v9930_v1 = vld [vmem:[#allocation65_spill] sm:$0xff] }
0x19b4   : > { %v5573_v21 = vadd.f32 %v5572_v54, %v9925_v46  ;;  %v5616_v35 = vadd.f32 %v5615_v25, %v9926_v48  ;;  %v5574_v55 = vpop.f32.mrb[78].mxu0  ;;  %v5617_v56 = vpop.f32.mrb[78].mxu1 }
0x19b5   : > { %v5575_v16 = vadd.f32 %v5574_v55, %v9001_v2  ;;  %v5618_v47 = vadd.f32 %v5617_v56, %v9924_v15  ;;  %v5576_v52 = vpop.f32.mrb[79].mxu0  ;;  %v5619_v19 = vpop.f32.mrb[79].mxu1  ;;  %v5716_v26 = vmax.f32 %v5571_v6, 0.0  ;;  %v5718_v28 = vmax.f32 %v5614_v60, 0.0  ;;  %v7839_v2 = vld [vmem:[%s8350_s5 + $0x178] sm:$0xff]   ;;  %v7852_v6 = vld [vmem:[%s8350_s5 + $0x2d0] sm:$0xff]  }
0x19b6   : > { %v5577_v50 = vadd.f32 %v5576_v52, %v9925_v46  ;;  %v5620_v51 = vadd.f32 %v5619_v19, %v9926_v48  ;;  %7030 = vmatpush3.bf16.msra.mxu0 %v7837_v17  ;;  %7052 = vmatpush3.bf16.msra.mxu1 %v7838_v23  ;;  %v5717_v40 = vmax.f32 %v5573_v21, 0.0  ;;  %v5719_v32 = vmax.f32 %v5616_v35, 0.0  ;;  %v7853_v46 = vld [vmem:[%s8350_s5 + $0x210] sm:$0xff]  }
0x19b7   : > { %v5732_v31 = vmax.f32 %v5575_v16, 0.0  ;;  %v5734_v34 = vmax.f32 %v5618_v47, 0.0  ;;  %7031 = vmatprep.subr.bf16.mxu0 %v7839_v2  ;;  %7053 = vmatprep.subr.bf16.mxu1 %v7840_v57  ;;  %v7854_v56 = vld [vmem:[%s8350_s5 + $0x290] sm:$0xff]   ;;  %v7855_v16 = vld [vmem:[%s8350_s5 + $0x258] sm:$0xff]   ;;  %v7859_v2 = vld [vmem:[%s8350_s5 + $0x260] sm:$0xff]  }
0x19b8   : > { %v5733_v44 = vmax.f32 %v5577_v50, 0.0  ;;  %v5735_v39 = vmax.f32 %v5620_v51, 0.0  ;;  %v7856_v51 = vld [vmem:[%s8350_s5 + $0x2d8] sm:$0xff]   ;;  %v7860_v57 = vld [vmem:[%s8350_s5 + $0x2e0] sm:$0xff]  }
0x19b9   : > { %v9506_v33 = vpack.c.bf16 %v5732_v31, %v5716_v26  ;;  %v9508_v5 = vpack.c.bf16 %v5734_v34, %v5718_v28  ;;  %v7857_v31 = vld [vmem:[%s8350_s5 + $0x218] sm:$0xff]  }
0x19ba   : > { %v5749_v0 = vpack.c.bf16 %v5733_v44, %v5717_v40  ;;  %v5751_v11 = vpack.c.bf16 %v5735_v39, %v5719_v32  ;;  %7032 = vmatpush3.bf16.msra.mxu0 %v7841_v36  ;;  %7054 = vmatpush3.bf16.msra.mxu1 %v7842_v49  ;;  %v7858_v34 = vld [vmem:[%s8350_s5 + $0x298] sm:$0xff]   ;;  %v7861_v40 = vld [vmem:[%s8350_s5 + $0x220] sm:$0xff]   ;;  %v7863_v44 = vld [vmem:[%s8350_s5 + $0x268] sm:$0xff]  }
0x19bb   : > { %7061 = vmatprep.subr.bf16.mxu0 %v7843_v3  ;;  %7083 = vmatprep.subr.bf16.mxu1 %v7844_v58  ;;  %v7862_v32 = vld [vmem:[%s8350_s5 + $0x2a0] sm:$0xff]   ;;  %v7864_v39 = vld [vmem:[%s8350_s5 + $0x2e8] sm:$0xff]   ;;  %v7867_v36 = vld [vmem:[%s8350_s5 + $0x270] sm:$0xff]  }
0x19bc   : > { %v7868_v49 = vld [vmem:[%s8350_s5 + $0x2f0] sm:$0xff]  }
0x19bd   : > { %5871 = vmatmul.mubr.bf16.vlgmr.msra.gmra.mrb[88].mxu0 %v9478_v13  ;;  %5912 = vmatmul.mubr.bf16.vlgmr.msra.gmra.mrb[88].mxu1 %v9480_v18  ;;  %v9927_v13 = vld [vmem:[#allocation63_spill] sm:$0xff]  ;;  %v9928_v18 = vld [vmem:[#allocation53_spill] sm:$0xff]  ;;  %v7869_v3 = vld [vmem:[%s8350_s5 + $0x230] sm:$0xff]  }
0x19be   : > { %7062 = vmatpush3.bf16.msra.mxu0 %v7845_v22  ;;  %5952 = vmatprep.mubr.bf16.mxu0 %v5749_v0  ;;  %v7865_v0 = vld [vmem:[%s8350_s5 + $0x228] sm:$0xff]   ;;  %v7870_v58 = vld [vmem:[%s8350_s5 + $0x2b0] sm:$0xff]   ;;  %v7871_v22 = vld [vmem:[%s8350_s5 + $0x278] sm:$0xff]  }
0x19bf   : > { %7084 = vmatpush3.bf16.msra.mxu1 %v7846_v38  ;;  %5993 = vmatprep.mubr.bf16.mxu1 %v5751_v11  ;;  %v7866_v11 = vld [vmem:[%s8350_s5 + $0x2a8] sm:$0xff]   ;;  %v7872_v38 = vld [vmem:[%s8350_s5 + $0x2f8] sm:$0xff]  }
0x19c0   : > { %7063 = vmatprep.subr.bf16.mxu0 %v7847_v20  ;;  %7085 = vmatprep.subr.bf16.mxu1 %v7848_v30  ;;  %v7873_v20 = vld [vmem:[%s8350_s5 + $0x238] sm:$0xff]  }
0x19c1   : > { %v7874_v30 = vld [vmem:[%s8350_s5 + $0x2b8] sm:$0xff]  }
0x19c2   : > { %v5656_v29 = vpop.f32.mrb[80].mxu0  ;;  %v5699_v53 = vpop.f32.mrb[80].mxu1  ;;  %7064 = vmatpush3.bf16.msra.mxu0 %v7849_v12  ;;  %v7877_v12 = vld [vmem:[%s8350_s5 + $0x300] sm:$0xff]  }
0x19c3   : > { %v5657_v45 = vadd.f32 %v5656_v29, %v9927_v13  ;;  %v5700_v62 = vadd.f32 %v5699_v53, %v9928_v18  ;;  %7086 = vmatpush3.bf16.msra.mxu1 %v7850_v42  ;;  %v5658_v9 = vpop.f32.mrb[81].mxu0  ;;  %v5701_v7 = vpop.f32.mrb[81].mxu1  ;;  %7065 = vmatprep.subr.bf16.mxu0 %v7851_v59  ;;  %v7875_v29 = vld [vmem:[%s8350_s5 + $0x340] sm:$0xff]   ;;  %v7884_v42 = vld [vmem:[%s8350_s5 + $0x3d0] sm:$0xff]   ;;  %v7887_v59 = vld [vmem:[%s8350_s5 + $0x358] sm:$0xff]  }
0x19c4   : > { %v5659_v14 = vadd.f32 %v5658_v9, %v9929_v4  ;;  %v5702_v43 = vadd.f32 %v5701_v7, %v9930_v1  ;;  %v5660_v63 = vpop.f32.mrb[82].mxu0  ;;  %v5703_v41 = vpop.f32.mrb[82].mxu1  ;;  %7087 = vmatprep.subr.bf16.mxu1 %v7852_v6  ;;  %v7876_v53 = vld [vmem:[%s8350_s5 + $0x3c0] sm:$0xff]   ;;  %v7885_v9 = vld [vmem:[%s8350_s5 + $0x310] sm:$0xff]  }
0x19c5   : > { %v5661_v15 = vadd.f32 %v5660_v63, %v9927_v13  ;;  %v5704_v60 = vadd.f32 %v5703_v41, %v9928_v18  ;;  %v5662_v54 = vpop.f32.mrb[83].mxu0  ;;  %v5705_v25 = vpop.f32.mrb[83].mxu1  ;;  %v5720_v21 = vmax.f32 %v5657_v45, 0.0  ;;  %v5722_v48 = vmax.f32 %v5700_v62, 0.0  ;;  %v7878_v13 = vld [vmem:[%s8350_s5 + $0x380] sm:$0xff]   ;;  %v7879_v45 = vld [vmem:[%s8350_s5 + $0x348] sm:$0xff]  }
0x19c6   : > { %v5663_v37 = vadd.f32 %v5662_v54, %v9929_v4  ;;  %v5706_v8 = vadd.f32 %v5705_v25, %v9930_v1  ;;  %7066 = vmatpush3.bf16.msra.mxu0 %v7853_v46  ;;  %v5721_v47 = vmax.f32 %v5659_v14, 0.0  ;;  %v5723_v52 = vmax.f32 %v5702_v43, 0.0  ;;  %v7880_v18 = vld [vmem:[%s8350_s5 + $0x3c8] sm:$0xff]   ;;  %v7886_v7 = vld [vmem:[%s8350_s5 + $0x390] sm:$0xff]   ;;  %v7888_v4 = vld [vmem:[%s8350_s5 + $0x3d8] sm:$0xff]  }
0x19c7   : > { %v5736_v35 = vmax.f32 %v5661_v15, 0.0  ;;  %v5738_v55 = vmax.f32 %v5704_v60, 0.0  ;;  %7088 = vmatpush3.bf16.msra.mxu1 %v7854_v56  ;;  %7067 = vmatprep.subr.bf16.mxu0 %v7855_v16  ;;  %v7881_v62 = vld [vmem:[%s8350_s5 + $0x308] sm:$0xff]   ;;  %v7889_v14 = vld [vmem:[%s8350_s5 + $0x318] sm:$0xff]   ;;  %v7891_v43 = vld [vmem:[%s8350_s5 + $0x360] sm:$0xff]  }
0x19c8   : > { %v5737_v19 = vmax.f32 %v5663_v37, 0.0  ;;  %v5739_v50 = vmax.f32 %v5706_v8, 0.0  ;;  %7089 = vmatprep.subr.bf16.mxu1 %v7856_v51  ;;  %v7890_v1 = vld [vmem:[%s8350_s5 + $0x398] sm:$0xff]   ;;  %v7892_v63 = vld [vmem:[%s8350_s5 + $0x3e0] sm:$0xff]   ;;  %v7895_v15 = vld [vmem:[%s8350_s5 + $0x368] sm:$0xff]  }
0x19c9   : > { %v9536_v17 = vpack.c.bf16 %v5736_v35, %v5720_v21  ;;  %v9538_v23 = vpack.c.bf16 %v5738_v55, %v5722_v48  ;;  %v7893_v41 = vld [vmem:[%s8350_s5 + $0x320] sm:$0xff]   ;;  %v7896_v60 = vld [vmem:[%s8350_s5 + $0x3e8] sm:$0xff]   ;;  %v7899_v37 = vld [vmem:[%s8350_s5 + $0x370] sm:$0xff]  }
0x19ca   : > { %v5753_v26 = vpack.c.bf16 %v5737_v19, %v5721_v47  ;;  %v5755_v28 = vpack.c.bf16 %v5739_v50, %v5723_v52  ;;  %7068 = vmatpush3.bf16.msra.mxu0 %v7857_v31  ;;  %v7894_v6 = vld [vmem:[%s8350_s5 + $0x3a0] sm:$0xff]   ;;  %v7897_v54 = vld [vmem:[%s8350_s5 + $0x328] sm:$0xff]   ;;  %v7900_v8 = vld [vmem:[%s8350_s5 + $0x3f0] sm:$0xff]  }
0x19cb   : > { %7090 = vmatpush3.bf16.msra.mxu1 %v7858_v34  ;;  %7069 = vmatprep.subr.bf16.mxu0 %v7859_v2  ;;  %v7898_v25 = vld [vmem:[%s8350_s5 + $0x3a8] sm:$0xff]   ;;  %v7901_v46 = vld [vmem:[%s8350_s5 + $0x330] sm:$0xff]   ;;  %v7903_v48 = vld [vmem:[%s8350_s5 + $0x378] sm:$0xff]  }
0x19cc   : > { %7091 = vmatprep.subr.bf16.mxu1 %v7860_v57  ;;  %v7902_v21 = vld [vmem:[%s8350_s5 + $0x3b0] sm:$0xff]   ;;  %v7904_v35 = vld [vmem:[%s8350_s5 + $0x3f8] sm:$0xff]   ;;  %v7907_v2 = vld [vmem:[%s8356_s6] ss:$0 sm:$0xff] }
0x19cd   : > { %v7905_v55 = vld [vmem:[%s8350_s5 + $0x338] sm:$0xff]  }
0x19ce   : > { %7070 = vmatpush3.bf16.msra.mxu0 %v7861_v40  ;;  %v7906_v56 = vld [vmem:[%s8350_s5 + $0x3b8] sm:$0xff]  }
0x19cf   : > { %7092 = vmatpush3.bf16.msra.mxu1 %v7862_v32  ;;  %7071 = vmatprep.subr.bf16.mxu0 %v7863_v44 }
0x19d0   : > { %7093 = vmatprep.subr.bf16.mxu1 %v7864_v39 }
0x19d2   : > { %7072 = vmatpush3.bf16.msra.mxu0 %v7865_v0 }
0x19d3   : > { %7094 = vmatpush3.bf16.msra.mxu1 %v7866_v11  ;;  %7073 = vmatprep.subr.bf16.mxu0 %v7867_v36 }
0x19d4   : > { %7095 = vmatprep.subr.bf16.mxu1 %v7868_v49 }
0x19d6   : > { %7074 = vmatpush3.bf16.msra.mxu0 %v7869_v3 }
0x19d7   : > { %7096 = vmatpush3.bf16.msra.mxu1 %v7870_v58  ;;  %7075 = vmatprep.subr.bf16.mxu0 %v7871_v22 }
0x19d8   : > { %7097 = vmatprep.subr.bf16.mxu1 %v7872_v38 }
0x19da   : > { %7076 = vmatpush3.bf16.msra.mxu0 %v7873_v20 }
0x19db   : > { %7098 = vmatpush3.bf16.msra.mxu1 %v7874_v30  ;;  %7105 = vmatprep.subr.bf16.mxu0 %v7875_v29 }
0x19dc   : > { %7127 = vmatprep.subr.bf16.mxu1 %v7876_v53 }
0x19dd   : > { %5953 = vmatmul.mubr.bf16.vlgmr.msra.gmra.mrb[92].mxu0 %v9506_v33  ;;  %v7882_v33 = vld [vmem:[%s8350_s5 + $0x388] sm:$0xff]  }
0x19de   : > { %5994 = vmatmul.mubr.bf16.vlgmr.msra.gmra.mrb[92].mxu1 %v9508_v5  ;;  %7106 = vmatpush3.bf16.msra.mxu0 %v7877_v12  ;;  %v7883_v5 = vld [vmem:[%s8350_s5 + $0x350] sm:$0xff]  }
0x19df   : > { %6034 = vmatprep.mubr.bf16.mxu0 %v5753_v26  ;;  %7128 = vmatpush3.bf16.msra.mxu1 %v7878_v13 }
0x19e0   : > { %6075 = vmatprep.mubr.bf16.mxu1 %v5755_v28  ;;  %7107 = vmatprep.subr.bf16.mxu0 %v7879_v45 }
0x19e1   : > { %7129 = vmatprep.subr.bf16.mxu1 %v7880_v18 }
0x19e2   : > { %7108 = vmatpush3.bf16.msra.mxu0 %v7881_v62 }
0x19e3   : > { %7130 = vmatpush3.bf16.msra.mxu1 %v7882_v33  ;;  %7109 = vmatprep.subr.bf16.mxu0 %v7883_v5 }
0x19e4   : > { %7131 = vmatprep.subr.bf16.mxu1 %v7884_v42 }
0x19e6   : > { %7110 = vmatpush3.bf16.msra.mxu0 %v7885_v9 }
0x19e7   : > { %7132 = vmatpush3.bf16.msra.mxu1 %v7886_v7  ;;  %7111 = vmatprep.subr.bf16.mxu0 %v7887_v59 }
0x19e8   : > { %7133 = vmatprep.subr.bf16.mxu1 %v7888_v4 }
0x19ea   : > { %7112 = vmatpush3.bf16.msra.mxu0 %v7889_v14 }
0x19eb   : > { %7134 = vmatpush3.bf16.msra.mxu1 %v7890_v1  ;;  %7113 = vmatprep.subr.bf16.mxu0 %v7891_v43 }
0x19ec   : > { %7135 = vmatprep.subr.bf16.mxu1 %v7892_v63 }
0x19ee   : > { %7114 = vmatpush3.bf16.msra.mxu0 %v7893_v41 }
0x19ef   : > { %7136 = vmatpush3.bf16.msra.mxu1 %v7894_v6  ;;  %7115 = vmatprep.subr.bf16.mxu0 %v7895_v15 }
0x19f0   : > { %7137 = vmatprep.subr.bf16.mxu1 %v7896_v60  ;;  %v4243_v60 = vpop.xlane.xlu0 %4242 }
0x19f2   : > { %7116 = vmatpush3.bf16.msra.mxu0 %v7897_v54 }
0x19f3   : > { %7138 = vmatpush3.bf16.msra.mxu1 %v7898_v25  ;;  %7117 = vmatprep.subr.bf16.mxu0 %v7899_v37 }
0x19f4   : > { %7139 = vmatprep.subr.bf16.mxu1 %v7900_v8 }
0x19f6   : > { %7118 = vmatpush3.bf16.msra.mxu0 %v7901_v46 }
0x19f7   : > { %7140 = vmatpush3.bf16.msra.mxu1 %v7902_v21  ;;  %7119 = vmatprep.subr.bf16.mxu0 %v7903_v48 }
0x19f8   : > { %7141 = vmatprep.subr.bf16.mxu1 %v7904_v35 }
0x19fa   : > { %7120 = vmatpush3.bf16.msra.mxu0 %v7905_v55 }
0x19fb   : > { %7142 = vmatpush3.bf16.msra.mxu1 %v7906_v56 }
0x19fd   : > { %6035 = vmatmul.mubr.bf16.vlgmr.msra.gmra.mrb[96].mxu0 %v9536_v17 }
0x19fe   : > { %6076 = vmatmul.mubr.bf16.vlgmr.msra.gmra.mrb[96].mxu1 %v9538_v23 }
0x1a70   : > { %v6989_v16 = vpop.f32.mrb[84].mxu0  ;;  %v7011_v47 = vpop.f32.mrb[84].mxu1 }
0x1a71   : > { %v6990_v52 = vpop.f32.mrb[85].mxu0  ;;  %v7012_v19 = vpop.f32.mrb[85].mxu1 }
0x1a72   : > { %v6991_v50 = vadd.f32 %v6990_v52, %v6989_v16  ;;  %v7013_v51 = vadd.f32 %v7012_v19, %v7011_v47  ;;  %v6992_v26 = vpop.f32.mrb[86].mxu0  ;;  %v7014_v28 = vpop.f32.mrb[86].mxu1  ;;  %v4247_v19 = vmul.f32 0.015625, %v4243_v60 }
0x1a73   : > { %v6993_v31 = vpop.f32.mrb[87].mxu0  ;;  %v7015_v34 = vpop.f32.mrb[87].mxu1 }
0x1a74   : > { %v5791_v57 = vadd.f32 %v7907_v2, %v6991_v50  ;;  %v6994_v40 = vadd.f32 %v6993_v31, %v6992_v26  ;;  %v7016_v32 = vadd.f32 %v7015_v34, %v7014_v28  ;;  %v4246_v26 = vpop.xlane.xlu0 %4245  ;;  %v4249_v34 = vsub.f32 %v9328_v27, %v4247_v19 }
0x1a76   : > { %v5832_v44 = vadd.f32 %v7013_v51, %v5791_v57  ;;  %v5794_v39 = vadd.f32 %v7907_v2, %v6994_v40  ;;  %v4248_v2 = vmul.f32 0.015625, %v4246_v26 }
0x1a78   : > { %v5835_v0 = vadd.f32 %v7016_v32, %v5794_v39  ;;  %v4250_v32 = vsub.f32 %v9334_v24, %v4248_v2  ;;  %v4251_v39 = vmul.f32 %v4249_v34, %v4249_v34 }
0x1a90   : > { %v7033_v17 = vpop.f32.mrb[88].mxu0  ;;  %v7055_v11 = vpop.f32.mrb[88].mxu1 }
0x1a91   : > { %v7034_v23 = vpop.f32.mrb[89].mxu0  ;;  %v7056_v36 = vpop.f32.mrb[89].mxu1 }
0x1a92   : > { %v7035_v49 = vadd.f32 %v7034_v23, %v7033_v17  ;;  %v7057_v3 = vadd.f32 %v7056_v36, %v7055_v11  ;;  %v7036_v58 = vpop.f32.mrb[90].mxu0  ;;  %v7058_v22 = vpop.f32.mrb[90].mxu1  ;;  %v4252_v17 = vmul.f32 %v4250_v32, %v4250_v32 }
0x1a93   : > { %v7037_v38 = vpop.f32.mrb[91].mxu0  ;;  %v7059_v20 = vpop.f32.mrb[91].mxu1 }
0x1a94   : > { %v5873_v30 = vadd.f32 %v7035_v49, %v5832_v44  ;;  %v7038_v29 = vadd.f32 %v7037_v38, %v7036_v58  ;;  %v7060_v53 = vadd.f32 %v7059_v20, %v7058_v22 }
0x1a96   : > { %v5914_v12 = vadd.f32 %v7057_v3, %v5873_v30  ;;  %v5876_v13 = vadd.f32 %v7038_v29, %v5835_v0  ;;  %v4253_v0 = vsel %vm1219_vm2, %v4251_v39, 0.0 }
0x1a98   : > { %v5917_v45 = vadd.f32 %v7060_v53, %v5876_v13 }
0x1ab0   : > { %v7077_v18 = vpop.f32.mrb[92].mxu0 }
0x1ab1   : > { %v7099_v62 = vpop.f32.mrb[92].mxu1  ;;  %v7078_v33 = vpop.f32.mrb[93].mxu0 }
0x1ab2   : > { %v7079_v5 = vadd.f32 %v7078_v33, %v7077_v18  ;;  %v7100_v42 = vpop.f32.mrb[93].mxu1  ;;  %v7080_v9 = vpop.f32.mrb[94].mxu0 }
0x1ab3   : > { %v7101_v7 = vadd.f32 %v7100_v42, %v7099_v62  ;;  %v7102_v59 = vpop.f32.mrb[94].mxu1  ;;  %v7081_v4 = vpop.f32.mrb[95].mxu0  ;;  %v6662_v62 = vld [vmem:[%s762_s3] ss:$0 sm:$0xff] }
0x1ab4   : > { %v5955_v14 = vadd.f32 %v7079_v5, %v5914_v12  ;;  %v7082_v1 = vadd.f32 %v7081_v4, %v7080_v9  ;;  %v7103_v43 = vpop.f32.mrb[95].mxu1 }
0x1ab5   : > { %v7104_v63 = vadd.f32 %v7103_v43, %v7102_v59 }
0x1ab6   : > { %v5996_v41 = vadd.f32 %v7101_v7, %v5955_v14  ;;  %v5958_v6 = vadd.f32 %v7082_v1, %v5917_v45  ;;  %v6661_v45 = vld [vmem:[%s759_s7] ss:$0 sm:$0xff] }
0x1ab8   : > { %v5999_v15 = vadd.f32 %v7104_v63, %v5958_v6 }
0x1ad0   : > { %v7121_v54 = vpop.f32.mrb[96].mxu0 }
0x1ad1   : > { %v7143_v25 = vpop.f32.mrb[96].mxu1  ;;  %v7122_v37 = vpop.f32.mrb[97].mxu0 }
0x1ad2   : > { %v7123_v8 = vadd.f32 %v7122_v37, %v7121_v54  ;;  %v7144_v46 = vpop.f32.mrb[97].mxu1  ;;  %v7124_v21 = vpop.f32.mrb[98].mxu0 }
0x1ad3   : > { %v7145_v48 = vadd.f32 %v7144_v46, %v7143_v25  ;;  %v7146_v35 = vpop.f32.mrb[98].mxu1  ;;  %v7125_v55 = vpop.f32.mrb[99].mxu0 }
0x1ad4   : > { %v6037_v56 = vadd.f32 %v7123_v8, %v5996_v41  ;;  %v7126_v16 = vadd.f32 %v7125_v55, %v7124_v21  ;;  %v7147_v47 = vpop.f32.mrb[99].mxu1 }
0x1ad5   : > { %v7148_v52 = vadd.f32 %v7147_v47, %v7146_v35 }
0x1ad6   : > { %v6078_v50 = vadd.f32 %v7145_v48, %v6037_v56  ;;  %v6040_v51 = vadd.f32 %v7126_v16, %v5999_v15 }
0x1ad8   : > { %v6081_v28 = vadd.f32 %v7148_v52, %v6040_v51  ;;  %v6084_v31 = vadd.f32 %v6078_v50, %v9340_v10  ;;  %v4256_v10 = vsel %vm2298_vm11, %v4252_v17, 0.0 }
0x1ada   : > { %v6086_v57 = vsel %vm1219_vm2, %v6084_v31, 0.0  ;;  %v6085_v40 = vadd.f32 %v6081_v28, %v9342_v61 }
0x1adb   : > { %6087 = vadd.xlane.f32.xlu0 %v6086_v57 }
0x1adc   : > { %v6089_v44 = vsel %vm2298_vm11, %v6085_v40, 0.0 }
0x1adf   : > { %6090 = vadd.xlane.f32.xlu0 %v6089_v44 }
0x1ae3   : > { %4254 = vadd.xlane.f32.xlu0 %v4253_v0 }
0x1ae7   : > { %4257 = vadd.xlane.f32.xlu0 %v4256_v10 }
0x1b68   : > { %v6088_v27 = vpop.xlane.xlu0 %6087 }
0x1b69   : > { %v6092_v11 = vmul.f32 0.015625, %v6088_v27 }
0x1b6b   : > { %v6094_v23 = vsub.f32 %v6084_v31, %v6092_v11 }
0x1b6c   : > { %v6091_v36 = vpop.xlane.xlu0 %6090 }
0x1b6d   : > { %v6093_v49 = vmul.f32 0.015625, %v6091_v36  ;;  %v6096_v61 = vmul.f32 %v6094_v23, %v6094_v23 }
0x1b6f   : > { %v6095_v3 = vsub.f32 %v6085_v40, %v6093_v49  ;;  %v6098_v24 = vsel %vm1219_vm2, %v6096_v61, 0.0 }
0x1b70   : > { %6099 = vadd.xlane.f32.xlu0 %v6098_v24  ;;  %v4255_v58 = vpop.xlane.xlu0 %4254 }
0x1b71   : > { %v4259_v22 = vmul.f32 0.015625, %v4255_v58  ;;  %v6097_v38 = vmul.f32 %v6095_v3, %v6095_v3 }
0x1b73   : > { %v4261_v20 = vadd.f32 1e-05, %v4259_v22  ;;  %v6101_v30 = vsel %vm2298_vm11, %v6097_v38, 0.0 }
0x1b74   : > { %6102 = vadd.xlane.f32.xlu0 %v6101_v30  ;;  %v4258_v29 = vpop.xlane.xlu0 %4257 }
0x1b75   : > { %7754 = vrsqrt.f32 %v4261_v20  ;;  %v4260_v53 = vmul.f32 0.015625, %v4258_v29 }
0x1b77   : > { %v4262_v12 = vadd.f32 1e-05, %v4260_v53 }
0x1b79   : > { %7756 = vrsqrt.f32 %v4262_v12 }
0x1b7f   : > { %v7755_v13 = vpop.eup %7754 }
0x1b80   : > { %v4265_v18 = vmul.f32 %v7755_v13, %v4249_v34 }
0x1b82   : > { %v4273_v33 = vmul.f32 %v6661_v45, %v4265_v18 }
0x1b83   : > { %v7757_v5 = vpop.eup %7756 }
0x1b84   : > { %v4281_v42 = vadd.f32 %v6662_v62, %v4273_v33  ;;  %v4266_v9 = vmul.f32 %v7757_v5, %v4250_v32 }
0x1b86   : > { %4283 = vst.msk [vmem:[%s9813_s9] sm:$0xff] %vm1219_vm2, %v4281_v42  ;;  %v4274_v7 = vmul.f32 %v6661_v45, %v4266_v9 }
0x1b88   : > { %v4282_v59 = vadd.f32 %v6662_v62, %v4274_v7 }
0x1b8a   : > { %4284 = vst.msk [vmem:[%s9813_s9 + $0x8] sm:$0x3] %vm2298_vm11, %v4282_v59 }
0x1bfd   : > { %v6100_v4 = vpop.xlane.xlu0 %6099 }
0x1bfe   : > { %v6104_v14 = vmul.f32 0.015625, %v6100_v4 }
0x1c00   : > { %v6106_v1 = vadd.f32 1e-05, %v6104_v14 }
0x1c01   : > { %v6103_v43 = vpop.xlane.xlu0 %6102 }
0x1c02   : > { %7758 = vrsqrt.f32 %v6106_v1  ;;  %v6105_v63 = vmul.f32 0.015625, %v6103_v43 }
0x1c04   : > { %v6107_v41 = vadd.f32 1e-05, %v6105_v63 }
0x1c06   : > { %7760 = vrsqrt.f32 %v6107_v41 }
0x1c0c   : > { %v7759_v6 = vpop.eup %7758 }
0x1c0d   : > { %v6110_v15 = vmul.f32 %v7759_v6, %v6094_v23 }
0x1c0f   : > { %v6112_v60 = vmul.f32 %v6661_v45, %v6110_v15 }
0x1c10   : > { %v7761_v54 = vpop.eup %7760 }
0x1c11   : > { %v6114_v25 = vadd.f32 %v6662_v62, %v6112_v60  ;;  %v6111_v37 = vmul.f32 %v7761_v54, %v6095_v3  ;;  %6121 = sbr.rel (%p6708_p12) target bundleno = 7521 (0x1d61), region = 112 }
0x1c13   : > { %6706 = vst.msk [vmem:[%s9813_s9 + $0x10] sm:$0xff] %vm1219_vm2, %v6114_v25  ;;  %v6113_v8 = vmul.f32 %v6661_v45, %v6111_v37  ;;  %v6709_v45 = vld [vmem:[#allocation6] ss:$0 sm:$0xff] (!%p6708_p12) }
0x1c15   : > { %v6115_v46 = vadd.f32 %v6662_v62, %v6113_v8  ;;  %v6710_v62 = vld [vmem:[#allocation7] ss:$0 sm:$0xff] (!%p6708_p12) }
0x1c17   : > { %6707 = vst.msk [vmem:[%s9813_s9 + $0x18] sm:$0x3] %vm2298_vm11, %v6115_v46 }
0x1c1e   : > { %v6122_v21 = vld [vmem:[%s9933_s17] sm:$0xff]  ;;  %v6124_v48 = vld [vmem:[%s9933_s17 + $0x10] sm:$0xff]  ;;  %v6123_v35 = vld [vmem:[%s9933_s17 + $0x8] sm:$0x3] }
0x1c1f   : > { %v6128_v55 = vsel %vm1219_vm2, %v6122_v21, 0.0  ;;  %v6134_v56 = vsel %vm1219_vm2, %v6124_v48, 0.0  ;;  %v6125_v16 = vld [vmem:[%s9933_s17 + $0x18] sm:$0x3]  ;;  %v6131_v47 = vsel %vm2298_vm11, %v6123_v35, 0.0 }
0x1c20   : > { %6129 = vadd.xlane.f32.xlu0 %v6128_v55  ;;  %6135 = vadd.xlane.f32.xlu1 %v6134_v56  ;;  %v6137_v52 = vsel %vm2298_vm11, %v6125_v16, 0.0 }
0x1c24   : > { %6132 = vadd.xlane.f32.xlu0 %v6131_v47  ;;  %6138 = vadd.xlane.f32.xlu1 %v6137_v52 }
0x1cad   : > { %v6130_v19 = vpop.xlane.xlu0 %6129  ;;  %v6136_v50 = vpop.xlane.xlu1 %6135 }
0x1cae   : > { %v6140_v51 = vmul.f32 0.015625, %v6130_v19  ;;  %v6142_v26 = vmul.f32 0.015625, %v6136_v50 }
0x1cb0   : > { %v6144_v28 = vsub.f32 %v6122_v21, %v6140_v51  ;;  %v6146_v31 = vsub.f32 %v6124_v48, %v6142_v26 }
0x1cb1   : > { %v6133_v34 = vpop.xlane.xlu0 %6132  ;;  %v6139_v2 = vpop.xlane.xlu1 %6138 }
0x1cb2   : > { %v6141_v57 = vmul.f32 0.015625, %v6133_v34  ;;  %v6143_v40 = vmul.f32 0.015625, %v6139_v2  ;;  %v6148_v32 = vmul.f32 %v6144_v28, %v6144_v28  ;;  %v6150_v44 = vmul.f32 %v6146_v31, %v6146_v31 }
0x1cb4   : > { %v6145_v39 = vsub.f32 %v6123_v35, %v6141_v57  ;;  %v6147_v0 = vsub.f32 %v6125_v16, %v6143_v40  ;;  %v6152_v17 = vsel %vm1219_vm2, %v6148_v32, 0.0  ;;  %v6158_v10 = vsel %vm1219_vm2, %v6150_v44, 0.0 }
0x1cb5   : > { %6153 = vadd.xlane.f32.xlu0 %v6152_v17 }
0x1cb6   : > { %v6149_v27 = vmul.f32 %v6145_v39, %v6145_v39  ;;  %v6151_v11 = vmul.f32 %v6147_v0, %v6147_v0 }
0x1cb8   : > { %v6155_v23 = vsel %vm2298_vm11, %v6149_v27, 0.0  ;;  %v6161_v36 = vsel %vm2298_vm11, %v6151_v11, 0.0 }
0x1cb9   : > { %6159 = vadd.xlane.f32.xlu0 %v6158_v10  ;;  %6156 = vadd.xlane.f32.xlu1 %v6155_v23 }
0x1cbd   : > { %6162 = vadd.xlane.f32.xlu1 %v6161_v36 }
0x1d42   : > { %v6154_v49 = vpop.xlane.xlu0 %6153 }
0x1d43   : > { %v6164_v61 = vmul.f32 0.015625, %v6154_v49 }
0x1d45   : > { %v6168_v3 = vadd.f32 1e-05, %v6164_v61 }
0x1d46   : > { %v6157_v24 = vpop.xlane.xlu1 %6156  ;;  %v6160_v58 = vpop.xlane.xlu0 %6159 }
0x1d47   : > { %7908 = vrsqrt.f32 %v6168_v3  ;;  %v6165_v22 = vmul.f32 0.015625, %v6157_v24  ;;  %v6166_v38 = vmul.f32 0.015625, %v6160_v58 }
0x1d49   : > { %v6169_v20 = vadd.f32 1e-05, %v6165_v22  ;;  %v6170_v30 = vadd.f32 1e-05, %v6166_v38 }
0x1d4a   : > { %v6163_v29 = vpop.xlane.xlu1 %6162 }
0x1d4b   : > { %7910 = vrsqrt.f32 %v6169_v20  ;;  %v6167_v53 = vmul.f32 0.015625, %v6163_v29 }
0x1d4c   : > { %7912 = vrsqrt.f32 %v6170_v30 }
0x1d4d   : > { %v6171_v12 = vadd.f32 1e-05, %v6167_v53 }
0x1d4f   : > { %7914 = vrsqrt.f32 %v6171_v12 }
0x1d51   : > { %v7909_v13 = vpop.eup %7908 }
0x1d52   : > { %v6176_v18 = vmul.f32 %v7909_v13, %v6144_v28 }
0x1d54   : > { %v6186_v33 = vmul.f32 %v6709_v45, %v6176_v18 }
0x1d55   : > { %v7911_v5 = vpop.eup %7910 }
0x1d56   : > { %v7913_v42 = vpop.eup %7912  ;;  %v6196_v9 = vadd.f32 %v6710_v62, %v6186_v33  ;;  %v6177_v7 = vmul.f32 %v7911_v5, %v6145_v39 }
0x1d57   : > { %v6178_v59 = vmul.f32 %v7913_v42, %v6146_v31 }
0x1d58   : > { %6200 = vst.msk [vmem:[%s9933_s17] sm:$0xff] %vm1219_vm2, %v6196_v9  ;;  %v6187_v4 = vmul.f32 %v6709_v45, %v6177_v7 }
0x1d59   : > { %v7915_v14 = vpop.eup %7914  ;;  %v6188_v1 = vmul.f32 %v6709_v45, %v6178_v59 }
0x1d5a   : > { %v6197_v43 = vadd.f32 %v6710_v62, %v6187_v4  ;;  %v6179_v63 = vmul.f32 %v7915_v14, %v6147_v0 }
0x1d5b   : > { %v6198_v41 = vadd.f32 %v6710_v62, %v6188_v1 }
0x1d5c   : > { %6201 = vst.msk [vmem:[%s9933_s17 + $0x8] sm:$0x3] %vm2298_vm11, %v6197_v43  ;;  %v6189_v6 = vmul.f32 %v6709_v45, %v6179_v63 }
0x1d5d   : > { %6202 = vst.msk [vmem:[%s9933_s17 + $0x10] sm:$0xff] %vm1219_vm2, %v6198_v41 }
0x1d5e   : > { %v6199_v15 = vadd.f32 %v6710_v62, %v6189_v6 }
0x1d60   : > { %6203 = vst.msk [vmem:[%s9933_s17 + $0x18] sm:$0x3] %vm2298_vm11, %v6199_v15 }
0x1d61 PF: > { %s9934_s19 = sld [smem:[#allocation12_spill]] }
0x1d67   : > { %s30_s24 = sadd.s32 1, %s9934_s19  }
0x1d68   : > { %p27_p13 = scmp.ge.s32.totalorder %s30_s24, 4  }
0x1d6a   :  { %29 = sbr.rel (!%p27_p13) target bundleno = 18 (0x12), region = 173 }
0x1d71   :  { %6215 = vsyncpa [#allocation3], 1 }
0x1d72   :  { %6217 = vsyncpa [#allocation3 + $0x1], 1 }
0x1d73   :  { %6218 = vsyncpa [#allocation5], 1 }
0x1d74   :  { %6219 = vsyncpa [#allocation8], 1 }

// kernel: stock_price_transformer.3
= control target key start
LH: loop header
LB: loop body
LE: loop exit
PB: predicated region body
PF: predicated region fallthrough
CT: control target
= control target key end

     0   :  { %s11850_s0 = inlined_call_operand.vmem [shape: f32[2,8,1], index: 0, kind: input, shape index: {}]   ;;  %s11851_s1 = inlined_call_operand.vmem [shape: f32[1,64], index: 1, kind: input, shape index: {}]   ;;  %s11852_s2 = inlined_call_operand.vmem [shape: f32[1,64], index: 2, kind: input, shape index: {}]   ;;  %s11853_s3 = inlined_call_operand.vmem [shape: f32[2,10,64], index: 3, kind: input, shape index: {}]   ;;  %s11854_s4 = inlined_call_operand.vmem [shape: bf16[6,64,192], index: 4, kind: input, shape index: {}]   ;;  %s11855_s5 = inlined_call_operand.vmem [shape: f32[6,1,192], index: 5, kind: input, shape index: {}]   ;;  %s11856_s6 = inlined_call_operand.vmem [shape: bf16[6,64,64], index: 6, kind: input, shape index: {}]   ;;  %s11857_s7 = inlined_call_operand.vmem [shape: f32[6,1,64], index: 7, kind: input, shape index: {}]   ;;  %s11858_s8 = inlined_call_operand.vmem [shape: f32[6,1,64], index: 8, kind: input, shape index: {}]   ;;  %s11859_s9 = inlined_call_operand.vmem [shape: f32[6,1,64], index: 9, kind: input, shape index: {}]   ;;  %s11860_s10 = inlined_call_operand.vmem [shape: bf16[6,64,64], index: 10, kind: input, shape index: {}]   ;;  %s11861_s11 = inlined_call_operand.vmem [shape: f32[6,1,64], index: 11, kind: input, shape index: {}]   ;;  %s11862_s12 = inlined_call_operand.vmem [shape: bf16[6,64,128], index: 12, kind: input, shape index: {}]   ;;  %s11863_s13 = inlined_call_operand.vmem [shape: f32[6,1,128], index: 13, kind: input, shape index: {}]   ;;  %s11864_s14 = inlined_call_operand.vmem [shape: bf16[6,64,64], index: 14, kind: input, shape index: {}]   ;;  %s11865_s15 = inlined_call_operand.vmem [shape: f32[6,1,64], index: 15, kind: input, shape index: {}]   ;;  %s11866_s16 = inlined_call_operand.vmem [shape: f32[6,1,64], index: 16, kind: input, shape index: {}]   ;;  %s11867_s17 = inlined_call_operand.vmem [shape: f32[6,1,64], index: 17, kind: input, shape index: {}]   ;;  %s11868_s18 = inlined_call_operand.vmem [shape: bf16[6,64,2048], index: 18, kind: input, shape index: {}]   ;;  %s11869_s19 = inlined_call_operand.vmem [shape: f32[6,1,2048], index: 19, kind: input, shape index: {}]   ;;  %s11870_s20 = inlined_call_operand.vmem [shape: bf16[6,2048,64], index: 20, kind: input, shape index: {}]   ;;  %s11871_s21 = inlined_call_operand.vmem [shape: f32[6,1,64], index: 21, kind: input, shape index: {}]   ;;  %s11872_s22 = inlined_call_operand.vmem [shape: f32[6,1,64], index: 22, kind: input, shape index: {}]   ;;  %s11873_s23 = inlined_call_operand.vmem [shape: f32[6,1,64], index: 23, kind: input, shape index: {}]   ;;  %s11874_s24 = inlined_call_operand.vmem [shape: f32[1,64], index: 24, kind: input, shape index: {}]   ;;  %s11875_s25 = inlined_call_operand.vmem [shape: f32[1,64], index: 25, kind: input, shape index: {}]   ;;  %s11876_s26 = inlined_call_operand.vmem [shape: f32[1,64], index: 26, kind: input, shape index: {}]   ;;  %s11877_s27 = inlined_call_operand.<no memory space> [shape: f32[1,1], index: 27, kind: input, shape index: {}]   ;;  %s11878_s28 = inlined_call_operand.vmem [shape: f32[2,8,1], index: 28, kind: output, shape index: {}]  }
   0x1   :  { %11961 = sst [smem:[#allocation61_spill]] %s11850_s0  ;;  %v33_v0 = vstv %s11877_s27 }
   0x2   :  { %11962 = sst [smem:[#allocation62_spill]] %s11851_s1  ;;  %34 = vst [vmem:[#allocation3] sm:$0x1] %v33_v0 }
   0x3   :  { %11963 = sst [smem:[#allocation63_spill]] %s11852_s2 }
   0x4   :  { %11964 = sst [smem:[#allocation64_spill]] %s11853_s3 }
   0x5   :  { %11965 = sst [smem:[#allocation65_spill]] %s11854_s4 }
   0x6   :  { %11966 = sst [smem:[#allocation66_spill]] %s11855_s5 }
   0x7   :  { %11967 = sst [smem:[#allocation67_spill]] %s11856_s6 }
   0x8   :  { %11968 = sst [smem:[#allocation68_spill]] %s11857_s7 }
   0x9   :  { %11969 = sst [smem:[#allocation69_spill]] %s11858_s8 }
   0xa   :  { %11970 = sst [smem:[#allocation70_spill]] %s11859_s9  ;;  %s10336_s9 = smov 0  }
   0xb   :  { %11971 = sst [smem:[#allocation71_spill]] %s11860_s10 }
   0xc   :  { %11972 = sst [smem:[#allocation72_spill]] %s11861_s11 }
   0xd   :  { %11973 = sst [smem:[#allocation73_spill]] %s11862_s12 }
   0xe   :  { %11974 = sst [smem:[#allocation74_spill]] %s11863_s13 }
   0xf   :  { %11975 = sst [smem:[#allocation75_spill]] %s11864_s14 }
  0x10   :  { %11976 = sst [smem:[#allocation76_spill]] %s11865_s15 }
  0x11   :  { %11977 = sst [smem:[#allocation77_spill]] %s11866_s16 }
  0x12   :  { %11978 = sst [smem:[#allocation78_spill]] %s11867_s17 }
  0x13   :  { %11979 = sst [smem:[#allocation79_spill]] %s11868_s18 }
  0x14   :  { %11980 = sst [smem:[#allocation80_spill]] %s11874_s24 }
  0x15   :  { %11981 = sst [smem:[#allocation81_spill]] %s11875_s25 }
  0x16   :  { %11982 = sst [smem:[#allocation82_spill]] %s11876_s26 }
  0x17   :  { %11983 = sst [smem:[#allocation83_spill]] %s11878_s28 }
  0x18 LB: > { %11984 = sst [smem:[#allocation4_spill]] %s10173_s9  ;;  %s10342_s30 = sadd.s32 4294967295, %s10173_s9   ;;  %s10173_s9 = sphi %s10336_s9, %s40_s9  }
  0x19   : > { %p8426_p0 = scmp.ge.s32.totalorder %s10173_s9, 1  ;;  %p925_p1 = scmp.lt.s32.totalorder %s10173_s9, 7 }
  0x1b   : > { %p926_p2 = pnand %p8426_p0, %p925_p1 }
  0x1d   : > { %929 = sbr.rel (%p926_p2) target bundleno = 12333 (0x302d), region = 132 }
  0x24   : > { %p1065_p3 = scmp.lt.s32.totalorder %s10342_s30, 5  ;;  %s11985_s11 = sld [smem:[#allocation65_spill]] }
  0x25   : > { %s11987_s12 = sld [smem:[#allocation66_spill]]  ;;  %s11988_s9 = sld [smem:[#allocation68_spill]] }
  0x26   : > { %s10348_s27 = scalar_select %p1065_p3, %s10342_s30, 5 }
  0x27   : > { %s11990_s24 = sld [smem:[#allocation67_spill]]  ;;  %s11994_s7 = sld [smem:[#allocation70_spill]] }
  0x28   : > { %s8787_s3 = sshll.u32 %s10348_s27, 6  ;;  %s8429_s6 = sshll.u32 %s10348_s27, 1 }
  0x29   : > { %s8788_s4 = sshll.u32 %s10348_s27, 5  ;;  %s11996_s5 = sld [smem:[#allocation71_spill]] }
  0x2a   : > { %s10355_s29 = scalar_lea.vmem %s11985_s11, %s8787_s3  ;;  %s11992_s11 = sld [smem:[#allocation69_spill]] }
  0x2b   : > { %11986 = sst [smem:[#allocation5_spill]] %s10355_s29  ;;  %s10360_s1 = scalar_lea.vmem %s11987_s12, %s8429_s6 }
  0x2c   : > { %s10367_s28 = scalar_lea.vmem %s11988_s9, %s10348_s27  ;;  %s11997_s26 = sld [smem:[#allocation72_spill]] }
  0x2d   : > { %11989 = sst [smem:[#allocation6_spill]] %s10367_s28  ;;  %s10372_s10 = scalar_lea.vmem %s11990_s24, %s8788_s4 }
  0x2e   : > { %11991 = sst [smem:[#allocation7_spill]] %s10372_s10  ;;  %s10384_s12 = scalar_lea.vmem %s11994_s7, %s10348_s27 }
  0x2f   : > { %11995 = sst [smem:[#allocation9_spill]] %s10384_s12  ;;  %s10389_s28 = scalar_lea.vmem %s11996_s5, %s8788_s4 }
  0x30   : > { %s10378_s29 = scalar_lea.vmem %s11992_s11, %s10348_s27  ;;  %s11999_s11 = sld [smem:[#allocation73_spill]] }
  0x31   : > { %11993 = sst [smem:[#allocation8_spill]] %s10378_s29  ;;  %s12000_s13 = sld [smem:[#allocation74_spill]] }
  0x32   : > { %s10395_s10 = scalar_lea.vmem %s11997_s26, %s10348_s27  ;;  %s12001_s14 = sld [smem:[#allocation75_spill]] }
  0x33   : > { %11998 = sst [smem:[#allocation10_spill]] %s10395_s10  ;;  %s12002_s15 = sld [smem:[#allocation76_spill]] }
  0x34   : > { %s12003_s16 = sld [smem:[#allocation77_spill]]  ;;  %s12004_s17 = sld [smem:[#allocation78_spill]] }
  0x35   : > { %s8792_s2 = sshll.u32 %s10348_s27, 9  ;;  %s12006_s18 = sld [smem:[#allocation79_spill]] }
  0x36   : > { %s10400_s29 = scalar_lea.vmem %s11999_s11, %s8788_s4  ;;  %s8440_s9 = sshll.u32 %s10348_s27, 4 }
  0x37   : > { %s10406_s7 = scalar_lea.vmem %s12000_s13, %s10348_s27  ;;  %s8793_s10 = sshll.u32 %s10348_s27, 10 }
  0x38   : > { %s10411_s5 = scalar_lea.vmem %s12001_s14, %s8788_s4  ;;  %s10441_s14 = scalar_lea.vmem %s11869_s19, %s8440_s9 }
  0x39   : > { %s10417_s24 = scalar_lea.vmem %s12002_s15, %s10348_s27  ;;  %p8443_p4 = scmp.ne.s32.totalorder %s10342_s30, 0 }
  0x3a   : > { %s10423_s3 = scalar_lea.vmem %s12003_s16, %s10348_s27  ;;  %s10429_s6 = scalar_lea.vmem %s12004_s17, %s10348_s27  ;;  %v10175_v2 = vmov (!%p8443_p4), 0   ;;  %vm1176_vm0 = vcmask (!%p8443_p4), 523264  }
  0x3b   : > { %12005 = sst [smem:[#allocation11_spill]] %s10429_s6  ;;  %s10435_s4 = scalar_lea.vmem %s12006_s18, %s8792_s2  ;;  %9699 = vset.pattern.permute.xlu0 (!%p8443_p4), %v10175_v2 }
  0x3c   : > { %s10447_s16 = scalar_lea.vmem %s11870_s20, %s8793_s10  ;;  %s10453_s17 = scalar_lea.vmem %s11871_s21, %s10348_s27 }
  0x3d   : > { %1145 = sbr.rel (%p8443_p4) target bundleno = 205 (0xcd), region = 136  ;;  %s12007_s25 = sld [smem:[#allocation61_spill]] (!%p8443_p4) }
  0x3e   : > { %s12008_s13 = sld [smem:[#allocation62_spill]] (!%p8443_p4)  ;;  %s12009_s2 = sld [smem:[#allocation63_spill]] (!%p8443_p4) }
  0x43   : > { %v1146_v1 = vld [vmem:[%s12007_s25] sm:$0xff] (!%p8443_p4)  ;;  %v1147_v3 = vld [vmem:[%s12007_s25 + $0x8] sm:$0xff] (!%p8443_p4) }
  0x44   : > { %1151 = vperm.xlu0 %9699, %v1146_v1   ;;  %v8444_v4 = vld [vmem:[%s12008_s13] ss:$0 sm:$0xff] }
  0x45   : > { %v8445_v5 = vld [vmem:[%s12009_s2] ss:$0 sm:$0xff] }
  0x48   : > { %1156 = vperm.xlu0 %9699, %v1147_v3  }
  0xc3   : > { %v1152_v6 = vpop.permute.xlu0 %1151 }
  0xc4   : > { %v1165_v7 = vmul.f32 %v8444_v4, %v1152_v6 }
  0xc6   : > { %v1174_v8 = vadd.f32 %v8445_v5, %v1165_v7 }
  0xc7   : > { %v1157_v9 = vpop.permute.xlu0 %1156 }
  0xc8   : > { %1177 = vst.msk [vmem:[#allocation2] sm:$0xff] %vm1176_vm0, %v1174_v8  ;;  %v1166_v10 = vmul.f32 %v8444_v4, %v1157_v9 }
  0xca   : > { %v1175_v11 = vadd.f32 %v8445_v5, %v1166_v10 }
  0xcc   : > { %1178 = vst.msk [vmem:[#allocation2 + $0x8] sm:$0xff] %vm1176_vm0, %v1175_v11 }
  0xcd PF: > { %s12010_s12 = sld [smem:[#allocation5_spill]]  ;;  %v11904_v14 = vmov 0   ;;  %vm1608_vm1 = vcmask 523264   ;;  %v11902_v23 = vmov 0.0   ;;  %v1558_v24 = vlaneseq  ;;  %v1187_v27 = vld [vmem:[%s10360_s1] sm:$0x3] }
  0xce   : > { %1644 = vmatprep.mubr.bf16.mxu0 %v11904_v14  ;;  %9278 = vmatprep.subr.mxu1 %v11902_v23  ;;  %vm10178_vm2 = vmmov 0   ;;  %s10179_s15 = smov 48   ;;  %s10180_s10 = smov 64   ;;  %vm1656_vm3 = vcmask 130048   ;;  %vm1732_vm4 = vcmask 64512   ;;  %vm2783_vm6 = vcmask 80896  }
  0xcf   : > { %v10485_v21 = vld [vmem:[#allocation2] sm:$0xff]  ;;  %v10492_v25 = vshrl.u32 %v1558_v24, 7  ;;  %9280 = vmatprep.mubr.msk.f32.mxu1 %vm10178_vm2, %v11902_v23  ;;  %s11898_s26 = smov 112   ;;  %s11896_s1 = smov 96   ;;  %vm10644_vm5 = vmpackc.low %vm1656_vm3, %vm1656_vm3  ;;  %vm2801_vm7 = vcmask 1041408   ;;  %vm10187_vm8 = vmmov 1  }
  0xd0   : > { %v1556_v22 = vpack.c.bf16 %v10485_v21, %v10485_v21  ;;  %s12011_s0 = sld [smem:[#allocation7_spill]]  ;;  %s11894_s11 = smov 80   ;;  %vm10680_vm9 = vmpackc.low %vm2801_vm7, %vm10187_vm8 }
  0xd1   : > { %v10499_v26 = vsub.s32 0, %v10492_v25  ;;  %v10515_v34 = vsub.s32 1, %v10492_v25  ;;  %s11892_s13 = smov 32   ;;  %s11890_s18 = smov 16  }
  0xd2   : > { %s12012_s6 = sld [smem:[#allocation6_spill]]  ;;  %s12013_s8 = sld [smem:[#allocation64_spill]] }
  0xd3   : > { %v9770_v12 = vld [vmem:[%s12010_s12 + $0x4] ss:$8 sps:$4 sm:$0xff]   ;;  %v9772_v13 = vld [vmem:[%s12010_s12] ss:$8 sps:$4 sm:$0xff]   ;;  %v9773_v15 = vld [vmem:[%s12010_s12 + $0x14] ss:$8 sps:$4 sm:$0xff]   ;;  %v10503_v28 = vrot.slane %v1187_v27, %v10499_v26  ;;  %v10518_v35 = vrot.slane %v1187_v27, %v10515_v34 }
  0xd4   : > { %1612 = vmatprep.subr.bf16.mxu0 %v9770_v12  ;;  %v9775_v16 = vld [vmem:[%s12010_s12 + $0x10] ss:$8 sps:$4 sm:$0xff]   ;;  %v9776_v17 = vld [vmem:[%s12010_s12 + $0x24] ss:$8 sps:$4 sm:$0xff]   ;;  %v9778_v18 = vld [vmem:[%s12010_s12 + $0x20] ss:$8 sps:$4 sm:$0xff]  }
  0xd5   : > { %1613 = vmatpush1.bf16.msra.mxu0 %v9772_v13  ;;  %v9779_v19 = vld [vmem:[%s12010_s12 + $0x34] ss:$8 sps:$4 sm:$0xff]   ;;  %v9781_v20 = vld [vmem:[%s12010_s12 + $0x30] ss:$8 sps:$4 sm:$0xff]   ;;  %s12015_s9 = sld [smem:[#allocation9_spill]]  ;;  %s12022_s2 = smov 32  }
  0xd6   : > { %1614 = vmatprep.subr.bf16.mxu0 %v9773_v15  ;;  %v9782_v50 = vld [vmem:[%s12011_s0] sm:$0xff]   ;;  %v9783_v4 = vld [vmem:[%s12011_s0 + $0x8] sm:$0xff]   ;;  %p8777_p5 = scmp.ne.s32.totalorder %s10342_s30, 5 }
  0xd7   : > { %vm8161_vm10 = vcmask (!%p8777_p5), 7168  }
  0xd9   : > { %1615 = vmatpush1.bf16.msra.mxu0 %v9775_v16 }
  0xda   : > { %1616 = vmatprep.subr.bf16.mxu0 %v9776_v17 }
  0xdd   : > { %1617 = vmatpush1.bf16.msra.mxu0 %v9778_v18 }
  0xde   : > { %1618 = vmatprep.subr.bf16.mxu0 %v9779_v19 }
  0xe1   : > { %1619 = vmatpush1.bf16.msra.mxu0 %v9781_v20 }
  0xe2   : > { %9304 = vmatprep.subr.bf16.mxu0 %v11902_v23 }
  0xe4   : > { %8454 = vmatmul.mubr.msk.bf16.vlgmr.msra.gmra.mrb[0].mxu0 %vm1608_vm1, %v1556_v22 }
  0xe5   : > { %9306 = vmatprep.mubr.msk.bf16.mxu0 %vm10178_vm2, %v11902_v23  ;;  %9305 = vmatpush3.bf16.msra.mxu0 %v9782_v50 }
  0xe6   : > { %9315 = vmatprep.subr.mxu0 %v11902_v23 }
 0x1b7   : > { %v1646_v29 = vpop.f32.mrb[0].mxu0 }
 0x1b8   : > { %v10506_v30 = vadd.f32 %v1646_v29, %v10503_v28  ;;  %v1648_v31 = vpop.f32.mrb[1].mxu0 }
 0x1b9   : > { %v1650_v32 = vpop.f32.mrb[2].mxu0  ;;  %v10523_v37 = vadd.f32 %v1648_v31, %v10518_v35 }
 0x1ba   : > { %v1651_v33 = vpop.f32.mrb[3].mxu0  ;;  %1820 = vrot.lane.b32.xlu1 %v10506_v30, %s10179_s15  ;;  %1654 = vrot.lane.b32.xlu0 %v10506_v30, %s10180_s10 }
 0x1be   : > { %1818 = vrot.lane.b32.xlu1 %v10506_v30, %s11898_s26 }
 0x22c   : > { %v1655_v36 = vpop.permute.xlu0 %1654  ;;  %v1821_v45 = vpop.permute.xlu1 %1820 }
 0x22d   : > { %9279 = vmatpush3.xpose.msk.msra.mxu1 %vm1656_vm3, %v1655_v36 }
 0x22e   : > { %9283 = vmatprep.subr.mxu1 %v11902_v23 }
 0x230   : > { %9281 = vmatmul.mubr.msk.f32.vlgmr.msra.gmra.mrb[0].mxu1 %vm1656_vm3, %v10506_v30  ;;  %v1819_v48 = vpop.permute.xlu1 %1818 }
 0x231   : > { %9284 = vmatpush3.msra.mxu1 %v10523_v37  ;;  %9285 = vmatprep.mubr.msk.f32.mxu1 %vm10178_vm2, %v11902_v23 }
 0x232   : > { %9288 = vmatprep.subr.mxu1 %v11902_v23 }
 0x303   : > { %v1727_v38 = vpop.f32.mrb[0].mxu1 }
 0x304   : > { %v1731_v39 = vmul.f32 0.25, %v1727_v38  ;;  %v9282_v40 = vpop.f32.mrb[1].mxu1 }
 0x306   : > { %v1733_v41 = vsel %vm1732_vm4, %v1731_v39, -inf }
 0x307   : > { %1734 = vmax.xlane.f32.xlu0 %v1733_v41  ;;  %v9784_v41 = vld [vmem:[%s12011_s0 + $0x10] sm:$0xff]  }
 0x31d   : > { %1907 = vrot.lane.b32.xlu0 %v10523_v37, %s11898_s26 }
 0x321   : > { %2084 = vrot.lane.b32.xlu0 %v10506_v30, %s11896_s1 }
 0x394   : > { %v1735_v42 = vpop.xlane.xlu0 %1734 }
 0x395   : > { %v1736_v43 = vsub.f32 %v1731_v39, %v1735_v42 }
 0x397   : > { %v1737_v44 = vmul.f32 1.442695, %v1736_v43 }
 0x398   : > { %v1908_v49 = vpop.permute.xlu0 %1907 }
 0x399   : > { %9926 = vpow2.f32 %v1737_v44 }
 0x39c   : > { %v2085_v51 = vpop.permute.xlu0 %2084 }
 0x3a3   : > { %v9927_v46 = vpop.eup %9926 }
 0x3a4   : > { %9286 = vmatmul.mubr.msk.f32.vlgmr.msra.gmra.mrb[2].mxu1 %vm1732_vm4, %v9927_v46  ;;  %v1739_v47 = vsel %vm1732_vm4, %v9927_v46, 0.0 }
 0x3a5   : > { %9289 = vmatpush3.xpose.msk.msra.mxu1 %vm1656_vm3, %v1821_v45  ;;  %1740 = vadd.xlane.f32.xlu0 %v1739_v47 }
 0x3a6   : > { %9290 = vmatprep.mubr.msk.f32.mxu1 %vm10178_vm2, %v11902_v23  ;;  %9293 = vmatprep.subr.mxu1 %v11902_v23 }
 0x3a8   : > { %9291 = vmatmul.mubr.msk.f32.vlgmr.msra.gmra.mrb[4].mxu1 %vm1656_vm3, %v1819_v48 }
 0x3a9   : > { %9294 = vmatpush3.msra.mxu1 %v1908_v49  ;;  %9295 = vmatprep.mubr.msk.f32.mxu1 %vm10178_vm2, %v11902_v23 }
 0x3aa   : > { %9298 = vmatprep.subr.bf16.mxu1 %v11902_v23 }
 0x3bb   : > { %2172 = vrot.lane.b32.xlu0 %v10523_v37, %s11896_s1 }
 0x3bf   : > { %2301 = vrot.lane.b32.xlu0 %v10506_v30, %s11894_s11 }
 0x432   : > { %v1741_v52 = vpop.xlane.xlu0 %1740 }
 0x433   : > { %9928 = vrcp.f32 %v1741_v52 }
 0x436   : > { %v2173_v59 = vpop.permute.xlu0 %2172 }
 0x43d   : > { %v9929_v53 = vpop.eup %9928 }
 0x477   : > { %v1811_v54 = vpop.f32.mrb[2].mxu1 }
 0x478   : > { %v1816_v55 = vmul.f32 %v9929_v53, %v1811_v54  ;;  %v9287_v56 = vpop.f32.mrb[3].mxu1 }
 0x47a   : > { %v1817_v57 = vpack.c.bf16 %v1816_v55, %v1816_v55 }
 0x47b   : > { %v1892_v58 = vpop.f32.mrb[4].mxu1 }
 0x47c   : > { %v1896_v60 = vmul.f32 0.25, %v1892_v58  ;;  %v9292_v61 = vpop.f32.mrb[5].mxu1  ;;  %9307 = vmatmul.mubr.msk.bf16.vlgmr.msra.gmra.mrb[4].mxu0 %vm1656_vm3, %v1817_v57 }
 0x47d   : > { %9316 = vmatpush3.msra.mxu0 %v2173_v59  ;;  %9317 = vmatprep.mubr.msk.f32.mxu0 %vm10178_vm2, %v11902_v23 }
 0x47e   : > { %v1897_v62 = vsel %vm1732_vm4, %v1896_v60, -inf  ;;  %9326 = vmatprep.subr.mxu0 %v11902_v23 }
 0x47f   : > { %1898 = vmax.xlane.f32.xlu1 %v1897_v62  ;;  %v9785_v62 = vld [vmem:[%s12011_s0 + $0x18] sm:$0xff]  }
 0x50c   : > { %v1899_v63 = vpop.xlane.xlu1 %1898 }
 0x50d   : > { %v1900_v0 = vsub.f32 %v1896_v60, %v1899_v63 }
 0x50f   : > { %v1901_v1 = vmul.f32 1.442695, %v1900_v0 }
 0x511   : > { %9930 = vpow2.f32 %v1901_v1 }
 0x51b   : > { %v9931_v2 = vpop.eup %9930 }
 0x51c   : > { %9296 = vmatmul.mubr.msk.f32.vlgmr.msra.gmra.mrb[6].mxu1 %vm1732_vm4, %v9931_v2  ;;  %v1903_v3 = vsel %vm1732_vm4, %v9931_v2, 0.0 }
 0x51d   : > { %1904 = vadd.xlane.f32.xlu1 %v1903_v3  ;;  %9300 = vmatprep.mubr.msk.bf16.mxu1 %vm10178_vm2, %v11902_v23 }
 0x51e   : > { %9299 = vmatpush3.bf16.msra.mxu1 %v9783_v4 }
 0x51f   : > { %9310 = vmatprep.subr.mxu1 %v11902_v23 }
 0x52e   : > { %2086 = vrot.lane.b32.xlu1 %v10506_v30, %s11892_s13  ;;  %s12016_s13 = sld [smem:[#allocation10_spill]] }
 0x54f   : > { %v2078_v5 = vpop.f32.mrb[4].mxu0 }
 0x550   : > { %v9308_v6 = vpop.f32.mrb[5].mxu0 }
 0x551   : > { %v2081_v7 = vpop.f32.mrb[6].mxu0 }
 0x552   : > { %v9309_v8 = vpop.f32.mrb[7].mxu0 }
 0x5aa   : > { %v1905_v9 = vpop.xlane.xlu1 %1904 }
 0x5ab   : > { %9932 = vrcp.f32 %v1905_v9 }
 0x5ae   : > { %v2087_v16 = vpop.permute.xlu1 %2086 }
 0x5b5   : > { %v9933_v10 = vpop.eup %9932 }
 0x5ef   : > { %v1979_v11 = vpop.f32.mrb[6].mxu1 }
 0x5f0   : > { %v1984_v12 = vmul.f32 %v9933_v10, %v1979_v11  ;;  %v9297_v13 = vpop.f32.mrb[7].mxu1 }
 0x5f2   : > { %v1985_v15 = vpack.c.bf16 %v1984_v12, %v1984_v12 }
 0x5f4   : > { %9301 = vmatmul.mubr.msk.bf16.vlgmr.msra.gmra.mrb[8].mxu1 %vm1656_vm3, %v1985_v15  ;;  %v9786_v15 = vld [vmem:[%s10400_s29] sm:$0xff]  }
 0x5f5   : > { %9311 = vmatpush3.xpose.msk.msra.mxu1 %vm1656_vm3, %v2087_v16  ;;  %9312 = vmatprep.mubr.msk.f32.mxu1 %vm10178_vm2, %v11902_v23  ;;  %v9787_v16 = vld [vmem:[%s10400_s29 + $0x8] sm:$0xff]  }
 0x5f6   : > { %9320 = vmatprep.subr.bf16.mxu1 %v11902_v23 }
 0x5fc   : > { %9313 = vmatmul.mubr.msk.f32.vlgmr.msra.gmra.mrb[12].mxu1 %vm1656_vm3, %v2085_v51 }
 0x5fd   : > { %9322 = vmatprep.mubr.msk.bf16.mxu1 %vm10178_vm2, %v11902_v23  ;;  %9321 = vmatpush3.bf16.msra.mxu1 %v9784_v41 }
 0x5fe   : > { %9336 = vmatprep.subr.bf16.mxu1 %v11902_v23 }
 0x6c7   : > { %v2029_v17 = vpop.f32.mrb[8].mxu1 }
 0x6c8   : > { %v2079_v18 = vadd.f32 %v2078_v5, %v2029_v17  ;;  %v9302_v19 = vpop.f32.mrb[9].mxu1  ;;  %v8475_v5 = vld [vmem:[%s12012_s6] ss:$0 sm:$0xff]  ;;  %v9788_v17 = vld [vmem:[%s10400_s29 + $0x10] sm:$0xff]  }
 0x6c9   : > { %v2032_v20 = vpop.f32.mrb[10].mxu1 }
 0x6ca   : > { %v9303_v22 = vpop.f32.mrb[11].mxu1 }
 0x6cf   : > { %v2158_v24 = vpop.f32.mrb[12].mxu1 }
 0x6d0   : > { %v2162_v27 = vmul.f32 0.25, %v2158_v24  ;;  %v9314_v29 = vpop.f32.mrb[13].mxu1  ;;  %v9789_v24 = vld [vmem:[%s10400_s29 + $0x18] sm:$0xff]  }
 0x6d1   : > { %v1555_v29 = vld [vmem:[%s12013_s8 + $0x8] sm:$0x3] }
 0x6d2   : > { %v2163_v31 = vsel %vm1732_vm4, %v2162_v27, -inf }
 0x6d3   : > { %2164 = vmax.xlane.f32.xlu1 %v2163_v31 }
 0x6e4   : > { %2303 = vrot.lane.b32.xlu1 %v10506_v30, %s11890_s18  ;;  %v2302_v30 = vpop.permute.xlu0 %2301  ;;  %s12021_s18 = smov 80  }
 0x6e8   : > { %2389 = vrot.lane.b32.xlu1 %v10523_v37, %s11894_s11  ;;  %s12014_s11 = sld [smem:[#allocation8_spill]] }
 0x760   : > { %v2165_v32 = vpop.xlane.xlu1 %2164 }
 0x761   : > { %v2166_v33 = vsub.f32 %v2162_v27, %v2165_v32  ;;  %v1554_v27 = vld [vmem:[%s12013_s8] sm:$0xff] }
 0x762   : > { %v2628_v31 = vpack.c.bf16 %v1555_v29, %v1554_v27  ;;  %v9790_v32 = vld [vmem:[%s10389_s28] sm:$0xff]  }
 0x763   : > { %v2167_v36 = vmul.f32 1.442695, %v2166_v33  ;;  %v9791_v33 = vld [vmem:[%s10389_s28 + $0x8] sm:$0xff]   ;;  %v9794_v27 = vld [vmem:[%s10411_s5] sm:$0xff]  }
 0x764   : > { %v2304_v38 = vpop.permute.xlu1 %2303 }
 0x765   : > { %9934 = vpow2.f32 %v2167_v36  ;;  %v9792_v36 = vld [vmem:[%s10389_s28 + $0x10] sm:$0xff]  }
 0x768   : > { %v2390_v37 = vpop.permute.xlu1 %2389 }
 0x76f   : > { %v9935_v39 = vpop.eup %9934 }
 0x770   : > { %9318 = vmatmul.mubr.msk.f32.vlgmr.msra.gmra.mrb[8].mxu0 %vm1732_vm4, %v9935_v39  ;;  %v2169_v40 = vsel %vm1732_vm4, %v9935_v39, 0.0  ;;  %v11900_v39 = vmov 0.0|0.0  }
 0x771   : > { %9327 = vmatpush3.xpose.msk.msra.mxu0 %vm1656_vm3, %v2304_v38  ;;  %2170 = vadd.xlane.f32.xlu1 %v2169_v40  ;;  %v9793_v38 = vld [vmem:[%s10389_s28 + $0x18] sm:$0xff]  }
 0x772   : > { %9328 = vmatprep.mubr.msk.f32.mxu0 %vm10178_vm2, %v11902_v23  ;;  %9331 = vmatprep.subr.mxu0 %v11902_v23 }
 0x774   : > { %9329 = vmatmul.mubr.msk.f32.vlgmr.msra.gmra.mrb[10].mxu0 %vm1656_vm3, %v2302_v30 }
 0x775   : > { %9332 = vmatpush3.msra.mxu0 %v2390_v37  ;;  %9333 = vmatprep.mubr.msk.f32.mxu0 %vm10178_vm2, %v11902_v23 }
 0x776   : > { %9342 = vmatprep.subr.bf16.mxu0 %v11902_v23 }
 0x7fe   : > { %v2171_v42 = vpop.xlane.xlu1 %2170 }
 0x7ff   : > { %9936 = vrcp.f32 %v2171_v42  ;;  %v8476_v42 = vld [vmem:[%s12014_s11] ss:$0 sm:$0xff] }
 0x809   : > { %v9937_v43 = vpop.eup %9936 }
 0x843   : > { %v2244_v44 = vpop.f32.mrb[8].mxu0 }
 0x844   : > { %v2249_v45 = vmul.f32 %v9937_v43, %v2244_v44  ;;  %v9319_v46 = vpop.f32.mrb[9].mxu0  ;;  %v8477_v44 = vld [vmem:[%s12015_s9] ss:$0 sm:$0xff] }
 0x846   : > { %v2250_v47 = vpack.c.bf16 %v2249_v45, %v2249_v45 }
 0x847   : > { %v2375_v48 = vpop.f32.mrb[10].mxu0 }
 0x848   : > { %v2379_v49 = vmul.f32 0.25, %v2375_v48  ;;  %9323 = vmatmul.mubr.msk.bf16.vlgmr.msra.gmra.mrb[16].mxu1 %vm1656_vm3, %v2250_v47  ;;  %v9330_v50 = vpop.f32.mrb[11].mxu0  ;;  %v8484_v48 = vld [vmem:[%s10406_s7] ss:$0 sm:$0xff] }
 0x849   : > { %9338 = vmatprep.mubr.msk.bf16.mxu1 %vm10178_vm2, %v11902_v23  ;;  %9337 = vmatpush3.bf16.msra.mxu1 %v9785_v62 }
 0x84a   : > { %v2380_v51 = vsel %vm1732_vm4, %v2379_v49, -inf  ;;  %9354 = vmatprep.subr.bf16.mxu1 %v11902_v23 }
 0x84b   : > { %2381 = vmax.xlane.f32.xlu0 %v2380_v51 }
 0x8d8   : > { %v2382_v52 = vpop.xlane.xlu0 %2381 }
 0x8d9   : > { %v2383_v53 = vsub.f32 %v2379_v49, %v2382_v52 }
 0x8db   : > { %v2384_v54 = vmul.f32 1.442695, %v2383_v53 }
 0x8dd   : > { %9938 = vpow2.f32 %v2384_v54 }
 0x8e7   : > { %v9939_v55 = vpop.eup %9938 }
 0x8e8   : > { %9334 = vmatmul.mubr.msk.f32.vlgmr.msra.gmra.mrb[12].mxu0 %vm1732_vm4, %v9939_v55  ;;  %v2386_v56 = vsel %vm1732_vm4, %v9939_v55, 0.0 }
 0x8e9   : > { %2387 = vadd.xlane.f32.xlu0 %v2386_v56  ;;  %9350 = vmatprep.mubr.msk.bf16.mxu0 %vm10178_vm2, %v11902_v23 }
 0x8ea   : > { %9343 = vmatpush3.bf16.msra.mxu0 %v9790_v32 }
 0x8eb   : > { %9344 = vmatprep.subr.bf16.mxu0 %v11902_v23 }
 0x8ee   : > { %9345 = vmatpush3.bf16.msra.mxu0 %v9791_v33 }
 0x8ef   : > { %9346 = vmatprep.subr.bf16.mxu0 %v11902_v23 }
 0x8f2   : > { %9347 = vmatpush3.bf16.msra.mxu0 %v9792_v36 }
 0x8f3   : > { %9348 = vmatprep.subr.bf16.mxu0 %v11902_v23 }
 0x8f6   : > { %9349 = vmatpush3.bf16.msra.mxu0 %v9793_v38 }
 0x8f7   : > { %9614 = vmatprep.subr.bf16.mxu0 %v11900_v39 }
 0x91b   : > { %v2294_v57 = vpop.f32.mrb[16].mxu1 }
 0x91c   : > { %v2300_v58 = vadd.f32 %v2294_v57, %v2079_v18  ;;  %v9324_v59 = vpop.f32.mrb[17].mxu1 }
 0x91d   : > { %v2297_v60 = vpop.f32.mrb[18].mxu1 }
 0x91e   : > { %v9325_v61 = vpop.f32.mrb[19].mxu1 }
 0x91f   : > { %v8478_v61 = vld [vmem:[%s12016_s13] ss:$0 sm:$0xff] }
 0x976   : > { %v2388_v63 = vpop.xlane.xlu0 %2387 }
 0x977   : > { %9940 = vrcp.f32 %v2388_v63 }
 0x981   : > { %v9941_v0 = vpop.eup %9940 }
 0x9bb   : > { %v2461_v1 = vpop.f32.mrb[12].mxu0 }
 0x9bc   : > { %v2466_v2 = vmul.f32 %v9941_v0, %v2461_v1  ;;  %v9335_v3 = vpop.f32.mrb[13].mxu0 }
 0x9be   : > { %v2467_v4 = vpack.c.bf16 %v2466_v2, %v2466_v2 }
 0x9c0   : > { %9339 = vmatmul.mubr.msk.bf16.vlgmr.msra.gmra.mrb[20].mxu1 %vm1656_vm3, %v2467_v4 }
 0x9c1   : > { %9362 = vmatprep.mubr.msk.bf16.mxu1 %vm10178_vm2, %v11902_v23  ;;  %9355 = vmatpush3.bf16.msra.mxu1 %v9786_v15 }
 0x9c2   : > { %9356 = vmatprep.subr.bf16.mxu1 %v11902_v23 }
 0x9c5   : > { %9357 = vmatpush3.bf16.msra.mxu1 %v9787_v16 }
 0x9c6   : > { %9358 = vmatprep.subr.bf16.mxu1 %v11902_v23 }
 0x9c9   : > { %9359 = vmatpush3.bf16.msra.mxu1 %v9788_v17 }
 0x9ca   : > { %9360 = vmatprep.subr.bf16.mxu1 %v11902_v23 }
 0x9cd   : > { %9361 = vmatpush3.bf16.msra.mxu1 %v9789_v24 }
 0x9ce   : > { %9618 = vmatprep.subr.bf16.mxu1 %v11900_v39 }
 0x9d0   : > { %9363 = vmatmul.mubr.msk.bf16.vlgmr.msra.gmra.mrb[24].mxu1 %vm1608_vm1, %v2628_v31 }
 0x9d1   : > { %9377 = vmatprep.mubr.msk.f32.mxu1 %vm10178_vm2, %v11902_v23 }
 0xa93   : > { %v2511_v6 = vpop.f32.mrb[20].mxu1 }
 0xa94   : > { %v2517_v7 = vadd.f32 %v2511_v6, %v2300_v58  ;;  %v9340_v8 = vpop.f32.mrb[21].mxu1 }
 0xa95   : > { %v2514_v9 = vpop.f32.mrb[22].mxu1 }
 0xa96   : > { %v2524_v10 = vadd.f32 %v8475_v5, %v2517_v7  ;;  %v9341_v11 = vpop.f32.mrb[23].mxu1 }
 0xa98   : > { %v2525_v12 = vadd.f32 %v2524_v10, %v10485_v21 }
 0xa9a   : > { %v2526_v13 = vsel %vm1608_vm1, %v2525_v12, 0.0 }
 0xa9b   : > { %2527 = vadd.xlane.f32.xlu0 %v2526_v13 }
 0xaa3   : > { %v2696_v49 = vpop.f32.mrb[24].mxu1 }
 0xaa4   : > { %v2697_v50 = vadd.f32 %v8484_v48, %v2696_v49  ;;  %v9364_v51 = vpop.f32.mrb[25].mxu1 }
 0xaa5   : > { %v2699_v52 = vpop.f32.mrb[26].mxu1 }
 0xaa6   : > { %v2700_v53 = vadd.f32 %v8484_v48, %v2699_v52  ;;  %v9365_v54 = vpop.f32.mrb[27].mxu1 }
 0xaa8   : > { %v10648_v56 = vpack.i.bf16 %v2700_v53, %v2697_v50  ;;  %v9615_v57 = vpack.c.bf16 %v2700_v53, %v2697_v50 }
 0xaaa   : > { %9701 = vrot.lane.b32.xlu1 %v10648_v56, %s11898_s26 }
 0xb1c   : > { %v9702_v58 = vpop.permute.xlu1 %9701 }
 0xb1d   : > { %v9704_v59 = vunpack.i.h.bf16 %v9702_v58  ;;  %v9703_v60 = vunpack.i.l.bf16 %v9702_v58 }
 0xb1f   : > { %v9623_v63 = vpack.c.bf16 %v9704_v59, %v9703_v60 }
 0xb28   : > { %v2528_v18 = vpop.xlane.xlu0 %2527 }
 0xb29   : > { %v2530_v21 = vmul.f32 0.015625, %v2528_v18 }
 0xb2b   : > { %v2531_v19 = vsub.f32 %v2525_v12, %v2530_v21 }
 0xb2d   : > { %v2532_v20 = vmul.f32 %v2531_v19, %v2531_v19 }
 0xb2f   : > { %v2533_v22 = vsel %vm1608_vm1, %v2532_v20, 0.0 }
 0xb30   : > { %2534 = vadd.xlane.f32.xlu0 %v2533_v22 }
 0xbbd   : > { %v2535_v40 = vpop.xlane.xlu0 %2534 }
 0xbbe   : > { %v2536_v30 = vmul.f32 0.015625, %v2535_v40 }
 0xbc0   : > { %v2537_v37 = vadd.f32 1e-05, %v2536_v30 }
 0xbc2   : > { %9942 = vrsqrt.f32 %v2537_v37 }
 0xbcc   : > { %v9943_v41 = vpop.eup %9942 }
 0xbcd   : > { %v2539_v43 = vmul.f32 %v9943_v41, %v2531_v19  ;;  %v9795_v41 = vld [vmem:[%s10411_s5 + $0x8] sm:$0xff]  }
 0xbcf   : > { %v2546_v45 = vmul.f32 %v8476_v42, %v2539_v43 }
 0xbd1   : > { %v10634_v46 = vadd.f32 %v8477_v44, %v2546_v45 }
 0xbd3   : > { %v2554_v47 = vpack.c.bf16 %v10634_v46, %v10634_v46 }
 0xbd5   : > { %9351 = vmatmul.mubr.msk.bf16.vlgmr.msra.gmra.mrb[16].mxu0 %vm1608_vm1, %v2554_v47 }
 0xbd6   : > { %9370 = vmatprep.mubr.msk.f32.mxu0 %vm10178_vm2, %v11902_v23  ;;  %9617 = vmatpush3.bf16.xpose.msk.msra.mxu0 %vm10644_vm5, %v9615_v57 }
 0xbd7   : > { %9622 = vmatprep.subr.bf16.mxu0 %v11900_v39 }
 0xca8   : > { %v2622_v62 = vpop.f32.mrb[16].mxu0 }
 0xca9   : > { %v10656_v0 = vadd.f32 %v8478_v61, %v2622_v62  ;;  %v9352_v1 = vpop.f32.mrb[17].mxu0 }
 0xcaa   : > { %v2625_v2 = vpop.f32.mrb[18].mxu0 }
 0xcab   : > { %2877 = vrot.lane.b32.xlu0 %v10656_v0, %s11898_s26  ;;  %v9353_v3 = vpop.f32.mrb[19].mxu0  ;;  %9371 = vmatmul.mubr.msk.f32.vlgmr.msra.gmra.mrb[14].mxu0 %vm1656_vm3, %v10656_v0  ;;  %s12024_s26 = sld [smem:[#allocation11_spill]] }
 0xcac   : > { %9625 = vmatpush3.bf16.xpose.msk.msra.mxu0 %vm10644_vm5, %v9623_v63  ;;  %9384 = vmatprep.mubr.msk.f32.mxu0 %vm10178_vm2, %v11902_v23 }
 0xcad   : > { %9400 = vmatprep.subr.bf16.mxu0 %v11902_v23 }
 0xd1d   : > { %v2878_v4 = vpop.permute.xlu0 %2877 }
 0xd1e   : > { %9385 = vmatmul.mubr.msk.f32.vlgmr.msra.gmra.mrb[20].mxu0 %vm1656_vm3, %v2878_v4 }
 0xd1f   : > { %9402 = vmatprep.mubr.msk.bf16.mxu0 %vm10178_vm2, %v11902_v23  ;;  %9401 = vmatpush3.bf16.msra.mxu0 %v9794_v27 }
 0xd20   : > { %9634 = vmatprep.subr.bf16.mxu0 %v11900_v39 }
 0xd7e   : > { %v2778_v5 = vpop.f32.mrb[14].mxu0 }
 0xd7f   : > { %v2782_v6 = vmul.f32 0.25, %v2778_v5  ;;  %v9372_v7 = vpop.f32.mrb[15].mxu0 }
 0xd81   : > { %v2784_v8 = vsel %vm2783_vm6, %v2782_v6, -inf }
 0xd82   : > { %2785 = vmax.xlane.f32.xlu1 %v2784_v8 }
 0xd93   : > { %9706 = vrot.lane.b32.xlu1 %v10648_v56, %s10180_s10 }
 0xdf1   : > { %v2955_v9 = vpop.f32.mrb[20].mxu0 }
 0xdf2   : > { %v2959_v10 = vmul.f32 0.25, %v2955_v9  ;;  %v9386_v11 = vpop.f32.mrb[21].mxu0 }
 0xdf4   : > { %v2960_v12 = vsel %vm2783_vm6, %v2959_v10, -inf }
 0xdf5   : > { %2961 = vmax.xlane.f32.xlu0 %v2960_v12 }
 0xe0b   : > { %9711 = vrot.lane.b32.xlu0 %v10648_v56, %s10179_s15 }
 0xe0f   : > { %v2786_v13 = vpop.xlane.xlu1 %2785  ;;  %9716 = vrot.lane.b32.xlu0 %v10648_v56, %s11896_s1 }
 0xe10   : > { %v2787_v15 = vsub.f32 %v2782_v6, %v2786_v13 }
 0xe12   : > { %v2788_v16 = vmul.f32 1.442695, %v2787_v15 }
 0xe13   : > { %v9707_v17 = vpop.permute.xlu1 %9706  ;;  %3150 = vrot.lane.b32.xlu0 %v10656_v0, %s11896_s1  ;;  %s12023_s1 = smov 16  }
 0xe14   : > { %9944 = vpow2.f32 %v2788_v16  ;;  %v9709_v18 = vunpack.i.h.bf16 %v9707_v17  ;;  %v9708_v21 = vunpack.i.l.bf16 %v9707_v17 }
 0xe16   : > { %v9619_v20 = vpack.c.bf16 %v9709_v18, %v9708_v21 }
 0xe18   : > { %9621 = vmatpush3.bf16.msk.msra.mxu1 %vm10680_vm9, %v9619_v20 }
 0xe19   : > { %9626 = vmatprep.subr.bf16.mxu1 %v11900_v39 }
 0xe1e   : > { %v9945_v22 = vpop.eup %9944 }
 0xe1f   : > { %9378 = vmatmul.mubr.msk.f32.vlgmr.msra.gmra.mrb[14].mxu1 %vm2783_vm6, %v9945_v22  ;;  %v2790_v24 = vsel %vm2783_vm6, %v9945_v22, 0.0 }
 0xe20   : > { %9391 = vmatprep.mubr.msk.f32.mxu1 %vm10178_vm2, %v11902_v23 }
 0xe32   : > { %2791 = vadd.xlane.f32.xlu0 %v2790_v24 }
 0xe48   : > { %9726 = vrot.lane.b32.xlu0 %v10648_v56, %s12021_s18 }
 0xe82   : > { %v2962_v29 = vpop.xlane.xlu0 %2961 }
 0xe83   : > { %v2963_v31 = vsub.f32 %v2959_v10, %v2962_v29 }
 0xe85   : > { %v2964_v32 = vmul.f32 1.442695, %v2963_v31 }
 0xe86   : > { %v9712_v33 = vpop.permute.xlu0 %9711 }
 0xe87   : > { %9946 = vpow2.f32 %v2964_v32  ;;  %v9714_v36 = vunpack.i.h.bf16 %v9712_v33  ;;  %v9713_v38 = vunpack.i.l.bf16 %v9712_v33  ;;  %v9796_v32 = vld [vmem:[%s10411_s5 + $0x10] sm:$0xff]  }
 0xe89   : > { %v9627_v40 = vpack.c.bf16 %v9714_v36, %v9713_v38 }
 0xe8a   : > { %v9717_v42 = vpop.permute.xlu0 %9716 }
 0xe8b   : > { %9629 = vmatpush3.bf16.msk.msra.mxu1 %vm10680_vm9, %v9627_v40  ;;  %v9719_v59 = vunpack.i.h.bf16 %v9717_v42  ;;  %v9718_v60 = vunpack.i.l.bf16 %v9717_v42 }
 0xe8c   : > { %9394 = vmatprep.subr.bf16.mxu1 %v11902_v23 }
 0xe8d   : > { %v9631_v2 = vpack.c.bf16 %v9719_v59, %v9718_v60 }
 0xe8e   : > { %v3151_v43 = vpop.permute.xlu0 %3150 }
 0xe91   : > { %v9947_v30 = vpop.eup %9946 }
 0xe92   : > { %9392 = vmatmul.mubr.msk.f32.vlgmr.msra.gmra.mrb[28].mxu1 %vm2783_vm6, %v9947_v30  ;;  %v2966_v37 = vsel %vm2783_vm6, %v9947_v30, 0.0 }
 0xe93   : > { %2967 = vadd.xlane.f32.xlu1 %v2966_v37  ;;  %9396 = vmatprep.mubr.msk.bf16.mxu1 %vm10178_vm2, %v11902_v23 }
 0xe94   : > { %9395 = vmatpush3.bf16.msra.mxu1 %v9795_v41 }
 0xe95   : > { %9630 = vmatprep.subr.bf16.mxu1 %v11900_v39 }
 0xea4   : > { %9721 = vrot.lane.b32.xlu1 %v10648_v56, %s12022_s2 }
 0xebf   : > { %v2792_v44 = vpop.xlane.xlu0 %2791 }
 0xec0   : > { %9948 = vrcp.f32 %v2792_v44 }
 0xec3   : > { %v9727_v20 = vpop.permute.xlu0 %9726 }
 0xec4   : > { %v9729_v22 = vunpack.i.h.bf16 %v9727_v20  ;;  %v9728_v24 = vunpack.i.l.bf16 %v9727_v20  ;;  %v1228_v20 = vld [vmem:[%s10435_s4] sm:$0xff] }
 0xec6   : > { %v9639_v29 = vpack.c.bf16 %v9729_v22, %v9728_v24  ;;  %v1236_v22 = vld [vmem:[%s10435_s4 + $0x40] sm:$0xff] }
 0xec7   : > { %v10761_v24 = vcombine.high %v1228_v20, %v1236_v22 }
 0xeca   : > { %v9949_v45 = vpop.eup %9948 }
 0xef2   : > { %v2870_v47 = vpop.f32.mrb[14].mxu1 }
 0xef3   : > { %v2875_v48 = vmul.f32 %v9949_v45, %v2870_v47  ;;  %v9379_v49 = vpop.f32.mrb[15].mxu1 }
 0xef5   : > { %v2876_v50 = vpack.c.bf16 %v2875_v48, %v2875_v48 }
 0xef7   : > { %9403 = vmatmul.mubr.msk.bf16.vlgmr.msra.gmra.mrb[24].mxu0 %vm1656_vm3, %v2876_v50 }
 0xef8   : > { %9417 = vmatprep.mubr.msk.f32.mxu0 %vm10178_vm2, %v11902_v23 }
 0xf20   : > { %v2968_v51 = vpop.xlane.xlu1 %2967 }
 0xf21   : > { %9950 = vrcp.f32 %v2968_v51 }
 0xf24   : > { %v9722_v52 = vpop.permute.xlu1 %9721 }
 0xf25   : > { %v9724_v53 = vunpack.i.h.bf16 %v9722_v52  ;;  %v9723_v54 = vunpack.i.l.bf16 %v9722_v52 }
 0xf27   : > { %v9635_v57 = vpack.c.bf16 %v9724_v53, %v9723_v54 }
 0xf29   : > { %9637 = vmatpush3.bf16.msk.msra.mxu0 %vm10680_vm9, %v9635_v57 }
 0xf2a   : > { %9638 = vmatprep.subr.bf16.mxu0 %v11900_v39 }
 0xf2b   : > { %v9951_v58 = vpop.eup %9950 }
 0xf65   : > { %v3045_v61 = vpop.f32.mrb[28].mxu1 }
 0xf66   : > { %v3050_v62 = vmul.f32 %v9951_v58, %v3045_v61  ;;  %v9393_v63 = vpop.f32.mrb[29].mxu1  ;;  %v9797_v61 = vld [vmem:[%s10411_s5 + $0x18] sm:$0xff]  }
 0xf68   : > { %v3051_v1 = vpack.c.bf16 %v3050_v62, %v3050_v62 }
 0xf6a   : > { %9397 = vmatmul.mubr.msk.bf16.vlgmr.msra.gmra.mrb[32].mxu1 %vm1656_vm3, %v3051_v1 }
 0xf6b   : > { %9633 = vmatpush3.bf16.xpose.msk.msra.mxu1 %vm10644_vm5, %v9631_v2  ;;  %9410 = vmatprep.mubr.msk.f32.mxu1 %vm10178_vm2, %v11902_v23 }
 0xf6c   : > { %9420 = vmatprep.subr.bf16.mxu1 %v11902_v23 }
 0xf72   : > { %9411 = vmatmul.mubr.msk.f32.vlgmr.msra.gmra.mrb[30].mxu1 %vm1656_vm3, %v3151_v43 }
 0xf73   : > { %9422 = vmatprep.mubr.msk.bf16.mxu1 %vm10178_vm2, %v11902_v23  ;;  %9421 = vmatpush3.bf16.msra.mxu1 %v9796_v32  ;;  %v1244_v32 = vld [vmem:[%s10435_s4 + $0x80] sm:$0xff] }
 0xf74   : > { %9642 = vmatprep.subr.bf16.mxu1 %v11900_v39  ;;  %v1281_v39 = vld [vmem:[%s10435_s4 + $0x1a8] sm:$0xff] }
 0xfca   : > { %v3144_v3 = vpop.f32.mrb[24].mxu0 }
 0xfcb   : > { %v9404_v4 = vpop.f32.mrb[25].mxu0 }
 0xfcc   : > { %v3147_v5 = vpop.f32.mrb[26].mxu0 }
 0xfcd   : > { %v9405_v6 = vpop.f32.mrb[27].mxu0  ;;  %v8518_v5 = vld [vmem:[%s10417_s24] ss:$0 sm:$0xff] }
0x103d   : > { %v3095_v7 = vpop.f32.mrb[32].mxu1 }
0x103e   : > { %v3145_v8 = vadd.f32 %v3144_v3, %v3095_v7  ;;  %v9398_v9 = vpop.f32.mrb[33].mxu1 }
0x103f   : > { %v3098_v10 = vpop.f32.mrb[34].mxu1 }
0x1040   : > { %v9399_v11 = vpop.f32.mrb[35].mxu1 }
0x1045   : > { %v3228_v12 = vpop.f32.mrb[30].mxu1 }
0x1046   : > { %v3232_v13 = vmul.f32 0.25, %v3228_v12  ;;  %v9412_v15 = vpop.f32.mrb[31].mxu1 }
0x1048   : > { %v3233_v16 = vsel %vm2783_vm6, %v3232_v13, -inf }
0x1049   : > { %3234 = vmax.xlane.f32.xlu1 %v3233_v16 }
0x105a   : > { %3375 = vrot.lane.b32.xlu1 %v10656_v0, %s12021_s18 }
0x10d6   : > { %v3235_v17 = vpop.xlane.xlu1 %3234 }
0x10d7   : > { %v3236_v18 = vsub.f32 %v3232_v13, %v3235_v17 }
0x10d9   : > { %v3237_v21 = vmul.f32 1.442695, %v3236_v18 }
0x10da   : > { %v3376_v0 = vpop.permute.xlu1 %3375 }
0x10db   : > { %9952 = vpow2.f32 %v3237_v21 }
0x10e5   : > { %v9953_v27 = vpop.eup %9952 }
0x10e6   : > { %9418 = vmatmul.mubr.msk.f32.vlgmr.msra.gmra.mrb[22].mxu0 %vm2783_vm6, %v9953_v27  ;;  %v3239_v31 = vsel %vm2783_vm6, %v9953_v27, 0.0  ;;  %v1237_v27 = vld [vmem:[%s10435_s4 + $0x48] sm:$0xff] }
0x10e7   : > { %9641 = vmatpush3.bf16.xpose.msk.msra.mxu0 %vm10644_vm5, %v9639_v29  ;;  %3240 = vadd.xlane.f32.xlu1 %v3239_v31  ;;  %v10764_v29 = vcombine.low %v1228_v20, %v1236_v22 }
0x10e8   : > { %9430 = vmatprep.mubr.msk.f32.mxu0 %vm10178_vm2, %v11902_v23  ;;  %9440 = vmatprep.subr.bf16.mxu0 %v11902_v23 }
0x10ee   : > { %9431 = vmatmul.mubr.msk.f32.vlgmr.msra.gmra.mrb[28].mxu0 %vm1656_vm3, %v3376_v0 }
0x10ef   : > { %9442 = vmatprep.mubr.msk.bf16.mxu0 %vm10178_vm2, %v11902_v23  ;;  %9441 = vmatpush3.bf16.msra.mxu0 %v9797_v61  ;;  %v1238_v61 = vld [vmem:[%s10435_s4 + $0x50] sm:$0xff] }
0x10f8   : > { %9731 = vrot.lane.b32.xlu1 %v10648_v56, %s12023_s1 }
0x1174   : > { %v3241_v33 = vpop.xlane.xlu1 %3240 }
0x1175   : > { %9954 = vrcp.f32 %v3241_v33  ;;  %v1252_v33 = vld [vmem:[%s10435_s4 + $0xc0] sm:$0xff] }
0x1178   : > { %v9732_v36 = vpop.permute.xlu1 %9731 }
0x1179   : > { %v9734_v40 = vunpack.i.h.bf16 %v9732_v36  ;;  %v9733_v30 = vunpack.i.l.bf16 %v9732_v36  ;;  %v1245_v36 = vld [vmem:[%s10435_s4 + $0x88] sm:$0xff] }
0x117b   : > { %v9643_v44 = vpack.c.bf16 %v9734_v40, %v9733_v30  ;;  %v1253_v40 = vld [vmem:[%s10435_s4 + $0xc8] sm:$0xff]  ;;  %v10780_v30 = vcombine.low %v1244_v32, %v1252_v33 }
0x117f   : > { %v9955_v38 = vpop.eup %9954 }
0x11b9   : > { %v3318_v37 = vpop.f32.mrb[22].mxu0 }
0x11ba   : > { %v3323_v41 = vmul.f32 %v9955_v38, %v3318_v37  ;;  %v9419_v42 = vpop.f32.mrb[23].mxu0  ;;  %v10777_v38 = vcombine.high %v1244_v32, %v1252_v33  ;;  %v10782_v37 = vcombine.low %v1245_v36, %v1253_v40  ;;  %v1263_v32 = vld [vmem:[%s10435_s4 + $0x118] sm:$0xff] }
0x11bb   : > { %v1260_v42 = vld [vmem:[%s10435_s4 + $0x100] sm:$0xff]  ;;  %v1271_v33 = vld [vmem:[%s10435_s4 + $0x158] sm:$0xff] }
0x11bc   : > { %v3324_v43 = vpack.c.bf16 %v3323_v41, %v3323_v41  ;;  %v10784_v41 = vcombine.high %v1245_v36, %v1253_v40 }
0x11be   : > { %9423 = vmatmul.mubr.msk.bf16.vlgmr.msra.gmra.mrb[36].mxu1 %vm1656_vm3, %v3324_v43  ;;  %v1268_v43 = vld [vmem:[%s10435_s4 + $0x140] sm:$0xff] }
0x11bf   : > { %9645 = vmatpush3.bf16.msk.msra.mxu1 %vm10680_vm9, %v9643_v44  ;;  %9437 = vmatprep.mubr.msk.f32.mxu1 %vm10178_vm2, %v11902_v23  ;;  %v1261_v44 = vld [vmem:[%s10435_s4 + $0x108] sm:$0xff] }
0x11c0   : > { %4041 = vmatprep.subr.bf16.mxu1 %v10761_v24  ;;  %v1289_v23 = vld [vmem:[%s10435_s4 + $0x1e8] sm:$0xff] }
0x11c1   : > { %v3453_v56 = vpop.f32.mrb[28].mxu0 }
0x11c2   : > { %v3457_v45 = vmul.f32 0.25, %v3453_v56  ;;  %v9432_v47 = vpop.f32.mrb[29].mxu0  ;;  %v10793_v56 = vcombine.high %v1260_v42, %v1268_v43 }
0x11c3   : > { %v10796_v47 = vcombine.low %v1260_v42, %v1268_v43  ;;  %v10871_v43 = vcombine.high %v1263_v32, %v1271_v33 }
0x11c4   : > { %v3458_v48 = vsel %vm2783_vm6, %v3457_v45, -inf }
0x11c5   : > { %3459 = vmax.xlane.f32.xlu0 %v3458_v48 }
0x1252   : > { %v3460_v49 = vpop.xlane.xlu0 %3459 }
0x1253   : > { %v3461_v50 = vsub.f32 %v3457_v45, %v3460_v49  ;;  %v1269_v45 = vld [vmem:[%s10435_s4 + $0x148] sm:$0xff] }
0x1254   : > { %v10798_v48 = vcombine.low %v1261_v44, %v1269_v45  ;;  %v10800_v49 = vcombine.high %v1261_v44, %v1269_v45  ;;  %v1278_v44 = vld [vmem:[%s10435_s4 + $0x190] sm:$0xff] }
0x1255   : > { %v3462_v51 = vmul.f32 1.442695, %v3461_v50  ;;  %v1276_v50 = vld [vmem:[%s10435_s4 + $0x180] sm:$0xff]  ;;  %v1286_v45 = vld [vmem:[%s10435_s4 + $0x1d0] sm:$0xff] }
0x1257   : > { %9956 = vpow2.f32 %v3462_v51  ;;  %v1284_v51 = vld [vmem:[%s10435_s4 + $0x1c0] sm:$0xff] }
0x1261   : > { %v9957_v52 = vpop.eup %9956 }
0x1262   : > { %9438 = vmatmul.mubr.msk.f32.vlgmr.msra.gmra.mrb[40].mxu1 %vm2783_vm6, %v9957_v52  ;;  %v3464_v53 = vsel %vm2783_vm6, %v9957_v52, 0.0  ;;  %v1277_v52 = vld [vmem:[%s10435_s4 + $0x188] sm:$0xff] }
0x1263   : > { %3465 = vadd.xlane.f32.xlu0 %v3464_v53  ;;  %4073 = vmatprep.mubr.bf16.mxu1 %v11904_v14  ;;  %v10809_v53 = vcombine.high %v1276_v50, %v1284_v51 }
0x1264   : > { %4042 = vmatpush1.bf16.msra.mxu1 %v10764_v29 }
0x1265   : > { %4043 = vmatprep.subr.bf16.mxu1 %v10777_v38 }
0x1268   : > { %4044 = vmatpush1.bf16.msra.mxu1 %v10780_v30 }
0x1269   : > { %4045 = vmatprep.subr.bf16.mxu1 %v10793_v56 }
0x126c   : > { %4046 = vmatpush1.bf16.msra.mxu1 %v10796_v47 }
0x126d   : > { %4047 = vmatprep.subr.bf16.mxu1 %v10809_v53 }
0x1291   : > { %v3368_v54 = vpop.f32.mrb[36].mxu1 }
0x1292   : > { %v3374_v57 = vadd.f32 %v3368_v54, %v3145_v8  ;;  %v9424_v58 = vpop.f32.mrb[37].mxu1  ;;  %v1285_v54 = vld [vmem:[%s10435_s4 + $0x1c8] sm:$0xff] }
0x1293   : > { %v3371_v59 = vpop.f32.mrb[38].mxu1  ;;  %v10814_v58 = vcombine.low %v1277_v52, %v1285_v54 }
0x1294   : > { %v9425_v60 = vpop.f32.mrb[39].mxu1  ;;  %v10816_v59 = vcombine.high %v1277_v52, %v1285_v54  ;;  %v10883_v54 = vcombine.low %v1263_v32, %v1271_v33  ;;  %v1264_v32 = vld [vmem:[%s10435_s4 + $0x120] sm:$0xff] }
0x1295   : > { %v1230_v60 = vld [vmem:[%s10435_s4 + $0x10] sm:$0xff]  ;;  %v1272_v33 = vld [vmem:[%s10435_s4 + $0x160] sm:$0xff] }
0x12f0   : > { %v3466_v62 = vpop.xlane.xlu0 %3465 }
0x12f1   : > { %9958 = vrcp.f32 %v3466_v62  ;;  %v1231_v62 = vld [vmem:[%s10435_s4 + $0x18] sm:$0xff] }
0x12fb   : > { %v9959_v63 = vpop.eup %9958 }
0x1335   : > { %v3543_v1 = vpop.f32.mrb[40].mxu1 }
0x1336   : > { %v3548_v2 = vmul.f32 %v9959_v63, %v3543_v1  ;;  %v9439_v3 = vpop.f32.mrb[41].mxu1  ;;  %v10825_v63 = vcombine.high %v1230_v60, %v1238_v61  ;;  %v1239_v1 = vld [vmem:[%s10435_s4 + $0x58] sm:$0xff] }
0x1337   : > { %v10830_v3 = vcombine.low %v1231_v62, %v1239_v1 }
0x1338   : > { %v3549_v4 = vpack.c.bf16 %v3548_v2, %v3548_v2  ;;  %v10828_v2 = vcombine.low %v1230_v60, %v1238_v61  ;;  %v10887_v60 = vcombine.high %v1278_v44, %v1286_v45 }
0x133a   : > { %9443 = vmatmul.mubr.msk.bf16.vlgmr.msra.gmra.mrb[32].mxu0 %vm1656_vm3, %v3549_v4  ;;  %v10832_v4 = vcombine.high %v1231_v62, %v1239_v1  ;;  %v1232_v62 = vld [vmem:[%s10435_s4 + $0x20] sm:$0xff] }
0x133b   : > { %4114 = vmatprep.mubr.bf16.mxu0 %v11904_v14  ;;  %v1240_v1 = vld [vmem:[%s10435_s4 + $0x60] sm:$0xff] }
0x140d   : > { %v3593_v6 = vpop.f32.mrb[32].mxu0 }
0x140e   : > { %v3599_v7 = vadd.f32 %v3593_v6, %v3374_v57  ;;  %v9444_v8 = vpop.f32.mrb[33].mxu0  ;;  %v10812_v57 = vcombine.low %v1276_v50, %v1284_v51  ;;  %v1279_v50 = vld [vmem:[%s10435_s4 + $0x198] sm:$0xff] }
0x140f   : > { %v3596_v9 = vpop.f32.mrb[34].mxu0  ;;  %v1287_v51 = vld [vmem:[%s10435_s4 + $0x1d8] sm:$0xff] }
0x1410   : > { %v3606_v10 = vadd.f32 %v8518_v5, %v3599_v7  ;;  %v9445_v11 = vpop.f32.mrb[35].mxu0  ;;  %4048 = vmatpush1.bf16.msra.mxu1 %v10812_v57  ;;  %v8519_v9 = vld [vmem:[%s10423_s3] ss:$0 sm:$0xff]  ;;  %v10889_v61 = vcombine.high %v1279_v50, %v1287_v51 }
0x1411   : > { %4123 = vmatprep.subr.bf16.mxu1 %v10825_v63  ;;  %v8520_v11 = vld [vmem:[%s12024_s26] ss:$0 sm:$0xff] }
0x1412   : > { %v3607_v12 = vadd.f32 %v3606_v10, %v10634_v46  ;;  %v1229_v46 = vld [vmem:[%s10435_s4 + $0x8] sm:$0xff] }
0x1413   : > { %v10766_v31 = vcombine.low %v1229_v46, %v1237_v27  ;;  %v10768_v0 = vcombine.high %v1229_v46, %v1237_v27  ;;  %v1262_v27 = vld [vmem:[%s10435_s4 + $0x110] sm:$0xff] }
0x1414   : > { %v3608_v13 = vsel %vm1608_vm1, %v3607_v12, 0.0 }
0x1415   : > { %3609 = vadd.xlane.f32.xlu0 %v3608_v13  ;;  %4082 = vmatprep.subr.bf16.mxu0 %v10768_v0  ;;  %v1246_v13 = vld [vmem:[%s10435_s4 + $0x90] sm:$0xff] }
0x1416   : > { %4083 = vmatpush1.bf16.msra.mxu0 %v10766_v31 }
0x1417   : > { %4084 = vmatprep.subr.bf16.mxu0 %v10784_v41 }
0x141a   : > { %4085 = vmatpush1.bf16.msra.mxu0 %v10782_v37 }
0x141b   : > { %4086 = vmatprep.subr.bf16.mxu0 %v10800_v49 }
0x141e   : > { %4087 = vmatpush1.bf16.msra.mxu0 %v10798_v48 }
0x141f   : > { %4088 = vmatprep.subr.bf16.mxu0 %v10816_v59 }
0x1422   : > { %4089 = vmatpush1.bf16.msra.mxu0 %v10814_v58 }
0x1423   : > { %4164 = vmatprep.subr.bf16.mxu0 %v10832_v4 }
0x14a2   : > { %v3610_v15 = vpop.xlane.xlu0 %3609 }
0x14a3   : > { %v3611_v16 = vmul.f32 0.015625, %v3610_v15  ;;  %v1254_v15 = vld [vmem:[%s10435_s4 + $0xd0] sm:$0xff] }
0x14a4   : > { %v10849_v22 = vcombine.high %v1246_v13, %v1254_v15  ;;  %v10863_v36 = vcombine.low %v1246_v13, %v1254_v15  ;;  %v1249_v13 = vld [vmem:[%s10435_s4 + $0xa8] sm:$0xff] }
0x14a5   : > { %v10753_v17 = vsub.f32 %v3607_v12, %v3611_v16  ;;  %v1247_v16 = vld [vmem:[%s10435_s4 + $0x98] sm:$0xff]  ;;  %v1257_v15 = vld [vmem:[%s10435_s4 + $0xe8] sm:$0xff] }
0x14a7   : > { %v3613_v18 = vmul.f32 %v10753_v17, %v10753_v17 }
0x14a9   : > { %v3614_v21 = vsel %vm1608_vm1, %v3613_v18, 0.0  ;;  %v1255_v18 = vld [vmem:[%s10435_s4 + $0xd8] sm:$0xff] }
0x14aa   : > { %3615 = vadd.xlane.f32.xlu0 %v3614_v21  ;;  %v10851_v46 = vcombine.high %v1247_v16, %v1255_v18  ;;  %v10865_v40 = vcombine.low %v1247_v16, %v1255_v18  ;;  %v10913_v16 = vcombine.low %v1232_v62, %v1240_v1 }
0x14ac   : > { %12028 = vst [vmem:[#allocation15_spill] sm:$0xff] %v10913_v16 }
0x1537   : > { %v3616_v5 = vpop.xlane.xlu0 %3615 }
0x1538   : > { %v3617_v6 = vmul.f32 0.015625, %v3616_v5  ;;  %v1233_v5 = vld [vmem:[%s10435_s4 + $0x28] sm:$0xff] }
0x153a   : > { %v3618_v7 = vadd.f32 1e-05, %v3617_v6  ;;  %v1241_v6 = vld [vmem:[%s10435_s4 + $0x68] sm:$0xff] }
0x153b   : > { %v10915_v18 = vcombine.low %v1233_v5, %v1241_v6 }
0x153c   : > { %9960 = vrsqrt.f32 %v3618_v7  ;;  %v10897_v7 = vcombine.low %v1278_v44, %v1286_v45  ;;  %v1265_v44 = vld [vmem:[%s10435_s4 + $0x128] sm:$0xff] }
0x153d   : > { %12029 = vst [vmem:[#allocation16_spill] sm:$0xff] %v10915_v18  ;;  %v1273_v45 = vld [vmem:[%s10435_s4 + $0x168] sm:$0xff] }
0x1546   : > { %v9961_v8 = vpop.eup %9960 }
0x1547   : > { %v3620_v10 = vmul.f32 %v9961_v8, %v10753_v17  ;;  %v1270_v17 = vld [vmem:[%s10435_s4 + $0x150] sm:$0xff]  ;;  %v10899_v8 = vcombine.low %v1279_v50, %v1287_v51  ;;  %v10935_v51 = vcombine.low %v1249_v13, %v1257_v15 }
0x1548   : > { %v10869_v42 = vcombine.high %v1262_v27, %v1270_v17  ;;  %v10881_v52 = vcombine.low %v1262_v27, %v1270_v17  ;;  %v10921_v17 = vcombine.high %v1249_v13, %v1257_v15  ;;  %v10959_v15 = vcombine.high %v1281_v39, %v1289_v23 }
0x1549   : > { %v3627_v12 = vmul.f32 %v8519_v9, %v3620_v10  ;;  %12025 = vst [vmem:[#allocation12_spill] sm:$0xff] %v10899_v8  ;;  %v10903_v9 = vcombine.high %v1232_v62, %v1240_v1  ;;  %v10905_v10 = vcombine.high %v1233_v5, %v1241_v6  ;;  %12033 = vst [vmem:[#allocation20_spill] sm:$0xff] %v10935_v51  ;;  %v1280_v5 = vld [vmem:[%s10435_s4 + $0x1a0] sm:$0xff] }
0x154a   : > { %12031 = vst [vmem:[#allocation18_spill] sm:$0xff] %v10921_v17  ;;  %v10939_v62 = vcombine.high %v1264_v32, %v1272_v33  ;;  %v10941_v1 = vcombine.high %v1265_v44, %v1273_v45  ;;  %v1288_v6 = vld [vmem:[%s10435_s4 + $0x1e0] sm:$0xff]  ;;  %12039 = vst [vmem:[#allocation26_spill] sm:$0xff] %v10959_v15 }
0x154b   : > { %v10843_v21 = vadd.f32 %v8520_v11, %v3627_v12  ;;  %12026 = vst [vmem:[#allocation13_spill] sm:$0xff] %v10903_v9  ;;  %12027 = vst [vmem:[#allocation14_spill] sm:$0xff] %v10905_v10  ;;  %v1248_v11 = vld [vmem:[%s10435_s4 + $0xa0] sm:$0xff]  ;;  %v10957_v13 = vcombine.high %v1280_v5, %v1288_v6 }
0x154c   : > { %v1256_v12 = vld [vmem:[%s10435_s4 + $0xe0] sm:$0xff]  ;;  %12034 = vst [vmem:[#allocation21_spill] sm:$0xff] %v10939_v62  ;;  %12035 = vst [vmem:[#allocation22_spill] sm:$0xff] %v10941_v1 }
0x154d   : > { %v10847_v20 = vpack.c.bf16 %v10843_v21, %v10843_v21  ;;  %v10919_v27 = vcombine.high %v1248_v11, %v1256_v12  ;;  %v10933_v50 = vcombine.low %v1248_v11, %v1256_v12  ;;  %v10951_v11 = vcombine.low %v1264_v32, %v1272_v33  ;;  %12038 = vst [vmem:[#allocation25_spill] sm:$0xff] %v10957_v13 }
0x154e   : > { %v10953_v12 = vcombine.low %v1265_v44, %v1273_v45  ;;  %v10967_v32 = vcombine.low %v1280_v5, %v1288_v6  ;;  %v10969_v33 = vcombine.low %v1281_v39, %v1289_v23 }
0x154f   : > { %8585 = vmatmul.mubr.msk.bf16.vlgmr.msra.gmra.mrb[44].mxu1 %vm1608_vm1, %v10847_v20  ;;  %8586 = vmatmul.mubr.msk.bf16.vlgmr.msra.gmra.mrb[36].mxu0 %vm1608_vm1, %v10847_v20  ;;  %12030 = vst [vmem:[#allocation17_spill] sm:$0xff] %v10919_v27  ;;  %12032 = vst [vmem:[#allocation19_spill] sm:$0xff] %v10933_v50 }
0x1550   : > { %4124 = vmatpush1.bf16.msra.mxu1 %v10828_v2  ;;  %4165 = vmatpush1.bf16.msra.mxu0 %v10830_v3  ;;  %12036 = vst [vmem:[#allocation23_spill] sm:$0xff] %v10951_v11  ;;  %12037 = vst [vmem:[#allocation24_spill] sm:$0xff] %v10953_v12 }
0x1551   : > { %4125 = vmatprep.subr.bf16.mxu1 %v10849_v22  ;;  %4166 = vmatprep.subr.bf16.mxu0 %v10851_v46  ;;  %12040 = vst [vmem:[#allocation27_spill] sm:$0xff] %v10967_v32  ;;  %12041 = vst [vmem:[#allocation28_spill] sm:$0xff] %v10969_v33 }
0x1552   : > { %4155 = vmatprep.mubr.bf16.mxu1 %v11904_v14  ;;  %4196 = vmatprep.mubr.bf16.mxu0 %v11904_v14 }
0x1554   : > { %4126 = vmatpush1.bf16.msra.mxu1 %v10863_v36  ;;  %4167 = vmatpush1.bf16.msra.mxu0 %v10865_v40 }
0x1555   : > { %4127 = vmatprep.subr.bf16.mxu1 %v10869_v42  ;;  %4168 = vmatprep.subr.bf16.mxu0 %v10871_v43 }
0x1558   : > { %4128 = vmatpush1.bf16.msra.mxu1 %v10881_v52  ;;  %4169 = vmatpush1.bf16.msra.mxu0 %v10883_v54 }
0x1559   : > { %4129 = vmatprep.subr.bf16.mxu1 %v10887_v60  ;;  %4170 = vmatprep.subr.bf16.mxu0 %v10889_v61 }
0x155c   : > { %4130 = vmatpush1.bf16.msra.mxu1 %v10897_v7  ;;  %4171 = vmatpush1.bf16.msra.mxu0 %v10899_v8 }
0x155d   : > { %4205 = vmatprep.subr.bf16.mxu1 %v10903_v9  ;;  %4246 = vmatprep.subr.bf16.mxu0 %v10905_v10  ;;  %v9833_v9 = vld [vmem:[%s10447_s16 + $0x180] sm:$0xff]  }
0x155f   : > { %8587 = vmatmul.mubr.msk.bf16.vlgmr.msra.gmra.mrb[48].mxu1 %vm1608_vm1, %v10847_v20  ;;  %8588 = vmatmul.mubr.msk.bf16.vlgmr.msra.gmra.mrb[40].mxu0 %vm1608_vm1, %v10847_v20 }
0x1560   : > { %4206 = vmatpush1.bf16.msra.mxu1 %v10913_v16  ;;  %4247 = vmatpush1.bf16.msra.mxu0 %v10915_v18  ;;  %v1291_v18 = vld [vmem:[%s10435_s4 + $0x1f8] sm:$0xff]  ;;  %v12052_v16 = vmov 0  }
0x1561   : > { %4207 = vmatprep.subr.bf16.mxu1 %v10919_v27  ;;  %4248 = vmatprep.subr.bf16.mxu0 %v10921_v17  ;;  %v1235_v17 = vld [vmem:[%s10435_s4 + $0x38] sm:$0xff] }
0x1562   : > { %4237 = vmatprep.mubr.bf16.mxu1 %v11904_v14  ;;  %4278 = vmatprep.mubr.bf16.mxu0 %v11904_v14  ;;  %v1234_v14 = vld [vmem:[%s10435_s4 + $0x30] sm:$0xff]  ;;  %v1283_v27 = vld [vmem:[%s10435_s4 + $0x1b8] sm:$0xff] }
0x1564   : > { %4208 = vmatpush1.bf16.msra.mxu1 %v10933_v50  ;;  %4249 = vmatpush1.bf16.msra.mxu0 %v10935_v51  ;;  %v1242_v50 = vld [vmem:[%s10435_s4 + $0x70] sm:$0xff]  ;;  %v1243_v51 = vld [vmem:[%s10435_s4 + $0x78] sm:$0xff] }
0x1565   : > { %4209 = vmatprep.subr.bf16.mxu1 %v10939_v62  ;;  %4250 = vmatprep.subr.bf16.mxu0 %v10941_v1  ;;  %v10973_v44 = vcombine.high %v1234_v14, %v1242_v50  ;;  %v10975_v45 = vcombine.high %v1235_v17, %v1243_v51  ;;  %v1250_v1 = vld [vmem:[%s10435_s4 + $0xb0] sm:$0xff]  ;;  %v1251_v62 = vld [vmem:[%s10435_s4 + $0xb8] sm:$0xff]  ;;  %v10983_v23 = vcombine.low %v1234_v14, %v1242_v50 }
0x1566   : > { %v10985_v39 = vcombine.low %v1235_v17, %v1243_v51 }
0x1567   : > { %12042 = vst [vmem:[#allocation29_spill] sm:$0xff] %v10973_v44  ;;  %12043 = vst [vmem:[#allocation30_spill] sm:$0xff] %v10975_v45 }
0x1568   : > { %4210 = vmatpush1.bf16.msra.mxu1 %v10951_v11  ;;  %4251 = vmatpush1.bf16.msra.mxu0 %v10953_v12  ;;  %v1258_v11 = vld [vmem:[%s10435_s4 + $0xf0] sm:$0xff]  ;;  %v1259_v12 = vld [vmem:[%s10435_s4 + $0xf8] sm:$0xff]  ;;  %12044 = vst [vmem:[#allocation31_spill] sm:$0xff] %v10983_v23  ;;  %12045 = vst [vmem:[#allocation32_spill] sm:$0xff] %v10985_v39 }
0x1569   : > { %4211 = vmatprep.subr.bf16.mxu1 %v10957_v13  ;;  %4252 = vmatprep.subr.bf16.mxu0 %v10959_v15  ;;  %v10989_v5 = vcombine.high %v1250_v1, %v1258_v11  ;;  %v10991_v6 = vcombine.high %v1251_v62, %v1259_v12  ;;  %v1266_v15 = vld [vmem:[%s10435_s4 + $0x130] sm:$0xff]  ;;  %v11003_v14 = vcombine.low %v1250_v1, %v1258_v11 }
0x156a   : > { %v1274_v13 = vld [vmem:[%s10435_s4 + $0x170] sm:$0xff]  ;;  %v11005_v17 = vcombine.low %v1251_v62, %v1259_v12  ;;  %v11029_v12 = vcombine.high %v1283_v27, %v1291_v18 }
0x156b   : > { %12046 = vst [vmem:[#allocation33_spill] sm:$0xff] %v10989_v5  ;;  %12047 = vst [vmem:[#allocation34_spill] sm:$0xff] %v10991_v6  ;;  %v11009_v50 = vcombine.high %v1266_v15, %v1274_v13  ;;  %v11021_v62 = vcombine.low %v1266_v15, %v1274_v13  ;;  %v11035_v15 = vcombine.low %v1283_v27, %v1291_v18  ;;  %v9802_v18 = vld [vmem:[%s10447_s16 + $0x48] sm:$0xff]  }
0x156c   : > { %4212 = vmatpush1.bf16.msra.mxu1 %v10967_v32  ;;  %4253 = vmatpush1.bf16.msra.mxu0 %v10969_v33  ;;  %v1267_v32 = vld [vmem:[%s10435_s4 + $0x138] sm:$0xff]  ;;  %12048 = vst [vmem:[#allocation35_spill] sm:$0xff] %v11003_v14  ;;  %12049 = vst [vmem:[#allocation36_spill] sm:$0xff] %v11005_v17  ;;  %v9803_v27 = vld [vmem:[%s10447_s16 + $0xc8] sm:$0xff]  }
0x156d   : > { %4287 = vmatprep.subr.bf16.mxu1 %v10973_v44  ;;  %4328 = vmatprep.subr.bf16.mxu0 %v10975_v45  ;;  %v1275_v33 = vld [vmem:[%s10435_s4 + $0x178] sm:$0xff]  ;;  %12050 = vst [vmem:[#allocation37_spill] sm:$0xff] %v11009_v50  ;;  %v1282_v45 = vld [vmem:[%s10435_s4 + $0x1b0] sm:$0xff]  ;;  %12053 = vst [vmem:[#allocation39_spill] sm:$0xff] %v11021_v62 }
0x156e   : > { %v11011_v51 = vcombine.high %v1267_v32, %v1275_v33  ;;  %v1290_v44 = vld [vmem:[%s10435_s4 + $0x1f0] sm:$0xff]  ;;  %v11023_v1 = vcombine.low %v1267_v32, %v1275_v33  ;;  %12056 = vst [vmem:[#allocation42_spill] sm:$0xff] %v11029_v12  ;;  %12058 = vst [vmem:[#allocation44_spill] sm:$0xff] %v11035_v15  ;;  %v9798_v32 = vld [vmem:[%s10447_s16 + $0x40] sm:$0xff]   ;;  %s12083_s4 = smov 96  }
0x156f   : > { %8589 = vmatmul.mubr.msk.bf16.vlgmr.msra.gmra.mrb[52].mxu1 %vm1608_vm1, %v10847_v20  ;;  %8590 = vmatmul.mubr.msk.bf16.vlgmr.msra.gmra.mrb[44].mxu0 %vm1608_vm1, %v10847_v20  ;;  %v11027_v11 = vcombine.high %v1282_v45, %v1290_v44  ;;  %v11033_v13 = vcombine.low %v1282_v45, %v1290_v44  ;;  %v9799_v33 = vld [vmem:[%s10447_s16 + $0xc0] sm:$0xff]   ;;  %v9804_v44 = vld [vmem:[%s10447_s16 + $0x8] sm:$0xff]  }
0x1570   : > { %4288 = vmatpush1.bf16.msra.mxu1 %v10983_v23  ;;  %4329 = vmatpush1.bf16.msra.mxu0 %v10985_v39  ;;  %12051 = vst [vmem:[#allocation38_spill] sm:$0xff] %v11011_v51  ;;  %12054 = vst [vmem:[#allocation40_spill] sm:$0xff] %v11023_v1  ;;  %v9805_v45 = vld [vmem:[%s10447_s16 + $0x88] sm:$0xff]  }
0x1571   : > { %4289 = vmatprep.subr.bf16.mxu1 %v10989_v5  ;;  %4330 = vmatprep.subr.bf16.mxu0 %v10991_v6  ;;  %12055 = vst [vmem:[#allocation41_spill] sm:$0xff] %v11027_v11  ;;  %12057 = vst [vmem:[#allocation43_spill] sm:$0xff] %v11033_v13 }
0x1572   : > { %4319 = vmatprep.mubr.bf16.mxu1 %v12052_v16  ;;  %4360 = vmatprep.mubr.bf16.mxu0 %v12052_v16 }
0x1574   : > { %4290 = vmatpush1.bf16.msra.mxu1 %v11003_v14  ;;  %4331 = vmatpush1.bf16.msra.mxu0 %v11005_v17 }
0x1575   : > { %4291 = vmatprep.subr.bf16.mxu1 %v11009_v50  ;;  %4332 = vmatprep.subr.bf16.mxu0 %v11011_v51 }
0x1578   : > { %4292 = vmatpush1.bf16.msra.mxu1 %v11021_v62  ;;  %4333 = vmatpush1.bf16.msra.mxu0 %v11023_v1  ;;  %v9800_v62 = vld [vmem:[%s10447_s16] sm:$0xff]  }
0x1579   : > { %4293 = vmatprep.subr.bf16.mxu1 %v11027_v11  ;;  %4334 = vmatprep.subr.bf16.mxu0 %v11029_v12  ;;  %v9801_v1 = vld [vmem:[%s10447_s16 + $0x80] sm:$0xff]   ;;  %v9829_v12 = vld [vmem:[%s10447_s16 + $0xb8] sm:$0xff]  }
0x157c   : > { %4294 = vmatpush1.bf16.msra.mxu1 %v11033_v13  ;;  %4335 = vmatpush1.bf16.msra.mxu0 %v11035_v15  ;;  %v9808_v15 = vld [vmem:[%s10447_s16 + $0x10] sm:$0xff]  }
0x157d   : > { %8860 = vmatprep.subr.bf16.mxu1 %v9798_v32  ;;  %8882 = vmatprep.subr.bf16.mxu0 %v9799_v33  ;;  %v9806_v32 = vld [vmem:[%s10447_s16 + $0x50] sm:$0xff]  }
0x157e   : > { %v9807_v33 = vld [vmem:[%s10447_s16 + $0xd0] sm:$0xff]  }
0x157f   : > { %8591 = vmatmul.mubr.msk.bf16.vlgmr.msra.gmra.mrb[56].mxu1 %vm1608_vm1, %v10847_v20  ;;  %8592 = vmatmul.mubr.msk.bf16.vlgmr.msra.gmra.mrb[48].mxu0 %vm1608_vm1, %v10847_v20  ;;  %v9809_v13 = vld [vmem:[%s10447_s16 + $0x90] sm:$0xff]   ;;  %v9810_v20 = vld [vmem:[%s10447_s16 + $0x58] sm:$0xff]  }
0x1580   : > { %8861 = vmatpush3.bf16.msra.mxu1 %v9800_v62  ;;  %8883 = vmatpush3.bf16.msra.mxu0 %v9801_v1  ;;  %v9811_v62 = vld [vmem:[%s10447_s16 + $0xd8] sm:$0xff]  }
0x1581   : > { %8862 = vmatprep.subr.bf16.mxu1 %v9802_v18  ;;  %8884 = vmatprep.subr.bf16.mxu0 %v9803_v27  ;;  %v9812_v1 = vld [vmem:[%s10447_s16 + $0x18] sm:$0xff]   ;;  %v9814_v27 = vld [vmem:[%s10447_s16 + $0x60] sm:$0xff]  }
0x1582   : > { %v9813_v18 = vld [vmem:[%s10447_s16 + $0x98] sm:$0xff]  }
0x1584   : > { %8863 = vmatpush3.bf16.msra.mxu1 %v9804_v44  ;;  %8885 = vmatpush3.bf16.msra.mxu0 %v9805_v45  ;;  %v9815_v44 = vld [vmem:[%s10447_s16 + $0xe0] sm:$0xff]  }
0x1585   : > { %8864 = vmatprep.subr.bf16.mxu1 %v9806_v32  ;;  %8886 = vmatprep.subr.bf16.mxu0 %v9807_v33  ;;  %v9816_v45 = vld [vmem:[%s10447_s16 + $0x20] sm:$0xff]   ;;  %v9820_v33 = vld [vmem:[%s10447_s16 + $0x28] sm:$0xff]  }
0x1586   : > { %v9817_v32 = vld [vmem:[%s10447_s16 + $0xa0] sm:$0xff]  }
0x1588   : > { %8865 = vmatpush3.bf16.msra.mxu1 %v9808_v15  ;;  %8887 = vmatpush3.bf16.msra.mxu0 %v9809_v13  ;;  %v9818_v15 = vld [vmem:[%s10447_s16 + $0x68] sm:$0xff]  }
0x1589   : > { %8866 = vmatprep.subr.bf16.mxu1 %v9810_v20  ;;  %8888 = vmatprep.subr.bf16.mxu0 %v9811_v62  ;;  %v9819_v13 = vld [vmem:[%s10447_s16 + $0xe8] sm:$0xff]   ;;  %v9822_v62 = vld [vmem:[%s10447_s16 + $0x70] sm:$0xff]  }
0x158a   : > { %v9821_v20 = vld [vmem:[%s10447_s16 + $0xa8] sm:$0xff]  }
0x158c   : > { %8867 = vmatpush3.bf16.msra.mxu1 %v9812_v1  ;;  %8889 = vmatpush3.bf16.msra.mxu0 %v9813_v18  ;;  %v9823_v1 = vld [vmem:[%s10447_s16 + $0xf0] sm:$0xff]  }
0x158d   : > { %8868 = vmatprep.subr.bf16.mxu1 %v9814_v27  ;;  %8890 = vmatprep.subr.bf16.mxu0 %v9815_v44  ;;  %v9824_v18 = vld [vmem:[%s10447_s16 + $0x30] sm:$0xff]   ;;  %v9826_v44 = vld [vmem:[%s10447_s16 + $0x78] sm:$0xff]  }
0x158e   : > { %v9825_v27 = vld [vmem:[%s10447_s16 + $0xb0] sm:$0xff]  }
0x1590   : > { %8869 = vmatpush3.bf16.msra.mxu1 %v9816_v45  ;;  %8891 = vmatpush3.bf16.msra.mxu0 %v9817_v32  ;;  %v9827_v45 = vld [vmem:[%s10447_s16 + $0xf8] sm:$0xff]  }
0x1591   : > { %8870 = vmatprep.subr.bf16.mxu1 %v9818_v15  ;;  %8892 = vmatprep.subr.bf16.mxu0 %v9819_v13  ;;  %v9828_v32 = vld [vmem:[%s10447_s16 + $0x38] sm:$0xff]   ;;  %v9830_v15 = vld [vmem:[%s10447_s16 + $0x140] sm:$0xff]  }
0x1592   : > { %v9831_v13 = vld [vmem:[%s10447_s16 + $0x1c0] sm:$0xff]  }
0x1594   : > { %8871 = vmatpush3.bf16.msra.mxu1 %v9820_v33  ;;  %8893 = vmatpush3.bf16.msra.mxu0 %v9821_v20  ;;  %v11927_v33 = vsub.s32 6, %v10492_v25  ;;  %v11081_v20 = vld [vmem:[%s10441_s14 + $0x8] sm:$0xff] }
0x1595   : > { %8872 = vmatprep.subr.bf16.mxu1 %v9822_v62  ;;  %8894 = vmatprep.subr.bf16.mxu0 %v9823_v1  ;;  %v11930_v1 = vsub.s32 2, %v10492_v25 }
0x1596   : > { %v11086_v62 = vrot.slane %v11081_v20, %v11927_v33 }
0x1598   : > { %8873 = vmatpush3.bf16.msra.mxu1 %v9824_v18  ;;  %8895 = vmatpush3.bf16.msra.mxu0 %v9825_v27  ;;  %12059 = vst [vmem:[#allocation45_spill] sm:$0xff] %v11086_v62  ;;  %v11090_v18 = vld [vmem:[%s10441_s14] sm:$0xff]  ;;  %v11935_v27 = vsub.s32 3, %v10492_v25  ;;  %s12082_s14 = smov 112  }
0x1599   : > { %8874 = vmatprep.subr.bf16.mxu1 %v9826_v44  ;;  %8896 = vmatprep.subr.bf16.mxu0 %v9827_v45  ;;  %v11100_v44 = vrot.slane %v11090_v18, %v11930_v1  ;;  %v11104_v45 = vrot.slane %v11090_v18, %v10515_v34 }
0x159b   : > { %12061 = vst [vmem:[#allocation47_spill] sm:$0xff] %v11100_v44  ;;  %12062 = vst [vmem:[#allocation48_spill] sm:$0xff] %v11104_v45 }
0x159c   : > { %8875 = vmatpush3.bf16.msra.mxu1 %v9828_v32  ;;  %8897 = vmatpush3.bf16.msra.mxu0 %v9829_v12  ;;  %v11095_v12 = vrot.slane %v11090_v18, %v10499_v26  ;;  %v11109_v32 = vrot.slane %v11090_v18, %v11935_v27 }
0x159d   : > { %8904 = vmatprep.subr.bf16.mxu1 %v9830_v15  ;;  %8926 = vmatprep.subr.bf16.mxu0 %v9831_v13 }
0x159e   : > { %12060 = vst [vmem:[#allocation46_spill] sm:$0xff] %v11095_v12  ;;  %12063 = vst [vmem:[#allocation49_spill] sm:$0xff] %v11109_v32 }
0x1622   : > { %v4075_v15 = vpop.f32.mrb[44].mxu1  ;;  %v4116_v13 = vpop.f32.mrb[36].mxu0 }
0x1623   : > { %v4076_v33 = vadd.f32 %v4075_v15, %v11095_v12  ;;  %v4117_v11 = vadd.f32 %v4116_v13, %v11100_v44  ;;  %v4077_v51 = vpop.f32.mrb[45].mxu1  ;;  %v4118_v1 = vpop.f32.mrb[37].mxu0  ;;  %v9832_v12 = vld [vmem:[%s10447_s16 + $0x100] sm:$0xff]  }
0x1624   : > { %v4078_v50 = vadd.f32 %v4077_v51, %v11104_v45  ;;  %v4119_v17 = vadd.f32 %v4118_v1, %v11109_v32  ;;  %v4079_v14 = vpop.f32.mrb[46].mxu1  ;;  %v4120_v6 = vpop.f32.mrb[38].mxu0  ;;  %v9834_v1 = vld [vmem:[%s10447_s16 + $0x148] sm:$0xff]  }
0x1625   : > { %v4369_v27 = vmax.f32 %v4076_v33, 0.0  ;;  %v4371_v5 = vmax.f32 %v4117_v11, 0.0  ;;  %v4080_v39 = vpop.f32.mrb[47].mxu1  ;;  %v4121_v23 = vpop.f32.mrb[39].mxu0  ;;  %v9835_v32 = vld [vmem:[%s10447_s16 + $0x1c8] sm:$0xff]   ;;  %v11945_v6 = vsub.s32 7, %v10492_v25 }
0x1626   : > { %v4370_v10 = vmax.f32 %v4078_v50, 0.0  ;;  %v4372_v15 = vmax.f32 %v4119_v17, 0.0  ;;  %v9836_v23 = vld [vmem:[%s10447_s16 + $0x108] sm:$0xff]   ;;  %v11946_v39 = vsub.s32 5, %v10492_v25  ;;  %v9839_v14 = vld [vmem:[%s10447_s16 + $0x1d0] sm:$0xff]   ;;  %v9842_v11 = vld [vmem:[%s10447_s16 + $0x158] sm:$0xff]  }
0x1627   : > { %v4385_v8 = vpack.c.bf16 %v4369_v27, %v4369_v27  ;;  %v4387_v51 = vpack.c.bf16 %v4371_v5, %v4371_v5  ;;  %v9838_v5 = vld [vmem:[%s10447_s16 + $0x150] sm:$0xff]   ;;  %v9843_v33 = vld [vmem:[%s10447_s16 + $0x1d8] sm:$0xff]  }
0x1628   : > { %v4386_v13 = vpack.c.bf16 %v4370_v10, %v4370_v10  ;;  %v4388_v44 = vpack.c.bf16 %v4372_v15, %v4372_v15  ;;  %v9837_v10 = vld [vmem:[%s10447_s16 + $0x188] sm:$0xff]   ;;  %v9840_v17 = vld [vmem:[%s10447_s16 + $0x110] sm:$0xff]  }
0x1629   : > { %v9841_v50 = vld [vmem:[%s10447_s16 + $0x190] sm:$0xff]  }
0x162a   : > { %5207 = vmatprep.mubr.bf16.mxu1 %v4386_v13  ;;  %5247 = vmatprep.mubr.bf16.mxu0 %v4388_v44 }
0x162b   : > { %5208 = vmatmul.mubr.bf16.vlgmr.msra.gmra.mrb[60].mxu1 %v4385_v8  ;;  %5248 = vmatmul.mubr.bf16.vlgmr.msra.gmra.mrb[52].mxu0 %v4387_v51  ;;  %v11128_v8 = vrot.slane %v11090_v18, %v11946_v39  ;;  %v9847_v39 = vld [vmem:[%s10447_s16 + $0x1e0] sm:$0xff]  }
0x162c   : > { %8905 = vmatpush3.bf16.msra.mxu1 %v9832_v12  ;;  %8927 = vmatpush3.bf16.msra.mxu0 %v9833_v9  ;;  %v11133_v9 = vrot.slane %v11090_v18, %v11945_v6  ;;  %v9846_v6 = vld [vmem:[%s10447_s16 + $0x160] sm:$0xff]  }
0x162d   : > { %8906 = vmatprep.subr.bf16.mxu1 %v9834_v1  ;;  %8928 = vmatprep.subr.bf16.mxu0 %v9835_v32  ;;  %12064 = vst [vmem:[#allocation50_spill] sm:$0xff] %v11128_v8 }
0x162e   : > { %12065 = vst [vmem:[#allocation51_spill] sm:$0xff] %v11133_v9 }
0x1630   : > { %8907 = vmatpush3.bf16.msra.mxu1 %v9836_v23  ;;  %8929 = vmatpush3.bf16.msra.mxu0 %v9837_v10  ;;  %v9844_v23 = vld [vmem:[%s10447_s16 + $0x118] sm:$0xff]  }
0x1631   : > { %8908 = vmatprep.subr.bf16.mxu1 %v9838_v5  ;;  %8930 = vmatprep.subr.bf16.mxu0 %v9839_v14  ;;  %v9845_v10 = vld [vmem:[%s10447_s16 + $0x198] sm:$0xff]  }
0x1632   : > { %v4157_v27 = vpop.f32.mrb[48].mxu1  ;;  %v4198_v12 = vpop.f32.mrb[40].mxu0 }
0x1633   : > { %v4159_v44 = vpop.f32.mrb[49].mxu1  ;;  %v4200_v32 = vpop.f32.mrb[41].mxu0 }
0x1634   : > { %v4160_v15 = vadd.f32 %v4159_v44, %v11128_v8  ;;  %v4201_v13 = vadd.f32 %v4200_v32, %v11133_v9  ;;  %v4161_v51 = vpop.f32.mrb[50].mxu1  ;;  %v4202_v1 = vpop.f32.mrb[42].mxu0  ;;  %8909 = vmatpush3.bf16.msra.mxu1 %v9840_v17  ;;  %8931 = vmatpush3.bf16.msra.mxu0 %v9841_v50  ;;  %v9848_v17 = vld [vmem:[%s10447_s16 + $0x120] sm:$0xff]  }
0x1635   : > { %v4162_v5 = vpop.f32.mrb[51].mxu1  ;;  %v4203_v14 = vpop.f32.mrb[43].mxu0  ;;  %8910 = vmatprep.subr.bf16.mxu1 %v9842_v11  ;;  %8932 = vmatprep.subr.bf16.mxu0 %v9843_v33  ;;  %v9849_v50 = vld [vmem:[%s10447_s16 + $0x1a0] sm:$0xff]   ;;  %v11948_v1 = vsub.s32 4, %v10492_v25  ;;  %v9850_v11 = vld [vmem:[%s10447_s16 + $0x168] sm:$0xff]  }
0x1636   : > { %v4374_v45 = vmax.f32 %v4160_v15, 0.0  ;;  %v4376_v44 = vmax.f32 %v4201_v13, 0.0  ;;  %v9851_v33 = vld [vmem:[%s10447_s16 + $0x1e8] sm:$0xff]   ;;  %v11166_v5 = vrot.slane %v11081_v20, %v10515_v34  ;;  %v12070_v14 = vsub.s32 3, %v10492_v25  ;;  %v9862_v8 = vld [vmem:[%s10447_s16 + $0x240] sm:$0xff]  }
0x1637   : > { %v9853_v15 = vld [vmem:[%s10447_s16 + $0x1a8] sm:$0xff]   ;;  %v11155_v13 = vrot.slane %v11090_v18, %v11948_v1 }
0x1638   : > { %v4390_v32 = vpack.c.bf16 %v4374_v45, %v4374_v45  ;;  %v4392_v51 = vpack.c.bf16 %v4376_v44, %v4376_v44  ;;  %8911 = vmatpush3.bf16.msra.mxu1 %v9844_v23  ;;  %8933 = vmatpush3.bf16.msra.mxu0 %v9845_v10  ;;  %v9852_v45 = vld [vmem:[%s10447_s16 + $0x128] sm:$0xff]   ;;  %v12067_v23 = vsub.s32 6, %v10492_v25  ;;  %v9855_v10 = vld [vmem:[%s10447_s16 + $0x1f0] sm:$0xff]   ;;  %12069 = vst [vmem:[#allocation54_spill] sm:$0xff] %v11166_v5 }
0x1639   : > { %8912 = vmatprep.subr.bf16.mxu1 %v9846_v6  ;;  %8934 = vmatprep.subr.bf16.mxu0 %v9847_v39  ;;  %12066 = vst [vmem:[#allocation52_spill] sm:$0xff] %v11155_v13  ;;  %v9854_v6 = vld [vmem:[%s10447_s16 + $0x170] sm:$0xff]   ;;  %v11171_v44 = vrot.slane %v11081_v20, %v12070_v14 }
0x163a   : > { %5287 = vmatprep.mubr.bf16.mxu1 %v4390_v32  ;;  %5327 = vmatprep.mubr.bf16.mxu0 %v4392_v51  ;;  %v11160_v39 = vrot.slane %v11090_v18, %v12067_v23  ;;  %v9856_v32 = vld [vmem:[%s10447_s16 + $0x130] sm:$0xff]   ;;  %v4158_v18 = vadd.f32 %v4157_v27, %v11155_v13 }
0x163b   : > { %12071 = vst [vmem:[#allocation55_spill] sm:$0xff] %v11171_v44  ;;  %v9857_v51 = vld [vmem:[%s10447_s16 + $0x1b0] sm:$0xff]  }
0x163c   : > { %8913 = vmatpush3.bf16.msra.mxu1 %v9848_v17  ;;  %8935 = vmatpush3.bf16.msra.mxu0 %v9849_v50  ;;  %12068 = vst [vmem:[#allocation53_spill] sm:$0xff] %v11160_v39  ;;  %v4199_v17 = vadd.f32 %v4198_v12, %v11160_v39  ;;  %v9858_v50 = vld [vmem:[%s10447_s16 + $0x178] sm:$0xff]  }
0x163d   : > { %8914 = vmatprep.subr.bf16.mxu1 %v9850_v11  ;;  %8936 = vmatprep.subr.bf16.mxu0 %v9851_v33  ;;  %v9859_v11 = vld [vmem:[%s10447_s16 + $0x1f8] sm:$0xff]  }
0x163e   : > { %v9860_v12 = vld [vmem:[%s10447_s16 + $0x138] sm:$0xff]   ;;  %v4375_v39 = vmax.f32 %v4199_v17, 0.0  ;;  %v9867_v17 = vld [vmem:[%s10447_s16 + $0x2c8] sm:$0xff]  }
0x1640   : > { %8915 = vmatpush3.bf16.msra.mxu1 %v9852_v45  ;;  %8937 = vmatpush3.bf16.msra.mxu0 %v9853_v15 }
0x1641   : > { %8916 = vmatprep.subr.bf16.mxu1 %v9854_v6  ;;  %8938 = vmatprep.subr.bf16.mxu0 %v9855_v10  ;;  %v9861_v6 = vld [vmem:[%s10447_s16 + $0x1b8] sm:$0xff]   ;;  %v4373_v10 = vmax.f32 %v4158_v18, 0.0  ;;  %v9866_v18 = vld [vmem:[%s10447_s16 + $0x248] sm:$0xff]  }
0x1642   : > { %v11179_v33 = vpop.f32.mrb[52].mxu1  ;;  %v11181_v34 = vpop.f32.mrb[44].mxu0 }
0x1643   : > { %v4241_v45 = vpop.f32.mrb[53].mxu1  ;;  %v4282_v15 = vpop.f32.mrb[45].mxu0 }
0x1644   : > { %v4242_v23 = vadd.f32 %v4241_v45, %v11166_v5  ;;  %v4283_v27 = vadd.f32 %v4282_v15, %v11171_v44  ;;  %v4243_v14 = vpop.f32.mrb[54].mxu1  ;;  %v4284_v1 = vpop.f32.mrb[46].mxu0  ;;  %8917 = vmatpush3.bf16.msra.mxu1 %v9856_v32  ;;  %8939 = vmatpush3.bf16.msra.mxu0 %v9857_v51  ;;  %v9863_v45 = vld [vmem:[%s10447_s16 + $0x2c0] sm:$0xff]   ;;  %v4389_v32 = vpack.c.bf16 %v4373_v10, %v4373_v10  ;;  %v9875_v10 = vld [vmem:[%s10447_s16 + $0x2d8] sm:$0xff]  }
0x1645   : > { %v4244_v13 = vpop.f32.mrb[55].mxu1  ;;  %v4285_v9 = vpop.f32.mrb[47].mxu0  ;;  %8918 = vmatprep.subr.bf16.mxu1 %v9858_v50  ;;  %8940 = vmatprep.subr.bf16.mxu0 %v9859_v11  ;;  %v9864_v1 = vld [vmem:[%s10447_s16 + $0x200] sm:$0xff]   ;;  %v4391_v51 = vpack.c.bf16 %v4375_v39, %v4375_v39  ;;  %v9868_v11 = vld [vmem:[%s10447_s16 + $0x208] sm:$0xff]   ;;  %v9874_v14 = vld [vmem:[%s10447_s16 + $0x258] sm:$0xff]  }
0x1646   : > { %v4378_v5 = vmax.f32 %v4242_v23, 0.0  ;;  %v4380_v15 = vmax.f32 %v4283_v27, 0.0  ;;  %v9865_v13 = vld [vmem:[%s10447_s16 + $0x280] sm:$0xff]   ;;  %v9869_v39 = vld [vmem:[%s10447_s16 + $0x288] sm:$0xff]   ;;  %v9871_v23 = vld [vmem:[%s10447_s16 + $0x2d0] sm:$0xff]  }
0x1647   : > { %v9873_v27 = vld [vmem:[%s10447_s16 + $0x290] sm:$0xff]  }
0x1648   : > { %8919 = vmatpush3.bf16.msra.mxu1 %v9860_v12  ;;  %8941 = vmatpush3.bf16.msra.mxu0 %v9861_v6  ;;  %v4394_v9 = vpack.c.bf16 %v4378_v5, %v4378_v5  ;;  %v4396_v50 = vpack.c.bf16 %v4380_v15, %v4380_v15  ;;  %v9872_v5 = vld [vmem:[%s10447_s16 + $0x210] sm:$0xff]  }
0x1649   : > { %8948 = vmatprep.subr.bf16.mxu1 %v9862_v8  ;;  %8970 = vmatprep.subr.bf16.mxu0 %v9863_v45  ;;  %v9870_v8 = vld [vmem:[%s10447_s16 + $0x250] sm:$0xff]  }
0x164b   : > { %5288 = vmatmul.mubr.bf16.vlgmr.msra.gmra.mrb[64].mxu1 %v4389_v32  ;;  %5328 = vmatmul.mubr.bf16.vlgmr.msra.gmra.mrb[56].mxu0 %v4391_v51  ;;  %v9876_v51 = vld [vmem:[%s10447_s16 + $0x218] sm:$0xff]  }
0x164c   : > { %8949 = vmatpush3.bf16.msra.mxu1 %v9864_v1  ;;  %5367 = vmatprep.mubr.bf16.mxu1 %v4394_v9 }
0x164d   : > { %8971 = vmatpush3.bf16.msra.mxu0 %v9865_v13  ;;  %5407 = vmatprep.mubr.bf16.mxu0 %v4396_v50  ;;  %v9879_v50 = vld [vmem:[%s10447_s16 + $0x2e0] sm:$0xff]  }
0x164e   : > { %8950 = vmatprep.subr.bf16.mxu1 %v9866_v18  ;;  %8972 = vmatprep.subr.bf16.mxu0 %v9867_v17  ;;  %v9877_v18 = vld [vmem:[%s10447_s16 + $0x298] sm:$0xff]   ;;  %v9878_v17 = vld [vmem:[%s10447_s16 + $0x260] sm:$0xff]  }
0x1650   : > { %8951 = vmatpush3.bf16.msra.mxu1 %v9868_v11  ;;  %v9880_v11 = vld [vmem:[%s10447_s16 + $0x220] sm:$0xff]  }
0x1651   : > { %8973 = vmatpush3.bf16.msra.mxu0 %v9869_v39  ;;  %8952 = vmatprep.subr.bf16.mxu1 %v9870_v8  ;;  %v9881_v39 = vld [vmem:[%s10447_s16 + $0x2a0] sm:$0xff]   ;;  %v9882_v8 = vld [vmem:[%s10447_s16 + $0x268] sm:$0xff]  }
0x1652   : > { %v11200_v12 = vpop.f32.mrb[56].mxu1  ;;  %v11202_v6 = vpop.f32.mrb[48].mxu0  ;;  %8974 = vmatprep.subr.bf16.mxu0 %v9871_v23  ;;  %v9883_v23 = vld [vmem:[%s10447_s16 + $0x2e8] sm:$0xff]  }
0x1653   : > { %v4323_v45 = vpop.f32.mrb[57].mxu1  ;;  %v4364_v15 = vpop.f32.mrb[49].mxu0 }
0x1654   : > { %v4325_v1 = vpop.f32.mrb[58].mxu1  ;;  %v4366_v32 = vpop.f32.mrb[50].mxu0  ;;  %8953 = vmatpush3.bf16.msra.mxu1 %v9872_v5  ;;  %v9884_v5 = vld [vmem:[%s10447_s16 + $0x228] sm:$0xff]  }
0x1655   : > { %8975 = vmatpush3.bf16.msra.mxu0 %v9873_v27  ;;  %v4326_v13 = vpop.f32.mrb[59].mxu1  ;;  %v4367_v9 = vpop.f32.mrb[51].mxu0  ;;  %8954 = vmatprep.subr.bf16.mxu1 %v9874_v14  ;;  %v11216_v27 = vrot.slane %v11081_v20, %v10499_v26  ;;  %v9885_v14 = vld [vmem:[%s10447_s16 + $0x2a8] sm:$0xff]   ;;  %v12073_v1 = vsub.s32 2, %v10492_v25  ;;  %v12077_v26 = vsub.s32 7, %v10492_v25 }
0x1656   : > { %8976 = vmatprep.subr.bf16.mxu0 %v9875_v10  ;;  %v9886_v10 = vld [vmem:[%s10447_s16 + $0x270] sm:$0xff]   ;;  %v12075_v13 = vsub.s32 5, %v10492_v25 }
0x1657   : > { %12072 = vst [vmem:[#allocation56_spill] sm:$0xff] %v11216_v27  ;;  %v11223_v32 = vrot.slane %v11081_v20, %v12073_v1 }
0x1658   : > { %8955 = vmatpush3.bf16.msra.mxu1 %v9876_v51  ;;  %v9887_v51 = vld [vmem:[%s10447_s16 + $0x2f0] sm:$0xff]   ;;  %v11229_v9 = vrot.slane %v11081_v20, %v12075_v13  ;;  %v9892_v13 = vld [vmem:[%s10447_s16 + $0x238] sm:$0xff]  }
0x1659   : > { %8977 = vmatpush3.bf16.msra.mxu0 %v9877_v18  ;;  %8956 = vmatprep.subr.bf16.mxu1 %v9878_v17  ;;  %12074 = vst [vmem:[#allocation57_spill] sm:$0xff] %v11223_v32  ;;  %v11234_v18 = vrot.slane %v11081_v20, %v12077_v26  ;;  %v9888_v17 = vld [vmem:[%s10447_s16 + $0x230] sm:$0xff]  }
0x165a   : > { %8978 = vmatprep.subr.bf16.mxu0 %v9879_v50  ;;  %12076 = vst [vmem:[#allocation58_spill] sm:$0xff] %v11229_v9  ;;  %v4240_v50 = vadd.f32 %v11179_v33, %v11216_v27  ;;  %v4324_v1 = vadd.f32 %v4323_v45, %v11229_v9  ;;  %v9896_v45 = vld [vmem:[%s10447_s16 + $0x300] sm:$0xff]  }
0x165b   : > { %12078 = vst [vmem:[#allocation59_spill] sm:$0xff] %v11234_v18 }
0x165c   : > { %8957 = vmatpush3.bf16.msra.mxu1 %v9880_v11  ;;  %v9889_v11 = vld [vmem:[%s10447_s16 + $0x2b0] sm:$0xff]   ;;  %v4377_v33 = vmax.f32 %v4240_v50, 0.0  ;;  %v9898_v50 = vld [vmem:[%s10447_s16 + $0x348] sm:$0xff]  }
0x165d   : > { %8979 = vmatpush3.bf16.msra.mxu0 %v9881_v39  ;;  %8958 = vmatprep.subr.bf16.mxu1 %v9882_v8  ;;  %v9890_v39 = vld [vmem:[%s10447_s16 + $0x278] sm:$0xff]   ;;  %v4281_v8 = vadd.f32 %v11181_v34, %v11223_v32  ;;  %v9895_v34 = vld [vmem:[%s10447_s16 + $0x3c0] sm:$0xff]  }
0x165e   : > { %8980 = vmatprep.subr.bf16.mxu0 %v9883_v23  ;;  %v9891_v23 = vld [vmem:[%s10447_s16 + $0x2f8] sm:$0xff]   ;;  %v4393_v9 = vpack.c.bf16 %v4377_v33, %v4377_v33 }
0x165f   : > { %v4379_v26 = vmax.f32 %v4281_v8, 0.0  ;;  %v9906_v33 = vld [vmem:[%s10447_s16 + $0x358] sm:$0xff]  }
0x1660   : > { %8959 = vmatpush3.bf16.msra.mxu1 %v9884_v5  ;;  %v4365_v5 = vadd.f32 %v4364_v15, %v11234_v18  ;;  %v9897_v15 = vld [vmem:[%s10447_s16 + $0x380] sm:$0xff]  }
0x1661   : > { %8981 = vmatpush3.bf16.msra.mxu0 %v9885_v14  ;;  %8960 = vmatprep.subr.bf16.mxu1 %v9886_v10  ;;  %v9893_v14 = vld [vmem:[%s10447_s16 + $0x2b8] sm:$0xff]   ;;  %v9894_v10 = vld [vmem:[%s10447_s16 + $0x340] sm:$0xff]  }
0x1662   : > { %8982 = vmatprep.subr.bf16.mxu0 %v9887_v51  ;;  %v4382_v51 = vmax.f32 %v4324_v1, 0.0  ;;  %v4384_v32 = vmax.f32 %v4365_v5, 0.0  ;;  %v9901_v1 = vld [vmem:[%s10447_s16 + $0x388] sm:$0xff]   ;;  %v9902_v5 = vld [vmem:[%s10447_s16 + $0x350] sm:$0xff]  }
0x1664   : > { %8961 = vmatpush3.bf16.msra.mxu1 %v9888_v17  ;;  %v4395_v17 = vpack.c.bf16 %v4379_v26, %v4379_v26  ;;  %v4400_v8 = vpack.c.bf16 %v4384_v32, %v4384_v32  ;;  %v9904_v32 = vld [vmem:[%s10447_s16 + $0x310] sm:$0xff]   ;;  %v9909_v26 = vld [vmem:[%s10447_s16 + $0x398] sm:$0xff]  }
0x1665   : > { %8983 = vmatpush3.bf16.msra.mxu0 %v9889_v11  ;;  %8962 = vmatprep.subr.bf16.mxu1 %v9890_v39  ;;  %v4398_v11 = vpack.c.bf16 %v4382_v51, %v4382_v51  ;;  %v9899_v39 = vld [vmem:[%s10447_s16 + $0x3c8] sm:$0xff]   ;;  %v9911_v51 = vld [vmem:[%s10447_s16 + $0x3e0] sm:$0xff]  }
0x1666   : > { %8984 = vmatprep.subr.bf16.mxu0 %v9891_v23  ;;  %v9900_v23 = vld [vmem:[%s10447_s16 + $0x308] sm:$0xff]  }
0x1668   : > { %8963 = vmatpush3.bf16.msra.mxu1 %v9892_v13  ;;  %v9903_v13 = vld [vmem:[%s10447_s16 + $0x3d0] sm:$0xff]  }
0x1669   : > { %8985 = vmatpush3.bf16.msra.mxu0 %v9893_v14  ;;  %8992 = vmatprep.subr.bf16.mxu1 %v9894_v10  ;;  %v9907_v14 = vld [vmem:[%s10447_s16 + $0x3d8] sm:$0xff]  }
0x166a   : > { %9014 = vmatprep.subr.bf16.mxu0 %v9895_v34  ;;  %v9908_v10 = vld [vmem:[%s10447_s16 + $0x318] sm:$0xff]   ;;  %v9910_v34 = vld [vmem:[%s10447_s16 + $0x360] sm:$0xff]  }
0x166b   : > { %5368 = vmatmul.mubr.bf16.vlgmr.msra.gmra.mrb[68].mxu1 %v4393_v9  ;;  %v9905_v9 = vld [vmem:[%s10447_s16 + $0x390] sm:$0xff]  }
0x166c   : > { %5408 = vmatmul.mubr.bf16.vlgmr.msra.gmra.mrb[60].mxu0 %v4395_v17  ;;  %8993 = vmatpush3.bf16.msra.mxu1 %v9896_v45  ;;  %v9912_v45 = vld [vmem:[%s10447_s16 + $0x320] sm:$0xff]   ;;  %v9914_v17 = vld [vmem:[%s10447_s16 + $0x368] sm:$0xff]  }
0x166d   : > { %5447 = vmatprep.mubr.bf16.mxu1 %v4398_v11  ;;  %9015 = vmatpush3.bf16.msra.mxu0 %v9897_v15  ;;  %v9913_v15 = vld [vmem:[%s10447_s16 + $0x3a0] sm:$0xff]   ;;  %v9916_v11 = vld [vmem:[%s10447_s16 + $0x328] sm:$0xff]  }
0x166e   : > { %5487 = vmatprep.mubr.bf16.mxu0 %v4400_v8  ;;  %8994 = vmatprep.subr.bf16.mxu1 %v9898_v50  ;;  %v9915_v50 = vld [vmem:[%s10447_s16 + $0x3e8] sm:$0xff]  }
0x166f   : > { %9016 = vmatprep.subr.bf16.mxu0 %v9899_v39  ;;  %v12079_v39 = vsub.s32 4, %v10492_v25  ;;  %v9921_v25 = vld [vmem:[%s10447_s16 + $0x3b0] sm:$0xff]  }
0x1670   : > { %8995 = vmatpush3.bf16.msra.mxu1 %v9900_v23  ;;  %v9917_v23 = vld [vmem:[%s10447_s16 + $0x3a8] sm:$0xff]  }
0x1671   : > { %9017 = vmatpush3.bf16.msra.mxu0 %v9901_v1  ;;  %8996 = vmatprep.subr.bf16.mxu1 %v9902_v5  ;;  %v11274_v8 = vrot.slane %v11081_v20, %v12079_v39  ;;  %v9918_v1 = vld [vmem:[%s10447_s16 + $0x370] sm:$0xff]   ;;  %v9922_v20 = vld [vmem:[%s10447_s16 + $0x378] sm:$0xff]   ;;  %v10007_v39 = vld [vmem:[%s12010_s12 + $0x20] ss:$8 sps:$4 sm:$0xff]  }
0x1672   : > { %9018 = vmatprep.subr.bf16.mxu0 %v9903_v13  ;;  %v9919_v5 = vld [vmem:[%s10447_s16 + $0x3f0] sm:$0xff]  }
0x1673   : > { %12080 = vst [vmem:[#allocation60_spill] sm:$0xff] %v11274_v8  ;;  %v9920_v13 = vld [vmem:[%s10447_s16 + $0x330] sm:$0xff]  }
0x1674   : > { %8997 = vmatpush3.bf16.msra.mxu1 %v9904_v32  ;;  %v4322_v32 = vadd.f32 %v11200_v12, %v11274_v8 }
0x1675   : > { %9019 = vmatpush3.bf16.msra.mxu0 %v9905_v9  ;;  %8998 = vmatprep.subr.bf16.mxu1 %v9906_v33  ;;  %v4363_v9 = vadd.f32 %v11202_v6, %v11086_v62  ;;  %v9923_v33 = vld [vmem:[%s10447_s16 + $0x3f8] sm:$0xff]  }
0x1676   : > { %9020 = vmatprep.subr.bf16.mxu0 %v9907_v14  ;;  %v9924_v14 = vld [vmem:[%s10447_s16 + $0x338] sm:$0xff]  }
0x1678   : > { %8999 = vmatpush3.bf16.msra.mxu1 %v9908_v10  ;;  %v4381_v10 = vmax.f32 %v4322_v32, 0.0  ;;  %v10010_v32 = vld [vmem:[%s12011_s0 + $0x8] sm:$0xff]  }
0x1679   : > { %9021 = vmatpush3.bf16.msra.mxu0 %v9909_v26  ;;  %9000 = vmatprep.subr.bf16.mxu1 %v9910_v34  ;;  %v9925_v26 = vld [vmem:[%s10447_s16 + $0x3b8] sm:$0xff]   ;;  %v4383_v34 = vmax.f32 %v4363_v9, 0.0  ;;  %v8593_v9 = vld [vmem:[%s10453_s17] ss:$0 sm:$0xff] }
0x167a   : > { %9022 = vmatprep.subr.bf16.mxu0 %v9911_v51  ;;  %v4397_v12 = vpack.c.bf16 %v4381_v10, %v4381_v10  ;;  %v10002_v51 = vld [vmem:[%s12010_s12 + $0x4] ss:$8 sps:$4 sm:$0xff]  }
0x167b   : > { %v4399_v6 = vpack.c.bf16 %v4383_v34, %v4383_v34 }
0x167c   : > { %9001 = vmatpush3.bf16.msra.mxu1 %v9912_v45  ;;  %v12081_v45 = vmov 0.0  }
0x167d   : > { %9023 = vmatpush3.bf16.msra.mxu0 %v9913_v15  ;;  %9002 = vmatprep.subr.bf16.mxu1 %v9914_v17  ;;  %v10003_v15 = vld [vmem:[%s12010_s12] ss:$8 sps:$4 sm:$0xff]   ;;  %v10004_v17 = vld [vmem:[%s12010_s12 + $0x14] ss:$8 sps:$4 sm:$0xff]  }
0x167e   : > { %9024 = vmatprep.subr.bf16.mxu0 %v9915_v50  ;;  %v10005_v50 = vld [vmem:[%s12010_s12 + $0x10] ss:$8 sps:$4 sm:$0xff]  }
0x1680   : > { %9003 = vmatpush3.bf16.msra.mxu1 %v9916_v11  ;;  %v10006_v11 = vld [vmem:[%s12010_s12 + $0x24] ss:$8 sps:$4 sm:$0xff]  }
0x1681   : > { %9025 = vmatpush3.bf16.msra.mxu0 %v9917_v23  ;;  %9004 = vmatprep.subr.bf16.mxu1 %v9918_v1  ;;  %v11299_v23 = vld [vmem:[#allocation2 + $0x8] sm:$0xff]  ;;  %v10008_v1 = vld [vmem:[%s12010_s12 + $0x34] ss:$8 sps:$4 sm:$0xff]  }
0x1682   : > { %9026 = vmatprep.subr.bf16.mxu0 %v9919_v5  ;;  %v5529_v5 = vpack.c.bf16 %v11299_v23, %v11299_v23 }
0x1684   : > { %9005 = vmatpush3.bf16.msra.mxu1 %v9920_v13  ;;  %v10009_v13 = vld [vmem:[%s12010_s12 + $0x30] ss:$8 sps:$4 sm:$0xff]  }
0x1685   : > { %9027 = vmatpush3.bf16.msra.mxu0 %v9921_v25  ;;  %9006 = vmatprep.subr.bf16.mxu1 %v9922_v20 }
0x1686   : > { %9028 = vmatprep.subr.bf16.mxu0 %v9923_v33 }
0x1688   : > { %9007 = vmatpush3.bf16.msra.mxu1 %v9924_v14 }
0x1689   : > { %9029 = vmatpush3.bf16.msra.mxu0 %v9925_v26  ;;  %5533 = vmatprep.subr.bf16.mxu1 %v10002_v51 }
0x168a   : > { %9446 = vmatprep.subr.mxu0 %v12081_v45 }
0x168b   : > { %5448 = vmatmul.mubr.bf16.vlgmr.msra.gmra.mrb[72].mxu1 %v4397_v12 }
0x168c   : > { %5488 = vmatmul.mubr.bf16.vlgmr.msra.gmra.mrb[64].mxu0 %v4399_v6  ;;  %5534 = vmatpush1.bf16.msra.mxu1 %v10003_v15 }
0x168d   : > { %5535 = vmatprep.subr.bf16.mxu1 %v10004_v17  ;;  %5565 = vmatprep.mubr.bf16.mxu1 %v12052_v16 }
0x168e   : > { %9448 = vmatprep.mubr.msk.f32.mxu0 %vm10178_vm2, %v12081_v45 }
0x1690   : > { %5536 = vmatpush1.bf16.msra.mxu1 %v10005_v50 }
0x1691   : > { %5537 = vmatprep.subr.bf16.mxu1 %v10006_v11 }
0x1694   : > { %5538 = vmatpush1.bf16.msra.mxu1 %v10007_v39 }
0x1695   : > { %5539 = vmatprep.subr.bf16.mxu1 %v10008_v1 }
0x1698   : > { %5540 = vmatpush1.bf16.msra.mxu1 %v10009_v13 }
0x1699   : > { %9466 = vmatprep.subr.bf16.mxu1 %v12081_v45 }
0x169b   : > { %8726 = vmatmul.mubr.msk.bf16.vlgmr.msra.gmra.mrb[76].mxu1 %vm1608_vm1, %v5529_v5 }
0x169c   : > { %9467 = vmatpush3.bf16.msra.mxu1 %v10010_v32  ;;  %9468 = vmatprep.mubr.msk.bf16.mxu1 %vm10178_vm2, %v12081_v45 }
0x169d   : > { %9478 = vmatprep.subr.mxu1 %v12081_v45 }
0x16fe   : > { %v8876_v25 = vpop.f32.mrb[60].mxu1  ;;  %v8898_v20 = vpop.f32.mrb[52].mxu0 }
0x16ff   : > { %v8877_v33 = vpop.f32.mrb[61].mxu1  ;;  %v8899_v14 = vpop.f32.mrb[53].mxu0 }
0x1700   : > { %v8878_v10 = vadd.f32 %v8877_v33, %v8876_v25  ;;  %v8900_v26 = vadd.f32 %v8899_v14, %v8898_v20  ;;  %v8879_v34 = vpop.f32.mrb[62].mxu1  ;;  %v8901_v12 = vpop.f32.mrb[54].mxu0 }
0x1701   : > { %v8880_v51 = vpop.f32.mrb[63].mxu1  ;;  %v8902_v6 = vpop.f32.mrb[55].mxu0 }
0x1702   : > { %v5210_v15 = vadd.f32 %v8878_v10, %v8593_v9 }
0x1704   : > { %v5250_v17 = vadd.f32 %v8900_v26, %v5210_v15 }
0x171e   : > { %v8920_v50 = vpop.f32.mrb[64].mxu1  ;;  %v8942_v11 = vpop.f32.mrb[56].mxu0 }
0x171f   : > { %v8921_v39 = vpop.f32.mrb[65].mxu1  ;;  %v8943_v1 = vpop.f32.mrb[57].mxu0 }
0x1720   : > { %v8922_v5 = vadd.f32 %v8921_v39, %v8920_v50  ;;  %v8944_v13 = vadd.f32 %v8943_v1, %v8942_v11  ;;  %v8923_v32 = vpop.f32.mrb[66].mxu1  ;;  %v8945_v62 = vpop.f32.mrb[58].mxu0 }
0x1721   : > { %v8924_v8 = vpop.f32.mrb[67].mxu1  ;;  %v8946_v18 = vpop.f32.mrb[59].mxu0 }
0x1722   : > { %v5290_v27 = vadd.f32 %v8922_v5, %v5250_v17 }
0x1724   : > { %v5330_v44 = vadd.f32 %v8944_v13, %v5290_v27 }
0x173e   : > { %v8964_v25 = vpop.f32.mrb[68].mxu1 }
0x173f   : > { %v8986_v20 = vpop.f32.mrb[60].mxu0  ;;  %v8965_v33 = vpop.f32.mrb[69].mxu1 }
0x1740   : > { %v8966_v14 = vadd.f32 %v8965_v33, %v8964_v25  ;;  %v8987_v34 = vpop.f32.mrb[61].mxu0  ;;  %v8967_v12 = vpop.f32.mrb[70].mxu1 }
0x1741   : > { %v8988_v9 = vadd.f32 %v8987_v34, %v8986_v20  ;;  %v8989_v10 = vpop.f32.mrb[62].mxu0  ;;  %v8968_v26 = vpop.f32.mrb[71].mxu1 }
0x1742   : > { %v5370_v51 = vadd.f32 %v8966_v14, %v5330_v44  ;;  %v8990_v6 = vpop.f32.mrb[63].mxu0 }
0x1744   : > { %v5410_v15 = vadd.f32 %v8988_v9, %v5370_v51 }
0x175e   : > { %v9008_v50 = vpop.f32.mrb[72].mxu1 }
0x175f   : > { %v9030_v11 = vpop.f32.mrb[64].mxu0  ;;  %v9009_v39 = vpop.f32.mrb[73].mxu1 }
0x1760   : > { %v9010_v62 = vadd.f32 %v9009_v39, %v9008_v50  ;;  %v9031_v8 = vpop.f32.mrb[65].mxu0  ;;  %v9011_v18 = vpop.f32.mrb[74].mxu1 }
0x1761   : > { %v9032_v17 = vadd.f32 %v9031_v8, %v9030_v11  ;;  %v9033_v27 = vpop.f32.mrb[66].mxu0  ;;  %v9012_v1 = vpop.f32.mrb[75].mxu1 }
0x1762   : > { %v5450_v5 = vadd.f32 %v9010_v62, %v5410_v15  ;;  %v9034_v13 = vpop.f32.mrb[67].mxu0 }
0x1764   : > { %v11312_v32 = vadd.f32 %v9032_v17, %v5450_v5 }
0x176e   : > { %v5567_v25 = vpop.f32.mrb[76].mxu1 }
0x176f   : > { %v11315_v20 = vadd.f32 %v5567_v25, %v10503_v28  ;;  %v5569_v44 = vpop.f32.mrb[77].mxu1 }
0x1770   : > { %v5571_v33 = vpop.f32.mrb[78].mxu1  ;;  %v11326_v28 = vadd.f32 %v5569_v44, %v10518_v35 }
0x1771   : > { %v5572_v14 = vpop.f32.mrb[79].mxu1  ;;  %5575 = vrot.lane.b32.xlu0 %v11315_v20, %s10180_s10 }
0x1775   : > { %5739 = vrot.lane.b32.xlu0 %v11315_v20, %s10179_s15 }
0x1779   : > { %5737 = vrot.lane.b32.xlu0 %v11315_v20, %s12082_s14 }
0x17e3   : > { %v5576_v34 = vpop.permute.xlu0 %5575 }
0x17e4   : > { %9447 = vmatpush3.xpose.msk.msra.mxu0 %vm1656_vm3, %v5576_v34  ;;  %v10011_v34 = vld [vmem:[%s12011_s0] sm:$0xff]  }
0x17e5   : > { %9451 = vmatprep.subr.mxu0 %v12081_v45 }
0x17e7   : > { %9449 = vmatmul.mubr.msk.f32.vlgmr.msra.gmra.mrb[30].mxu0 %vm1656_vm3, %v11315_v20  ;;  %v5740_v15 = vpop.permute.xlu0 %5739 }
0x17e8   : > { %9452 = vmatpush3.msra.mxu0 %v11326_v28  ;;  %9453 = vmatprep.mubr.msk.f32.mxu0 %vm10178_vm2, %v12081_v45 }
0x17e9   : > { %9456 = vmatprep.subr.mxu0 %v12081_v45 }
0x17eb   : > { %v5738_v11 = vpop.permute.xlu0 %5737 }
0x18ba   : > { %v5647_v12 = vpop.f32.mrb[30].mxu0 }
0x18bb   : > { %v5651_v9 = vmul.f32 0.25, %v5647_v12  ;;  %v9450_v10 = vpop.f32.mrb[31].mxu0 }
0x18bd   : > { %v5652_v26 = vsel %vm1732_vm4, %v5651_v9, -inf }
0x18be   : > { %5653 = vmax.xlane.f32.xlu1 %v5652_v26 }
0x18cf   : > { %5826 = vrot.lane.b32.xlu1 %v11326_v28, %s12082_s14 }
0x194b   : > { %v5654_v35 = vpop.xlane.xlu1 %5653 }
0x194c   : > { %v5655_v51 = vsub.f32 %v5651_v9, %v5654_v35 }
0x194e   : > { %v5656_v6 = vmul.f32 1.442695, %v5655_v51 }
0x194f   : > { %v5827_v39 = vpop.permute.xlu1 %5826 }
0x1950   : > { %9962 = vpow2.f32 %v5656_v6 }
0x195a   : > { %v9963_v50 = vpop.eup %9962 }
0x195b   : > { %9454 = vmatmul.mubr.msk.f32.vlgmr.msra.gmra.mrb[68].mxu0 %vm1732_vm4, %v9963_v50  ;;  %v5658_v5 = vsel %vm1732_vm4, %v9963_v50, 0.0 }
0x195c   : > { %9457 = vmatpush3.xpose.msk.msra.mxu0 %vm1656_vm3, %v5740_v15  ;;  %9458 = vmatprep.mubr.msk.f32.mxu0 %vm10178_vm2, %v12081_v45 }
0x195d   : > { %9461 = vmatprep.subr.mxu0 %v12081_v45 }
0x195f   : > { %9459 = vmatmul.mubr.msk.f32.vlgmr.msra.gmra.mrb[70].mxu0 %vm1656_vm3, %v5738_v11 }
0x1960   : > { %9462 = vmatpush3.msra.mxu0 %v5827_v39  ;;  %9463 = vmatprep.mubr.msk.f32.mxu0 %vm10178_vm2, %v12081_v45 }
0x1961   : > { %9472 = vmatprep.subr.bf16.mxu0 %v12081_v45 }
0x1a2e   : > { %v5730_v62 = vpop.f32.mrb[68].mxu0 }
0x1a2f   : > { %v9455_v8 = vpop.f32.mrb[69].mxu0 }
0x1a32   : > { %v5811_v18 = vpop.f32.mrb[70].mxu0 }
0x1a33   : > { %v5815_v17 = vmul.f32 0.25, %v5811_v18  ;;  %v9460_v27 = vpop.f32.mrb[71].mxu0 }
0x1a35   : > { %v5816_v1 = vsel %vm1732_vm4, %v5815_v17, -inf }
0x1a36   : > { %5817 = vmax.xlane.f32.xlu0 %v5816_v1 }
0x1a4c   : > { %5993 = vrot.lane.b32.xlu0 %v11315_v20, %s12022_s2 }
0x1a50   : > { %5991 = vrot.lane.b32.xlu0 %v11315_v20, %s12083_s4 }
0x1a6f   : > { %5659 = vadd.xlane.f32.xlu0 %v5658_v5 }
0x1ac3   : > { %v5818_v13 = vpop.xlane.xlu0 %5817 }
0x1ac4   : > { %v5819_v25 = vsub.f32 %v5815_v17, %v5818_v13 }
0x1ac6   : > { %v5820_v44 = vmul.f32 1.442695, %v5819_v25 }
0x1ac7   : > { %v5994_v12 = vpop.permute.xlu0 %5993 }
0x1ac8   : > { %9964 = vpow2.f32 %v5820_v44 }
0x1acb   : > { %v5992_v9 = vpop.permute.xlu0 %5991 }
0x1ad2   : > { %v9965_v33 = vpop.eup %9964 }
0x1ad3   : > { %9464 = vmatmul.mubr.msk.f32.vlgmr.msra.gmra.mrb[72].mxu0 %vm1732_vm4, %v9965_v33  ;;  %v5822_v14 = vsel %vm1732_vm4, %v9965_v33, 0.0 }
0x1ad4   : > { %5823 = vadd.xlane.f32.xlu1 %v5822_v14  ;;  %9473 = vmatpush3.bf16.msra.mxu0 %v10011_v34 }
0x1ad5   : > { %9474 = vmatprep.mubr.msk.bf16.mxu0 %vm10178_vm2, %v12081_v45  ;;  %9483 = vmatprep.subr.mxu0 %v12081_v45 }
0x1ae5   : > { %6079 = vrot.lane.b32.xlu1 %v11326_v28, %s12083_s4 }
0x1ae9   : > { %6204 = vrot.lane.b32.xlu1 %v11315_v20, %s12023_s1 }
0x1afc   : > { %v5660_v10 = vpop.xlane.xlu0 %5659 }
0x1afd   : > { %9966 = vrcp.f32 %v5660_v10 }
0x1b07   : > { %v9967_v26 = vpop.eup %9966 }
0x1b08   : > { %v5735_v35 = vmul.f32 %v9967_v26, %v5730_v62  ;;  %v10012_v62 = vld [vmem:[%s12011_s0 + $0x10] sm:$0xff]  }
0x1b0a   : > { %v5736_v51 = vpack.c.bf16 %v5735_v35, %v5735_v35 }
0x1b0c   : > { %9475 = vmatmul.mubr.msk.bf16.vlgmr.msra.gmra.mrb[76].mxu0 %vm1656_vm3, %v5736_v51 }
0x1b0d   : > { %9485 = vmatprep.mubr.msk.f32.mxu0 %vm10178_vm2, %v12081_v45 }
0x1b61   : > { %v5824_v6 = vpop.xlane.xlu1 %5823 }
0x1b62   : > { %9968 = vrcp.f32 %v5824_v6 }
0x1b65   : > { %v6080_v15 = vpop.permute.xlu1 %6079 }
0x1b66   : > { %9484 = vmatpush3.msra.mxu0 %v6080_v15 }
0x1b67   : > { %9494 = vmatprep.subr.mxu0 %v12081_v45 }
0x1b69   : > { %v6205_v26 = vpop.permute.xlu1 %6204 }
0x1b6c   : > { %v9969_v50 = vpop.eup %9968 }
0x1ba6   : > { %v5898_v11 = vpop.f32.mrb[72].mxu0 }
0x1ba7   : > { %v5903_v39 = vmul.f32 %v9969_v50, %v5898_v11  ;;  %v9465_v8 = vpop.f32.mrb[73].mxu0 }
0x1ba9   : > { %v5904_v18 = vpack.c.bf16 %v5903_v39, %v5903_v39 }
0x1bab   : > { %9469 = vmatmul.mubr.msk.bf16.vlgmr.msra.gmra.mrb[80].mxu1 %vm1656_vm3, %v5904_v18 }
0x1bac   : > { %9479 = vmatpush3.xpose.msk.msra.mxu1 %vm1656_vm3, %v5994_v12  ;;  %9480 = vmatprep.mubr.msk.f32.mxu1 %vm10178_vm2, %v12081_v45 }
0x1bad   : > { %9488 = vmatprep.subr.bf16.mxu1 %v12081_v45 }
0x1bb3   : > { %9481 = vmatmul.mubr.msk.f32.vlgmr.msra.gmra.mrb[42].mxu1 %vm1656_vm3, %v5992_v9 }
0x1bb4   : > { %9489 = vmatpush3.bf16.msra.mxu1 %v10012_v62  ;;  %9490 = vmatprep.mubr.msk.bf16.mxu1 %vm10178_vm2, %v12081_v45 }
0x1bb5   : > { %9504 = vmatprep.subr.bf16.mxu1 %v12081_v45 }
0x1bdf   : > { %v5985_v17 = vpop.f32.mrb[76].mxu0 }
0x1be0   : > { %v9476_v27 = vpop.f32.mrb[77].mxu0 }
0x1be1   : > { %v5988_v1 = vpop.f32.mrb[78].mxu0 }
0x1be2   : > { %v9477_v5 = vpop.f32.mrb[79].mxu0 }
0x1c7e   : > { %v5942_v13 = vpop.f32.mrb[80].mxu1 }
0x1c7f   : > { %v11376_v25 = vadd.f32 %v5985_v17, %v5942_v13  ;;  %v9470_v44 = vpop.f32.mrb[81].mxu1 }
0x1c80   : > { %v5945_v33 = vpop.f32.mrb[82].mxu1 }
0x1c81   : > { %v9471_v14 = vpop.f32.mrb[83].mxu1 }
0x1c86   : > { %v6065_v34 = vpop.f32.mrb[42].mxu1 }
0x1c87   : > { %v6069_v12 = vmul.f32 0.25, %v6065_v34  ;;  %v9482_v9 = vpop.f32.mrb[43].mxu1 }
0x1c89   : > { %v6070_v10 = vsel %vm1732_vm4, %v6069_v12, -inf }
0x1c8a   : > { %6071 = vmax.xlane.f32.xlu1 %v6070_v10  ;;  %v10014_v10 = vld [vmem:[%s10389_s28 + $0x8] sm:$0xff]  }
0x1c9b   : > { %6202 = vrot.lane.b32.xlu1 %v11315_v20, %s12021_s18 }
0x1c9f   : > { %6290 = vrot.lane.b32.xlu1 %v11326_v28, %s12021_s18 }
0x1d17   : > { %v6072_v35 = vpop.xlane.xlu1 %6071 }
0x1d18   : > { %v6073_v51 = vsub.f32 %v6069_v12, %v6072_v35  ;;  %v10013_v12 = vld [vmem:[%s10389_s28] sm:$0xff]   ;;  %v10016_v35 = vld [vmem:[%s10389_s28 + $0x10] sm:$0xff]  }
0x1d1a   : > { %v6074_v6 = vmul.f32 1.442695, %v6073_v51  ;;  %v10017_v51 = vld [vmem:[%s10389_s28 + $0x18] sm:$0xff]  }
0x1d1b   : > { %v6203_v15 = vpop.permute.xlu1 %6202 }
0x1d1c   : > { %9970 = vpow2.f32 %v6074_v6  ;;  %v12084_v6 = vmov 0.0|0.0  }
0x1d1f   : > { %v6291_v20 = vpop.permute.xlu1 %6290 }
0x1d26   : > { %v9971_v50 = vpop.eup %9970 }
0x1d27   : > { %9486 = vmatmul.mubr.msk.f32.vlgmr.msra.gmra.mrb[74].mxu0 %vm1732_vm4, %v9971_v50  ;;  %v6076_v17 = vsel %vm1732_vm4, %v9971_v50, 0.0 }
0x1d28   : > { %9495 = vmatpush3.xpose.msk.msra.mxu0 %vm1656_vm3, %v6205_v26  ;;  %9496 = vmatprep.mubr.msk.f32.mxu0 %vm10178_vm2, %v12081_v45  ;;  %v10015_v26 = vld [vmem:[%s12011_s0 + $0x18] sm:$0xff]  }
0x1d29   : > { %9499 = vmatprep.subr.mxu0 %v12081_v45 }
0x1d2b   : > { %9497 = vmatmul.mubr.msk.f32.vlgmr.msra.gmra.mrb[80].mxu0 %vm1656_vm3, %v6203_v15 }
0x1d2c   : > { %9500 = vmatpush3.msra.mxu0 %v6291_v20  ;;  %9501 = vmatprep.mubr.msk.f32.mxu0 %vm10178_vm2, %v12081_v45 }
0x1d2d   : > { %9510 = vmatprep.subr.bf16.mxu0 %v12081_v45 }
0x1dfa   : > { %v6151_v28 = vpop.f32.mrb[74].mxu0 }
0x1dfb   : > { %v9487_v11 = vpop.f32.mrb[75].mxu0 }
0x1dfe   : > { %v6276_v39 = vpop.f32.mrb[80].mxu0 }
0x1dff   : > { %v6280_v8 = vmul.f32 0.25, %v6276_v39  ;;  %v9498_v18 = vpop.f32.mrb[81].mxu0 }
0x1e01   : > { %v6281_v62 = vsel %vm1732_vm4, %v6280_v8, -inf }
0x1e02   : > { %6282 = vmax.xlane.f32.xlu0 %v6281_v62 }
0x1e06   : > { %6077 = vadd.xlane.f32.xlu0 %v6076_v17  ;;  %v10018_v17 = vld [vmem:[%s10400_s29] sm:$0xff]  }
0x1e8f   : > { %v6283_v27 = vpop.xlane.xlu0 %6282 }
0x1e90   : > { %v6284_v1 = vsub.f32 %v6280_v8, %v6283_v27 }
0x1e92   : > { %v6285_v5 = vmul.f32 1.442695, %v6284_v1 }
0x1e93   : > { %v6078_v13 = vpop.xlane.xlu0 %6077 }
0x1e94   : > { %9972 = vpow2.f32 %v6285_v5  ;;  %v10019_v5 = vld [vmem:[%s10400_s29 + $0x8] sm:$0xff]  }
0x1e95   : > { %9974 = vrcp.f32 %v6078_v13  ;;  %v10020_v13 = vld [vmem:[%s10400_s29 + $0x10] sm:$0xff]  }
0x1e9e   : > { %v9973_v44 = vpop.eup %9972 }
0x1e9f   : > { %v9975_v33 = vpop.eup %9974  ;;  %9502 = vmatmul.mubr.msk.f32.vlgmr.msra.gmra.mrb[82].mxu0 %vm1732_vm4, %v9973_v44  ;;  %v6287_v14 = vsel %vm1732_vm4, %v9973_v44, 0.0 }
0x1ea0   : > { %v6156_v34 = vmul.f32 %v9975_v33, %v6151_v28  ;;  %6288 = vadd.xlane.f32.xlu1 %v6287_v14  ;;  %9511 = vmatpush3.bf16.msra.mxu0 %v10013_v12  ;;  %v10022_v12 = vld [vmem:[%s12012_s6] ss:$0 sm:$0xff] }
0x1ea1   : > { %9512 = vmatprep.subr.bf16.mxu0 %v12081_v45  ;;  %9518 = vmatprep.mubr.msk.bf16.mxu0 %vm10178_vm2, %v12081_v45 }
0x1ea2   : > { %v6157_v9 = vpack.c.bf16 %v6156_v34, %v6156_v34 }
0x1ea4   : > { %9491 = vmatmul.mubr.msk.bf16.vlgmr.msra.gmra.mrb[84].mxu1 %vm1656_vm3, %v6157_v9  ;;  %9513 = vmatpush3.bf16.msra.mxu0 %v10014_v10 }
0x1ea5   : > { %9505 = vmatpush3.bf16.msra.mxu1 %v10015_v26  ;;  %9506 = vmatprep.mubr.msk.bf16.mxu1 %vm10178_vm2, %v12081_v45 }
0x1ea6   : > { %9522 = vmatprep.subr.bf16.mxu1 %v12081_v45  ;;  %9514 = vmatprep.subr.bf16.mxu0 %v12081_v45 }
0x1ea8   : > { %9515 = vmatpush3.bf16.msra.mxu0 %v10016_v35 }
0x1ea9   : > { %9516 = vmatprep.subr.bf16.mxu0 %v12081_v45 }
0x1eac   : > { %9517 = vmatpush3.bf16.msra.mxu0 %v10017_v51 }
0x1ead   : > { %9646 = vmatprep.subr.bf16.mxu0 %v12084_v6 }
0x1f2d   : > { %v6289_v15 = vpop.xlane.xlu1 %6288 }
0x1f2e   : > { %9976 = vrcp.f32 %v6289_v15 }
0x1f38   : > { %v9977_v50 = vpop.eup %9976 }
0x1f72   : > { %v6362_v20 = vpop.f32.mrb[82].mxu0 }
0x1f73   : > { %v6367_v28 = vmul.f32 %v9977_v50, %v6362_v20  ;;  %v9503_v11 = vpop.f32.mrb[83].mxu0 }
0x1f74   : > { %v8724_v11 = vld [vmem:[%s12013_s8 + $0x10] sm:$0xff] }
0x1f75   : > { %v6368_v39 = vpack.c.bf16 %v6367_v28, %v6367_v28 }
0x1f77   : > { %v6195_v8 = vpop.f32.mrb[84].mxu1  ;;  %9507 = vmatmul.mubr.msk.bf16.vlgmr.msra.gmra.mrb[88].mxu1 %vm1656_vm3, %v6368_v39 }
0x1f78   : > { %v6201_v18 = vadd.f32 %v6195_v8, %v11376_v25  ;;  %v9492_v62 = vpop.f32.mrb[85].mxu1  ;;  %9523 = vmatpush3.bf16.msra.mxu1 %v10018_v17  ;;  %9530 = vmatprep.mubr.msk.bf16.mxu1 %vm10178_vm2, %v12081_v45  ;;  %v10021_v25 = vld [vmem:[%s10400_s29 + $0x18] sm:$0xff]  }
0x1f79   : > { %v6198_v27 = vpop.f32.mrb[86].mxu1  ;;  %9524 = vmatprep.subr.bf16.mxu1 %v12081_v45 }
0x1f7a   : > { %v9493_v1 = vpop.f32.mrb[87].mxu1 }
0x1f7b   : > { %v10023_v1 = vld [vmem:[%s12014_s11] ss:$0 sm:$0xff] }
0x1f7c   : > { %9525 = vmatpush3.bf16.msra.mxu1 %v10019_v5 }
0x1f7d   : > { %9526 = vmatprep.subr.bf16.mxu1 %v12081_v45 }
0x1f80   : > { %9527 = vmatpush3.bf16.msra.mxu1 %v10020_v13  ;;  %v10024_v13 = vld [vmem:[%s12015_s9] ss:$0 sm:$0xff]  ;;  %s12138_s9 = sld [smem:[#allocation82_spill]] (!%p8777_p5) }
0x1f81   : > { %9528 = vmatprep.subr.bf16.mxu1 %v12081_v45 }
0x1f84   : > { %9529 = vmatpush3.bf16.msra.mxu1 %v10021_v25 }
0x1f85   : > { %9650 = vmatprep.subr.bf16.mxu1 %v12084_v6 }
0x204a   : > { %v6406_v44 = vpop.f32.mrb[88].mxu1 }
0x204b   : > { %v6412_v33 = vadd.f32 %v6406_v44, %v6201_v18  ;;  %v9508_v14 = vpop.f32.mrb[89].mxu1 }
0x204c   : > { %v6409_v34 = vpop.f32.mrb[90].mxu1  ;;  %v10025_v14 = vld [vmem:[%s10406_s7] ss:$0 sm:$0xff]  ;;  %s12134_s7 = scalar_lea.vmem %s11872_s22, %s10348_s27 }
0x204d   : > { %v6413_v9 = vadd.f32 %v10022_v12, %v6412_v33  ;;  %v9509_v10 = vpop.f32.mrb[91].mxu1 }
0x204f   : > { %v6414_v26 = vadd.f32 %v6413_v9, %v11299_v23  ;;  %v8725_v23 = vld [vmem:[%s12013_s8 + $0x18] sm:$0x3] }
0x2050   : > { %v6474_v39 = vpack.c.bf16 %v8725_v23, %v8724_v11 }
0x2051   : > { %v6415_v35 = vsel %vm1608_vm1, %v6414_v26, 0.0 }
0x2052   : > { %6416 = vadd.xlane.f32.xlu0 %v6415_v35  ;;  %9531 = vmatmul.mubr.msk.bf16.vlgmr.msra.gmra.mrb[92].mxu1 %vm1608_vm1, %v6474_v39 }
0x2053   : > { %9545 = vmatprep.mubr.msk.f32.mxu1 %vm10178_vm2, %v12081_v45 }
0x20df   : > { %v6417_v51 = vpop.xlane.xlu0 %6416 }
0x20e0   : > { %v6418_v15 = vmul.f32 0.015625, %v6417_v51 }
0x20e2   : > { %v6419_v50 = vsub.f32 %v6414_v26, %v6418_v15 }
0x20e4   : > { %v6420_v20 = vmul.f32 %v6419_v50, %v6419_v50 }
0x20e6   : > { %v6421_v28 = vsel %vm1608_vm1, %v6420_v20, 0.0 }
0x20e7   : > { %6422 = vadd.xlane.f32.xlu0 %v6421_v28 }
0x2125   : > { %v6512_v33 = vpop.f32.mrb[92].mxu1 }
0x2126   : > { %v6513_v34 = vadd.f32 %v10025_v14, %v6512_v33  ;;  %v9532_v12 = vpop.f32.mrb[93].mxu1 }
0x2127   : > { %v6515_v9 = vpop.f32.mrb[94].mxu1 }
0x2128   : > { %v6516_v10 = vadd.f32 %v10025_v14, %v6515_v9  ;;  %v9533_v26 = vpop.f32.mrb[95].mxu1 }
0x212a   : > { %v11446_v35 = vpack.i.bf16 %v6516_v10, %v6513_v34  ;;  %v9647_v51 = vpack.c.bf16 %v6516_v10, %v6513_v34 }
0x212c   : > { %9736 = vrot.lane.b32.xlu0 %v11446_v35, %s12082_s14  ;;  %9741 = vrot.lane.b32.xlu1 %v11446_v35, %s10180_s10 }
0x2174   : > { %v6423_v8 = vpop.xlane.xlu0 %6422 }
0x2175   : > { %v6424_v18 = vmul.f32 0.015625, %v6423_v8 }
0x2177   : > { %v6425_v62 = vadd.f32 1e-05, %v6424_v18 }
0x2179   : > { %9978 = vrsqrt.f32 %v6425_v62  ;;  %v10026_v62 = vld [vmem:[%s12016_s13] ss:$0 sm:$0xff] }
0x2183   : > { %v9979_v17 = vpop.eup %9978 }
0x2184   : > { %v6427_v27 = vmul.f32 %v9979_v17, %v6419_v50 }
0x2186   : > { %v6428_v5 = vmul.f32 %v10023_v1, %v6427_v27 }
0x2188   : > { %v11438_v25 = vadd.f32 %v10024_v13, %v6428_v5 }
0x218a   : > { %v6430_v44 = vpack.c.bf16 %v11438_v25, %v11438_v25 }
0x218c   : > { %9519 = vmatmul.mubr.msk.bf16.vlgmr.msra.gmra.mrb[84].mxu0 %vm1608_vm1, %v6430_v44  ;;  %v10027_v44 = vld [vmem:[%s10411_s5] sm:$0xff]  }
0x218d   : > { %9538 = vmatprep.mubr.msk.f32.mxu0 %vm10178_vm2, %v12081_v45  ;;  %9649 = vmatpush3.bf16.xpose.msk.msra.mxu0 %vm10644_vm5, %v9647_v51 }
0x218e   : > { %9654 = vmatprep.subr.bf16.mxu0 %v12084_v6 }
0x219e   : > { %v9742_v15 = vpop.permute.xlu1 %9741  ;;  %v9737_v11 = vpop.permute.xlu0 %9736 }
0x219f   : > { %v9744_v50 = vunpack.i.h.bf16 %v9742_v15  ;;  %v9743_v20 = vunpack.i.l.bf16 %v9742_v15  ;;  %v9739_v23 = vunpack.i.h.bf16 %v9737_v11  ;;  %v9738_v39 = vunpack.i.l.bf16 %v9737_v11 }
0x21a1   : > { %v9651_v28 = vpack.c.bf16 %v9744_v50, %v9743_v20  ;;  %v9655_v18 = vpack.c.bf16 %v9739_v23, %v9738_v39 }
0x21a3   : > { %9653 = vmatpush3.bf16.msk.msra.mxu1 %vm10680_vm9, %v9651_v28 }
0x21a4   : > { %9658 = vmatprep.subr.bf16.mxu1 %v12084_v6 }
0x225f   : > { %v6468_v8 = vpop.f32.mrb[84].mxu0 }
0x2260   : > { %v11459_v17 = vadd.f32 %v10026_v62, %v6468_v8  ;;  %v9520_v27 = vpop.f32.mrb[85].mxu0 }
0x2261   : > { %v6471_v1 = vpop.f32.mrb[86].mxu0 }
0x2262   : > { %6691 = vrot.lane.b32.xlu0 %v11459_v17, %s12082_s14  ;;  %v9521_v5 = vpop.f32.mrb[87].mxu0  ;;  %9539 = vmatmul.mubr.msk.f32.vlgmr.msra.gmra.mrb[88].mxu0 %vm1656_vm3, %v11459_v17 }
0x2263   : > { %9657 = vmatpush3.bf16.xpose.msk.msra.mxu0 %vm10644_vm5, %v9655_v18  ;;  %9552 = vmatprep.mubr.msk.f32.mxu0 %vm10178_vm2, %v12081_v45 }
0x2264   : > { %9568 = vmatprep.subr.bf16.mxu0 %v12081_v45 }
0x22d4   : > { %v6692_v13 = vpop.permute.xlu0 %6691 }
0x22d5   : > { %9553 = vmatmul.mubr.msk.f32.vlgmr.msra.gmra.mrb[90].mxu0 %vm1656_vm3, %v6692_v13 }
0x22d6   : > { %9569 = vmatpush3.bf16.msra.mxu0 %v10027_v44  ;;  %9570 = vmatprep.mubr.msk.bf16.mxu0 %vm10178_vm2, %v12081_v45  ;;  %v10028_v44 = vld [vmem:[%s10411_s5 + $0x8] sm:$0xff]  }
0x22d7   : > { %9666 = vmatprep.subr.bf16.mxu0 %v12084_v6 }
0x2335   : > { %v6594_v33 = vpop.f32.mrb[88].mxu0 }
0x2336   : > { %v6598_v14 = vmul.f32 0.25, %v6594_v33  ;;  %v9540_v34 = vpop.f32.mrb[89].mxu0 }
0x2338   : > { %v6599_v12 = vsel %vm2783_vm6, %v6598_v14, -inf }
0x2339   : > { %6600 = vmax.xlane.f32.xlu0 %v6599_v12 }
0x234f   : > { %9751 = vrot.lane.b32.xlu0 %v11446_v35, %s12083_s4 }
0x2353   : > { %6952 = vrot.lane.b32.xlu0 %v11459_v17, %s12083_s4 }
0x23a8   : > { %v6769_v9 = vpop.f32.mrb[90].mxu0 }
0x23a9   : > { %v6773_v10 = vmul.f32 0.25, %v6769_v9  ;;  %v9554_v26 = vpop.f32.mrb[91].mxu0 }
0x23ab   : > { %v6774_v51 = vsel %vm2783_vm6, %v6773_v10, -inf }
0x23ac   : > { %6775 = vmax.xlane.f32.xlu1 %v6774_v51 }
0x23bd   : > { %9746 = vrot.lane.b32.xlu1 %v11446_v35, %s10179_s15  ;;  %s12136_s15 = sld [smem:[#allocation80_spill]] (!%p8777_p5) }
0x23c6   : > { %v6601_v15 = vpop.xlane.xlu0 %6600 }
0x23c7   : > { %v6602_v50 = vsub.f32 %v6598_v14, %v6601_v15 }
0x23c9   : > { %v6603_v20 = vmul.f32 1.442695, %v6602_v50 }
0x23ca   : > { %v9752_v33 = vpop.permute.xlu0 %9751 }
0x23cb   : > { %9980 = vpow2.f32 %v6603_v20 }
0x23ce   : > { %v6953_v14 = vpop.permute.xlu0 %6952 }
0x23d5   : > { %v9981_v28 = vpop.eup %9980 }
0x23d6   : > { %9546 = vmatmul.mubr.msk.f32.vlgmr.msra.gmra.mrb[96].mxu1 %vm2783_vm6, %v9981_v28  ;;  %v6605_v11 = vsel %vm2783_vm6, %v9981_v28, 0.0 }
0x23d7   : > { %6606 = vadd.xlane.f32.xlu0 %v6605_v11  ;;  %9559 = vmatprep.mubr.msk.f32.mxu1 %vm10178_vm2, %v12081_v45 }
0x2439   : > { %v6776_v23 = vpop.xlane.xlu1 %6775 }
0x243a   : > { %v6777_v39 = vsub.f32 %v6773_v10, %v6776_v23 }
0x243c   : > { %v6778_v8 = vmul.f32 1.442695, %v6777_v39  ;;  %v9754_v39 = vunpack.i.h.bf16 %v9752_v33 }
0x243d   : > { %v9747_v18 = vpop.permute.xlu1 %9746 }
0x243e   : > { %9982 = vpow2.f32 %v6778_v8  ;;  %v9749_v62 = vunpack.i.h.bf16 %v9747_v18  ;;  %v9748_v27 = vunpack.i.l.bf16 %v9747_v18  ;;  %v9753_v8 = vunpack.i.l.bf16 %v9752_v33 }
0x2440   : > { %v9659_v1 = vpack.c.bf16 %v9749_v62, %v9748_v27 }
0x2442   : > { %9661 = vmatpush3.bf16.msk.msra.mxu1 %vm10680_vm9, %v9659_v1 }
0x2443   : > { %9562 = vmatprep.subr.bf16.mxu1 %v12081_v45 }
0x2448   : > { %v9983_v5 = vpop.eup %9982 }
0x2449   : > { %9560 = vmatmul.mubr.msk.f32.vlgmr.msra.gmra.mrb[98].mxu1 %vm2783_vm6, %v9983_v5  ;;  %v6780_v13 = vsel %vm2783_vm6, %v9983_v5, 0.0  ;;  %v9663_v5 = vpack.c.bf16 %v9754_v39, %v9753_v8 }
0x244a   : > { %6781 = vadd.xlane.f32.xlu1 %v6780_v13  ;;  %9563 = vmatpush3.bf16.msra.mxu1 %v10028_v44  ;;  %v10029_v13 = vld [vmem:[%s10411_s5 + $0x10] sm:$0xff]  }
0x244b   : > { %9564 = vmatprep.mubr.msk.bf16.mxu1 %vm10178_vm2, %v12081_v45  ;;  %9662 = vmatprep.subr.bf16.mxu1 %v12084_v6 }
0x245b   : > { %9756 = vrot.lane.b32.xlu1 %v11446_v35, %s12022_s2  ;;  %s12139_s2 = sld [smem:[#allocation83_spill]] (!%p8777_p5) }
0x245f   : > { %9761 = vrot.lane.b32.xlu1 %v11446_v35, %s12021_s18 }
0x2464   : > { %v6607_v34 = vpop.xlane.xlu0 %6606 }
0x2465   : > { %9984 = vrcp.f32 %v6607_v34 }
0x246f   : > { %v9985_v12 = vpop.eup %9984 }
0x24a9   : > { %v6684_v9 = vpop.f32.mrb[96].mxu1 }
0x24aa   : > { %v6689_v10 = vmul.f32 %v9985_v12, %v6684_v9  ;;  %v9547_v26 = vpop.f32.mrb[97].mxu1 }
0x24ac   : > { %v6690_v51 = vpack.c.bf16 %v6689_v10, %v6689_v10 }
0x24ae   : > { %9571 = vmatmul.mubr.msk.bf16.vlgmr.msra.gmra.mrb[92].mxu0 %vm1656_vm3, %v6690_v51 }
0x24af   : > { %9585 = vmatprep.mubr.msk.f32.mxu0 %vm10178_vm2, %v12081_v45 }
0x24d7   : > { %v6782_v15 = vpop.xlane.xlu1 %6781 }
0x24d8   : > { %9986 = vrcp.f32 %v6782_v15 }
0x24db   : > { %v9757_v50 = vpop.permute.xlu1 %9756 }
0x24dc   : > { %v9759_v20 = vunpack.i.h.bf16 %v9757_v50  ;;  %v9758_v28 = vunpack.i.l.bf16 %v9757_v50 }
0x24de   : > { %v9667_v11 = vpack.c.bf16 %v9759_v20, %v9758_v28 }
0x24e0   : > { %9669 = vmatpush3.bf16.msk.msra.mxu0 %vm10680_vm9, %v9667_v11 }
0x24e1   : > { %9670 = vmatprep.subr.bf16.mxu0 %v12084_v6 }
0x24e2   : > { %v9987_v23 = vpop.eup %9986 }
0x251c   : > { %v6859_v18 = vpop.f32.mrb[98].mxu1 }
0x251d   : > { %v6864_v62 = vmul.f32 %v9987_v23, %v6859_v18  ;;  %v9561_v27 = vpop.f32.mrb[99].mxu1 }
0x251f   : > { %v6865_v1 = vpack.c.bf16 %v6864_v62, %v6864_v62 }
0x2521   : > { %9565 = vmatmul.mubr.msk.bf16.vlgmr.msra.gmra.mrb[100].mxu1 %vm1656_vm3, %v6865_v1 }
0x2522   : > { %9665 = vmatpush3.bf16.xpose.msk.msra.mxu1 %vm10644_vm5, %v9663_v5  ;;  %9578 = vmatprep.mubr.msk.f32.mxu1 %vm10178_vm2, %v12081_v45  ;;  %v10030_v5 = vld [vmem:[%s10411_s5 + $0x18] sm:$0xff]  }
0x2523   : > { %9588 = vmatprep.subr.bf16.mxu1 %v12081_v45 }
0x2529   : > { %9579 = vmatmul.mubr.msk.f32.vlgmr.msra.gmra.mrb[104].mxu1 %vm1656_vm3, %v6953_v14 }
0x252a   : > { %9589 = vmatpush3.bf16.msra.mxu1 %v10029_v13  ;;  %9590 = vmatprep.mubr.msk.bf16.mxu1 %vm10178_vm2, %v12081_v45 }
0x252b   : > { %9674 = vmatprep.subr.bf16.mxu1 %v12084_v6  ;;  %v9762_v6 = vpop.permute.xlu1 %9761 }
0x252c   : > { %v9764_v8 = vunpack.i.h.bf16 %v9762_v6  ;;  %v9763_v18 = vunpack.i.l.bf16 %v9762_v6 }
0x252e   : > { %v9671_v27 = vpack.c.bf16 %v9764_v8, %v9763_v18 }
0x2581   : > { %v6946_v44 = vpop.f32.mrb[92].mxu0 }
0x2582   : > { %v9572_v33 = vpop.f32.mrb[93].mxu0 }
0x2583   : > { %v6949_v34 = vpop.f32.mrb[94].mxu0 }
0x2584   : > { %v9573_v12 = vpop.f32.mrb[95].mxu0 }
0x25f4   : > { %v6903_v9 = vpop.f32.mrb[100].mxu1 }
0x25f5   : > { %v11517_v10 = vadd.f32 %v6946_v44, %v6903_v9  ;;  %v9566_v26 = vpop.f32.mrb[101].mxu1 }
0x25f6   : > { %v6906_v51 = vpop.f32.mrb[102].mxu1 }
0x25f7   : > { %v9567_v15 = vpop.f32.mrb[103].mxu1 }
0x25fc   : > { %v7030_v50 = vpop.f32.mrb[104].mxu1 }
0x25fd   : > { %v7034_v20 = vmul.f32 0.25, %v7030_v50  ;;  %v9580_v14 = vpop.f32.mrb[105].mxu1 }
0x25ff   : > { %v7035_v28 = vsel %vm2783_vm6, %v7034_v20, -inf }
0x2600   : > { %7036 = vmax.xlane.f32.xlu1 %v7035_v28 }
0x2611   : > { %7171 = vrot.lane.b32.xlu1 %v11459_v17, %s12021_s18 }
0x268d   : > { %v7037_v11 = vpop.xlane.xlu1 %7036 }
0x268e   : > { %v7038_v23 = vsub.f32 %v7034_v20, %v7037_v11 }
0x2690   : > { %v7039_v39 = vmul.f32 1.442695, %v7038_v23 }
0x2691   : > { %v7172_v17 = vpop.permute.xlu1 %7171 }
0x2692   : > { %9988 = vpow2.f32 %v7039_v39 }
0x269c   : > { %v9989_v62 = vpop.eup %9988 }
0x269d   : > { %9586 = vmatmul.mubr.msk.f32.vlgmr.msra.gmra.mrb[96].mxu0 %vm2783_vm6, %v9989_v62  ;;  %v7041_v1 = vsel %vm2783_vm6, %v9989_v62, 0.0 }
0x269e   : > { %9673 = vmatpush3.bf16.xpose.msk.msra.mxu0 %vm10644_vm5, %v9671_v27  ;;  %7042 = vadd.xlane.f32.xlu0 %v7041_v1  ;;  %v11571_v1 = vadd.f32 %v11312_v32, %v10843_v21  ;;  %v12098_v32 = vld [vmem:[#allocation25_spill] sm:$0xff] }
0x269f   : > { %9598 = vmatprep.mubr.msk.f32.mxu0 %vm10178_vm2, %v12081_v45  ;;  %9608 = vmatprep.subr.bf16.mxu0 %v12081_v45 }
0x26a5   : > { %9599 = vmatmul.mubr.msk.f32.vlgmr.msra.gmra.mrb[98].mxu0 %vm1656_vm3, %v7172_v17  ;;  %v5496_v17 = vsel %vm1608_vm1, %v11571_v1, 0.0 }
0x26a6   : > { %9609 = vmatpush3.bf16.msra.mxu0 %v10030_v5  ;;  %9610 = vmatprep.mubr.msk.bf16.mxu0 %vm10178_vm2, %v12081_v45 }
0x26a7   : > { %7452 = vmatprep.subr.bf16.mxu0 %v10768_v0 }
0x26b4   : > { %9766 = vrot.lane.b32.xlu0 %v11446_v35, %s12023_s1  ;;  %s12137_s1 = sld [smem:[#allocation81_spill]] (!%p8777_p5) }
0x272b   : > { %v7043_v55 = vpop.xlane.xlu0 %7042 }
0x272c   : > { %9990 = vrcp.f32 %v7043_v55 }
0x272f   : > { %v9767_v13 = vpop.permute.xlu0 %9766 }
0x2730   : > { %v9769_v33 = vunpack.i.h.bf16 %v9767_v13  ;;  %v9768_v34 = vunpack.i.l.bf16 %v9767_v13 }
0x2732   : > { %v9675_v15 = vpack.c.bf16 %v9769_v33, %v9768_v34  ;;  %v10032_v33 = vld [vmem:[%s10423_s3] ss:$0 sm:$0xff]  ;;  %s12135_s3 = scalar_lea.vmem %s11873_s23, %s10348_s27 }
0x2736   : > { %v9991_v44 = vpop.eup %9990 }
0x2770   : > { %v7120_v12 = vpop.f32.mrb[96].mxu0 }
0x2771   : > { %v7125_v9 = vmul.f32 %v9991_v44, %v7120_v12  ;;  %v9587_v26 = vpop.f32.mrb[97].mxu0  ;;  %v10033_v12 = vld [vmem:[%s12024_s26] ss:$0 sm:$0xff] }
0x2772   : > { %v12099_v26 = vld [vmem:[#allocation26_spill] sm:$0xff] }
0x2773   : > { %v7126_v51 = vpack.c.bf16 %v7125_v9, %v7125_v9 }
0x2775   : > { %9591 = vmatmul.mubr.msk.bf16.vlgmr.msra.gmra.mrb[108].mxu1 %vm1656_vm3, %v7126_v51  ;;  %v12100_v51 = vld [vmem:[#allocation27_spill] sm:$0xff] }
0x2776   : > { %9677 = vmatpush3.bf16.msk.msra.mxu1 %vm10680_vm9, %v9675_v15  ;;  %9605 = vmatprep.mubr.msk.f32.mxu1 %vm10178_vm2, %v12081_v45  ;;  %v12101_v15 = vld [vmem:[#allocation28_spill] sm:$0xff] }
0x2777   : > { %7411 = vmatprep.subr.bf16.mxu1 %v10761_v24 }
0x2778   : > { %v7249_v0 = vpop.f32.mrb[98].mxu0 }
0x2779   : > { %v7253_v35 = vmul.f32 0.25, %v7249_v0  ;;  %v9600_v50 = vpop.f32.mrb[99].mxu0  ;;  %v12102_v0 = vld [vmem:[#allocation29_spill] sm:$0xff] }
0x277a   : > { %v12104_v50 = vld [vmem:[#allocation31_spill] sm:$0xff] }
0x277b   : > { %v7254_v20 = vsel %vm2783_vm6, %v7253_v35, -inf }
0x277c   : > { %7255 = vmax.xlane.f32.xlu1 %v7254_v20  ;;  %v12105_v20 = vld [vmem:[#allocation32_spill] sm:$0xff] }
0x2809   : > { %v7256_v14 = vpop.xlane.xlu1 %7255 }
0x280a   : > { %v7257_v28 = vsub.f32 %v7253_v35, %v7256_v14  ;;  %v12103_v35 = vld [vmem:[#allocation30_spill] sm:$0xff]  ;;  %v12106_v14 = vld [vmem:[#allocation33_spill] sm:$0xff] }
0x280c   : > { %v7258_v6 = vmul.f32 1.442695, %v7257_v28  ;;  %v12107_v28 = vld [vmem:[#allocation34_spill] sm:$0xff] }
0x280e   : > { %9992 = vpow2.f32 %v7258_v6  ;;  %v12108_v6 = vld [vmem:[#allocation35_spill] sm:$0xff] }
0x2818   : > { %v9993_v11 = vpop.eup %9992 }
0x2819   : > { %9606 = vmatmul.mubr.msk.f32.vlgmr.msra.gmra.mrb[106].mxu1 %vm2783_vm6, %v9993_v11  ;;  %v7260_v19 = vsel %vm2783_vm6, %v9993_v11, 0.0  ;;  %v12109_v11 = vld [vmem:[#allocation36_spill] sm:$0xff] }
0x281a   : > { %7261 = vadd.xlane.f32.xlu0 %v7260_v19  ;;  %7412 = vmatpush1.bf16.msra.mxu1 %v10764_v29  ;;  %v12110_v19 = vld [vmem:[#allocation37_spill] sm:$0xff] }
0x281b   : > { %7413 = vmatprep.subr.bf16.mxu1 %v10777_v38  ;;  %7443 = vmatprep.mubr.bf16.mxu1 %v12052_v16 }
0x281e   : > { %7414 = vmatpush1.bf16.msra.mxu1 %v10780_v30 }
0x281f   : > { %7415 = vmatprep.subr.bf16.mxu1 %v10793_v56 }
0x2822   : > { %7416 = vmatpush1.bf16.msra.mxu1 %v10796_v47 }
0x2823   : > { %7417 = vmatprep.subr.bf16.mxu1 %v10809_v53 }
0x2826   : > { %7418 = vmatpush1.bf16.msra.mxu1 %v10812_v57 }
0x2827   : > { %7493 = vmatprep.subr.bf16.mxu1 %v10825_v63 }
0x2848   : > { %v7164_v24 = vpop.f32.mrb[108].mxu1 }
0x2849   : > { %v7170_v45 = vadd.f32 %v7164_v24, %v11517_v10  ;;  %v9592_v29 = vpop.f32.mrb[109].mxu1  ;;  %v10031_v10 = vld [vmem:[%s10417_s24] ss:$0 sm:$0xff]  ;;  %v12111_v24 = vld [vmem:[#allocation38_spill] sm:$0xff] }
0x284a   : > { %v7167_v23 = vpop.f32.mrb[110].mxu1  ;;  %v12113_v29 = vld [vmem:[#allocation40_spill] sm:$0xff] }
0x284b   : > { %v9593_v38 = vpop.f32.mrb[111].mxu1  ;;  %v12114_v23 = vld [vmem:[#allocation41_spill] sm:$0xff] }
0x284c   : > { %v12115_v38 = vld [vmem:[#allocation42_spill] sm:$0xff] }
0x28a7   : > { %v7262_v39 = vpop.xlane.xlu0 %7261 }
0x28a8   : > { %9994 = vrcp.f32 %v7262_v39  ;;  %v12117_v39 = vld [vmem:[#allocation44_spill] sm:$0xff] }
0x28b2   : > { %v9995_v8 = vpop.eup %9994 }
0x28ec   : > { %v7339_v30 = vpop.f32.mrb[106].mxu1 }
0x28ed   : > { %v7344_v18 = vmul.f32 %v9995_v8, %v7339_v30  ;;  %v9607_v56 = vpop.f32.mrb[107].mxu1  ;;  %v10034_v8 = vld [vmem:[%s10447_s16 + $0x40] sm:$0xff]  }
0x28ee   : > { %v10035_v30 = vld [vmem:[%s10447_s16 + $0xc0] sm:$0xff]  }
0x28ef   : > { %v7345_v47 = vpack.c.bf16 %v7344_v18, %v7344_v18  ;;  %v10036_v18 = vld [vmem:[%s10447_s16] sm:$0xff]  }
0x28f0   : > { %v10037_v56 = vld [vmem:[%s10447_s16 + $0x80] sm:$0xff]  }
0x28f1   : > { %9611 = vmatmul.mubr.msk.bf16.vlgmr.msra.gmra.mrb[100].mxu0 %vm1656_vm3, %v7345_v47  ;;  %v10038_v47 = vld [vmem:[%s10447_s16 + $0x48] sm:$0xff]  }
0x28f2   : > { %7453 = vmatpush1.bf16.msra.mxu0 %v10766_v31  ;;  %7484 = vmatprep.mubr.bf16.mxu0 %v12052_v16 }
0x28f3   : > { %7454 = vmatprep.subr.bf16.mxu0 %v10784_v41 }
0x28f6   : > { %7455 = vmatpush1.bf16.msra.mxu0 %v10782_v37 }
0x28f7   : > { %7456 = vmatprep.subr.bf16.mxu0 %v10800_v49 }
0x28fa   : > { %7457 = vmatpush1.bf16.msra.mxu0 %v10798_v48 }
0x28fb   : > { %7458 = vmatprep.subr.bf16.mxu0 %v10816_v59 }
0x28fe   : > { %7459 = vmatpush1.bf16.msra.mxu0 %v10814_v58 }
0x28ff   : > { %7534 = vmatprep.subr.bf16.mxu0 %v10832_v4 }
0x29c4   : > { %v7383_v53 = vpop.f32.mrb[100].mxu0 }
0x29c5   : > { %v7389_v57 = vadd.f32 %v7383_v53, %v7170_v45  ;;  %v9612_v63 = vpop.f32.mrb[101].mxu0  ;;  %v12112_v45 = vld [vmem:[#allocation39_spill] sm:$0xff] }
0x29c6   : > { %v7386_v31 = vpop.f32.mrb[102].mxu0  ;;  %v10039_v53 = vld [vmem:[%s10447_s16 + $0xc8] sm:$0xff]  }
0x29c7   : > { %v7390_v62 = vadd.f32 %v10031_v10, %v7389_v57  ;;  %v9613_v27 = vpop.f32.mrb[103].mxu0  ;;  %v10040_v57 = vld [vmem:[%s10447_s16 + $0x8] sm:$0xff]   ;;  %v10042_v31 = vld [vmem:[%s10447_s16 + $0x50] sm:$0xff]  }
0x29c8   : > { %v10041_v63 = vld [vmem:[%s10447_s16 + $0x88] sm:$0xff]   ;;  %v10043_v10 = vld [vmem:[%s10447_s16 + $0xd0] sm:$0xff]  }
0x29c9   : > { %v7391_v41 = vadd.f32 %v7390_v62, %v11438_v25  ;;  %v10044_v62 = vld [vmem:[%s10447_s16 + $0x10] sm:$0xff]  }
0x29ca   : > { %v10045_v27 = vld [vmem:[%s10447_s16 + $0x90] sm:$0xff]  }
0x29cb   : > { %v7392_v37 = vsel %vm1608_vm1, %v7391_v41, 0.0 }
0x29cc   : > { %7393 = vadd.xlane.f32.xlu1 %v7392_v37  ;;  %v10047_v37 = vld [vmem:[%s10447_s16 + $0xd8] sm:$0xff]  }
0x2a59   : > { %v7394_v48 = vpop.xlane.xlu1 %7393 }
0x2a5a   : > { %v7395_v49 = vmul.f32 0.015625, %v7394_v48  ;;  %v10048_v48 = vld [vmem:[%s10447_s16 + $0x18] sm:$0xff]  }
0x2a5c   : > { %v7396_v59 = vsub.f32 %v7391_v41, %v7395_v49  ;;  %v10046_v41 = vld [vmem:[%s10447_s16 + $0x58] sm:$0xff]  }
0x2a5d   : > { %v10049_v49 = vld [vmem:[%s10447_s16 + $0x98] sm:$0xff]  }
0x2a5e   : > { %v7397_v58 = vmul.f32 %v7396_v59, %v7396_v59 }
0x2a60   : > { %v7398_v4 = vsel %vm1608_vm1, %v7397_v58, 0.0  ;;  %v10051_v58 = vld [vmem:[%s10447_s16 + $0xe0] sm:$0xff]  }
0x2a61   : > { %7399 = vadd.xlane.f32.xlu1 %v7398_v4  ;;  %v10052_v4 = vld [vmem:[%s10447_s16 + $0x20] sm:$0xff]  }
0x2a65   : > { %5497 = vadd.xlane.f32.xlu1 %v5496_v17  ;;  %v10053_v17 = vld [vmem:[%s10447_s16 + $0xa0] sm:$0xff]  }
0x2aee   : > { %v7400_v25 = vpop.xlane.xlu1 %7399 }
0x2aef   : > { %v7401_v5 = vmul.f32 0.015625, %v7400_v25  ;;  %v10054_v25 = vld [vmem:[%s10447_s16 + $0x68] sm:$0xff]  }
0x2af1   : > { %v7402_v55 = vadd.f32 1e-05, %v7401_v5  ;;  %v10055_v5 = vld [vmem:[%s10447_s16 + $0xe8] sm:$0xff]  }
0x2af3   : > { %9996 = vrsqrt.f32 %v7402_v55  ;;  %v10056_v55 = vld [vmem:[%s10447_s16 + $0x28] sm:$0xff]  }
0x2afd   : > { %v9997_v13 = vpop.eup %9996 }
0x2afe   : > { %v7404_v44 = vmul.f32 %v9997_v13, %v7396_v59  ;;  %v10050_v59 = vld [vmem:[%s10447_s16 + $0x60] sm:$0xff]   ;;  %v10057_v13 = vld [vmem:[%s10447_s16 + $0xa8] sm:$0xff]  }
0x2b00   : > { %v7405_v34 = vmul.f32 %v10032_v33, %v7404_v44  ;;  %v10058_v44 = vld [vmem:[%s10447_s16 + $0x70] sm:$0xff]  }
0x2b01   : > { %v10059_v33 = vld [vmem:[%s10447_s16 + $0xf0] sm:$0xff]  }
0x2b02   : > { %v11577_v9 = vadd.f32 %v10033_v12, %v7405_v34  ;;  %v10060_v34 = vld [vmem:[%s10447_s16 + $0x30] sm:$0xff]  }
0x2b03   : > { %v10061_v12 = vld [vmem:[%s10447_s16 + $0xb0] sm:$0xff]  }
0x2b04   : > { %v11581_v21 = vpack.c.bf16 %v11577_v9, %v11577_v9 }
0x2b06   : > { %8769 = vmatmul.mubr.msk.bf16.vlgmr.msra.gmra.mrb[112].mxu1 %vm1608_vm1, %v11581_v21  ;;  %8770 = vmatmul.mubr.msk.bf16.vlgmr.msra.gmra.mrb[104].mxu0 %vm1608_vm1, %v11581_v21 }
0x2b07   : > { %7494 = vmatpush1.bf16.msra.mxu1 %v10828_v2  ;;  %7535 = vmatpush1.bf16.msra.mxu0 %v10830_v3  ;;  %v12085_v2 = vld [vmem:[#allocation12_spill] sm:$0xff]  ;;  %v12086_v3 = vld [vmem:[#allocation13_spill] sm:$0xff] }
0x2b08   : > { %7495 = vmatprep.subr.bf16.mxu1 %v10849_v22  ;;  %7536 = vmatprep.subr.bf16.mxu0 %v10851_v46  ;;  %v12087_v22 = vld [vmem:[#allocation14_spill] sm:$0xff]  ;;  %v12088_v46 = vld [vmem:[#allocation15_spill] sm:$0xff] }
0x2b09   : > { %7525 = vmatprep.mubr.bf16.mxu1 %v12052_v16  ;;  %7566 = vmatprep.mubr.bf16.mxu0 %v12052_v16 }
0x2b0b   : > { %7496 = vmatpush1.bf16.msra.mxu1 %v10863_v36  ;;  %7537 = vmatpush1.bf16.msra.mxu0 %v10865_v40  ;;  %v12089_v36 = vld [vmem:[#allocation16_spill] sm:$0xff]  ;;  %v12090_v40 = vld [vmem:[#allocation17_spill] sm:$0xff] }
0x2b0c   : > { %7497 = vmatprep.subr.bf16.mxu1 %v10869_v42  ;;  %7538 = vmatprep.subr.bf16.mxu0 %v10871_v43  ;;  %v12091_v42 = vld [vmem:[#allocation18_spill] sm:$0xff]  ;;  %v12092_v43 = vld [vmem:[#allocation19_spill] sm:$0xff] }
0x2b0f   : > { %7498 = vmatpush1.bf16.msra.mxu1 %v10881_v52  ;;  %7539 = vmatpush1.bf16.msra.mxu0 %v10883_v54  ;;  %v12093_v52 = vld [vmem:[#allocation20_spill] sm:$0xff]  ;;  %v12094_v54 = vld [vmem:[#allocation21_spill] sm:$0xff] }
0x2b10   : > { %7499 = vmatprep.subr.bf16.mxu1 %v10887_v60  ;;  %7540 = vmatprep.subr.bf16.mxu0 %v10889_v61  ;;  %v12095_v60 = vld [vmem:[#allocation22_spill] sm:$0xff]  ;;  %v12096_v61 = vld [vmem:[#allocation23_spill] sm:$0xff] }
0x2b13   : > { %7500 = vmatpush1.bf16.msra.mxu1 %v10897_v7  ;;  %7541 = vmatpush1.bf16.msra.mxu0 %v12085_v2  ;;  %v12097_v7 = vld [vmem:[#allocation24_spill] sm:$0xff] }
0x2b14   : > { %7575 = vmatprep.subr.bf16.mxu1 %v12086_v3  ;;  %7616 = vmatprep.subr.bf16.mxu0 %v12087_v22  ;;  %v10063_v2 = vld [vmem:[%s10447_s16 + $0xf8] sm:$0xff]  }
0x2b15   : > { %v10064_v3 = vld [vmem:[%s10447_s16 + $0x38] sm:$0xff]  }
0x2b16   : > { %8771 = vmatmul.mubr.msk.bf16.vlgmr.msra.gmra.mrb[116].mxu1 %vm1608_vm1, %v11581_v21  ;;  %8772 = vmatmul.mubr.msk.bf16.vlgmr.msra.gmra.mrb[108].mxu0 %vm1608_vm1, %v11581_v21  ;;  %v10065_v22 = vld [vmem:[%s10447_s16 + $0xb8] sm:$0xff]  }
0x2b17   : > { %7576 = vmatpush1.bf16.msra.mxu1 %v12088_v46  ;;  %7617 = vmatpush1.bf16.msra.mxu0 %v12089_v36  ;;  %v10066_v46 = vld [vmem:[%s10447_s16 + $0x140] sm:$0xff]  }
0x2b18   : > { %7577 = vmatprep.subr.bf16.mxu1 %v12090_v40  ;;  %7618 = vmatprep.subr.bf16.mxu0 %v12091_v42  ;;  %v10067_v36 = vld [vmem:[%s10447_s16 + $0x1c0] sm:$0xff]  }
0x2b19   : > { %7607 = vmatprep.mubr.bf16.mxu1 %v12052_v16  ;;  %7648 = vmatprep.mubr.bf16.mxu0 %v12052_v16 }
0x2b1b   : > { %7578 = vmatpush1.bf16.msra.mxu1 %v12092_v43  ;;  %7619 = vmatpush1.bf16.msra.mxu0 %v12093_v52  ;;  %v12118_v43 = vld [vmem:[#allocation46_spill] sm:$0xff] }
0x2b1c   : > { %7579 = vmatprep.subr.bf16.mxu1 %v12094_v54  ;;  %7620 = vmatprep.subr.bf16.mxu0 %v12095_v60  ;;  %v12119_v54 = vld [vmem:[#allocation47_spill] sm:$0xff] }
0x2b1f   : > { %7580 = vmatpush1.bf16.msra.mxu1 %v12096_v61  ;;  %7621 = vmatpush1.bf16.msra.mxu0 %v12097_v7 }
0x2b20   : > { %7581 = vmatprep.subr.bf16.mxu1 %v12098_v32  ;;  %7622 = vmatprep.subr.bf16.mxu0 %v12099_v26  ;;  %v12120_v32 = vld [vmem:[#allocation48_spill] sm:$0xff] }
0x2b23   : > { %7582 = vmatpush1.bf16.msra.mxu1 %v12100_v51  ;;  %7623 = vmatpush1.bf16.msra.mxu0 %v12101_v15  ;;  %v12121_v51 = vld [vmem:[#allocation49_spill] sm:$0xff] }
0x2b24   : > { %7657 = vmatprep.subr.bf16.mxu1 %v12102_v0  ;;  %7698 = vmatprep.subr.bf16.mxu0 %v12103_v35 }
0x2b26   : > { %8773 = vmatmul.mubr.msk.bf16.vlgmr.msra.gmra.mrb[120].mxu1 %vm1608_vm1, %v11581_v21  ;;  %8774 = vmatmul.mubr.msk.bf16.vlgmr.msra.gmra.mrb[112].mxu0 %vm1608_vm1, %v11581_v21 }
0x2b27   : > { %7658 = vmatpush1.bf16.msra.mxu1 %v12104_v50  ;;  %7699 = vmatpush1.bf16.msra.mxu0 %v12105_v20 }
0x2b28   : > { %7659 = vmatprep.subr.bf16.mxu1 %v12106_v14  ;;  %7700 = vmatprep.subr.bf16.mxu0 %v12107_v28 }
0x2b29   : > { %7689 = vmatprep.mubr.bf16.mxu1 %v12052_v16  ;;  %7730 = vmatprep.mubr.bf16.mxu0 %v12052_v16  ;;  %v12116_v16 = vld [vmem:[#allocation43_spill] sm:$0xff] }
0x2b2b   : > { %7660 = vmatpush1.bf16.msra.mxu1 %v12108_v6  ;;  %7701 = vmatpush1.bf16.msra.mxu0 %v12109_v11 }
0x2b2c   : > { %7661 = vmatprep.subr.bf16.mxu1 %v12110_v19  ;;  %7702 = vmatprep.subr.bf16.mxu0 %v12111_v24 }
0x2b2f   : > { %7662 = vmatpush1.bf16.msra.mxu1 %v12112_v45  ;;  %7703 = vmatpush1.bf16.msra.mxu0 %v12113_v29 }
0x2b30   : > { %7663 = vmatprep.subr.bf16.mxu1 %v12114_v23  ;;  %7704 = vmatprep.subr.bf16.mxu0 %v12115_v38  ;;  %v10068_v23 = vld [vmem:[%s10447_s16 + $0x100] sm:$0xff]  }
0x2b31   : > { %v10069_v38 = vld [vmem:[%s10447_s16 + $0x180] sm:$0xff]  }
0x2b33   : > { %7664 = vmatpush1.bf16.msra.mxu1 %v12116_v16  ;;  %7705 = vmatpush1.bf16.msra.mxu0 %v12117_v39  ;;  %v10070_v16 = vld [vmem:[%s10447_s16 + $0x148] sm:$0xff]  }
0x2b34   : > { %9102 = vmatprep.subr.bf16.mxu1 %v10034_v8  ;;  %9124 = vmatprep.subr.bf16.mxu0 %v10035_v30  ;;  %v10071_v39 = vld [vmem:[%s10447_s16 + $0x1c8] sm:$0xff]  }
0x2b35   : > { %v10072_v8 = vld [vmem:[%s10447_s16 + $0x108] sm:$0xff]  }
0x2b36   : > { %8775 = vmatmul.mubr.msk.bf16.vlgmr.msra.gmra.mrb[124].mxu1 %vm1608_vm1, %v11581_v21  ;;  %8776 = vmatmul.mubr.msk.bf16.vlgmr.msra.gmra.mrb[116].mxu0 %vm1608_vm1, %v11581_v21  ;;  %v10062_v21 = vld [vmem:[%s10447_s16 + $0x78] sm:$0xff]   ;;  %v10073_v30 = vld [vmem:[%s10447_s16 + $0x188] sm:$0xff]  }
0x2b37   : > { %9103 = vmatpush3.bf16.msra.mxu1 %v10036_v18  ;;  %9125 = vmatpush3.bf16.msra.mxu0 %v10037_v56  ;;  %v10074_v18 = vld [vmem:[%s10447_s16 + $0x150] sm:$0xff]  }
0x2b38   : > { %9104 = vmatprep.subr.bf16.mxu1 %v10038_v47  ;;  %9126 = vmatprep.subr.bf16.mxu0 %v10039_v53  ;;  %v10075_v56 = vld [vmem:[%s10447_s16 + $0x1d0] sm:$0xff]  }
0x2b3b   : > { %9105 = vmatpush3.bf16.msra.mxu1 %v10040_v57  ;;  %9127 = vmatpush3.bf16.msra.mxu0 %v10041_v63 }
0x2b3c   : > { %9106 = vmatprep.subr.bf16.mxu1 %v10042_v31  ;;  %9128 = vmatprep.subr.bf16.mxu0 %v10043_v10  ;;  %v12122_v31 = vld [vmem:[#allocation50_spill] sm:$0xff] }
0x2b3f   : > { %9107 = vmatpush3.bf16.msra.mxu1 %v10044_v62  ;;  %9129 = vmatpush3.bf16.msra.mxu0 %v10045_v27  ;;  %v12123_v62 = vld [vmem:[#allocation51_spill] sm:$0xff] }
0x2b40   : > { %9108 = vmatprep.subr.bf16.mxu1 %v10046_v41  ;;  %9130 = vmatprep.subr.bf16.mxu0 %v10047_v37 }
0x2b43   : > { %9109 = vmatpush3.bf16.msra.mxu1 %v10048_v48  ;;  %9131 = vmatpush3.bf16.msra.mxu0 %v10049_v49  ;;  %v10076_v48 = vld [vmem:[%s10447_s16 + $0x110] sm:$0xff]  }
0x2b44   : > { %9110 = vmatprep.subr.bf16.mxu1 %v10050_v59  ;;  %9132 = vmatprep.subr.bf16.mxu0 %v10051_v58  ;;  %v10077_v49 = vld [vmem:[%s10447_s16 + $0x190] sm:$0xff]  }
0x2b47   : > { %9111 = vmatpush3.bf16.msra.mxu1 %v10052_v4  ;;  %9133 = vmatpush3.bf16.msra.mxu0 %v10053_v17  ;;  %v10078_v4 = vld [vmem:[%s10447_s16 + $0x158] sm:$0xff]  }
0x2b48   : > { %9112 = vmatprep.subr.bf16.mxu1 %v10054_v25  ;;  %9134 = vmatprep.subr.bf16.mxu0 %v10055_v5  ;;  %v10079_v17 = vld [vmem:[%s10447_s16 + $0x1d8] sm:$0xff]  }
0x2b4b   : > { %9113 = vmatpush3.bf16.msra.mxu1 %v10056_v55  ;;  %9135 = vmatpush3.bf16.msra.mxu0 %v10057_v13 }
0x2b4c   : > { %9114 = vmatprep.subr.bf16.mxu1 %v10058_v44  ;;  %9136 = vmatprep.subr.bf16.mxu0 %v10059_v33  ;;  %v10080_v44 = vld [vmem:[%s10447_s16 + $0x118] sm:$0xff]  }
0x2b4d   : > { %v10081_v33 = vld [vmem:[%s10447_s16 + $0x198] sm:$0xff]  }
0x2b4f   : > { %9115 = vmatpush3.bf16.msra.mxu1 %v10060_v34  ;;  %9137 = vmatpush3.bf16.msra.mxu0 %v10061_v12  ;;  %v10082_v34 = vld [vmem:[%s10447_s16 + $0x160] sm:$0xff]  }
0x2b50   : > { %9116 = vmatprep.subr.bf16.mxu1 %v10062_v21  ;;  %9138 = vmatprep.subr.bf16.mxu0 %v10063_v2  ;;  %v10083_v12 = vld [vmem:[%s10447_s16 + $0x1e0] sm:$0xff]  }
0x2b51   : > { %v10084_v21 = vld [vmem:[%s10447_s16 + $0x120] sm:$0xff]  }
0x2b52   : > { %v10085_v2 = vld [vmem:[%s10447_s16 + $0x1a0] sm:$0xff]  }
0x2b53   : > { %9117 = vmatpush3.bf16.msra.mxu1 %v10064_v3  ;;  %9139 = vmatpush3.bf16.msra.mxu0 %v10065_v22  ;;  %v10086_v3 = vld [vmem:[%s10447_s16 + $0x168] sm:$0xff]  }
0x2b54   : > { %9146 = vmatprep.subr.bf16.mxu1 %v10066_v46  ;;  %9168 = vmatprep.subr.bf16.mxu0 %v10067_v36  ;;  %v10087_v22 = vld [vmem:[%s10447_s16 + $0x1e8] sm:$0xff]  }
0x2b55   : > { %v10088_v46 = vld [vmem:[%s10447_s16 + $0x128] sm:$0xff]  }
0x2b56   : > { %v10089_v36 = vld [vmem:[%s10447_s16 + $0x1a8] sm:$0xff]  }
0x2bd9   : > { %v7445_v40 = vpop.f32.mrb[112].mxu1  ;;  %v7486_v42 = vpop.f32.mrb[104].mxu0 }
0x2bda   : > { %v7446_v52 = vadd.f32 %v7445_v40, %v12118_v43  ;;  %v7487_v60 = vadd.f32 %v7486_v42, %v12119_v54  ;;  %v7447_v61 = vpop.f32.mrb[113].mxu1  ;;  %v7488_v7 = vpop.f32.mrb[105].mxu0  ;;  %v12124_v40 = vld [vmem:[#allocation52_spill] sm:$0xff]  ;;  %v12125_v43 = vld [vmem:[#allocation53_spill] sm:$0xff] }
0x2bdb   : > { %v7448_v26 = vadd.f32 %v7447_v61, %v12120_v32  ;;  %v7489_v15 = vadd.f32 %v7488_v7, %v12121_v51  ;;  %v7449_v0 = vpop.f32.mrb[114].mxu1  ;;  %v7490_v35 = vpop.f32.mrb[106].mxu0  ;;  %v10090_v54 = vld [vmem:[%s10447_s16 + $0x170] sm:$0xff]   ;;  %v12126_v51 = vld [vmem:[#allocation54_spill] sm:$0xff] }
0x2bdc   : > { %v7739_v50 = vmax.f32 %v7446_v52, 0.0  ;;  %v7741_v20 = vmax.f32 %v7487_v60, 0.0  ;;  %v7450_v14 = vpop.f32.mrb[115].mxu1  ;;  %v7491_v28 = vpop.f32.mrb[107].mxu0  ;;  %v10091_v60 = vld [vmem:[%s10447_s16 + $0x1f0] sm:$0xff]  }
0x2bdd   : > { %v7740_v6 = vmax.f32 %v7448_v26, 0.0  ;;  %v7742_v11 = vmax.f32 %v7489_v15, 0.0  ;;  %v12127_v0 = vld [vmem:[#allocation55_spill] sm:$0xff] }
0x2bde   : > { %v7755_v45 = vpack.c.bf16 %v7739_v50, %v7739_v50  ;;  %v7757_v29 = vpack.c.bf16 %v7741_v20, %v7741_v20  ;;  %v10092_v14 = vld [vmem:[%s10447_s16 + $0x130] sm:$0xff]  }
0x2bdf   : > { %v7756_v19 = vpack.c.bf16 %v7740_v6, %v7740_v6  ;;  %v7758_v24 = vpack.c.bf16 %v7742_v11, %v7742_v11  ;;  %v10093_v28 = vld [vmem:[%s10447_s16 + $0x1b0] sm:$0xff]  }
0x2be1   : > { %7803 = vmatprep.mubr.bf16.mxu1 %v7756_v19  ;;  %7843 = vmatprep.mubr.bf16.mxu0 %v7758_v24 }
0x2be2   : > { %7804 = vmatmul.mubr.bf16.vlgmr.msra.gmra.mrb[128].mxu1 %v7755_v45  ;;  %7844 = vmatmul.mubr.bf16.vlgmr.msra.gmra.mrb[120].mxu0 %v7757_v29  ;;  %v10094_v45 = vld [vmem:[%s10447_s16 + $0x178] sm:$0xff]  }
0x2be3   : > { %9147 = vmatpush3.bf16.msra.mxu1 %v10068_v23  ;;  %9169 = vmatpush3.bf16.msra.mxu0 %v10069_v38  ;;  %v10095_v29 = vld [vmem:[%s10447_s16 + $0x1f8] sm:$0xff]  }
0x2be4   : > { %9148 = vmatprep.subr.bf16.mxu1 %v10070_v16  ;;  %9170 = vmatprep.subr.bf16.mxu0 %v10071_v39  ;;  %v10096_v16 = vld [vmem:[%s10447_s16 + $0x138] sm:$0xff]  }
0x2be5   : > { %v10097_v39 = vld [vmem:[%s10447_s16 + $0x1b8] sm:$0xff]  }
0x2be7   : > { %9149 = vmatpush3.bf16.msra.mxu1 %v10072_v8  ;;  %9171 = vmatpush3.bf16.msra.mxu0 %v10073_v30 }
0x2be8   : > { %9150 = vmatprep.subr.bf16.mxu1 %v10074_v18  ;;  %9172 = vmatprep.subr.bf16.mxu0 %v10075_v56  ;;  %v10098_v18 = vld [vmem:[%s10447_s16 + $0x240] sm:$0xff]  }
0x2be9   : > { %v7527_v47 = vpop.f32.mrb[116].mxu1  ;;  %v7568_v53 = vpop.f32.mrb[108].mxu0  ;;  %v10099_v56 = vld [vmem:[%s10447_s16 + $0x2c0] sm:$0xff]  }
0x2bea   : > { %v7529_v57 = vpop.f32.mrb[117].mxu1  ;;  %v7570_v63 = vpop.f32.mrb[109].mxu0  ;;  %v7528_v42 = vadd.f32 %v7527_v47, %v12124_v40  ;;  %v7569_v52 = vadd.f32 %v7568_v53, %v12125_v43  ;;  %v10120_v40 = vld [vmem:[%s10447_s16 + $0x228] sm:$0xff]  }
0x2beb   : > { %v7530_v10 = vadd.f32 %v7529_v57, %v12122_v31  ;;  %v7571_v27 = vadd.f32 %v7570_v63, %v12123_v62  ;;  %v7531_v41 = vpop.f32.mrb[118].mxu1  ;;  %v7572_v37 = vpop.f32.mrb[110].mxu0  ;;  %9151 = vmatpush3.bf16.msra.mxu1 %v10076_v48  ;;  %9173 = vmatpush3.bf16.msra.mxu0 %v10077_v49  ;;  %v10100_v57 = vld [vmem:[%s10447_s16 + $0x200] sm:$0xff]   ;;  %v10102_v31 = vld [vmem:[%s10447_s16 + $0x248] sm:$0xff]   ;;  %v10107_v49 = vld [vmem:[%s10447_s16 + $0x2d0] sm:$0xff]  }
0x2bec   : > { %v7532_v59 = vpop.f32.mrb[119].mxu1  ;;  %v7573_v58 = vpop.f32.mrb[111].mxu0  ;;  %9152 = vmatprep.subr.bf16.mxu1 %v10078_v4  ;;  %9174 = vmatprep.subr.bf16.mxu0 %v10079_v17  ;;  %v7743_v6 = vmax.f32 %v7528_v42, 0.0  ;;  %v7745_v11 = vmax.f32 %v7569_v52, 0.0  ;;  %v10101_v63 = vld [vmem:[%s10447_s16 + $0x280] sm:$0xff]   ;;  %v10104_v62 = vld [vmem:[%s10447_s16 + $0x208] sm:$0xff]  }
0x2bed   : > { %v7744_v25 = vmax.f32 %v7530_v10, 0.0  ;;  %v7746_v5 = vmax.f32 %v7571_v27, 0.0  ;;  %v10103_v10 = vld [vmem:[%s10447_s16 + $0x2c8] sm:$0xff]   ;;  %v10106_v41 = vld [vmem:[%s10447_s16 + $0x250] sm:$0xff]  }
0x2bee   : > { %v7759_v8 = vpack.c.bf16 %v7743_v6, %v7743_v6  ;;  %v7761_v30 = vpack.c.bf16 %v7745_v11, %v7745_v11  ;;  %v10105_v27 = vld [vmem:[%s10447_s16 + $0x288] sm:$0xff]   ;;  %v12128_v42 = vld [vmem:[#allocation56_spill] sm:$0xff] }
0x2bef   : > { %v7760_v55 = vpack.c.bf16 %v7744_v25, %v7744_v25  ;;  %v7762_v13 = vpack.c.bf16 %v7746_v5, %v7746_v5  ;;  %9153 = vmatpush3.bf16.msra.mxu1 %v10080_v44  ;;  %9175 = vmatpush3.bf16.msra.mxu0 %v10081_v33  ;;  %v10108_v25 = vld [vmem:[%s10447_s16 + $0x210] sm:$0xff]   ;;  %v10110_v44 = vld [vmem:[%s10447_s16 + $0x258] sm:$0xff]   ;;  %v10121_v52 = vld [vmem:[%s10447_s16 + $0x2a8] sm:$0xff]  }
0x2bf0   : > { %9154 = vmatprep.subr.bf16.mxu1 %v10082_v34  ;;  %9176 = vmatprep.subr.bf16.mxu0 %v10083_v12  ;;  %v10109_v5 = vld [vmem:[%s10447_s16 + $0x290] sm:$0xff]   ;;  %v10111_v33 = vld [vmem:[%s10447_s16 + $0x2d8] sm:$0xff]  }
0x2bf1   : > { %7883 = vmatprep.mubr.bf16.mxu1 %v7760_v55  ;;  %7923 = vmatprep.mubr.bf16.mxu0 %v7762_v13  ;;  %v10112_v34 = vld [vmem:[%s10447_s16 + $0x218] sm:$0xff]  }
0x2bf2   : > { %v10113_v12 = vld [vmem:[%s10447_s16 + $0x298] sm:$0xff]  }
0x2bf3   : > { %9155 = vmatpush3.bf16.msra.mxu1 %v10084_v21  ;;  %9177 = vmatpush3.bf16.msra.mxu0 %v10085_v2  ;;  %v10114_v21 = vld [vmem:[%s10447_s16 + $0x260] sm:$0xff]   ;;  %v10127_v6 = vld [vmem:[%s10447_s16 + $0x2f8] sm:$0xff]  }
0x2bf4   : > { %9156 = vmatprep.subr.bf16.mxu1 %v10086_v3  ;;  %9178 = vmatprep.subr.bf16.mxu0 %v10087_v22  ;;  %v10115_v2 = vld [vmem:[%s10447_s16 + $0x2e0] sm:$0xff]  }
0x2bf5   : > { %v10116_v3 = vld [vmem:[%s10447_s16 + $0x220] sm:$0xff]  }
0x2bf6   : > { %v10117_v22 = vld [vmem:[%s10447_s16 + $0x2a0] sm:$0xff]  }
0x2bf7   : > { %9157 = vmatpush3.bf16.msra.mxu1 %v10088_v46  ;;  %9179 = vmatpush3.bf16.msra.mxu0 %v10089_v36  ;;  %v10118_v46 = vld [vmem:[%s10447_s16 + $0x268] sm:$0xff]  }
0x2bf8   : > { %9158 = vmatprep.subr.bf16.mxu1 %v10090_v54  ;;  %9180 = vmatprep.subr.bf16.mxu0 %v10091_v60  ;;  %v10119_v36 = vld [vmem:[%s10447_s16 + $0x2e8] sm:$0xff]   ;;  %v10122_v54 = vld [vmem:[%s10447_s16 + $0x270] sm:$0xff]   ;;  %v12129_v60 = vld [vmem:[#allocation57_spill] sm:$0xff] }
0x2bf9   : > { %v11717_v61 = vpop.f32.mrb[120].mxu1  ;;  %v11719_v7 = vpop.f32.mrb[112].mxu0 }
0x2bfa   : > { %v7611_v32 = vpop.f32.mrb[121].mxu1  ;;  %v7652_v26 = vpop.f32.mrb[113].mxu0  ;;  %v7610_v43 = vadd.f32 %v11717_v61, %v12128_v42  ;;  %v10160_v42 = vld [vmem:[%s10447_s16 + $0x338] sm:$0xff]  }
0x2bfb   : > { %v7612_v15 = vadd.f32 %v7611_v32, %v12126_v51  ;;  %v7653_v35 = vadd.f32 %v7652_v26, %v12127_v0  ;;  %v7613_v50 = vpop.f32.mrb[122].mxu1  ;;  %v7654_v20 = vpop.f32.mrb[114].mxu0  ;;  %9159 = vmatpush3.bf16.msra.mxu1 %v10092_v14  ;;  %9181 = vmatpush3.bf16.msra.mxu0 %v10093_v28  ;;  %v7651_v32 = vadd.f32 %v11719_v7, %v12129_v60  ;;  %v10123_v26 = vld [vmem:[%s10447_s16 + $0x2f0] sm:$0xff]   ;;  %v12130_v51 = vld [vmem:[#allocation58_spill] sm:$0xff]  ;;  %v10126_v14 = vld [vmem:[%s10447_s16 + $0x278] sm:$0xff]  }
0x2bfc   : > { %v7614_v19 = vpop.f32.mrb[123].mxu1  ;;  %v7655_v24 = vpop.f32.mrb[115].mxu0  ;;  %9160 = vmatprep.subr.bf16.mxu1 %v10094_v45  ;;  %9182 = vmatprep.subr.bf16.mxu0 %v10095_v29  ;;  %v12131_v0 = vld [vmem:[#allocation59_spill] sm:$0xff]  ;;  %v7747_v61 = vmax.f32 %v7610_v43, 0.0  ;;  %v10129_v45 = vld [vmem:[%s10447_s16 + $0x2b8] sm:$0xff]   ;;  %v10130_v29 = vld [vmem:[%s10447_s16 + $0x340] sm:$0xff]  }
0x2bfd   : > { %v7748_v23 = vmax.f32 %v7612_v15, 0.0  ;;  %v7750_v38 = vmax.f32 %v7653_v35, 0.0  ;;  %v10124_v50 = vld [vmem:[%s10447_s16 + $0x230] sm:$0xff]   ;;  %v7749_v28 = vmax.f32 %v7651_v32, 0.0  ;;  %v10128_v19 = vld [vmem:[%s10447_s16 + $0x238] sm:$0xff]  }
0x2bfe   : > { %v10125_v20 = vld [vmem:[%s10447_s16 + $0x2b0] sm:$0xff]   ;;  %v7763_v24 = vpack.c.bf16 %v7747_v61, %v7747_v61 }
0x2bff   : > { %9161 = vmatpush3.bf16.msra.mxu1 %v10096_v16  ;;  %9183 = vmatpush3.bf16.msra.mxu0 %v10097_v39  ;;  %v7764_v47 = vpack.c.bf16 %v7748_v23, %v7748_v23  ;;  %v7766_v53 = vpack.c.bf16 %v7750_v38, %v7750_v38  ;;  %v7765_v23 = vpack.c.bf16 %v7749_v28, %v7749_v28  ;;  %v10131_v38 = vld [vmem:[%s10447_s16 + $0x3c0] sm:$0xff]  }
0x2c00   : > { %9190 = vmatprep.subr.bf16.mxu1 %v10098_v18  ;;  %9212 = vmatprep.subr.bf16.mxu0 %v10099_v56  ;;  %v10134_v18 = vld [vmem:[%s10447_s16 + $0x348] sm:$0xff]  }
0x2c01   : > { %v10135_v56 = vld [vmem:[%s10447_s16 + $0x3c8] sm:$0xff]  }
0x2c02   : > { %7884 = vmatmul.mubr.bf16.vlgmr.msra.gmra.mrb[132].mxu1 %v7759_v8  ;;  %7924 = vmatmul.mubr.bf16.vlgmr.msra.gmra.mrb[124].mxu0 %v7761_v30  ;;  %v10132_v8 = vld [vmem:[%s10447_s16 + $0x300] sm:$0xff]  }
0x2c03   : > { %9191 = vmatpush3.bf16.msra.mxu1 %v10100_v57  ;;  %7963 = vmatprep.mubr.bf16.mxu1 %v7764_v47  ;;  %v10133_v30 = vld [vmem:[%s10447_s16 + $0x380] sm:$0xff]   ;;  %v10136_v47 = vld [vmem:[%s10447_s16 + $0x308] sm:$0xff]   ;;  %v10138_v57 = vld [vmem:[%s10447_s16 + $0x350] sm:$0xff]  }
0x2c04   : > { %9213 = vmatpush3.bf16.msra.mxu0 %v10101_v63  ;;  %8003 = vmatprep.mubr.bf16.mxu0 %v7766_v53  ;;  %v10137_v53 = vld [vmem:[%s10447_s16 + $0x388] sm:$0xff]   ;;  %v10139_v63 = vld [vmem:[%s10447_s16 + $0x3d0] sm:$0xff]  }
0x2c05   : > { %9192 = vmatprep.subr.bf16.mxu1 %v10102_v31  ;;  %9214 = vmatprep.subr.bf16.mxu0 %v10103_v10  ;;  %v10140_v31 = vld [vmem:[%s10447_s16 + $0x310] sm:$0xff]  }
0x2c06   : > { %v10141_v10 = vld [vmem:[%s10447_s16 + $0x390] sm:$0xff]  }
0x2c07   : > { %9193 = vmatpush3.bf16.msra.mxu1 %v10104_v62  ;;  %v10142_v62 = vld [vmem:[%s10447_s16 + $0x358] sm:$0xff]  }
0x2c08   : > { %9215 = vmatpush3.bf16.msra.mxu0 %v10105_v27  ;;  %9194 = vmatprep.subr.bf16.mxu1 %v10106_v41  ;;  %v10143_v27 = vld [vmem:[%s10447_s16 + $0x3d8] sm:$0xff]  }
0x2c09   : > { %v11738_v37 = vpop.f32.mrb[124].mxu1  ;;  %v11740_v48 = vpop.f32.mrb[116].mxu0  ;;  %9216 = vmatprep.subr.bf16.mxu0 %v10107_v49  ;;  %v10144_v41 = vld [vmem:[%s10447_s16 + $0x318] sm:$0xff]  }
0x2c0a   : > { %v7693_v59 = vpop.f32.mrb[125].mxu1  ;;  %v7734_v58 = vpop.f32.mrb[117].mxu0  ;;  %v10145_v49 = vld [vmem:[%s10447_s16 + $0x398] sm:$0xff]  }
0x2c0b   : > { %v7695_v4 = vpop.f32.mrb[126].mxu1  ;;  %v7736_v17 = vpop.f32.mrb[118].mxu0  ;;  %9195 = vmatpush3.bf16.msra.mxu1 %v10108_v25  ;;  %v7694_v15 = vadd.f32 %v7693_v59, %v12130_v51  ;;  %v7735_v35 = vadd.f32 %v7734_v58, %v12131_v0  ;;  %v10146_v59 = vld [vmem:[%s10447_s16 + $0x360] sm:$0xff]   ;;  %v10150_v25 = vld [vmem:[%s10447_s16 + $0x368] sm:$0xff]  }
0x2c0c   : > { %9217 = vmatpush3.bf16.msra.mxu0 %v10109_v5  ;;  %v7696_v55 = vpop.f32.mrb[127].mxu1  ;;  %v7737_v13 = vpop.f32.mrb[119].mxu0  ;;  %9196 = vmatprep.subr.bf16.mxu1 %v10110_v44  ;;  %v10147_v58 = vld [vmem:[%s10447_s16 + $0x3e0] sm:$0xff]   ;;  %v10151_v5 = vld [vmem:[%s10447_s16 + $0x3e8] sm:$0xff]  }
0x2c0d   : > { %9218 = vmatprep.subr.bf16.mxu0 %v10111_v33  ;;  %v7752_v7 = vmax.f32 %v7694_v15, 0.0  ;;  %v7754_v11 = vmax.f32 %v7735_v35, 0.0  ;;  %v10148_v4 = vld [vmem:[%s10447_s16 + $0x320] sm:$0xff]   ;;  %v10152_v55 = vld [vmem:[%s10447_s16 + $0x328] sm:$0xff]   ;;  %v12132_v13 = vld [vmem:[#allocation60_spill] sm:$0xff] }
0x2c0e   : > { %v10149_v17 = vld [vmem:[%s10447_s16 + $0x3a0] sm:$0xff]   ;;  %v7692_v44 = vadd.f32 %v11738_v37, %v12132_v13  ;;  %v10153_v33 = vld [vmem:[%s10447_s16 + $0x3a8] sm:$0xff]  }
0x2c0f   : > { %9197 = vmatpush3.bf16.msra.mxu1 %v10112_v34  ;;  %v7768_v16 = vpack.c.bf16 %v7752_v7, %v7752_v7  ;;  %v7770_v39 = vpack.c.bf16 %v7754_v11, %v7754_v11  ;;  %v10154_v34 = vld [vmem:[%s10447_s16 + $0x370] sm:$0xff]  }
0x2c10   : > { %9219 = vmatpush3.bf16.msra.mxu0 %v10113_v12  ;;  %9198 = vmatprep.subr.bf16.mxu1 %v10114_v21  ;;  %v12133_v12 = vld [vmem:[#allocation45_spill] sm:$0xff] }
0x2c11   : > { %9220 = vmatprep.subr.bf16.mxu0 %v10115_v2  ;;  %v7733_v21 = vadd.f32 %v11740_v48, %v12133_v12  ;;  %v10155_v2 = vld [vmem:[%s10447_s16 + $0x3f0] sm:$0xff]  }
0x2c13   : > { %9199 = vmatpush3.bf16.msra.mxu1 %v10116_v3  ;;  %v10156_v3 = vld [vmem:[%s10447_s16 + $0x330] sm:$0xff]   ;;  %v7753_v37 = vmax.f32 %v7733_v21, 0.0 }
0x2c14   : > { %9221 = vmatpush3.bf16.msra.mxu0 %v10117_v22  ;;  %9200 = vmatprep.subr.bf16.mxu1 %v10118_v46  ;;  %v7751_v22 = vmax.f32 %v7692_v44, 0.0  ;;  %v10157_v46 = vld [vmem:[%s10447_s16 + $0x3b0] sm:$0xff]  }
0x2c15   : > { %9222 = vmatprep.subr.bf16.mxu0 %v10119_v36  ;;  %v10158_v36 = vld [vmem:[%s10447_s16 + $0x378] sm:$0xff]   ;;  %v7769_v48 = vpack.c.bf16 %v7753_v37, %v7753_v37 }
0x2c16   : > { %v7767_v43 = vpack.c.bf16 %v7751_v22, %v7751_v22 }
0x2c17   : > { %9201 = vmatpush3.bf16.msra.mxu1 %v10120_v40  ;;  %v10159_v40 = vld [vmem:[%s10447_s16 + $0x3f8] sm:$0xff]  }
0x2c18   : > { %9223 = vmatpush3.bf16.msra.mxu0 %v10121_v52  ;;  %9202 = vmatprep.subr.bf16.mxu1 %v10122_v54  ;;  %v10161_v52 = vld [vmem:[%s10447_s16 + $0x3b8] sm:$0xff]  }
0x2c19   : > { %9224 = vmatprep.subr.bf16.mxu0 %v10123_v26 }
0x2c1b   : > { %9203 = vmatpush3.bf16.msra.mxu1 %v10124_v50 }
0x2c1c   : > { %9225 = vmatpush3.bf16.msra.mxu0 %v10125_v20  ;;  %9204 = vmatprep.subr.bf16.mxu1 %v10126_v14  ;;  %v10162_v20 = vld [vmem:[%s10453_s17] ss:$0 sm:$0xff] }
0x2c1d   : > { %9226 = vmatprep.subr.bf16.mxu0 %v10127_v6 }
0x2c1f   : > { %9205 = vmatpush3.bf16.msra.mxu1 %v10128_v19 }
0x2c20   : > { %9227 = vmatpush3.bf16.msra.mxu0 %v10129_v45  ;;  %9234 = vmatprep.subr.bf16.mxu1 %v10130_v29 }
0x2c21   : > { %9256 = vmatprep.subr.bf16.mxu0 %v10131_v38 }
0x2c22   : > { %7964 = vmatmul.mubr.bf16.vlgmr.msra.gmra.mrb[136].mxu1 %v7763_v24 }
0x2c23   : > { %8004 = vmatmul.mubr.bf16.vlgmr.msra.gmra.mrb[128].mxu0 %v7765_v23  ;;  %9235 = vmatpush3.bf16.msra.mxu1 %v10132_v8 }
0x2c24   : > { %8043 = vmatprep.mubr.bf16.mxu1 %v7768_v16  ;;  %9257 = vmatpush3.bf16.msra.mxu0 %v10133_v30 }
0x2c25   : > { %8083 = vmatprep.mubr.bf16.mxu0 %v7770_v39  ;;  %9236 = vmatprep.subr.bf16.mxu1 %v10134_v18 }
0x2c26   : > { %9258 = vmatprep.subr.bf16.mxu0 %v10135_v56 }
0x2c27   : > { %9237 = vmatpush3.bf16.msra.mxu1 %v10136_v47 }
0x2c28   : > { %9259 = vmatpush3.bf16.msra.mxu0 %v10137_v53  ;;  %9238 = vmatprep.subr.bf16.mxu1 %v10138_v57 }
0x2c29   : > { %9260 = vmatprep.subr.bf16.mxu0 %v10139_v63 }
0x2c2b   : > { %9239 = vmatpush3.bf16.msra.mxu1 %v10140_v31 }
0x2c2c   : > { %9261 = vmatpush3.bf16.msra.mxu0 %v10141_v10  ;;  %9240 = vmatprep.subr.bf16.mxu1 %v10142_v62 }
0x2c2d   : > { %9262 = vmatprep.subr.bf16.mxu0 %v10143_v27 }
0x2c2f   : > { %9241 = vmatpush3.bf16.msra.mxu1 %v10144_v41 }
0x2c30   : > { %9263 = vmatpush3.bf16.msra.mxu0 %v10145_v49  ;;  %9242 = vmatprep.subr.bf16.mxu1 %v10146_v59  ;;  %v5498_v49 = vpop.xlane.xlu1 %5497 }
0x2c31   : > { %9264 = vmatprep.subr.bf16.mxu0 %v10147_v58 }
0x2c33   : > { %9243 = vmatpush3.bf16.msra.mxu1 %v10148_v4 }
0x2c34   : > { %9265 = vmatpush3.bf16.msra.mxu0 %v10149_v17  ;;  %9244 = vmatprep.subr.bf16.mxu1 %v10150_v25  ;;  %v5499_v17 = vmul.f32 0.015625, %v5498_v49 }
0x2c35   : > { %9266 = vmatprep.subr.bf16.mxu0 %v10151_v5 }
0x2c36   : > { %v5500_v21 = vsub.f32 %v11571_v1, %v5499_v17 }
0x2c37   : > { %9245 = vmatpush3.bf16.msra.mxu1 %v10152_v55 }
0x2c38   : > { %9267 = vmatpush3.bf16.msra.mxu0 %v10153_v33  ;;  %9246 = vmatprep.subr.bf16.mxu1 %v10154_v34 }
0x2c39   : > { %9268 = vmatprep.subr.bf16.mxu0 %v10155_v2 }
0x2c3b   : > { %9247 = vmatpush3.bf16.msra.mxu1 %v10156_v3 }
0x2c3c   : > { %9269 = vmatpush3.bf16.msra.mxu0 %v10157_v46  ;;  %9248 = vmatprep.subr.bf16.mxu1 %v10158_v36  ;;  %v5501_v46 = vmul.f32 %v5500_v21, %v5500_v21 }
0x2c3d   : > { %9270 = vmatprep.subr.bf16.mxu0 %v10159_v40 }
0x2c3e   : > { %v5502_v36 = vsel %vm1608_vm1, %v5501_v46, 0.0 }
0x2c3f   : > { %9249 = vmatpush3.bf16.msra.mxu1 %v10160_v42 }
0x2c40   : > { %9271 = vmatpush3.bf16.msra.mxu0 %v10161_v52 }
0x2c42   : > { %8044 = vmatmul.mubr.bf16.vlgmr.msra.gmra.mrb[140].mxu1 %v7767_v43 }
0x2c43   : > { %8084 = vmatmul.mubr.bf16.vlgmr.msra.gmra.mrb[132].mxu0 %v7769_v48 }
0x2cb5   : > { %v9118_v54 = vpop.f32.mrb[128].mxu1  ;;  %v9140_v60 = vpop.f32.mrb[120].mxu0 }
0x2cb6   : > { %v9119_v32 = vpop.f32.mrb[129].mxu1  ;;  %v9141_v26 = vpop.f32.mrb[121].mxu0 }
0x2cb7   : > { %v9120_v51 = vadd.f32 %v9119_v32, %v9118_v54  ;;  %v9142_v15 = vadd.f32 %v9141_v26, %v9140_v60  ;;  %v9121_v0 = vpop.f32.mrb[130].mxu1  ;;  %v9143_v35 = vpop.f32.mrb[122].mxu0  ;;  %v8722_v60 = vld [vmem:[%s12134_s7] ss:$0 sm:$0xff] }
0x2cb8   : > { %v9122_v50 = vpop.f32.mrb[131].mxu1  ;;  %v9144_v61 = vpop.f32.mrb[123].mxu0  ;;  %v8723_v26 = vld [vmem:[%s12135_s3] ss:$0 sm:$0xff] }
0x2cb9   : > { %v7806_v14 = vadd.f32 %v10162_v20, %v9120_v51 }
0x2cbb   : > { %v7846_v28 = vadd.f32 %v9142_v15, %v7806_v14 }
0x2cd5   : > { %v9162_v6 = vpop.f32.mrb[132].mxu1  ;;  %v9184_v7 = vpop.f32.mrb[124].mxu0 }
0x2cd6   : > { %v9163_v11 = vpop.f32.mrb[133].mxu1  ;;  %v9185_v19 = vpop.f32.mrb[125].mxu0 }
0x2cd7   : > { %v9164_v24 = vadd.f32 %v9163_v11, %v9162_v6  ;;  %v9186_v45 = vadd.f32 %v9185_v19, %v9184_v7  ;;  %v9165_v29 = vpop.f32.mrb[134].mxu1  ;;  %v9187_v23 = vpop.f32.mrb[126].mxu0 }
0x2cd8   : > { %v9166_v38 = vpop.f32.mrb[135].mxu1  ;;  %v9188_v16 = vpop.f32.mrb[127].mxu0 }
0x2cd9   : > { %v7886_v39 = vadd.f32 %v9164_v24, %v7846_v28 }
0x2cdb   : > { %v7926_v8 = vadd.f32 %v9186_v45, %v7886_v39 }
0x2cf5   : > { %v9206_v30 = vpop.f32.mrb[136].mxu1 }
0x2cf6   : > { %v9228_v18 = vpop.f32.mrb[128].mxu0  ;;  %v9207_v56 = vpop.f32.mrb[137].mxu1 }
0x2cf7   : > { %v9208_v47 = vadd.f32 %v9207_v56, %v9206_v30  ;;  %v9229_v53 = vpop.f32.mrb[129].mxu0  ;;  %v9209_v57 = vpop.f32.mrb[138].mxu1 }
0x2cf8   : > { %v9230_v63 = vadd.f32 %v9229_v53, %v9228_v18  ;;  %v9231_v31 = vpop.f32.mrb[130].mxu0  ;;  %v9210_v10 = vpop.f32.mrb[139].mxu1 }
0x2cf9   : > { %v7966_v62 = vadd.f32 %v9208_v47, %v7926_v8  ;;  %v9232_v27 = vpop.f32.mrb[131].mxu0 }
0x2cfb   : > { %v8006_v41 = vadd.f32 %v9230_v63, %v7966_v62  ;;  %v8778_v62 = vld [vmem:[%s12136_s15] ss:$0 sm:$0xff] (!%p8777_p5) }
0x2d15   : > { %v9250_v59 = vpop.f32.mrb[140].mxu1 }
0x2d16   : > { %v9272_v58 = vpop.f32.mrb[132].mxu0  ;;  %v9251_v4 = vpop.f32.mrb[141].mxu1 }
0x2d17   : > { %v9252_v25 = vadd.f32 %v9251_v4, %v9250_v59  ;;  %v9273_v5 = vpop.f32.mrb[133].mxu0  ;;  %v9253_v55 = vpop.f32.mrb[142].mxu1 }
0x2d18   : > { %v9274_v13 = vadd.f32 %v9273_v5, %v9272_v58  ;;  %v9275_v44 = vpop.f32.mrb[134].mxu0  ;;  %v9254_v33 = vpop.f32.mrb[143].mxu1  ;;  %v8780_v58 = vld [vmem:[%s12138_s9] ss:$0 sm:$0xff] (!%p8777_p5) }
0x2d19   : > { %v8046_v34 = vadd.f32 %v9252_v25, %v8006_v41  ;;  %v9276_v12 = vpop.f32.mrb[135].mxu0  ;;  %v8779_v41 = vld [vmem:[%s12137_s1] ss:$0 sm:$0xff] (!%p8777_p5) }
0x2d1b   : > { %v8086_v2 = vadd.f32 %v9274_v13, %v8046_v34  ;;  %v8781_v34 = vld [vmem:[#allocation3] ss:$0 sm:$0xff] (!%p8777_p5) }
0x2d1d   : > { %v8091_v3 = vadd.f32 %v8086_v2, %v11577_v9 }
0x2d1f   : > { %v8092_v22 = vsel %vm1608_vm1, %v8091_v3, 0.0 }
0x2d20   : > { %8093 = vadd.xlane.f32.xlu1 %v8092_v22 }
0x2d24   : > { %5503 = vadd.xlane.f32.xlu1 %v5502_v36 }
0x2dad   : > { %v8094_v37 = vpop.xlane.xlu1 %8093 }
0x2dae   : > { %v8095_v40 = vmul.f32 0.015625, %v8094_v37 }
0x2db0   : > { %v8096_v42 = vsub.f32 %v8091_v3, %v8095_v40 }
0x2db1   : > { %v5504_v43 = vpop.xlane.xlu1 %5503 }
0x2db2   : > { %v5505_v52 = vmul.f32 0.015625, %v5504_v43  ;;  %v8097_v48 = vmul.f32 %v8096_v42, %v8096_v42 }
0x2db4   : > { %v5506_v54 = vadd.f32 1e-05, %v5505_v52  ;;  %v8098_v1 = vsel %vm1608_vm1, %v8097_v48, 0.0 }
0x2db5   : > { %8099 = vadd.xlane.f32.xlu0 %v8098_v1 }
0x2db6   : > { %9998 = vrsqrt.f32 %v5506_v54 }
0x2dc0   : > { %v9999_v9 = vpop.eup %9998 }
0x2dc1   : > { %v5508_v32 = vmul.f32 %v9999_v9, %v5500_v21 }
0x2dc3   : > { %v5515_v51 = vmul.f32 %v8722_v60, %v5508_v32 }
0x2dc5   : > { %v5522_v15 = vadd.f32 %v8723_v26, %v5515_v51 }
0x2dc7   : > { %5523 = vst.msk [vmem:[#allocation2] sm:$0xff] %vm1608_vm1, %v5522_v15 }
0x2dce   : > { %v8114_v6 = vld [vmem:[#allocation2] sm:$0xff] (!%p8777_p5) }
0x2dcf   : > { %v8117_v11 = vsel (!%p8777_p5), %vm1608_vm1, %v8114_v6, 0.0 }
0x2dd0   : > { %8118 = vadd.xlane.f32.xlu0 (!%p8777_p5), %v8117_v11 }
0x2e42   : > { %v8100_v0 = vpop.xlane.xlu0 %8099 }
0x2e43   : > { %v8101_v35 = vmul.f32 0.015625, %v8100_v0 }
0x2e45   : > { %v8102_v50 = vadd.f32 1e-05, %v8101_v35 }
0x2e47   : > { %10000 = vrsqrt.f32 %v8102_v50 }
0x2e51   : > { %v10001_v61 = vpop.eup %10000 }
0x2e52   : > { %v8104_v20 = vmul.f32 %v10001_v61, %v8096_v42  ;;  %8111 = sbr.rel (%p8777_p5) target bundleno = 12333 (0x302d), region = 140 }
0x2e54   : > { %v8105_v14 = vmul.f32 %v8722_v60, %v8104_v20 }
0x2e56   : > { %v8106_v28 = vadd.f32 %v8723_v26, %v8105_v14 }
0x2e58   : > { %8107 = vst.msk [vmem:[#allocation2 + $0x8] sm:$0xff] %vm1608_vm1, %v8106_v28 }
0x2e5d   : > { %v8119_v24 = vpop.xlane.xlu0 %8118 }
0x2e5e   : > { %v8120_v45 = vmul.f32 0.015625, %v8119_v24 }
0x2e5f   : > { %v8163_v7 = vld [vmem:[#allocation2 + $0x8] sm:$0xff] }
0x2e60   : > { %v8166_v19 = vsel %vm1608_vm1, %v8163_v7, 0.0  ;;  %v8121_v29 = vsub.f32 %v8114_v6, %v8120_v45 }
0x2e61   : > { %8167 = vadd.xlane.f32.xlu0 %v8166_v19 }
0x2e62   : > { %v8122_v16 = vmul.f32 %v8121_v29, %v8121_v29 }
0x2e64   : > { %v8123_v8 = vsel %vm1608_vm1, %v8122_v16, 0.0 }
0x2e65   : > { %8124 = vadd.xlane.f32.xlu1 %v8123_v8 }
0x2eee   : > { %v8168_v23 = vpop.xlane.xlu0 %8167 }
0x2eef   : > { %v8169_v38 = vmul.f32 0.015625, %v8168_v23 }
0x2ef1   : > { %v8170_v39 = vsub.f32 %v8163_v7, %v8169_v38 }
0x2ef2   : > { %v8125_v56 = vpop.xlane.xlu1 %8124 }
0x2ef3   : > { %v8171_v30 = vmul.f32 %v8170_v39, %v8170_v39  ;;  %v8126_v47 = vmul.f32 0.015625, %v8125_v56 }
0x2ef5   : > { %v8172_v18 = vsel %vm1608_vm1, %v8171_v30, 0.0  ;;  %v8127_v53 = vadd.f32 1e-05, %v8126_v47 }
0x2ef6   : > { %8173 = vadd.xlane.f32.xlu1 %v8172_v18 }
0x2ef7   : > { %10163 = vrsqrt.f32 %v8127_v53 }
0x2f01   : > { %v10164_v10 = vpop.eup %10163 }
0x2f02   : > { %v8129_v27 = vmul.f32 %v10164_v10, %v8121_v29 }
0x2f04   : > { %v8136_v49 = vmul.f32 %v8778_v62, %v8129_v27 }
0x2f06   : > { %v8143_v4 = vadd.f32 %v8779_v41, %v8136_v49 }
0x2f08   : > { %v8150_v25 = vmul.f32 %v8780_v58, %v8143_v4 }
0x2f0a   : > { %v8151_v55 = vsel %vm1608_vm1, %v8150_v25, 0.0 }
0x2f0b   : > { %8152 = vadd.xlane.f32.xlu0 %v8151_v55 }
0x2f83   : > { %v8174_v57 = vpop.xlane.xlu1 %8173 }
0x2f84   : > { %v8175_v63 = vmul.f32 0.015625, %v8174_v57 }
0x2f86   : > { %v8176_v31 = vadd.f32 1e-05, %v8175_v63 }
0x2f88   : > { %10165 = vrsqrt.f32 %v8176_v31 }
0x2f92   : > { %v10166_v59 = vpop.eup %10165 }
0x2f93   : > { %v8178_v17 = vmul.f32 %v10166_v59, %v8170_v39 }
0x2f95   : > { %v8185_v5 = vmul.f32 %v8778_v62, %v8178_v17 }
0x2f97   : > { %v8192_v13 = vadd.f32 %v8779_v41, %v8185_v5 }
0x2f98   : > { %v8153_v12 = vpop.xlane.xlu0 %8152 }
0x2f99   : > { %v8193_v44 = vmul.f32 %v8780_v58, %v8192_v13  ;;  %v8160_v21 = vadd.f32 %v8781_v34, %v8153_v12 }
0x2f9b   : > { %v8194_v33 = vsel %vm1608_vm1, %v8193_v44, 0.0  ;;  %8162 = vst.msk [vmem:[%s12139_s2] sm:$0xff] %vm8161_vm10, %v8160_v21 }
0x2f9c   : > { %8195 = vadd.xlane.f32.xlu1 %v8194_v33 }
0x3029   : > { %v8196_v2 = vpop.xlane.xlu1 %8195 }
0x302a   : > { %v8197_v3 = vadd.f32 %v8781_v34, %v8196_v2 }
0x302c   : > { %8784 = vst.msk [vmem:[%s12139_s2 + $0x8] sm:$0xff] %vm8161_vm10, %v8197_v3 }
0x302d PF: > { %s12140_s28 = sld [smem:[#allocation4_spill]] }
0x3033   : > { %s40_s9 = sadd.s32 1, %s12140_s28  }
0x3034   : > { %p37_p6 = scmp.ge.s32.totalorder %s40_s9, 8  }
0x3036   :  { %39 = sbr.rel (!%p37_p6) target bundleno = 24 (0x18), region = 226 }

</bundles_post_ra>
